<compile_context>
chip_gen: v5e
topology: v5e:2x2
jax: 0.10.0
libtpu: 0.0.40
codegen_flags: <defaults>
</compile_context>

<pallas_src>
import jax
import jax.numpy as jnp
from jax import lax
from jax.experimental import pallas as pl
from jax.experimental.pallas import tpu as pltpu

EPS = 1e-5
_LANE = 128
_MIN_GRID_STEPS = 8        # keep both v7x TensorCores pipelined when there is enough work


# ---------------------------------------------------------------------------
# Generation-aware VMEM budget and tile sizing
# ---------------------------------------------------------------------------
def _vmem_capacity_bytes():
    """Physical per-core VMEM; conservative fallback if the query is unavailable."""
    try:
        info = pltpu.get_tpu_info()
        for name in ("vmem_capacity_bytes", "vmem_size_bytes", "vmem_bytes"):
            v = getattr(info, name, None)
            if isinstance(v, int) and v > 0:
                return v
    except Exception:
        pass
    return 64 * 1024 * 1024   # v7x per-TensorCore VMEM (smallest across v5e/v6e/v7x)


_VMEM_CAP = _vmem_capacity_bytes()
# ~45 MiB scoped on v7x (64 MiB physical), ~90 MiB on v5e/v6e (128 MiB physical).
_VMEM_LIMIT = int(min(_VMEM_CAP * 0.7, 96 * 1024 * 1024))


def _compiler_params():
    return pltpu.CompilerParams(
        dimension_semantics=("parallel",),
        vmem_limit_bytes=_VMEM_LIMIT,
    )


def _lane_bytes(n, itemsize):
    """Bytes one row occupies in VMEM once the lane axis is padded to 128."""
    return ((n + _LANE - 1) // _LANE) * _LANE * itemsize


def _row_cap(bytes_per_row):
    """Rows per block so double-buffered in+out blocks use <= ~1/2 of scoped VMEM."""
    cap = (_VMEM_LIMIT // 2) // max(1, 2 * bytes_per_row)
    return max(64, min(4096, (cap // 8) * 8))


def _pick_tile(m, cap):
    """Largest divisor of m that is <= cap, preferring multiples of 8."""
    cap = max(1, min(m, cap))
    best = None
    for t in range(cap, 0, -1):
        if m % t == 0:
            if t % 8 == 0:
                return t
            if best is None:
                best = t
    # TODO(synk): for awkward m, switch to pl.cdiv grids with a masked tail
    # (keeping out-of-bounds rows out of the sum/sumsq statistics).
    return best if best is not None else m


def _row_tile(m, vmem_cap_rows):
    cap = vmem_cap_rows
    # Only manufacture extra grid steps (v7x megacore) when tiles can stay >= 512
    # rows; measured sweeps show 512-row tiles already reach ~85% of HBM roofline.
    if m >= _MIN_GRID_STEPS * 512:
        cap = min(cap, m // _MIN_GRID_STEPS)
    return _pick_tile(m, cap)


# ---------------------------------------------------------------------------
# Kernels
# ---------------------------------------------------------------------------
def _conv1_kernel(x_ref, w1_ref, h1_ref, st_ref):
    # x_ref: (TM, Cin) f32; w1_ref: (Cin, P) bf16; h1 stored bf16 (halves HBM traffic).
    h = jnp.dot(x_ref[...].astype(jnp.bfloat16), w1_ref[...],
                preferred_element_type=jnp.float32)                  # (TM, P) f32
    h1_ref[...] = h.astype(h1_ref.dtype)
    s = jnp.sum(h, axis=0, keepdims=True)
    ss = jnp.sum(h * h, axis=0, keepdims=True)
    st_ref[...] = jnp.concatenate([s, ss], axis=1).reshape(st_ref.shape)


def _conv2_kernel(h1_ref, s1_ref, b1_ref, w2_ref, h2_ref, st_ref, pad_ref):
    # h1_ref: (1, H, W, P) bf16; s1/b1: (1, P) f32; w2_ref: (9, P, P) bf16
    # pad_ref: (H+2, W+2, P) bf16 per-sample halo scratch.
    _, H, W, P = h1_ref.shape

    # bn1 + relu in f32, then bf16 for the MXU (the matmul consumes bf16 anyway).
    h = h1_ref[0].astype(jnp.float32)
    h = jnp.maximum(h * s1_ref[...].reshape(1, 1, P)
                    + b1_ref[...].reshape(1, 1, P), 0.0)
    pad_ref[1:H + 1, 1:W + 1, :] = h.astype(jnp.bfloat16)

    # Zero the 1-pixel halo frame. Re-done every step on purpose: with a "parallel"
    # grid the steps may be sharded across TensorCores, so a one-time
    # @pl.when(program_id == 0) init would leave the other core's scratch frame
    # uninitialized.
    zrow = jnp.zeros((1, W + 2, P), jnp.bfloat16)
    zcol = jnp.zeros((H + 2, 1, P), jnp.bfloat16)
    pad_ref[0:1, :, :] = zrow
    pad_ref[H + 1:H + 2, :, :] = zrow
    pad_ref[:, 0:1, :] = zcol
    pad_ref[:, W + 1:W + 2, :] = zcol

    # 3x3 conv as 9 accumulated tap matmuls on shifted windows (no im2col concat).
    acc = jnp.zeros((H * W, P), jnp.float32)
    for tap in range(9):
        ky, kx = tap // 3, tap % 3
        win = pad_ref[ky:ky + H, kx:kx + W, :].reshape(H * W, P)     # bf16
        acc = acc + jnp.dot(win, w2_ref[tap], preferred_element_type=jnp.float32)

    h2_ref[...] = acc.reshape(1, H, W, P).astype(h2_ref.dtype)       # bf16 store
    s = jnp.sum(acc, axis=0, keepdims=True)
    ss = jnp.sum(acc * acc, axis=0, keepdims=True)
    st_ref[...] = jnp.concatenate([s, ss], axis=1).reshape(st_ref.shape)


def _conv3_kernel(h2_ref, s2_ref, b2_ref, w3_ref, h3_ref, st_ref):
    # h2_ref: (TM, P) bf16; bn2+relu in f32; h3 kept f32 for the residual path.
    h = jnp.maximum(h2_ref[...].astype(jnp.float32) * s2_ref[...] + b2_ref[...], 0.0)
    h3 = jnp.dot(h.astype(jnp.bfloat16), w3_ref[...],
                 preferred_element_type=jnp.float32)                 # (TM, 4P) f32
    h3_ref[...] = h3
    s = jnp.sum(h3, axis=0, keepdims=True)
    ss = jnp.sum(h3 * h3, axis=0, keepdims=True)
    st_ref[...] = jnp.concatenate([s, ss], axis=1).reshape(st_ref.shape)


def _bn3_residual_kernel(h3_ref, x_ref, s3_ref, b3_ref, out_ref):
    # Lane-dense (TR, W*C) blocks; scale/bias pre-tiled to (1, W*C). Pure VPU, f32.
    out_ref[...] = jnp.maximum(
        h3_ref[...] * s3_ref[...] + b3_ref[...] + x_ref[...], 0.0)


# ---------------------------------------------------------------------------
# Glue: fold BN (training-mode) statistics into one per-channel scale/bias
# ---------------------------------------------------------------------------
def _fold_bn(partials, count, gamma, beta):
    # partials: (G, 1, 2*C) with [sum | sum of squares] along the last axis.
    s = jnp.sum(partials.astype(jnp.float32), axis=(0, 1))           # (2*C,)
    c = s.shape[0] // 2
    mean = s[:c] / count
    var = jnp.maximum(s[c:] / count - mean * mean, 0.0)              # clamp cancellation
    scale = gamma.reshape(-1) * lax.rsqrt(var + EPS)
    bias = beta.reshape(-1) - mean * scale
    return (scale.reshape(1, -1).astype(jnp.float32),
            bias.reshape(1, -1).astype(jnp.float32))


# ---------------------------------------------------------------------------
# Forward pass
# ---------------------------------------------------------------------------
@jax.jit
def bottleneck_forward(x_nchw, params):
    """x_nchw: (N, Cin, H, W) f32, Cin == 4 * planes (stride=1, downsample=None)."""
    w1, g1, b1, w2_taps, g2, b2, w3, g3, b3 = params
    N, Cin, H, W = x_nchw.shape
    P = w1.shape[1]
    C4 = 4 * P
    assert Cin == C4, "downsample=None requires inplanes == planes * expansion"
    M = N * H * W

    # TODO(synk): accept/produce NHWC at the module boundary (or fold these two
    # transposes into call 1 / call 4) to avoid the extra HBM round trips of x/out.
    x_nhwc = jnp.transpose(x_nchw, (0, 2, 3, 1)).astype(jnp.float32)
    x2d = x_nhwc.reshape(M, Cin)

    # bf16 weights for the MXU (accumulation stays f32)
    w1_bf = w1.astype(jnp.bfloat16)
    w2_bf = w2_taps.astype(jnp.bfloat16)             # (9, P, P)
    w3_bf = w3.astype(jnp.bfloat16)

    cp = _compiler_params()

    # ---- call 1: conv1 (1x1) + partial BN1 stats ---------------------------
    TM1 = _row_tile(M, _row_cap(_lane_bytes(Cin, 4) + _lane_bytes(P, 2)))
    G1 = M // TM1
    h1, st1 = pl.pallas_call(
        _conv1_kernel,
        grid=(G1,),
        in_specs=[pl.BlockSpec((TM1, Cin), lambda i: (i, 0)),
                  pl.BlockSpec((Cin, P), lambda i: (0, 0))],
        out_specs=(pl.BlockSpec((TM1, P), lambda i: (i, 0)),
                   pl.BlockSpec((1, 1, 2 * P), lambda i: (i, 0, 0))),
        out_shape=(jax.ShapeDtypeStruct((M, P), jnp.bfloat16),
                   jax.ShapeDtypeStruct((G1, 1, 2 * P), jnp.float32)),
        compiler_params=cp,
        cost_estimate=pl.CostEstimate(
            flops=2 * M * Cin * P, transcendentals=0,
            bytes_accessed=4 * M * Cin + 2 * M * P + 2 * Cin * P),
    )(x2d, w1_bf)
    scale1, bias1 = _fold_bn(st1, M, g1, b1)

    # ---- call 2: bn1 + relu + conv2 (3x3, pad 1) + partial BN2 stats -------
    # One whole H x W image per grid step.
    # TODO(synk): for large H*W (or small N on v7x), tile rows with a 1-row halo
    # (grid=(N, H//TH)) to bound per-step VMEM and restore pipeline depth.
    h1_4d = h1.reshape(N, H, W, P)
    h2, st2 = pl.pallas_call(
        _conv2_kernel,
        grid=(N,),
        in_specs=[pl.BlockSpec((1, H, W, P), lambda n: (n, 0, 0, 0)),
                  pl.BlockSpec((1, P), lambda n: (0, 0)),
                  pl.BlockSpec((1, P), lambda n: (0, 0)),
                  pl.BlockSpec((9, P, P), lambda n: (0, 0, 0))],
        out_specs=(pl.BlockSpec((1, H, W, P), lambda n: (n, 0, 0, 0)),
                   pl.BlockSpec((1, 1, 2 * P), lambda n: (n, 0, 0))),
        out_shape=(jax.ShapeDtypeStruct((N, H, W, P), jnp.bfloat16),
                   jax.ShapeDtypeStruct((N, 1, 2 * P), jnp.float32)),
        scratch_shapes=[pltpu.VMEM((H + 2, W + 2, P), jnp.bfloat16)],
        compiler_params=cp,
        cost_estimate=pl.CostEstimate(
            flops=2 * M * 9 * P * P + 4 * M * P, transcendentals=0,
            bytes_accessed=4 * M * P + 2 * 9 * P * P),
    )(h1_4d, scale1, bias1, w2_bf)
    scale2, bias2 = _fold_bn(st2, M, g2, b2)

    # ---- call 3: bn2 + relu + conv3 (1x1) + partial BN3 stats --------------
    h2_2d = h2.reshape(M, P)
    TM3 = _row_tile(M, _row_cap(_lane_bytes(P, 2) + _lane_bytes(C4, 4)))
    G3 = M // TM3
    h3, st3 = pl.pallas_call(
        _conv3_kernel,
        grid=(G3,),
        in_specs=[pl.BlockSpec((TM3, P), lambda i: (i, 0)),
                  pl.BlockSpec((1, P), lambda i: (0, 0)),
                  pl.BlockSpec((1, P), lambda i: (0, 0)),
                  pl.BlockSpec((P, C4), lambda i: (0, 0))],
        out_specs=(pl.BlockSpec((TM3, C4), lambda i: (i, 0)),
                   pl.BlockSpec((1, 1, 2 * C4), lambda i: (i, 0, 0))),
        out_shape=(jax.ShapeDtypeStruct((M, C4), jnp.float32),
                   jax.ShapeDtypeStruct((G3, 1, 2 * C4), jnp.float32)),
        compiler_params=cp,
        cost_estimate=pl.CostEstimate(
            flops=2 * M * P * C4 + 4 * M * P, transcendentals=0,
            bytes_accessed=2 * M * P + 4 * M * C4 + 2 * P * C4),
    )(h2_2d, scale2, bias2, w3_bf)
    scale3, bias3 = _fold_bn(st3, M, g3, b3)

    # ---- call 4: bn3 + residual + relu (lane-dense output) -----------------
    NH = N * H
    WC = W * Cin                            # 256 at the test shape -> unmasked stores
    TR = _row_tile(NH, _row_cap(3 * _lane_bytes(WC, 4)))
    GR = NH // TR
    h3_ld = h3.reshape(NH, WC)              # free metadata reshapes (row-major layout)
    x_ld = x2d.reshape(NH, WC)              # residual re-read here, not kept live
    s3_t = jnp.tile(scale3, (1, W))         # per-channel scale/bias replicated over W
    b3_t = jnp.tile(bias3, (1, W))
    out_ld = pl.pallas_call(
        _bn3_residual_kernel,
        grid=(GR,),
        in_specs=[pl.BlockSpec((TR, WC), lambda i: (i, 0)),
                  pl.BlockSpec((TR, WC), lambda i: (i, 0)),
                  pl.BlockSpec((1, WC), lambda i: (0, 0)),
                  pl.BlockSpec((1, WC), lambda i: (0, 0))],
        out_specs=pl.BlockSpec((TR, WC), lambda i: (i, 0)),
        out_shape=jax.ShapeDtypeStruct((NH, WC), jnp.float32),
        compiler_params=cp,
        cost_estimate=pl.CostEstimate(
            flops=3 * M * Cin, transcendentals=0,
            bytes_accessed=12 * M * Cin),
    )(h3_ld, x_ld, s3_t, b3_t)

    out_nhwc = out_ld.reshape(N, H, W, Cin)
    return jnp.transpose(out_nhwc, (0, 3, 1, 2))  # back to NCHW


# ---------------------------------------------------------------------------
# Pure-JAX f32 reference (for correctness check)
# ---------------------------------------------------------------------------
def bottleneck_ref(x_nchw, params):
    w1, g1, b1, w2_taps, g2, b2, w3, g3, b3 = params
    P = w1.shape[1]
    x = jnp.transpose(x_nchw, (0, 2, 3, 1))  # NHWC

    def bn(h, g, b, relu):
        mean = h.mean(axis=(0, 1, 2), keepdims=True)
        var = ((h - mean) ** 2).mean(axis=(0, 1, 2), keepdims=True)
        h = (h - mean) / jnp.sqrt(var + EPS) * g.reshape(1, 1, 1, -1) \
            + b.reshape(1, 1, 1, -1)
        return jnp.maximum(h, 0.0) if relu else h

    h = jnp.einsum('nhwc,cp->nhwp', x, w1)
    h = bn(h, g1, b1, True)
    w2_hwio = w2_taps.reshape(3, 3, P, P)
    h = lax.conv_general_dilated(h, w2_hwio, (1, 1), 'SAME',
                                 dimension_numbers=('NHWC', 'HWIO', 'NHWC'))
    h = bn(h, g2, b2, True)
    h = jnp.einsum('nhwc,cp->nhwp', h, w3)
    h = bn(h, g3, b3, False)
    out = jnp.maximum(h + x, 0.0)
    return jnp.transpose(out, (0, 3, 1, 2))


if __name__ == "__main__":
    # Bottleneck(inplanes=16, planes=4, stride=1, downsample=None)
    N, H, W = 2, 16, 16
    planes = 4
    inplanes = planes * 4  # residual add requires inplanes == planes * expansion

    key = jax.random.PRNGKey(0)
    ks = jax.random.split(key, 10)

    x = jax.random.normal(ks[0], (N, inplanes, H, W), jnp.float32)

    w1 = 0.1 * jax.random.normal(ks[1], (inplanes, planes), jnp.float32)
    w2 = 0.1 * jax.random.normal(ks[2], (9, planes, planes), jnp.float32)
    w3 = 0.1 * jax.random.normal(ks[3], (planes, planes * 4), jnp.float32)

    g1 = 1.0 + 0.1 * jax.random.normal(ks[4], (1, planes), jnp.float32)
    b1 = 0.1 * jax.random.normal(ks[5], (1, planes), jnp.float32)
    g2 = 1.0 + 0.1 * jax.random.normal(ks[6], (1, planes), jnp.float32)
    b2 = 0.1 * jax.random.normal(ks[7], (1, planes), jnp.float32)
    g3 = 1.0 + 0.1 * jax.random.normal(ks[8], (1, planes * 4), jnp.float32)
    b3 = 0.1 * jax.random.normal(ks[9], (1, planes * 4), jnp.float32)

    params = (w1, g1, b1, w2, g2, b2, w3, g3, b3)

    out = jax.block_until_ready(bottleneck_forward(x, params))
    ref = jax.block_until_ready(bottleneck_ref(x, params))

    assert out.shape == (N, inplanes, H, W)
    # bf16 MXU operands + bf16-stored h1/h2 (f32 accumulation / BN / residual) vs. a
    # pure-f32 reference: BN3's 1/sigma can amplify a few e-3 of rounding, so allow 5e-2.
    err = float(jnp.max(jnp.abs(out - ref)))
    assert jnp.allclose(out, ref, atol=5e-2, rtol=5e-2), err

    print("KERNEL_OK")
</pallas_src>

<mosaic_0001>
module attributes {stable_mosaic.version = 11 : i64} {
  func.func @_conv1_kernel(%arg0: i32, %arg1: memref<512x16xf32, #tpu.memory_space<vmem>>, %arg2: memref<16x4xbf16, #tpu.memory_space<vmem>>, %arg3: memref<512x4xbf16, #tpu.memory_space<vmem>>, %arg4: memref<1x1x8xf32, #tpu.memory_space<vmem>>) attributes {dimension_semantics = [#tpu.dimension_semantics<parallel>], iteration_bounds = array<i64: 1>, scalar_prefetch = 0 : i64, scratch_operands = 0 : i64, tpu.core_type = #tpu.core_type<tc>, window_params = [{transform_indices = @transform_0, window_bounds = array<i64: 512, 16>}, {pipeline_mode = #tpu.pipeline_mode<synchronous>, transform_indices = @transform_1, window_bounds = array<i64: 16, 4>}, {transform_indices = @transform_2, window_bounds = array<i64: 512, 4>}, {transform_indices = @transform_3, window_bounds = array<i64: 1, 1, 8>}]} {
    %c0 = arith.constant 0 : index
    %c0_0 = arith.constant 0 : index
    %0 = vector.load %arg1[%c0, %c0_0] : memref<512x16xf32, #tpu.memory_space<vmem>>, vector<512x16xf32>
    %1 = arith.truncf %0 : vector<512x16xf32> to vector<512x16xbf16>
    %c0_1 = arith.constant 0 : index
    %c0_2 = arith.constant 0 : index
    %2 = vector.load %arg2[%c0_1, %c0_2] : memref<16x4xbf16, #tpu.memory_space<vmem>>, vector<16x4xbf16>
    %cst = arith.constant dense<0.000000e+00> : vector<512x4xf32>
    %3 = tpu.matmul %1, %2, %cst {dimension_numbers = #tpu.dot_dimension_numbers<[1], [0], [0], [1], [0, 0, 1, 1], [], []>} : vector<512x16xbf16>, vector<16x4xbf16>, vector<512x4xf32> -> vector<512x4xf32>
    %4 = arith.truncf %3 : vector<512x4xf32> to vector<512x4xbf16>
    %c0_3 = arith.constant 0 : index
    %c0_4 = arith.constant 0 : index
    %5 = vector.load %arg3[%c0_3, %c0_4] : memref<512x4xbf16, #tpu.memory_space<vmem>>, vector<512x4xbf16>
    tpu.vector_store %arg3[%c0_3, %c0_4], %4 {strides = array<i32>} : memref<512x4xbf16, #tpu.memory_space<vmem>>, vector<512x4xbf16>,
    %cst_5 = arith.constant dense<0.000000e+00> : vector<4xf32>
    %6 = vector.multi_reduction <add>, %3, %cst_5 [0] : vector<512x4xf32> to vector<4xf32>
    %7 = vector.shape_cast %6 : vector<4xf32> to vector<1x4xf32>
    %8 = arith.mulf %3, %3 : vector<512x4xf32>
    %cst_6 = arith.constant dense<0.000000e+00> : vector<4xf32>
    %9 = vector.multi_reduction <add>, %8, %cst_6 [0] : vector<512x4xf32> to vector<4xf32>
    %10 = vector.shape_cast %9 : vector<4xf32> to vector<1x4xf32>
    %11 = tpu.concatenate %7, %10 in 1 : vector<1x4xf32>, vector<1x4xf32> -> vector<1x8xf32>
    %12 = vector.shape_cast %11 : vector<1x8xf32> to vector<1x1x8xf32>
    %c0_7 = arith.constant 0 : index
    %c0_8 = arith.constant 0 : index
    %c0_9 = arith.constant 0 : index
    %13 = vector.load %arg4[%c0_7, %c0_8, %c0_9] : memref<1x1x8xf32, #tpu.memory_space<vmem>>, vector<1x1x8xf32>
    tpu.vector_store %arg4[%c0_7, %c0_8, %c0_9], %12 {strides = array<i32>} : memref<1x1x8xf32, #tpu.memory_space<vmem>>, vector<1x1x8xf32>,
    return
  }
  func.func @transform_0(%arg0: i32) -> (i32, i32) {
    %c0_i32 = arith.constant 0 : i32
    %c0_i32_0 = arith.constant 0 : i32
    return %arg0, %c0_i32 : i32, i32
  }
  func.func @transform_1(%arg0: i32) -> (i32, i32) {
    %c0_i32 = arith.constant 0 : i32
    %c0_i32_0 = arith.constant 0 : i32
    %c0_i32_1 = arith.constant 0 : i32
    return %c0_i32, %c0_i32_0 : i32, i32
  }
  func.func @transform_2(%arg0: i32) -> (i32, i32) {
    %c0_i32 = arith.constant 0 : i32
    %c0_i32_0 = arith.constant 0 : i32
    return %arg0, %c0_i32 : i32, i32
  }
  func.func @transform_3(%arg0: i32) -> (i32, i32, i32) {
    %c0_i32 = arith.constant 0 : i32
    %c0_i32_0 = arith.constant 0 : i32
    %c0_i32_1 = arith.constant 0 : i32
    return %arg0, %c0_i32, %c0_i32_0 : i32, i32, i32
  }
}

module attributes {stable_mosaic.version = 11 : i64} {
  func.func @_conv2_kernel(%arg0: i32, %arg1: memref<1x16x16x4xbf16, #tpu.memory_space<vmem>>, %arg2: memref<1x4xf32, #tpu.memory_space<vmem>>, %arg3: memref<1x4xf32, #tpu.memory_space<vmem>>, %arg4: memref<9x4x4xbf16, #tpu.memory_space<vmem>>, %arg5: memref<1x16x16x4xbf16, #tpu.memory_space<vmem>>, %arg6: memref<1x1x8xf32, #tpu.memory_space<vmem>>, %arg7: memref<18x18x4xbf16, #tpu.memory_space<vmem>>) attributes {dimension_semantics = [#tpu.dimension_semantics<parallel>], iteration_bounds = array<i64: 2>, scalar_prefetch = 0 : i64, scratch_operands = 1 : i64, tpu.core_type = #tpu.core_type<tc>, window_params = [{transform_indices = @transform_0, window_bounds = array<i64: 1, 16, 16, 4>}, {pipeline_mode = #tpu.pipeline_mode<synchronous>, transform_indices = @transform_1, window_bounds = array<i64: 1, 4>}, {pipeline_mode = #tpu.pipeline_mode<synchronous>, transform_indices = @transform_2, window_bounds = array<i64: 1, 4>}, {pipeline_mode = #tpu.pipeline_mode<synchronous>, transform_indices = @transform_3, window_bounds = array<i64: 9, 4, 4>}, {transform_indices = @transform_4, window_bounds = array<i64: 1, 16, 16, 4>}, {transform_indices = @transform_5, window_bounds = array<i64: 1, 1, 8>}]} {
    %c0 = arith.constant 0 : index
    %c0_0 = arith.constant 0 : index
    %c0_1 = arith.constant 0 : index
    %c0_2 = arith.constant 0 : index
    %0 = vector.load %arg1[%c0, %c0_0, %c0_1, %c0_2] : memref<1x16x16x4xbf16, #tpu.memory_space<vmem>>, vector<1x16x16x4xbf16>
    %1 = vector.shape_cast %0 : vector<1x16x16x4xbf16> to vector<16x16x4xbf16>
    %2 = arith.extf %1 : vector<16x16x4xbf16> to vector<16x16x4xf32>
    %c0_3 = arith.constant 0 : index
    %c0_4 = arith.constant 0 : index
    %3 = vector.load %arg2[%c0_3, %c0_4] : memref<1x4xf32, #tpu.memory_space<vmem>>, vector<1x4xf32>
    %4 = vector.shape_cast %3 : vector<1x4xf32> to vector<1x1x4xf32>
    %5 = vector.broadcast %4 : vector<1x1x4xf32> to vector<16x16x4xf32>
    %6 = arith.mulf %2, %5 : vector<16x16x4xf32>
    %c0_5 = arith.constant 0 : index
    %c0_6 = arith.constant 0 : index
    %7 = vector.load %arg3[%c0_5, %c0_6] : memref<1x4xf32, #tpu.memory_space<vmem>>, vector<1x4xf32>
    %8 = vector.shape_cast %7 : vector<1x4xf32> to vector<1x1x4xf32>
    %9 = vector.broadcast %8 : vector<1x1x4xf32> to vector<16x16x4xf32>
    %10 = arith.addf %6, %9 : vector<16x16x4xf32>
    %cst = arith.constant 0.000000e+00 : f32
    %11 = vector.broadcast %cst : f32 to vector<16x16x4xf32>
    %12 = arith.maximumf %10, %11 : vector<16x16x4xf32>
    %13 = arith.truncf %12 : vector<16x16x4xf32> to vector<16x16x4xbf16>
    %c1 = arith.constant 1 : index
    %c1_7 = arith.constant 1 : index
    %c0_8 = arith.constant 0 : index
    %14 = vector.load %arg7[%c1, %c1_7, %c0_8] : memref<18x18x4xbf16, #tpu.memory_space<vmem>>, vector<16x16x4xbf16>
    tpu.vector_store %arg7[%c1, %c1_7, %c0_8], %13 {strides = array<i32>} : memref<18x18x4xbf16, #tpu.memory_space<vmem>>, vector<16x16x4xbf16>,
    %cst_9 = arith.constant 0.000000e+00 : bf16
    %15 = vector.broadcast %cst_9 : bf16 to vector<1x18x4xbf16>
    %cst_10 = arith.constant 0.000000e+00 : bf16
    %16 = vector.broadcast %cst_10 : bf16 to vector<18x1x4xbf16>
    %c0_11 = arith.constant 0 : index
    %c0_12 = arith.constant 0 : index
    %c0_13 = arith.constant 0 : index
    %17 = vector.load %arg7[%c0_11, %c0_12, %c0_13] : memref<18x18x4xbf16, #tpu.memory_space<vmem>>, vector<1x18x4xbf16>
    tpu.vector_store %arg7[%c0_11, %c0_12, %c0_13], %15 {strides = array<i32>} : memref<18x18x4xbf16, #tpu.memory_space<vmem>>, vector<1x18x4xbf16>,
    %c17 = arith.constant 17 : index
    %c0_14 = arith.constant 0 : index
    %c0_15 = arith.constant 0 : index
    %18 = vector.load %arg7[%c17, %c0_14, %c0_15] : memref<18x18x4xbf16, #tpu.memory_space<vmem>>, vector<1x18x4xbf16>
    tpu.vector_store %arg7[%c17, %c0_14, %c0_15], %15 {strides = array<i32>} : memref<18x18x4xbf16, #tpu.memory_space<vmem>>, vector<1x18x4xbf16>,
    %c0_16 = arith.constant 0 : index
    %c0_17 = arith.constant 0 : index
    %c0_18 = arith.constant 0 : index
    %19 = vector.load %arg7[%c0_16, %c0_17, %c0_18] : memref<18x18x4xbf16, #tpu.memory_space<vmem>>, vector<18x1x4xbf16>
    tpu.vector_store %arg7[%c0_16, %c0_17, %c0_18], %16 {strides = array<i32>} : memref<18x18x4xbf16, #tpu.memory_space<vmem>>, vector<18x1x4xbf16>,
    %c0_19 = arith.constant 0 : index
    %c17_20 = arith.constant 17 : index
    %c0_21 = arith.constant 0 : index
    %20 = vector.load %arg7[%c0_19, %c17_20, %c0_21] : memref<18x18x4xbf16, #tpu.memory_space<vmem>>, vector<18x1x4xbf16>
    tpu.vector_store %arg7[%c0_19, %c17_20, %c0_21], %16 {strides = array<i32>} : memref<18x18x4xbf16, #tpu.memory_space<vmem>>, vector<18x1x4xbf16>,
    %cst_22 = arith.constant 0.000000e+00 : f32
    %21 = vector.broadcast %cst_22 : f32 to vector<256x4xf32>
    %c0_23 = arith.constant 0 : index
    %c0_24 = arith.constant 0 : index
    %c0_25 = arith.constant 0 : index
    %22 = vector.load %arg7[%c0_23, %c0_24, %c0_25] : memref<18x18x4xbf16, #tpu.memory_space<vmem>>, vector<16x16x4xbf16>
    %23 = vector.shape_cast %22 : vector<16x16x4xbf16> to vector<256x4xbf16>
    %c0_26 = arith.constant 0 : index
    %c0_27 = arith.constant 0 : index
    %c0_28 = arith.constant 0 : index
    %24 = vector.load %arg4[%c0_26, %c0_27, %c0_28] : memref<9x4x4xbf16, #tpu.memory_space<vmem>>, vector<1x4x4xbf16>
    %25 = vector.shape_cast %24 : vector<1x4x4xbf16> to vector<4x4xbf16>
    %cst_29 = arith.constant dense<0.000000e+00> : vector<256x4xf32>
    %26 = tpu.matmul %23, %25, %cst_29 {dimension_numbers = #tpu.dot_dimension_numbers<[1], [0], [0], [1], [0, 0, 1, 1], [], []>} : vector<256x4xbf16>, vector<4x4xbf16>, vector<256x4xf32> -> vector<256x4xf32>
    %27 = arith.addf %21, %26 : vector<256x4xf32>
    %c0_30 = arith.constant 0 : index
    %c1_31 = arith.constant 1 : index
    %c0_32 = arith.constant 0 : index
    %28 = vector.load %arg7[%c0_30, %c1_31, %c0_32] : memref<18x18x4xbf16, #tpu.memory_space<vmem>>, vector<16x16x4xbf16>
    %29 = vector.shape_cast %28 : vector<16x16x4xbf16> to vector<256x4xbf16>
    %c1_33 = arith.constant 1 : index
    %c0_34 = arith.constant 0 : index
    %c0_35 = arith.constant 0 : index
    %30 = vector.load %arg4[%c1_33, %c0_34, %c0_35] : memref<9x4x4xbf16, #tpu.memory_space<vmem>>, vector<1x4x4xbf16>
    %31 = vector.shape_cast %30 : vector<1x4x4xbf16> to vector<4x4xbf16>
    %cst_36 = arith.constant dense<0.000000e+00> : vector<256x4xf32>
    %32 = tpu.matmul %29, %31, %cst_36 {dimension_numbers = #tpu.dot_dimension_numbers<[1], [0], [0], [1], [0, 0, 1, 1], [], []>} : vector<256x4xbf16>, vector<4x4xbf16>, vector<256x4xf32> -> vector<256x4xf32>
    %33 = arith.addf %27, %32 : vector<256x4xf32>
    %c0_37 = arith.constant 0 : index
    %c2 = arith.constant 2 : index
    %c0_38 = arith.constant 0 : index
    %34 = vector.load %arg7[%c0_37, %c2, %c0_38] : memref<18x18x4xbf16, #tpu.memory_space<vmem>>, vector<16x16x4xbf16>
    %35 = vector.shape_cast %34 : vector<16x16x4xbf16> to vector<256x4xbf16>
    %c2_39 = arith.constant 2 : index
    %c0_40 = arith.constant 0 : index
    %c0_41 = arith.constant 0 : index
    %36 = vector.load %arg4[%c2_39, %c0_40, %c0_41] : memref<9x4x4xbf16, #tpu.memory_space<vmem>>, vector<1x4x4xbf16>
    %37 = vector.shape_cast %36 : vector<1x4x4xbf16> to vector<4x4xbf16>
    %cst_42 = arith.constant dense<0.000000e+00> : vector<256x4xf32>
    %38 = tpu.matmul %35, %37, %cst_42 {dimension_numbers = #tpu.dot_dimension_numbers<[1], [0], [0], [1], [0, 0, 1, 1], [], []>} : vector<256x4xbf16>, vector<4x4xbf16>, vector<256x4xf32> -> vector<256x4xf32>
    %39 = arith.addf %33, %38 : vector<256x4xf32>
    %c1_43 = arith.constant 1 : index
    %c0_44 = arith.constant 0 : index
    %c0_45 = arith.constant 0 : index
    %40 = vector.load %arg7[%c1_43, %c0_44, %c0_45] : memref<18x18x4xbf16, #tpu.memory_space<vmem>>, vector<16x16x4xbf16>
    %41 = vector.shape_cast %40 : vector<16x16x4xbf16> to vector<256x4xbf16>
    %c3 = arith.constant 3 : index
    %c0_46 = arith.constant 0 : index
    %c0_47 = arith.constant 0 : index
    %42 = vector.load %arg4[%c3, %c0_46, %c0_47] : memref<9x4x4xbf16, #tpu.memory_space<vmem>>, vector<1x4x4xbf16>
    %43 = vector.shape_cast %42 : vector<1x4x4xbf16> to vector<4x4xbf16>
    %cst_48 = arith.constant dense<0.000000e+00> : vector<256x4xf32>
    %44 = tpu.matmul %41, %43, %cst_48 {dimension_numbers = #tpu.dot_dimension_numbers<[1], [0], [0], [1], [0, 0, 1, 1], [], []>} : vector<256x4xbf16>, vector<4x4xbf16>, vector<256x4xf32> -> vector<256x4xf32>
    %45 = arith.addf %39, %44 : vector<256x4xf32>
    %c1_49 = arith.constant 1 : index
    %c1_50 = arith.constant 1 : index
    %c0_51 = arith.constant 0 : index
    %46 = vector.load %arg7[%c1_49, %c1_50, %c0_51] : memref<18x18x4xbf16, #tpu.memory_space<vmem>>, vector<16x16x4xbf16>
    %47 = vector.shape_cast %46 : vector<16x16x4xbf16> to vector<256x4xbf16>
    %c4 = arith.constant 4 : index
    %c0_52 = arith.constant 0 : index
    %c0_53 = arith.constant 0 : index
    %48 = vector.load %arg4[%c4, %c0_52, %c0_53] : memref<9x4x4xbf16, #tpu.memory_space<vmem>>, vector<1x4x4xbf16>
    %49 = vector.shape_cast %48 : vector<1x4x4xbf16> to vector<4x4xbf16>
    %cst_54 = arith.constant dense<0.000000e+00> : vector<256x4xf32>
    %50 = tpu.matmul %47, %49, %cst_54 {dimension_numbers = #tpu.dot_dimension_numbers<[1], [0], [0], [1], [0, 0, 1, 1], [], []>} : vector<256x4xbf16>, vector<4x4xbf16>, vector<256x4xf32> -> vector<256x4xf32>
    %51 = arith.addf %45, %50 : vector<256x4xf32>
    %c1_55 = arith.constant 1 : index
    %c2_56 = arith.constant 2 : index
    %c0_57 = arith.constant 0 : index
    %52 = vector.load %arg7[%c1_55, %c2_56, %c0_57] : memref<18x18x4xbf16, #tpu.memory_space<vmem>>, vector<16x16x4xbf16>
    %53 = vector.shape_cast %52 : vector<16x16x4xbf16> to vector<256x4xbf16>
    %c5 = arith.constant 5 : index
    %c0_58 = arith.constant 0 : index
    %c0_59 = arith.constant 0 : index
    %54 = vector.load %arg4[%c5, %c0_58, %c0_59] : memref<9x4x4xbf16, #tpu.memory_space<vmem>>, vector<1x4x4xbf16>
    %55 = vector.shape_cast %54 : vector<1x4x4xbf16> to vector<4x4xbf16>
    %cst_60 = arith.constant dense<0.000000e+00> : vector<256x4xf32>
    %56 = tpu.matmul %53, %55, %cst_60 {dimension_numbers = #tpu.dot_dimension_numbers<[1], [0], [0], [1], [0, 0, 1, 1], [], []>} : vector<256x4xbf16>, vector<4x4xbf16>, vector<256x4xf32> -> vector<256x4xf32>
    %57 = arith.addf %51, %56 : vector<256x4xf32>
    %c2_61 = arith.constant 2 : index
    %c0_62 = arith.constant 0 : index
    %c0_63 = arith.constant 0 : index
    %58 = vector.load %arg7[%c2_61, %c0_62, %c0_63] : memref<18x18x4xbf16, #tpu.memory_space<vmem>>, vector<16x16x4xbf16>
    %59 = vector.shape_cast %58 : vector<16x16x4xbf16> to vector<256x4xbf16>
    %c6 = arith.constant 6 : index
    %c0_64 = arith.constant 0 : index
    %c0_65 = arith.constant 0 : index
    %60 = vector.load %arg4[%c6, %c0_64, %c0_65] : memref<9x4x4xbf16, #tpu.memory_space<vmem>>, vector<1x4x4xbf16>
    %61 = vector.shape_cast %60 : vector<1x4x4xbf16> to vector<4x4xbf16>
    %cst_66 = arith.constant dense<0.000000e+00> : vector<256x4xf32>
    %62 = tpu.matmul %59, %61, %cst_66 {dimension_numbers = #tpu.dot_dimension_numbers<[1], [0], [0], [1], [0, 0, 1, 1], [], []>} : vector<256x4xbf16>, vector<4x4xbf16>, vector<256x4xf32> -> vector<256x4xf32>
    %63 = arith.addf %57, %62 : vector<256x4xf32>
    %c2_67 = arith.constant 2 : index
    %c1_68 = arith.constant 1 : index
    %c0_69 = arith.constant 0 : index
    %64 = vector.load %arg7[%c2_67, %c1_68, %c0_69] : memref<18x18x4xbf16, #tpu.memory_space<vmem>>, vector<16x16x4xbf16>
    %65 = vector.shape_cast %64 : vector<16x16x4xbf16> to vector<256x4xbf16>
    %c7 = arith.constant 7 : index
    %c0_70 = arith.constant 0 : index
    %c0_71 = arith.constant 0 : index
    %66 = vector.load %arg4[%c7, %c0_70, %c0_71] : memref<9x4x4xbf16, #tpu.memory_space<vmem>>, vector<1x4x4xbf16>
    %67 = vector.shape_cast %66 : vector<1x4x4xbf16> to vector<4x4xbf16>
    %cst_72 = arith.constant dense<0.000000e+00> : vector<256x4xf32>
    %68 = tpu.matmul %65, %67, %cst_72 {dimension_numbers = #tpu.dot_dimension_numbers<[1], [0], [0], [1], [0, 0, 1, 1], [], []>} : vector<256x4xbf16>, vector<4x4xbf16>, vector<256x4xf32> -> vector<256x4xf32>
    %69 = arith.addf %63, %68 : vector<256x4xf32>
    %c2_73 = arith.constant 2 : index
    %c2_74 = arith.constant 2 : index
    %c0_75 = arith.constant 0 : index
    %70 = vector.load %arg7[%c2_73, %c2_74, %c0_75] : memref<18x18x4xbf16, #tpu.memory_space<vmem>>, vector<16x16x4xbf16>
    %71 = vector.shape_cast %70 : vector<16x16x4xbf16> to vector<256x4xbf16>
    %c8 = arith.constant 8 : index
    %c0_76 = arith.constant 0 : index
    %c0_77 = arith.constant 0 : index
    %72 = vector.load %arg4[%c8, %c0_76, %c0_77] : memref<9x4x4xbf16, #tpu.memory_space<vmem>>, vector<1x4x4xbf16>
    %73 = vector.shape_cast %72 : vector<1x4x4xbf16> to vector<4x4xbf16>
    %cst_78 = arith.constant dense<0.000000e+00> : vector<256x4xf32>
    %74 = tpu.matmul %71, %73, %cst_78 {dimension_numbers = #tpu.dot_dimension_numbers<[1], [0], [0], [1], [0, 0, 1, 1], [], []>} : vector<256x4xbf16>, vector<4x4xbf16>, vector<256x4xf32> -> vector<256x4xf32>
    %75 = arith.addf %69, %74 : vector<256x4xf32>
    %76 = vector.shape_cast %75 : vector<256x4xf32> to vector<1x16x16x4xf32>
    %77 = arith.truncf %76 : vector<1x16x16x4xf32> to vector<1x16x16x4xbf16>
    %c0_79 = arith.constant 0 : index
    %c0_80 = arith.constant 0 : index
    %c0_81 = arith.constant 0 : index
    %c0_82 = arith.constant 0 : index
    %78 = vector.load %arg5[%c0_79, %c0_80, %c0_81, %c0_82] : memref<1x16x16x4xbf16, #tpu.memory_space<vmem>>, vector<1x16x16x4xbf16>
    tpu.vector_store %arg5[%c0_79, %c0_80, %c0_81, %c0_82], %77 {strides = array<i32>} : memref<1x16x16x4xbf16, #tpu.memory_space<vmem>>, vector<1x16x16x4xbf16>,
    %cst_83 = arith.constant dense<0.000000e+00> : vector<4xf32>
    %79 = vector.multi_reduction <add>, %75, %cst_83 [0] : vector<256x4xf32> to vector<4xf32>
    %80 = vector.shape_cast %79 : vector<4xf32> to vector<1x4xf32>
    %81 = arith.mulf %75, %75 : vector<256x4xf32>
    %cst_84 = arith.constant dense<0.000000e+00> : vector<4xf32>
    %82 = vector.multi_reduction <add>, %81, %cst_84 [0] : vector<256x4xf32> to vector<4xf32>
    %83 = vector.shape_cast %82 : vector<4xf32> to vector<1x4xf32>
    %84 = tpu.concatenate %80, %83 in 1 : vector<1x4xf32>, vector<1x4xf32> -> vector<1x8xf32>
    %85 = vector.shape_cast %84 : vector<1x8xf32> to vector<1x1x8xf32>
    %c0_85 = arith.constant 0 : index
    %c0_86 = arith.constant 0 : index
    %c0_87 = arith.constant 0 : index
    %86 = vector.load %arg6[%c0_85, %c0_86, %c0_87] : memref<1x1x8xf32, #tpu.memory_space<vmem>>, vector<1x1x8xf32>
    tpu.vector_store %arg6[%c0_85, %c0_86, %c0_87], %85 {strides = array<i32>} : memref<1x1x8xf32, #tpu.memory_space<vmem>>, vector<1x1x8xf32>,
    return
  }
  func.func @transform_0(%arg0: i32) -> (i32, i32, i32, i32) {
    %c0_i32 = arith.constant 0 : i32
    %c0_i32_0 = arith.constant 0 : i32
    %c0_i32_1 = arith.constant 0 : i32
    %c0_i32_2 = arith.constant 0 : i32
    return %arg0, %c0_i32, %c0_i32_0, %c0_i32_1 : i32, i32, i32, i32
  }
  func.func @transform_1(%arg0: i32) -> (i32, i32) {
    %c0_i32 = arith.constant 0 : i32
    %c0_i32_0 = arith.constant 0 : i32
    %c0_i32_1 = arith.constant 0 : i32
    return %c0_i32, %c0_i32_0 : i32, i32
  }
  func.func @transform_2(%arg0: i32) -> (i32, i32) {
    %c0_i32 = arith.constant 0 : i32
    %c0_i32_0 = arith.constant 0 : i32
    %c0_i32_1 = arith.constant 0 : i32
    return %c0_i32, %c0_i32_0 : i32, i32
  }
  func.func @transform_3(%arg0: i32) -> (i32, i32, i32) {
    %c0_i32 = arith.constant 0 : i32
    %c0_i32_0 = arith.constant 0 : i32
    %c0_i32_1 = arith.constant 0 : i32
    %c0_i32_2 = arith.constant 0 : i32
    return %c0_i32, %c0_i32_0, %c0_i32_1 : i32, i32, i32
  }
  func.func @transform_4(%arg0: i32) -> (i32, i32, i32, i32) {
    %c0_i32 = arith.constant 0 : i32
    %c0_i32_0 = arith.constant 0 : i32
    %c0_i32_1 = arith.constant 0 : i32
    %c0_i32_2 = arith.constant 0 : i32
    return %arg0, %c0_i32, %c0_i32_0, %c0_i32_1 : i32, i32, i32, i32
  }
  func.func @transform_5(%arg0: i32) -> (i32, i32, i32) {
    %c0_i32 = arith.constant 0 : i32
    %c0_i32_0 = arith.constant 0 : i32
    %c0_i32_1 = arith.constant 0 : i32
    return %arg0, %c0_i32, %c0_i32_0 : i32, i32, i32
  }
}

module attributes {stable_mosaic.version = 11 : i64} {
  func.func @_conv3_kernel(%arg0: i32, %arg1: memref<512x4xbf16, #tpu.memory_space<vmem>>, %arg2: memref<1x4xf32, #tpu.memory_space<vmem>>, %arg3: memref<1x4xf32, #tpu.memory_space<vmem>>, %arg4: memref<4x16xbf16, #tpu.memory_space<vmem>>, %arg5: memref<512x16xf32, #tpu.memory_space<vmem>>, %arg6: memref<1x1x32xf32, #tpu.memory_space<vmem>>) attributes {dimension_semantics = [#tpu.dimension_semantics<parallel>], iteration_bounds = array<i64: 1>, scalar_prefetch = 0 : i64, scratch_operands = 0 : i64, tpu.core_type = #tpu.core_type<tc>, window_params = [{transform_indices = @transform_0, window_bounds = array<i64: 512, 4>}, {pipeline_mode = #tpu.pipeline_mode<synchronous>, transform_indices = @transform_1, window_bounds = array<i64: 1, 4>}, {pipeline_mode = #tpu.pipeline_mode<synchronous>, transform_indices = @transform_2, window_bounds = array<i64: 1, 4>}, {pipeline_mode = #tpu.pipeline_mode<synchronous>, transform_indices = @transform_3, window_bounds = array<i64: 4, 16>}, {transform_indices = @transform_4, window_bounds = array<i64: 512, 16>}, {transform_indices = @transform_5, window_bounds = array<i64: 1, 1, 32>}]} {
    %c0 = arith.constant 0 : index
    %c0_0 = arith.constant 0 : index
    %0 = vector.load %arg1[%c0, %c0_0] : memref<512x4xbf16, #tpu.memory_space<vmem>>, vector<512x4xbf16>
    %1 = arith.extf %0 : vector<512x4xbf16> to vector<512x4xf32>
    %c0_1 = arith.constant 0 : index
    %c0_2 = arith.constant 0 : index
    %2 = vector.load %arg2[%c0_1, %c0_2] : memref<1x4xf32, #tpu.memory_space<vmem>>, vector<1x4xf32>
    %3 = vector.broadcast %2 : vector<1x4xf32> to vector<512x4xf32>
    %4 = arith.mulf %1, %3 : vector<512x4xf32>
    %c0_3 = arith.constant 0 : index
    %c0_4 = arith.constant 0 : index
    %5 = vector.load %arg3[%c0_3, %c0_4] : memref<1x4xf32, #tpu.memory_space<vmem>>, vector<1x4xf32>
    %6 = vector.broadcast %5 : vector<1x4xf32> to vector<512x4xf32>
    %7 = arith.addf %4, %6 : vector<512x4xf32>
    %cst = arith.constant 0.000000e+00 : f32
    %8 = vector.broadcast %cst : f32 to vector<512x4xf32>
    %9 = arith.maximumf %7, %8 : vector<512x4xf32>
    %10 = arith.truncf %9 : vector<512x4xf32> to vector<512x4xbf16>
    %c0_5 = arith.constant 0 : index
    %c0_6 = arith.constant 0 : index
    %11 = vector.load %arg4[%c0_5, %c0_6] : memref<4x16xbf16, #tpu.memory_space<vmem>>, vector<4x16xbf16>
    %cst_7 = arith.constant dense<0.000000e+00> : vector<512x16xf32>
    %12 = tpu.matmul %10, %11, %cst_7 {dimension_numbers = #tpu.dot_dimension_numbers<[1], [0], [0], [1], [0, 0, 1, 1], [], []>} : vector<512x4xbf16>, vector<4x16xbf16>, vector<512x16xf32> -> vector<512x16xf32>
    %c0_8 = arith.constant 0 : index
    %c0_9 = arith.constant 0 : index
    %13 = vector.load %arg5[%c0_8, %c0_9] : memref<512x16xf32, #tpu.memory_space<vmem>>, vector<512x16xf32>
    tpu.vector_store %arg5[%c0_8, %c0_9], %12 {strides = array<i32>} : memref<512x16xf32, #tpu.memory_space<vmem>>, vector<512x16xf32>,
    %cst_10 = arith.constant dense<0.000000e+00> : vector<16xf32>
    %14 = vector.multi_reduction <add>, %12, %cst_10 [0] : vector<512x16xf32> to vector<16xf32>
    %15 = vector.shape_cast %14 : vector<16xf32> to vector<1x16xf32>
    %16 = arith.mulf %12, %12 : vector<512x16xf32>
    %cst_11 = arith.constant dense<0.000000e+00> : vector<16xf32>
    %17 = vector.multi_reduction <add>, %16, %cst_11 [0] : vector<512x16xf32> to vector<16xf32>
    %18 = vector.shape_cast %17 : vector<16xf32> to vector<1x16xf32>
    %19 = tpu.concatenate %15, %18 in 1 : vector<1x16xf32>, vector<1x16xf32> -> vector<1x32xf32>
    %20 = vector.shape_cast %19 : vector<1x32xf32> to vector<1x1x32xf32>
    %c0_12 = arith.constant 0 : index
    %c0_13 = arith.constant 0 : index
    %c0_14 = arith.constant 0 : index
    %21 = vector.load %arg6[%c0_12, %c0_13, %c0_14] : memref<1x1x32xf32, #tpu.memory_space<vmem>>, vector<1x1x32xf32>
    tpu.vector_store %arg6[%c0_12, %c0_13, %c0_14], %20 {strides = array<i32>} : memref<1x1x32xf32, #tpu.memory_space<vmem>>, vector<1x1x32xf32>,
    return
  }
  func.func @transform_0(%arg0: i32) -> (i32, i32) {
    %c0_i32 = arith.constant 0 : i32
    %c0_i32_0 = arith.constant 0 : i32
    return %arg0, %c0_i32 : i32, i32
  }
  func.func @transform_1(%arg0: i32) -> (i32, i32) {
    %c0_i32 = arith.constant 0 : i32
    %c0_i32_0 = arith.constant 0 : i32
    %c0_i32_1 = arith.constant 0 : i32
    return %c0_i32, %c0_i32_0 : i32, i32
  }
  func.func @transform_2(%arg0: i32) -> (i32, i32) {
    %c0_i32 = arith.constant 0 : i32
    %c0_i32_0 = arith.constant 0 : i32
    %c0_i32_1 = arith.constant 0 : i32
    return %c0_i32, %c0_i32_0 : i32, i32
  }
  func.func @transform_3(%arg0: i32) -> (i32, i32) {
    %c0_i32 = arith.constant 0 : i32
    %c0_i32_0 = arith.constant 0 : i32
    %c0_i32_1 = arith.constant 0 : i32
    return %c0_i32, %c0_i32_0 : i32, i32
  }
  func.func @transform_4(%arg0: i32) -> (i32, i32) {
    %c0_i32 = arith.constant 0 : i32
    %c0_i32_0 = arith.constant 0 : i32
    return %arg0, %c0_i32 : i32, i32
  }
  func.func @transform_5(%arg0: i32) -> (i32, i32, i32) {
    %c0_i32 = arith.constant 0 : i32
    %c0_i32_0 = arith.constant 0 : i32
    %c0_i32_1 = arith.constant 0 : i32
    return %arg0, %c0_i32, %c0_i32_0 : i32, i32, i32
  }
}

module attributes {stable_mosaic.version = 11 : i64} {
  func.func @_bn3_residual_kernel(%arg0: i32, %arg1: memref<32x256xf32, #tpu.memory_space<vmem>>, %arg2: memref<32x256xf32, #tpu.memory_space<vmem>>, %arg3: memref<1x256xf32, #tpu.memory_space<vmem>>, %arg4: memref<1x256xf32, #tpu.memory_space<vmem>>, %arg5: memref<32x256xf32, #tpu.memory_space<vmem>>) attributes {dimension_semantics = [#tpu.dimension_semantics<parallel>], iteration_bounds = array<i64: 1>, scalar_prefetch = 0 : i64, scratch_operands = 0 : i64, tpu.core_type = #tpu.core_type<tc>, window_params = [{transform_indices = @transform_0, window_bounds = array<i64: 32, 256>}, {transform_indices = @transform_1, window_bounds = array<i64: 32, 256>}, {pipeline_mode = #tpu.pipeline_mode<synchronous>, transform_indices = @transform_2, window_bounds = array<i64: 1, 256>}, {pipeline_mode = #tpu.pipeline_mode<synchronous>, transform_indices = @transform_3, window_bounds = array<i64: 1, 256>}, {transform_indices = @transform_4, window_bounds = array<i64: 32, 256>}]} {
    %c0 = arith.constant 0 : index
    %c0_0 = arith.constant 0 : index
    %0 = vector.load %arg1[%c0, %c0_0] : memref<32x256xf32, #tpu.memory_space<vmem>>, vector<32x256xf32>
    %c0_1 = arith.constant 0 : index
    %c0_2 = arith.constant 0 : index
    %1 = vector.load %arg3[%c0_1, %c0_2] : memref<1x256xf32, #tpu.memory_space<vmem>>, vector<1x256xf32>
    %2 = vector.broadcast %1 : vector<1x256xf32> to vector<32x256xf32>
    %3 = arith.mulf %0, %2 : vector<32x256xf32>
    %c0_3 = arith.constant 0 : index
    %c0_4 = arith.constant 0 : index
    %4 = vector.load %arg4[%c0_3, %c0_4] : memref<1x256xf32, #tpu.memory_space<vmem>>, vector<1x256xf32>
    %5 = vector.broadcast %4 : vector<1x256xf32> to vector<32x256xf32>
    %6 = arith.addf %3, %5 : vector<32x256xf32>
    %c0_5 = arith.constant 0 : index
    %c0_6 = arith.constant 0 : index
    %7 = vector.load %arg2[%c0_5, %c0_6] : memref<32x256xf32, #tpu.memory_space<vmem>>, vector<32x256xf32>
    %8 = arith.addf %6, %7 : vector<32x256xf32>
    %cst = arith.constant 0.000000e+00 : f32
    %9 = vector.broadcast %cst : f32 to vector<32x256xf32>
    %10 = arith.maximumf %8, %9 : vector<32x256xf32>
    %c0_7 = arith.constant 0 : index
    %c0_8 = arith.constant 0 : index
    %11 = vector.load %arg5[%c0_7, %c0_8] : memref<32x256xf32, #tpu.memory_space<vmem>>, vector<32x256xf32>
    tpu.vector_store %arg5[%c0_7, %c0_8], %10 {strides = array<i32>} : memref<32x256xf32, #tpu.memory_space<vmem>>, vector<32x256xf32>,
    return
  }
  func.func @transform_0(%arg0: i32) -> (i32, i32) {
    %c0_i32 = arith.constant 0 : i32
    %c0_i32_0 = arith.constant 0 : i32
    return %arg0, %c0_i32 : i32, i32
  }
  func.func @transform_1(%arg0: i32) -> (i32, i32) {
    %c0_i32 = arith.constant 0 : i32
    %c0_i32_0 = arith.constant 0 : i32
    return %arg0, %c0_i32 : i32, i32
  }
  func.func @transform_2(%arg0: i32) -> (i32, i32) {
    %c0_i32 = arith.constant 0 : i32
    %c0_i32_0 = arith.constant 0 : i32
    %c0_i32_1 = arith.constant 0 : i32
    return %c0_i32, %c0_i32_0 : i32, i32
  }
  func.func @transform_3(%arg0: i32) -> (i32, i32) {
    %c0_i32 = arith.constant 0 : i32
    %c0_i32_0 = arith.constant 0 : i32
    %c0_i32_1 = arith.constant 0 : i32
    return %c0_i32, %c0_i32_0 : i32, i32
  }
  func.func @transform_4(%arg0: i32) -> (i32, i32) {
    %c0_i32 = arith.constant 0 : i32
    %c0_i32_0 = arith.constant 0 : i32
    return %arg0, %c0_i32 : i32, i32
  }
}

</mosaic_0001>

<bundles_post_ra>
// kernel: bottleneck_forward.7
= control target key start
LH: loop header
LB: loop body
LE: loop exit
PB: predicated region body
PF: predicated region fallthrough
CT: control target
= control target key end

     0   :  { %s192_s0 = inlined_call_operand.vmem [shape: f32[32,256], index: 0, kind: input, shape index: {}]   ;;  %s193_s1 = inlined_call_operand.vmem [shape: f32[32,256], index: 1, kind: input, shape index: {}]   ;;  %s194_s2 = inlined_call_operand.vmem [shape: f32[1,256], index: 2, kind: input, shape index: {}]   ;;  %s195_s3 = inlined_call_operand.vmem [shape: f32[1,256], index: 3, kind: input, shape index: {}]   ;;  %s196_s4 = inlined_call_operand.vmem [shape: f32[32,256], index: 4, kind: output, shape index: {}]  }
   0x1   :  { %v17_v0 = vld [vmem:[%s192_s0] sm:$0xff]  ;;  %v18_v5 = vld [vmem:[%s192_s0 + $0x8] sm:$0xff]  ;;  %v19_v9 = vld [vmem:[%s192_s0 + $0x10] sm:$0xff] }
   0x2   :  { %v25_v1 = vld [vmem:[%s194_s2] sm:$0x3]  ;;  %v54_v12 = vld [vmem:[%s193_s1 + $0x8] sm:$0xff]  ;;  %v20_v14 = vld [vmem:[%s192_s0 + $0x18] sm:$0xff] }
   0x3   :  { %v39_v2 = vld [vmem:[%s195_s3] sm:$0x3]  ;;  %v27_v3 = vperm.slane %v25_v1, 0  ;;  %v28_v6 = vperm.slane %v25_v1, 1  ;;  %v55_v16 = vld [vmem:[%s193_s1 + $0x10] sm:$0xff]  ;;  %v56_v18 = vld [vmem:[%s193_s1 + $0x18] sm:$0xff] }
   0x4   :  { %v41_v4 = vperm.slane %v39_v2, 0  ;;  %v42_v7 = vperm.slane %v39_v2, 1  ;;  %v53_v8 = vld [vmem:[%s193_s1] sm:$0xff]  ;;  %v22_v20 = vld [vmem:[%s192_s0 + $0x28] sm:$0xff]  ;;  %v23_v26 = vld [vmem:[%s192_s0 + $0x30] sm:$0xff] }
   0x5   :  { %v31_v10 = vmul.f32 %v27_v3, %v17_v0  ;;  %v32_v11 = vmul.f32 %v28_v6, %v18_v5  ;;  %v33_v13 = vmul.f32 %v27_v3, %v19_v9  ;;  %v21_v15 = vld [vmem:[%s192_s0 + $0x20] sm:$0xff]  ;;  %v34_v17 = vmul.f32 %v28_v6, %v20_v14  ;;  %v24_v27 = vld [vmem:[%s192_s0 + $0x38] sm:$0xff]  ;;  %v58_v30 = vld [vmem:[%s193_s1 + $0x28] sm:$0xff] }
   0x6   :  { %v35_v19 = vmul.f32 %v27_v3, %v21_v15  ;;  %v57_v24 = vld [vmem:[%s193_s1 + $0x20] sm:$0xff]  ;;  %v36_v25 = vmul.f32 %v28_v6, %v22_v20  ;;  %v37_v31 = vmul.f32 %v27_v3, %v23_v26  ;;  %v38_v32 = vmul.f32 %v28_v6, %v24_v27  ;;  %v59_v37 = vld [vmem:[%s193_s1 + $0x30] sm:$0xff]  ;;  %v60_v38 = vld [vmem:[%s193_s1 + $0x38] sm:$0xff] }
   0x7   :  { %v45_v21 = vadd.f32 %v41_v4, %v31_v10  ;;  %v46_v22 = vadd.f32 %v42_v7, %v32_v11  ;;  %v47_v23 = vadd.f32 %v41_v4, %v33_v13  ;;  %v48_v28 = vadd.f32 %v42_v7, %v34_v17 }
   0x8   :  { %v49_v29 = vadd.f32 %v41_v4, %v35_v19  ;;  %v50_v36 = vadd.f32 %v42_v7, %v36_v25  ;;  %v51_v41 = vadd.f32 %v41_v4, %v37_v31  ;;  %v52_v42 = vadd.f32 %v42_v7, %v38_v32 }
   0x9   :  { %v61_v33 = vadd.f32 %v53_v8, %v45_v21  ;;  %v62_v34 = vadd.f32 %v54_v12, %v46_v22  ;;  %v63_v35 = vadd.f32 %v55_v16, %v47_v23  ;;  %v64_v39 = vadd.f32 %v56_v18, %v48_v28 }
   0xa   :  { %v65_v40 = vadd.f32 %v57_v24, %v49_v29  ;;  %v66_v46 = vadd.f32 %v58_v30, %v50_v36  ;;  %v67_v48 = vadd.f32 %v59_v37, %v51_v41  ;;  %v68_v49 = vadd.f32 %v60_v38, %v52_v42 }
   0xb   :  { %v69_v43 = vmax.f32 %v61_v33, 0.0  ;;  %v70_v44 = vmax.f32 %v62_v34, 0.0  ;;  %v71_v45 = vmax.f32 %v63_v35, 0.0  ;;  %v72_v47 = vmax.f32 %v64_v39, 0.0 }
   0xc   :  { %v73_v50 = vmax.f32 %v65_v40, 0.0  ;;  %v74_v51 = vmax.f32 %v66_v46, 0.0  ;;  %v75_v52 = vmax.f32 %v67_v48, 0.0  ;;  %v76_v53 = vmax.f32 %v68_v49, 0.0 }
   0xd   :  { %77 = vst [vmem:[%s196_s4] sm:$0xff] %v69_v43 }
   0xe   :  { %78 = vst [vmem:[%s196_s4 + $0x8] sm:$0xff] %v70_v44 }
   0xf   :  { %79 = vst [vmem:[%s196_s4 + $0x10] sm:$0xff] %v71_v45 }
  0x10   :  { %80 = vst [vmem:[%s196_s4 + $0x18] sm:$0xff] %v72_v47 }
  0x11   :  { %81 = vst [vmem:[%s196_s4 + $0x20] sm:$0xff] %v73_v50 }
  0x12   :  { %82 = vst [vmem:[%s196_s4 + $0x28] sm:$0xff] %v74_v51 }
  0x13   :  { %83 = vst [vmem:[%s196_s4 + $0x30] sm:$0xff] %v75_v52 }
  0x14   :  { %84 = vst [vmem:[%s196_s4 + $0x38] sm:$0xff] %v76_v53 }

// kernel: bottleneck_forward.4
= control target key start
LH: loop header
LB: loop body
LE: loop exit
PB: predicated region body
PF: predicated region fallthrough
CT: control target
= control target key end

     0   :  { %vm118_vm0 = vcmask 130048   ;;  %vm448_vm1 = vcmask 27648   ;;  %vm513_vm2 = vcmask 31744   ;;  %vm849_vm3 = vcmask 57344   ;;  %s1910_s1 = inlined_call_operand.vmem [shape: bf16[16,4], index: 1, kind: input, shape index: {}]   ;;  %s1911_s0 = inlined_call_operand.vmem [shape: f32[512,16], index: 0, kind: input, shape index: {}]   ;;  %s1912_s2 = inlined_call_operand.vmem [shape: bf16[512,4], index: 2, kind: output, shape index: {0}]   ;;  %s1913_s3 = inlined_call_operand.vmem [shape: f32[1,1,8], index: 3, kind: output, shape index: {1}]  }
   0x1   :  { %v895_v0 = vld [vmem:[%s1910_s1] sm:$0xff]  ;;  %v15_v2 = vld [vmem:[%s1911_s0 + $0x8] sm:$0xff]  ;;  %v16_v7 = vld [vmem:[%s1911_s0 + $0x10] sm:$0xff] }
   0x2   :  { %v14_v1 = vld [vmem:[%s1911_s0] sm:$0xff]  ;;  %222 = vmatpush.bf16.msra.mxu0 %v895_v0  ;;  %896 = vmatpush.bf16.msra.mxu1 %v895_v0  ;;  %v31_v5 = vld [vmem:[%s1911_s0 + $0x88] sm:$0xff]  ;;  %v17_v8 = vld [vmem:[%s1911_s0 + $0x18] sm:$0xff] }
   0x3   :  { %v78_v3 = vpack.c.bf16 %v15_v2, %v14_v1  ;;  %v30_v4 = vld [vmem:[%s1911_s0 + $0x80] sm:$0xff]  ;;  %897 = vmatpush.bf16.msra.mxu2 %v895_v0  ;;  %898 = vmatpush.bf16.msra.mxu3 %v895_v0  ;;  %v32_v9 = vld [vmem:[%s1911_s0 + $0x90] sm:$0xff]  ;;  %v33_v10 = vld [vmem:[%s1911_s0 + $0x98] sm:$0xff]  ;;  %v79_v11 = vpack.c.bf16 %v17_v8, %v16_v7 }
   0x4   :  { %v86_v6 = vpack.c.bf16 %v31_v5, %v30_v4  ;;  %v87_v12 = vpack.c.bf16 %v33_v10, %v32_v9  ;;  %v46_v13 = vld [vmem:[%s1911_s0 + $0x100] sm:$0xff]  ;;  %v47_v14 = vld [vmem:[%s1911_s0 + $0x108] sm:$0xff]  ;;  %v48_v22 = vld [vmem:[%s1911_s0 + $0x110] sm:$0xff] }
   0x5   :  { %863 = vmatmul.msk.bf16.vlgmr.msra.gmra.mxu0 %vm118_vm0, %v78_v3  ;;  %v94_v15 = vpack.c.bf16 %v47_v14, %v46_v13  ;;  %v18_v16 = vld [vmem:[%s1911_s0 + $0x20] sm:$0xff]  ;;  %v19_v17 = vld [vmem:[%s1911_s0 + $0x28] sm:$0xff]  ;;  %v49_v23 = vld [vmem:[%s1911_s0 + $0x118] sm:$0xff] }
   0x6   :  { %871 = vmatmul.msk.bf16.vlgmr.msra.gmra.mxu1 %vm118_vm0, %v86_v6  ;;  %v34_v18 = vld [vmem:[%s1911_s0 + $0xa0] sm:$0xff]  ;;  %v35_v19 = vld [vmem:[%s1911_s0 + $0xa8] sm:$0xff]  ;;  %v80_v20 = vpack.c.bf16 %v19_v17, %v18_v16  ;;  %v95_v24 = vpack.c.bf16 %v49_v23, %v48_v22  ;;  %v20_v25 = vld [vmem:[%s1911_s0 + $0x30] sm:$0xff] }
   0x7   :  { %879 = vmatmul.msk.bf16.vlgmr.msra.gmra.mxu2 %vm118_vm0, %v94_v15  ;;  %v88_v21 = vpack.c.bf16 %v35_v19, %v34_v18  ;;  %v21_v26 = vld [vmem:[%s1911_s0 + $0x38] sm:$0xff]  ;;  %v36_v27 = vld [vmem:[%s1911_s0 + $0xb0] sm:$0xff]  ;;  %v50_v31 = vld [vmem:[%s1911_s0 + $0x120] sm:$0xff] }
   0x8   :  { %v37_v28 = vld [vmem:[%s1911_s0 + $0xb8] sm:$0xff]  ;;  %v81_v29 = vpack.c.bf16 %v21_v26, %v20_v25  ;;  %v51_v32 = vld [vmem:[%s1911_s0 + $0x128] sm:$0xff]  ;;  %v62_v33 = vld [vmem:[%s1911_s0 + $0x180] sm:$0xff] }
   0x9   :  { %v89_v30 = vpack.c.bf16 %v37_v28, %v36_v27  ;;  %v96_v34 = vpack.c.bf16 %v51_v32, %v50_v31  ;;  %v63_v35 = vld [vmem:[%s1911_s0 + $0x188] sm:$0xff]  ;;  %v22_v37 = vld [vmem:[%s1911_s0 + $0x40] sm:$0xff]  ;;  %v52_v43 = vld [vmem:[%s1911_s0 + $0x130] sm:$0xff] }
   0xa   :  { %v102_v36 = vpack.c.bf16 %v63_v35, %v62_v33  ;;  %v23_v38 = vld [vmem:[%s1911_s0 + $0x48] sm:$0xff]  ;;  %v38_v39 = vld [vmem:[%s1911_s0 + $0xc0] sm:$0xff]  ;;  %v53_v44 = vld [vmem:[%s1911_s0 + $0x138] sm:$0xff] }
   0xb   :  { %v39_v40 = vld [vmem:[%s1911_s0 + $0xc8] sm:$0xff]  ;;  %v82_v41 = vpack.c.bf16 %v23_v38, %v22_v37  ;;  %v64_v45 = vld [vmem:[%s1911_s0 + $0x190] sm:$0xff]  ;;  %v97_v46 = vpack.c.bf16 %v53_v44, %v52_v43  ;;  %v65_v47 = vld [vmem:[%s1911_s0 + $0x198] sm:$0xff] }
   0xc   :  { %887 = vmatmul.msk.bf16.vlgmr.msra.gmra.mxu3 %vm118_vm0, %v102_v36  ;;  %v90_v42 = vpack.c.bf16 %v39_v40, %v38_v39  ;;  %v103_v48 = vpack.c.bf16 %v65_v47, %v64_v45  ;;  %v24_v49 = vld [vmem:[%s1911_s0 + $0x50] sm:$0xff]  ;;  %v25_v50 = vld [vmem:[%s1911_s0 + $0x58] sm:$0xff]  ;;  %v54_v55 = vld [vmem:[%s1911_s0 + $0x140] sm:$0xff] }
   0xd   :  { %v40_v51 = vld [vmem:[%s1911_s0 + $0xd0] sm:$0xff]  ;;  %v41_v52 = vld [vmem:[%s1911_s0 + $0xd8] sm:$0xff]  ;;  %v83_v53 = vpack.c.bf16 %v25_v50, %v24_v49  ;;  %v55_v56 = vld [vmem:[%s1911_s0 + $0x148] sm:$0xff] }
   0xe   :  { %v91_v54 = vpack.c.bf16 %v41_v52, %v40_v51  ;;  %v66_v57 = vld [vmem:[%s1911_s0 + $0x1a0] sm:$0xff]  ;;  %v98_v58 = vpack.c.bf16 %v55_v56, %v54_v55  ;;  %v67_v59 = vld [vmem:[%s1911_s0 + $0x1a8] sm:$0xff]  ;;  %v56_v3 = vld [vmem:[%s1911_s0 + $0x150] sm:$0xff] }
   0xf   :  { %v104_v60 = vpack.c.bf16 %v67_v59, %v66_v57  ;;  %v26_v61 = vld [vmem:[%s1911_s0 + $0x60] sm:$0xff]  ;;  %v27_v62 = vld [vmem:[%s1911_s0 + $0x68] sm:$0xff]  ;;  %v57_v4 = vld [vmem:[%s1911_s0 + $0x158] sm:$0xff] }
  0x10   :  { %v42_v63 = vld [vmem:[%s1911_s0 + $0xe0] sm:$0xff]  ;;  %v43_v0 = vld [vmem:[%s1911_s0 + $0xe8] sm:$0xff]  ;;  %v84_v1 = vpack.c.bf16 %v27_v62, %v26_v61  ;;  %v68_v5 = vld [vmem:[%s1911_s0 + $0x1b0] sm:$0xff]  ;;  %v99_v6 = vpack.c.bf16 %v57_v4, %v56_v3 }
  0x11   :  { %v92_v2 = vpack.c.bf16 %v43_v0, %v42_v63  ;;  %v69_v7 = vld [vmem:[%s1911_s0 + $0x1b8] sm:$0xff]  ;;  %v28_v9 = vld [vmem:[%s1911_s0 + $0x70] sm:$0xff]  ;;  %v58_v15 = vld [vmem:[%s1911_s0 + $0x160] sm:$0xff] }
  0x12   :  { %v105_v8 = vpack.c.bf16 %v69_v7, %v68_v5  ;;  %v29_v10 = vld [vmem:[%s1911_s0 + $0x78] sm:$0xff]  ;;  %v59_v16 = vld [vmem:[%s1911_s0 + $0x168] sm:$0xff]  ;;  %v70_v17 = vld [vmem:[%s1911_s0 + $0x1c0] sm:$0xff] }
  0x13   :  { %v85_v13 = vpack.c.bf16 %v29_v10, %v28_v9  ;;  %v100_v18 = vpack.c.bf16 %v59_v16, %v58_v15  ;;  %v71_v19 = vld [vmem:[%s1911_s0 + $0x1c8] sm:$0xff]  ;;  %v60_v25 = vld [vmem:[%s1911_s0 + $0x170] sm:$0xff]  ;;  %v61_v26 = vld [vmem:[%s1911_s0 + $0x178] sm:$0xff] }
  0x14   :  { %v72_v27 = vld [vmem:[%s1911_s0 + $0x1d0] sm:$0xff]  ;;  %v101_v28 = vpack.c.bf16 %v61_v26, %v60_v25  ;;  %v74_v50 = vld [vmem:[%s1911_s0 + $0x1e0] sm:$0xff]  ;;  %v75_v51 = vld [vmem:[%s1911_s0 + $0x1e8] sm:$0xff] }
  0x15   :  { %864 = vmatmul.msk.bf16.gmra.mxu0 %vm118_vm0, %v79_v11  ;;  %v44_v11 = vld [vmem:[%s1911_s0 + $0xf0] sm:$0xff] }
  0x16   :  { %872 = vmatmul.msk.bf16.gmra.mxu1 %vm118_vm0, %v87_v12  ;;  %v45_v12 = vld [vmem:[%s1911_s0 + $0xf8] sm:$0xff] }
  0x17   :  { %880 = vmatmul.msk.bf16.gmra.mxu2 %vm118_vm0, %v95_v24  ;;  %v93_v14 = vpack.c.bf16 %v45_v12, %v44_v11  ;;  %v76_v11 = vld [vmem:[%s1911_s0 + $0x1f0] sm:$0xff]  ;;  %v77_v12 = vld [vmem:[%s1911_s0 + $0x1f8] sm:$0xff] }
  0x1c   :  { %888 = vmatmul.msk.bf16.gmra.mxu3 %vm118_vm0, %v103_v48 }
  0x25   :  { %865 = vmatmul.msk.bf16.gmra.mxu0 %vm118_vm0, %v80_v20  ;;  %v106_v20 = vpack.c.bf16 %v71_v19, %v70_v17 }
  0x26   :  { %873 = vmatmul.msk.bf16.gmra.mxu1 %vm118_vm0, %v88_v21 }
  0x27   :  { %881 = vmatmul.msk.bf16.gmra.mxu2 %vm118_vm0, %v96_v34 }
  0x2c   :  { %889 = vmatmul.msk.bf16.gmra.mxu3 %vm118_vm0, %v104_v60 }
  0x35   :  { %866 = vmatmul.msk.bf16.gmra.mxu0 %vm118_vm0, %v81_v29  ;;  %v73_v29 = vld [vmem:[%s1911_s0 + $0x1d8] sm:$0xff] }
  0x36   :  { %874 = vmatmul.msk.bf16.gmra.mxu1 %vm118_vm0, %v89_v30  ;;  %v107_v30 = vpack.c.bf16 %v73_v29, %v72_v27 }
  0x37   :  { %882 = vmatmul.msk.bf16.gmra.mxu2 %vm118_vm0, %v97_v46 }
  0x3c   :  { %890 = vmatmul.msk.bf16.gmra.mxu3 %vm118_vm0, %v105_v8 }
  0x45   :  { %867 = vmatmul.msk.bf16.gmra.mxu0 %vm118_vm0, %v82_v41 }
  0x46   :  { %875 = vmatmul.msk.bf16.gmra.mxu1 %vm118_vm0, %v90_v42 }
  0x47   :  { %883 = vmatmul.msk.bf16.gmra.mxu2 %vm118_vm0, %v98_v58 }
  0x4c   :  { %891 = vmatmul.msk.bf16.gmra.mxu3 %vm118_vm0, %v106_v20 }
  0x55   :  { %868 = vmatmul.msk.bf16.gmra.mxu0 %vm118_vm0, %v83_v53  ;;  %v108_v53 = vpack.c.bf16 %v75_v51, %v74_v50 }
  0x56   :  { %876 = vmatmul.msk.bf16.gmra.mxu1 %vm118_vm0, %v91_v54 }
  0x57   :  { %884 = vmatmul.msk.bf16.gmra.mxu2 %vm118_vm0, %v99_v6 }
  0x5c   :  { %892 = vmatmul.msk.bf16.gmra.mxu3 %vm118_vm0, %v107_v30 }
  0x65   :  { %869 = vmatmul.msk.bf16.gmra.mxu0 %vm118_vm0, %v84_v1 }
  0x66   :  { %877 = vmatmul.msk.bf16.gmra.mxu1 %vm118_vm0, %v92_v2 }
  0x67   :  { %885 = vmatmul.msk.bf16.gmra.mxu2 %vm118_vm0, %v100_v18 }
  0x6c   :  { %893 = vmatmul.msk.bf16.gmra.mxu3 %vm118_vm0, %v108_v53 }
  0x75   :  { %870 = vmatmul.msk.bf16.gmra.mxu0 %vm118_vm0, %v85_v13 }
  0x76   :  { %878 = vmatmul.msk.bf16.gmra.mxu1 %vm118_vm0, %v93_v14  ;;  %v109_v14 = vpack.c.bf16 %v77_v12, %v76_v11 }
  0x77   :  { %886 = vmatmul.msk.bf16.gmra.mxu2 %vm118_vm0, %v101_v28 }
  0x7c   :  { %894 = vmatmul.msk.bf16.gmra.mxu3 %vm118_vm0, %v109_v14 }
  0x82   :  { %v224_v21 = vpop.f32.mrf.mxu0 }
  0x83   :  { %v1120_v22 = vpop.f32.mrf.mxu1  ;;  %v384_v23 = vpack.c.bf16 %v224_v21, %v224_v21  ;;  %v647_v31 = vmul.f32 %v224_v21, %v224_v21  ;;  %v514_v32 = vsel %vm513_vm2, %v224_v21, 0.0 }
  0x84   :  { %v400_v24 = vpack.c.bf16 %v1120_v22, %v1120_v22 }
  0x85   :  { %449 = vst.msk [vmem:[%s1912_s2] sm:$0xf] %vm448_vm1, %v384_v23  ;;  %v711_v40 = vsel %vm513_vm2, %v647_v31, 0.0 }
  0x86   :  { %465 = vst.msk [vmem:[%s1912_s2 + $0x40] sm:$0xf] %vm448_vm1, %v400_v24 }
  0x8a   :  { %v226_v33 = vpop.f32.mrf.mxu0  ;;  %v1188_v61 = vpop.f32.mrf.mxu2 }
  0x8b   :  { %v1147_v34 = vpop.f32.mrf.mxu1  ;;  %v385_v35 = vpack.c.bf16 %v226_v33, %v226_v33  ;;  %v515_v36 = vsel %vm513_vm2, %v226_v33, 0.0  ;;  %v648_v37 = vmul.f32 %v226_v33, %v226_v33  ;;  %v416_v1 = vpack.c.bf16 %v1188_v61, %v1188_v61 }
  0x8c   :  { %v401_v38 = vpack.c.bf16 %v1147_v34, %v1147_v34  ;;  %v516_v39 = vadd.f32 %v515_v36, %v514_v32 }
  0x8d   :  { %450 = vst.msk [vmem:[%s1912_s2 + $0x4] sm:$0xf] %vm448_vm1, %v385_v35  ;;  %v712_v41 = vsel %vm513_vm2, %v648_v37, 0.0 }
  0x8e   :  { %v713_v42 = vadd.f32 %v712_v41, %v711_v40  ;;  %466 = vst.msk [vmem:[%s1912_s2 + $0x44] sm:$0xf] %vm448_vm1, %v401_v38 }
  0x8f   :  { %481 = vst.msk [vmem:[%s1912_s2 + $0x80] sm:$0xf] %vm448_vm1, %v416_v1  ;;  %v1300_v40 = vpop.f32.mrf.mxu3 }
  0x92   :  { %v229_v43 = vpop.f32.mrf.mxu0  ;;  %v1210_v8 = vpop.f32.mrf.mxu2 }
  0x93   :  { %v1162_v44 = vpop.f32.mrf.mxu1  ;;  %v386_v45 = vpack.c.bf16 %v229_v43, %v229_v43  ;;  %v517_v46 = vsel %vm513_vm2, %v229_v43, 0.0  ;;  %v649_v47 = vmul.f32 %v229_v43, %v229_v43  ;;  %v417_v10 = vpack.c.bf16 %v1210_v8, %v1210_v8 }
  0x94   :  { %v402_v48 = vpack.c.bf16 %v1162_v44, %v1162_v44  ;;  %v518_v49 = vadd.f32 %v517_v46, %v516_v39  ;;  %v432_v43 = vpack.c.bf16 %v1300_v40, %v1300_v40 }
  0x95   :  { %451 = vst.msk [vmem:[%s1912_s2 + $0x8] sm:$0xf] %vm448_vm1, %v386_v45  ;;  %v714_v52 = vsel %vm513_vm2, %v649_v47, 0.0 }
  0x96   :  { %v715_v54 = vadd.f32 %v714_v52, %v713_v42  ;;  %467 = vst.msk [vmem:[%s1912_s2 + $0x48] sm:$0xf] %vm448_vm1, %v402_v48 }
  0x97   :  { %482 = vst.msk [vmem:[%s1912_s2 + $0x84] sm:$0xf] %vm448_vm1, %v417_v10  ;;  %v1334_v51 = vpop.f32.mrf.mxu3 }
  0x98   :  { %497 = vst.msk [vmem:[%s1912_s2 + $0xc0] sm:$0xf] %vm448_vm1, %v432_v43 }
  0x9a   :  { %v231_v55 = vpop.f32.mrf.mxu0  ;;  %v1246_v21 = vpop.f32.mrf.mxu2 }
  0x9b   :  { %v1183_v56 = vpop.f32.mrf.mxu1  ;;  %v387_v57 = vpack.c.bf16 %v231_v55, %v231_v55  ;;  %v519_v58 = vsel %vm513_vm2, %v231_v55, 0.0  ;;  %v650_v59 = vmul.f32 %v231_v55, %v231_v55  ;;  %v418_v24 = vpack.c.bf16 %v1246_v21, %v1246_v21 }
  0x9c   :  { %v403_v60 = vpack.c.bf16 %v1183_v56, %v1183_v56  ;;  %v520_v62 = vadd.f32 %v519_v58, %v518_v49 }
  0x9d   :  { %452 = vst.msk [vmem:[%s1912_s2 + $0xc] sm:$0xf] %vm448_vm1, %v387_v57  ;;  %v716_v63 = vsel %vm513_vm2, %v650_v59, 0.0 }
  0x9e   :  { %v717_v0 = vadd.f32 %v716_v63, %v715_v54  ;;  %468 = vst.msk [vmem:[%s1912_s2 + $0x4c] sm:$0xf] %vm448_vm1, %v403_v60  ;;  %v433_v54 = vpack.c.bf16 %v1334_v51, %v1334_v51 }
  0x9f   :  { %483 = vst.msk [vmem:[%s1912_s2 + $0x88] sm:$0xf] %vm448_vm1, %v418_v24  ;;  %v1368_v63 = vpop.f32.mrf.mxu3 }
  0xa0   :  { %498 = vst.msk [vmem:[%s1912_s2 + $0xc4] sm:$0xf] %vm448_vm1, %v433_v54 }
  0xa2   :  { %v234_v2 = vpop.f32.mrf.mxu0  ;;  %v1272_v30 = vpop.f32.mrf.mxu2 }
  0xa3   :  { %v1205_v3 = vpop.f32.mrf.mxu1  ;;  %v388_v4 = vpack.c.bf16 %v234_v2, %v234_v2  ;;  %v521_v5 = vsel %vm513_vm2, %v234_v2, 0.0  ;;  %v651_v6 = vmul.f32 %v234_v2, %v234_v2  ;;  %v419_v32 = vpack.c.bf16 %v1272_v30, %v1272_v30 }
  0xa4   :  { %v404_v7 = vpack.c.bf16 %v1205_v3, %v1205_v3  ;;  %v522_v9 = vadd.f32 %v521_v5, %v520_v62  ;;  %v434_v2 = vpack.c.bf16 %v1368_v63, %v1368_v63 }
  0xa5   :  { %453 = vst.msk [vmem:[%s1912_s2 + $0x10] sm:$0xf] %vm448_vm1, %v388_v4  ;;  %v718_v13 = vsel %vm513_vm2, %v651_v6, 0.0 }
  0xa6   :  { %v1225_v15 = vadd.f32 %v718_v13, %v717_v0  ;;  %469 = vst.msk [vmem:[%s1912_s2 + $0x50] sm:$0xf] %vm448_vm1, %v404_v7 }
  0xa7   :  { %484 = vst.msk [vmem:[%s1912_s2 + $0x8c] sm:$0xf] %vm448_vm1, %v419_v32  ;;  %v1397_v11 = vpop.f32.mrf.mxu3 }
  0xa8   :  { %499 = vst.msk [vmem:[%s1912_s2 + $0xc8] sm:$0xf] %vm448_vm1, %v434_v2  ;;  %v435_v14 = vpack.c.bf16 %v1397_v11, %v1397_v11 }
  0xaa   :  { %v1236_v16 = vpop.f32.mrf.mxu0  ;;  %v1298_v39 = vpop.f32.mrf.mxu2  ;;  %500 = vst.msk [vmem:[%s1912_s2 + $0xcc] sm:$0xf] %vm448_vm1, %v435_v14 }
  0xab   :  { %v1238_v17 = vpop.f32.mrf.mxu1  ;;  %v389_v18 = vpack.c.bf16 %v1236_v16, %v1236_v16  ;;  %v523_v19 = vsel %vm513_vm2, %v1236_v16, 0.0  ;;  %v420_v42 = vpack.c.bf16 %v1298_v39, %v1298_v39 }
  0xac   :  { %v405_v20 = vpack.c.bf16 %v1238_v17, %v1238_v17  ;;  %v524_v23 = vadd.f32 %v523_v19, %v522_v9 }
  0xad   :  { %454 = vst.msk [vmem:[%s1912_s2 + $0x14] sm:$0xf] %vm448_vm1, %v389_v18 }
  0xae   :  { %470 = vst.msk [vmem:[%s1912_s2 + $0x54] sm:$0xf] %vm448_vm1, %v405_v20 }
  0xaf   :  { %485 = vst.msk [vmem:[%s1912_s2 + $0x90] sm:$0xf] %vm448_vm1, %v420_v42 }
  0xb2   :  { %v1262_v25 = vpop.f32.mrf.mxu0  ;;  %v1332_v50 = vpop.f32.mrf.mxu2 }
  0xb3   :  { %v1264_v26 = vpop.f32.mrf.mxu1  ;;  %v390_v27 = vpack.c.bf16 %v1262_v25, %v1262_v25  ;;  %v525_v28 = vsel %vm513_vm2, %v1262_v25, 0.0  ;;  %v421_v53 = vpack.c.bf16 %v1332_v50, %v1332_v50 }
  0xb4   :  { %v406_v29 = vpack.c.bf16 %v1264_v26, %v1264_v26  ;;  %v526_v31 = vadd.f32 %v525_v28, %v524_v23  ;;  %v1426_v28 = vpop.f32.mrf.mxu3 }
  0xb5   :  { %455 = vst.msk [vmem:[%s1912_s2 + $0x18] sm:$0xf] %vm448_vm1, %v390_v27 }
  0xb6   :  { %471 = vst.msk [vmem:[%s1912_s2 + $0x58] sm:$0xf] %vm448_vm1, %v406_v29 }
  0xb7   :  { %486 = vst.msk [vmem:[%s1912_s2 + $0x94] sm:$0xf] %vm448_vm1, %v421_v53 }
  0xba   :  { %v1288_v33 = vpop.f32.mrf.mxu0  ;;  %v1366_v62 = vpop.f32.mrf.mxu2 }
  0xbb   :  { %v1290_v35 = vpop.f32.mrf.mxu1  ;;  %v391_v36 = vpack.c.bf16 %v1288_v33, %v1288_v33  ;;  %v527_v37 = vsel %vm513_vm2, %v1288_v33, 0.0  ;;  %v422_v1 = vpack.c.bf16 %v1366_v62, %v1366_v62 }
  0xbc   :  { %v407_v38 = vpack.c.bf16 %v1290_v35, %v1290_v35  ;;  %v528_v41 = vadd.f32 %v527_v37, %v526_v31  ;;  %v1445_v43 = vpop.f32.mrf.mxu3 }
  0xbd   :  { %456 = vst.msk [vmem:[%s1912_s2 + $0x1c] sm:$0xf] %vm448_vm1, %v391_v36  ;;  %v652_v36 = vmul.f32 %v1236_v16, %v1236_v16  ;;  %v436_v16 = vpack.c.bf16 %v1426_v28, %v1426_v28 }
  0xbe   :  { %472 = vst.msk [vmem:[%s1912_s2 + $0x5c] sm:$0xf] %vm448_vm1, %v407_v38 }
  0xbf   :  { %487 = vst.msk [vmem:[%s1912_s2 + $0x98] sm:$0xf] %vm448_vm1, %v422_v1  ;;  %v720_v53 = vsel %vm513_vm2, %v652_v36, 0.0 }
  0xc0   :  { %501 = vst.msk [vmem:[%s1912_s2 + $0xd0] sm:$0xf] %vm448_vm1, %v436_v16 }
  0xc2   :  { %v1322_v45 = vpop.f32.mrf.mxu0  ;;  %v1395_v10 = vpop.f32.mrf.mxu2 }
  0xc3   :  { %v1324_v46 = vpop.f32.mrf.mxu1  ;;  %v392_v47 = vpack.c.bf16 %v1322_v45, %v1322_v45  ;;  %v529_v48 = vsel %vm513_vm2, %v1322_v45, 0.0  ;;  %v423_v13 = vpack.c.bf16 %v1395_v10, %v1395_v10 }
  0xc4   :  { %v408_v49 = vpack.c.bf16 %v1324_v46, %v1324_v46  ;;  %v530_v52 = vadd.f32 %v529_v48, %v528_v41 }
  0xc5   :  { %457 = vst.msk [vmem:[%s1912_s2 + $0x20] sm:$0xf] %vm448_vm1, %v392_v47 }
  0xc6   :  { %473 = vst.msk [vmem:[%s1912_s2 + $0x60] sm:$0xf] %vm448_vm1, %v408_v49  ;;  %v653_v49 = vmul.f32 %v1262_v25, %v1262_v25 }
  0xc7   :  { %488 = vst.msk [vmem:[%s1912_s2 + $0x9c] sm:$0xf] %vm448_vm1, %v423_v13 }
  0xc8   :  { %v722_v54 = vsel %vm513_vm2, %v653_v49, 0.0 }
  0xca   :  { %v1356_v55 = vpop.f32.mrf.mxu0  ;;  %v1424_v27 = vpop.f32.mrf.mxu2 }
  0xcb   :  { %v1358_v57 = vpop.f32.mrf.mxu1  ;;  %v393_v58 = vpack.c.bf16 %v1356_v55, %v1356_v55  ;;  %v531_v59 = vsel %vm513_vm2, %v1356_v55, 0.0  ;;  %v424_v48 = vpack.c.bf16 %v1424_v27, %v1424_v27 }
  0xcc   :  { %v409_v60 = vpack.c.bf16 %v1358_v57, %v1358_v57  ;;  %v532_v0 = vadd.f32 %v531_v59, %v530_v52  ;;  %v654_v52 = vmul.f32 %v1288_v33, %v1288_v33  ;;  %v437_v33 = vpack.c.bf16 %v1445_v43, %v1445_v43 }
  0xcd   :  { %458 = vst.msk [vmem:[%s1912_s2 + $0x24] sm:$0xf] %vm448_vm1, %v393_v58  ;;  %v655_v58 = vmul.f32 %v1322_v45, %v1322_v45  ;;  %v721_v59 = vadd.f32 %v720_v53, %v1225_v15  ;;  %v656_v45 = vmul.f32 %v1356_v55, %v1356_v55 }
  0xce   :  { %474 = vst.msk [vmem:[%s1912_s2 + $0x64] sm:$0xf] %vm448_vm1, %v409_v60  ;;  %v724_v60 = vsel %vm513_vm2, %v654_v52, 0.0 }
  0xcf   :  { %489 = vst.msk [vmem:[%s1912_s2 + $0xa0] sm:$0xf] %vm448_vm1, %v424_v48  ;;  %v726_v14 = vsel %vm513_vm2, %v655_v58, 0.0 }
  0xd0   :  { %502 = vst.msk [vmem:[%s1912_s2 + $0xd4] sm:$0xf] %vm448_vm1, %v437_v33 }
  0xd2   :  { %v249_v4 = vpop.f32.mrf.mxu0  ;;  %v1443_v42 = vpop.f32.mrf.mxu2 }
  0xd3   :  { %v1390_v5 = vpop.f32.mrf.mxu1  ;;  %v394_v6 = vpack.c.bf16 %v249_v4, %v249_v4  ;;  %v533_v7 = vsel %vm513_vm2, %v249_v4, 0.0  ;;  %v425_v25 = vpack.c.bf16 %v1443_v42, %v1443_v42 }
  0xd4   :  { %v410_v9 = vpack.c.bf16 %v1390_v5, %v1390_v5  ;;  %v534_v12 = vadd.f32 %v533_v7, %v532_v0 }
  0xd5   :  { %459 = vst.msk [vmem:[%s1912_s2 + $0x28] sm:$0xf] %vm448_vm1, %v394_v6 }
  0xd6   :  { %475 = vst.msk [vmem:[%s1912_s2 + $0x68] sm:$0xf] %vm448_vm1, %v410_v9  ;;  %v1498_v9 = vpop.f32.mrf.mxu3 }
  0xd7   :  { %490 = vst.msk [vmem:[%s1912_s2 + $0xa4] sm:$0xf] %vm448_vm1, %v425_v25 }
  0xda   :  { %v251_v18 = vpop.f32.mrf.mxu0  ;;  %v1496_v15 = vpop.f32.mrf.mxu2 }
  0xdb   :  { %v1419_v19 = vpop.f32.mrf.mxu1  ;;  %v395_v20 = vpack.c.bf16 %v251_v18, %v251_v18  ;;  %v535_v23 = vsel %vm513_vm2, %v251_v18, 0.0 }
  0xdc   :  { %v411_v24 = vpack.c.bf16 %v1419_v19, %v1419_v19  ;;  %v536_v29 = vadd.f32 %v535_v23, %v534_v12  ;;  %v723_v12 = vadd.f32 %v722_v54, %v721_v59  ;;  %v658_v23 = vmul.f32 %v251_v18, %v251_v18 }
  0xdd   :  { %460 = vst.msk [vmem:[%s1912_s2 + $0x2c] sm:$0xf] %vm448_vm1, %v395_v20  ;;  %v657_v20 = vmul.f32 %v249_v4, %v249_v4  ;;  %v438_v59 = vpack.c.bf16 %v1498_v9, %v1498_v9 }
  0xde   :  { %476 = vst.msk [vmem:[%s1912_s2 + $0x6c] sm:$0xf] %vm448_vm1, %v411_v24  ;;  %v725_v55 = vadd.f32 %v724_v60, %v723_v12  ;;  %v728_v24 = vsel %vm513_vm2, %v656_v45, 0.0  ;;  %v732_v4 = vsel %vm513_vm2, %v658_v23, 0.0  ;;  %v1519_v53 = vpop.f32.mrf.mxu3  ;;  %v663_v12 = vmul.f32 %v1120_v22, %v1120_v22 }
  0xdf   :  { %v730_v36 = vsel %vm513_vm2, %v657_v20, 0.0  ;;  %503 = vst.msk [vmem:[%s1912_s2 + $0xd8] sm:$0xf] %vm448_vm1, %v438_v59  ;;  %v549_v59 = vsel %vm513_vm2, %v1162_v44, 0.0 }
  0xe2   :  { %v254_v31 = vpop.f32.mrf.mxu0  ;;  %v1517_v52 = vpop.f32.mrf.mxu2 }
  0xe3   :  { %v1436_v32 = vpop.f32.mrf.mxu1  ;;  %v396_v37 = vpack.c.bf16 %v254_v31, %v254_v31  ;;  %v537_v38 = vsel %vm513_vm2, %v254_v31, 0.0  ;;  %v427_v45 = vpack.c.bf16 %v1517_v52, %v1517_v52 }
  0xe4   :  { %v412_v41 = vpack.c.bf16 %v1436_v32, %v1436_v32  ;;  %v538_v47 = vadd.f32 %v537_v38, %v536_v29  ;;  %v727_v29 = vadd.f32 %v726_v14, %v725_v55 }
  0xe5   :  { %461 = vst.msk [vmem:[%s1912_s2 + $0x30] sm:$0xf] %vm448_vm1, %v396_v37  ;;  %v659_v37 = vmul.f32 %v254_v31, %v254_v31  ;;  %v426_v31 = vpack.c.bf16 %v1496_v15, %v1496_v15 }
  0xe6   :  { %477 = vst.msk [vmem:[%s1912_s2 + $0x70] sm:$0xf] %vm448_vm1, %v412_v41  ;;  %v729_v38 = vadd.f32 %v728_v24, %v727_v29 }
  0xe7   :  { %v734_v54 = vsel %vm513_vm2, %v659_v37, 0.0  ;;  %491 = vst.msk [vmem:[%s1912_s2 + $0xa8] sm:$0xf] %vm448_vm1, %v426_v31  ;;  %v1565_v37 = vpop.f32.mrf.mxu3 }
  0xe8   :  { %v731_v25 = vadd.f32 %v730_v36, %v729_v38  ;;  %492 = vst.msk [vmem:[%s1912_s2 + $0xac] sm:$0xf] %vm448_vm1, %v427_v45 }
  0xea   :  { %v256_v0 = vpop.f32.mrf.mxu0  ;;  %v733_v60 = vadd.f32 %v732_v4, %v731_v25  ;;  %v1563_v36 = vpop.f32.mrf.mxu2 }
  0xeb   :  { %v1485_v1 = vpop.f32.mrf.mxu1  ;;  %v397_v2 = vpack.c.bf16 %v256_v0, %v256_v0  ;;  %v539_v6 = vsel %vm513_vm2, %v256_v0, 0.0  ;;  %v660_v48 = vmul.f32 %v256_v0, %v256_v0 }
  0xec   :  { %v413_v7 = vpack.c.bf16 %v1485_v1, %v1485_v1  ;;  %v540_v13 = vadd.f32 %v539_v6, %v538_v47  ;;  %v439_v6 = vpack.c.bf16 %v1519_v53, %v1519_v53 }
  0xed   :  { %462 = vst.msk [vmem:[%s1912_s2 + $0x34] sm:$0xf] %vm448_vm1, %v397_v2  ;;  %v736_v0 = vsel %vm513_vm2, %v660_v48, 0.0  ;;  %v735_v2 = vadd.f32 %v734_v54, %v733_v60  ;;  %v664_v48 = vmul.f32 %v1147_v34, %v1147_v34  ;;  %v666_v60 = vmul.f32 %v1183_v56, %v1183_v56 }
  0xee   :  { %478 = vst.msk [vmem:[%s1912_s2 + $0x74] sm:$0xf] %vm448_vm1, %v413_v7 }
  0xef   :  { %504 = vst.msk [vmem:[%s1912_s2 + $0xdc] sm:$0xf] %vm448_vm1, %v439_v6  ;;  %v551_v6 = vsel %vm513_vm2, %v1183_v56, 0.0  ;;  %v553_v56 = vsel %vm513_vm2, %v1205_v3, 0.0 }
  0xf2   :  { %v259_v41 = vpop.f32.mrf.mxu0 }
  0xf3   :  { %v1512_v47 = vpop.f32.mrf.mxu1  ;;  %v398_v49 = vpack.c.bf16 %v259_v41, %v259_v41  ;;  %v541_v18 = vsel %vm513_vm2, %v259_v41, 0.0  ;;  %v661_v58 = vmul.f32 %v259_v41, %v259_v41  ;;  %v545_v41 = vsel %vm513_vm2, %v1120_v22, 0.0 }
  0xf4   :  { %v414_v16 = vpack.c.bf16 %v1512_v47, %v1512_v47  ;;  %v542_v33 = vadd.f32 %v541_v18, %v540_v13  ;;  %v737_v13 = vadd.f32 %v736_v0, %v735_v2  ;;  %v665_v18 = vmul.f32 %v1162_v44, %v1162_v44  ;;  %v1599_v44 = vpop.f32.mrf.mxu2 }
  0xf5   :  { %463 = vst.msk [vmem:[%s1912_s2 + $0x38] sm:$0xf] %vm448_vm1, %v398_v49  ;;  %v738_v7 = vsel %vm513_vm2, %v661_v58, 0.0  ;;  %v742_v22 = vsel %vm513_vm2, %v663_v12, 0.0  ;;  %v744_v58 = vsel %vm513_vm2, %v664_v48, 0.0  ;;  %v440_v12 = vpack.c.bf16 %v1565_v37, %v1565_v37 }
  0xf6   :  { %479 = vst.msk [vmem:[%s1912_s2 + $0x78] sm:$0xf] %vm448_vm1, %v414_v16  ;;  %v739_v38 = vadd.f32 %v738_v7, %v737_v13  ;;  %v746_v0 = vsel %vm513_vm2, %v665_v18, 0.0  ;;  %v428_v7 = vpack.c.bf16 %v1563_v36, %v1563_v36  ;;  %v1601_v13 = vpop.f32.mrf.mxu3  ;;  %v555_v48 = vsel %vm513_vm2, %v1238_v17, 0.0 }
  0xf7   :  { %505 = vst.msk [vmem:[%s1912_s2 + $0xe0] sm:$0xf] %vm448_vm1, %v440_v12 }
  0xf8   :  { %493 = vst.msk [vmem:[%s1912_s2 + $0xb0] sm:$0xf] %vm448_vm1, %v428_v7 }
  0xfa   :  { %v261_v14 = vpop.f32.mrf.mxu0 }
  0xfb   :  { %v1554_v20 = vpop.f32.mrf.mxu1  ;;  %v399_v55 = vpack.c.bf16 %v261_v14, %v261_v14  ;;  %v543_v23 = vsel %vm513_vm2, %v261_v14, 0.0  ;;  %v662_v24 = vmul.f32 %v261_v14, %v261_v14 }
  0xfc   :  { %v415_v29 = vpack.c.bf16 %v1554_v20, %v1554_v20  ;;  %v544_v4 = vadd.f32 %v543_v23, %v542_v33  ;;  %v547_v33 = vsel %vm513_vm2, %v1147_v34, 0.0  ;;  %v667_v34 = vmul.f32 %v1205_v3, %v1205_v3 }
  0xfd   :  { %464 = vst.msk [vmem:[%s1912_s2 + $0x3c] sm:$0xf] %vm448_vm1, %v399_v55  ;;  %v740_v49 = vsel %vm513_vm2, %v662_v24, 0.0  ;;  %v748_v23 = vsel %vm513_vm2, %v666_v60, 0.0  ;;  %v668_v24 = vmul.f32 %v1238_v17, %v1238_v17  ;;  %v441_v3 = vpack.c.bf16 %v1601_v13, %v1601_v13  ;;  %v1643_v60 = vpop.f32.mrf.mxu2 }
  0xfe   :  { %v546_v16 = vadd.f32 %v545_v41, %v544_v4  ;;  %v741_v25 = vadd.f32 %v740_v49, %v739_v38  ;;  %480 = vst.msk [vmem:[%s1912_s2 + $0x7c] sm:$0xf] %vm448_vm1, %v415_v29  ;;  %v429_v29 = vpack.c.bf16 %v1599_v44, %v1599_v44  ;;  %v750_v41 = vsel %vm513_vm2, %v667_v34, 0.0 }
  0xff   :  { %v669_v49 = vmul.f32 %v1264_v26, %v1264_v26  ;;  %506 = vst.msk [vmem:[%s1912_s2 + $0xe4] sm:$0xf] %vm448_vm1, %v441_v3  ;;  %v557_v17 = vsel %vm513_vm2, %v1264_v26, 0.0  ;;  %v672_v34 = vmul.f32 %v1358_v57, %v1358_v57 }
 0x100   :  { %v548_v31 = vadd.f32 %v547_v33, %v546_v16  ;;  %v743_v54 = vadd.f32 %v742_v22, %v741_v25  ;;  %494 = vst.msk [vmem:[%s1912_s2 + $0xb4] sm:$0xf] %vm448_vm1, %v429_v29  ;;  %v752_v25 = vsel %vm513_vm2, %v668_v24, 0.0  ;;  %v670_v22 = vmul.f32 %v1290_v35, %v1290_v35 }
 0x101   :  { %v760_v24 = vsel %vm513_vm2, %v672_v34, 0.0  ;;  %v674_v29 = vmul.f32 %v1419_v19, %v1419_v19  ;;  %v678_v34 = vmul.f32 %v1554_v20, %v1554_v20 }
 0x102   :  { %v550_v45 = vadd.f32 %v549_v59, %v548_v31  ;;  %v745_v2 = vadd.f32 %v744_v58, %v743_v54  ;;  %v754_v54 = vsel %vm513_vm2, %v669_v49, 0.0  ;;  %v559_v58 = vsel %vm513_vm2, %v1290_v35, 0.0 }
 0x103   :  { %v671_v59 = vmul.f32 %v1324_v46, %v1324_v46  ;;  %v756_v26 = vsel %vm513_vm2, %v670_v22, 0.0  ;;  %v673_v35 = vmul.f32 %v1390_v5, %v1390_v5  ;;  %v676_v22 = vmul.f32 %v1485_v1, %v1485_v1 }
 0x104   :  { %v552_v14 = vadd.f32 %v551_v6, %v550_v45  ;;  %v747_v55 = vadd.f32 %v746_v0, %v745_v2  ;;  %v1645_v0 = vpop.f32.mrf.mxu3  ;;  %v561_v6 = vsel %vm513_vm2, %v1324_v46, 0.0  ;;  %v565_v46 = vsel %vm513_vm2, %v1390_v5, 0.0 }
 0x105   :  { %v442_v49 = vpack.c.bf16 %v1645_v0, %v1645_v0  ;;  %v1671_v5 = vpop.f32.mrf.mxu2 }
 0x106   :  { %v554_v38 = vadd.f32 %v553_v56, %v552_v14  ;;  %v749_v4 = vadd.f32 %v748_v23, %v747_v55  ;;  %v758_v14 = vsel %vm513_vm2, %v671_v59, 0.0  ;;  %v563_v55 = vsel %vm513_vm2, %v1358_v57, 0.0 }
 0x107   :  { %v675_v57 = vmul.f32 %v1436_v32, %v1436_v32  ;;  %507 = vst.msk [vmem:[%s1912_s2 + $0xe8] sm:$0xf] %vm448_vm1, %v442_v49  ;;  %v571_v59 = vsel %vm513_vm2, %v1485_v1, 0.0  ;;  %v573_v1 = vsel %vm513_vm2, %v1512_v47, 0.0 }
 0x108   :  { %v556_v18 = vadd.f32 %v555_v48, %v554_v38  ;;  %v751_v16 = vadd.f32 %v750_v41, %v749_v4  ;;  %v762_v38 = vsel %vm513_vm2, %v673_v35, 0.0  ;;  %v567_v41 = vsel %vm513_vm2, %v1419_v19, 0.0 }
 0x109   :  { %v430_v48 = vpack.c.bf16 %v1643_v60, %v1643_v60  ;;  %v569_v19 = vsel %vm513_vm2, %v1436_v32, 0.0 }
 0x10a   :  { %v753_v33 = vadd.f32 %v752_v25, %v751_v16  ;;  %v558_v31 = vadd.f32 %v557_v17, %v556_v18  ;;  %v764_v17 = vsel %vm513_vm2, %v674_v29, 0.0  ;;  %v772_v29 = vsel %vm513_vm2, %v678_v34, 0.0 }
 0x10b   :  { %495 = vst.msk [vmem:[%s1912_s2 + $0xb8] sm:$0xf] %vm448_vm1, %v430_v48 }
 0x10c   :  { %v560_v45 = vadd.f32 %v559_v58, %v558_v31  ;;  %v755_v2 = vadd.f32 %v754_v54, %v753_v33  ;;  %v1673_v18 = vpop.f32.mrf.mxu3  ;;  %v431_v33 = vpack.c.bf16 %v1671_v5, %v1671_v5  ;;  %v766_v58 = vsel %vm513_vm2, %v675_v57, 0.0 }
 0x10d   :  { %v443_v32 = vpack.c.bf16 %v1673_v18, %v1673_v18 }
 0x10e   :  { %v562_v7 = vadd.f32 %v561_v6, %v560_v45  ;;  %v757_v12 = vadd.f32 %v756_v26, %v755_v2  ;;  %v677_v45 = vmul.f32 %v1512_v47, %v1512_v47  ;;  %496 = vst.msk [vmem:[%s1912_s2 + $0xbc] sm:$0xf] %vm448_vm1, %v431_v33  ;;  %v768_v6 = vsel %vm513_vm2, %v676_v22, 0.0 }
 0x10f   :  { %508 = vst.msk [vmem:[%s1912_s2 + $0xec] sm:$0xf] %vm448_vm1, %v443_v32  ;;  %v577_v47 = vsel %vm513_vm2, %v1188_v61, 0.0  ;;  %v683_v22 = vmul.f32 %v1298_v39, %v1298_v39 }
 0x110   :  { %v564_v23 = vadd.f32 %v563_v55, %v562_v7  ;;  %v759_v56 = vadd.f32 %v758_v14, %v757_v12  ;;  %v679_v12 = vmul.f32 %v1188_v61, %v1188_v61  ;;  %v770_v14 = vsel %vm513_vm2, %v677_v45, 0.0 }
 0x111   :  { %v575_v55 = vsel %vm513_vm2, %v1554_v20, 0.0  ;;  %v681_v20 = vmul.f32 %v1246_v21, %v1246_v21  ;;  %v581_v61 = vsel %vm513_vm2, %v1246_v21, 0.0 }
 0x112   :  { %v566_v4 = vadd.f32 %v565_v46, %v564_v23  ;;  %v761_v3 = vadd.f32 %v760_v24, %v759_v56  ;;  %v680_v46 = vmul.f32 %v1210_v8, %v1210_v8 }
 0x114   :  { %v568_v16 = vadd.f32 %v567_v41, %v566_v4  ;;  %v763_v25 = vadd.f32 %v762_v38, %v761_v3  ;;  %v1715_v23 = vpop.f32.mrf.mxu3  ;;  %v774_v3 = vsel %vm513_vm2, %v679_v12, 0.0  ;;  %v579_v41 = vsel %vm513_vm2, %v1210_v8, 0.0 }
 0x115   :  { %v776_v49 = vsel %vm513_vm2, %v680_v46, 0.0  ;;  %v583_v8 = vsel %vm513_vm2, %v1272_v30, 0.0  ;;  %v444_v33 = vpack.c.bf16 %v1715_v23, %v1715_v23  ;;  %v686_v12 = vmul.f32 %v1395_v10, %v1395_v10 }
 0x116   :  { %v570_v31 = vadd.f32 %v569_v19, %v568_v16  ;;  %v765_v54 = vadd.f32 %v764_v17, %v763_v25  ;;  %v682_v16 = vmul.f32 %v1272_v30, %v1272_v30  ;;  %v778_v19 = vsel %vm513_vm2, %v681_v20, 0.0 }
 0x117   :  { %v684_v30 = vmul.f32 %v1332_v50, %v1332_v50  ;;  %509 = vst.msk [vmem:[%s1912_s2 + $0xf0] sm:$0xf] %vm448_vm1, %v444_v33 }
 0x118   :  { %v767_v2 = vadd.f32 %v766_v58, %v765_v54  ;;  %v572_v26 = vadd.f32 %v571_v59, %v570_v31  ;;  %v780_v58 = vsel %vm513_vm2, %v682_v16, 0.0  ;;  %v585_v59 = vsel %vm513_vm2, %v1298_v39, 0.0 }
 0x119   :  { %v587_v39 = vsel %vm513_vm2, %v1332_v50, 0.0  ;;  %v591_v50 = vsel %vm513_vm2, %v1395_v10, 0.0  ;;  %v595_v10 = vsel %vm513_vm2, %v1443_v42, 0.0  ;;  %v690_v16 = vmul.f32 %v1517_v52, %v1517_v52 }
 0x11a   :  { %v769_v35 = vadd.f32 %v768_v6, %v767_v2  ;;  %v574_v7 = vadd.f32 %v573_v1, %v572_v26  ;;  %v782_v26 = vsel %vm513_vm2, %v683_v22, 0.0  ;;  %v685_v6 = vmul.f32 %v1366_v62, %v1366_v62 }
 0x11c   :  { %v771_v56 = vadd.f32 %v770_v14, %v769_v35  ;;  %v576_v24 = vadd.f32 %v575_v55, %v574_v7  ;;  %v1739_v31 = vpop.f32.mrf.mxu3  ;;  %v784_v35 = vsel %vm513_vm2, %v684_v30, 0.0  ;;  %v589_v7 = vsel %vm513_vm2, %v1366_v62, 0.0 }
 0x11d   :  { %v445_v32 = vpack.c.bf16 %v1739_v31, %v1739_v31  ;;  %v593_v62 = vsel %vm513_vm2, %v1424_v27, 0.0 }
 0x11e   :  { %v578_v38 = vadd.f32 %v577_v47, %v576_v24  ;;  %v773_v4 = vadd.f32 %v772_v29, %v771_v56  ;;  %v786_v56 = vsel %vm513_vm2, %v685_v6, 0.0  ;;  %v687_v24 = vmul.f32 %v1424_v27, %v1424_v27 }
 0x11f   :  { %510 = vst.msk [vmem:[%s1912_s2 + $0xf4] sm:$0xf] %vm448_vm1, %v445_v32  ;;  %v597_v27 = vsel %vm513_vm2, %v1496_v15, 0.0  ;;  %v796_v32 = vsel %vm513_vm2, %v690_v16, 0.0 }
 0x120   :  { %v580_v57 = vadd.f32 %v579_v41, %v578_v38  ;;  %v775_v48 = vadd.f32 %v774_v3, %v773_v4  ;;  %v788_v38 = vsel %vm513_vm2, %v686_v12, 0.0  ;;  %v688_v4 = vmul.f32 %v1443_v42, %v1443_v42 }
 0x121   :  { %v790_v20 = vsel %vm513_vm2, %v687_v24, 0.0  ;;  %v599_v42 = vsel %vm513_vm2, %v1517_v52, 0.0  ;;  %v692_v52 = vmul.f32 %v1599_v44, %v1599_v44  ;;  %v695_v12 = vmul.f32 %v1300_v40, %v1300_v40 }
 0x122   :  { %v582_v25 = vadd.f32 %v581_v61, %v580_v57  ;;  %v777_v17 = vadd.f32 %v776_v49, %v775_v48  ;;  %v689_v57 = vmul.f32 %v1496_v15, %v1496_v15  ;;  %v792_v61 = vsel %vm513_vm2, %v688_v4, 0.0 }
 0x123   :  { %v800_v6 = vsel %vm513_vm2, %v692_v52, 0.0 }
 0x124   :  { %v584_v54 = vadd.f32 %v583_v8, %v582_v25  ;;  %v779_v21 = vadd.f32 %v778_v19, %v777_v17  ;;  %v1771_v47 = vpop.f32.mrf.mxu3  ;;  %v794_v19 = vsel %vm513_vm2, %v689_v57, 0.0  ;;  %v691_v8 = vmul.f32 %v1563_v36, %v1563_v36 }
 0x125   :  { %v446_v22 = vpack.c.bf16 %v1771_v47, %v1771_v47 }
 0x126   :  { %v586_v45 = vadd.f32 %v585_v59, %v584_v54  ;;  %v781_v2 = vadd.f32 %v780_v58, %v779_v21  ;;  %v601_v58 = vsel %vm513_vm2, %v1563_v36, 0.0  ;;  %v603_v36 = vsel %vm513_vm2, %v1599_v44, 0.0 }
 0x127   :  { %511 = vst.msk [vmem:[%s1912_s2 + $0xf8] sm:$0xf] %vm448_vm1, %v446_v22 }
 0x128   :  { %v588_v1 = vadd.f32 %v587_v39, %v586_v45  ;;  %v783_v34 = vadd.f32 %v782_v26, %v781_v2  ;;  %v798_v45 = vsel %vm513_vm2, %v691_v8, 0.0  ;;  %v693_v2 = vmul.f32 %v1643_v60, %v1643_v60 }
 0x129   :  { %v701_v8 = vmul.f32 %v1498_v9, %v1498_v9 }
 0x12a   :  { %v785_v14 = vadd.f32 %v784_v35, %v783_v34  ;;  %v590_v55 = vadd.f32 %v589_v7, %v588_v1  ;;  %v605_v1 = vsel %vm513_vm2, %v1643_v60, 0.0  ;;  %v694_v34 = vmul.f32 %v1671_v5, %v1671_v5 }
 0x12b   :  { %v802_v44 = vsel %vm513_vm2, %v693_v2, 0.0  ;;  %v696_v60 = vmul.f32 %v1334_v51, %v1334_v51  ;;  %v818_v52 = vsel %vm513_vm2, %v701_v8, 0.0  ;;  %v704_v2 = vmul.f32 %v1601_v13, %v1601_v13 }
 0x12c   :  { %v592_v46 = vadd.f32 %v591_v50, %v590_v55  ;;  %v787_v29 = vadd.f32 %v786_v56, %v785_v14  ;;  %v1795_v33 = vpop.f32.mrf.mxu3  ;;  %v607_v14 = vsel %vm513_vm2, %v1671_v5, 0.0  ;;  %v609_v50 = vsel %vm513_vm2, %v1300_v40, 0.0 }
 0x12d   :  { %v447_v21 = vpack.c.bf16 %v1795_v33, %v1795_v33  ;;  %v804_v24 = vsel %vm513_vm2, %v694_v34, 0.0  ;;  %v697_v5 = vmul.f32 %v1368_v63, %v1368_v63  ;;  %v613_v40 = vsel %vm513_vm2, %v1368_v63, 0.0 }
 0x12e   :  { %v594_v3 = vadd.f32 %v593_v62, %v592_v46  ;;  %v789_v41 = vadd.f32 %v788_v38, %v787_v29  ;;  %v806_v38 = vsel %vm513_vm2, %v695_v12, 0.0  ;;  %v611_v62 = vsel %vm513_vm2, %v1334_v51, 0.0 }
 0x12f   :  { %512 = vst.msk [vmem:[%s1912_s2 + $0xfc] sm:$0xf] %vm448_vm1, %v447_v21  ;;  %v615_v51 = vsel %vm513_vm2, %v1397_v11, 0.0  ;;  %v617_v63 = vsel %vm513_vm2, %v1426_v28, 0.0  ;;  %v702_v21 = vmul.f32 %v1519_v53, %v1519_v53  ;;  %v706_v12 = vmul.f32 %v1673_v18, %v1673_v18  ;;  %s900_s2 = smov 4  }
 0x130   :  { %v596_v48 = vadd.f32 %v595_v10, %v594_v3  ;;  %v791_v49 = vadd.f32 %v790_v20, %v789_v41  ;;  %v808_v41 = vsel %vm513_vm2, %v696_v60, 0.0  ;;  %v698_v20 = vmul.f32 %v1397_v11, %v1397_v11 }
 0x131   :  { %v619_v11 = vsel %vm513_vm2, %v1445_v43, 0.0 }
 0x132   :  { %v598_v25 = vadd.f32 %v597_v27, %v596_v48  ;;  %v793_v17 = vadd.f32 %v792_v61, %v791_v49  ;;  %v810_v48 = vsel %vm513_vm2, %v697_v5, 0.0  ;;  %v699_v49 = vmul.f32 %v1426_v28, %v1426_v28 }
 0x133   :  { %v812_v16 = vsel %vm513_vm2, %v698_v20, 0.0  ;;  %v621_v28 = vsel %vm513_vm2, %v1498_v9, 0.0  ;;  %v625_v9 = vsel %vm513_vm2, %v1565_v37, 0.0  ;;  %v709_v5 = vmul.f32 %v1771_v47, %v1771_v47 }
 0x134   :  { %v600_v54 = vadd.f32 %v599_v42, %v598_v25  ;;  %v795_v15 = vadd.f32 %v794_v19, %v793_v17  ;;  %v700_v25 = vmul.f32 %v1445_v43, %v1445_v43  ;;  %v814_v42 = vsel %vm513_vm2, %v699_v49, 0.0 }
 0x135   :  { %v623_v43 = vsel %vm513_vm2, %v1519_v53, 0.0  ;;  %v627_v53 = vsel %vm513_vm2, %v1601_v13, 0.0  ;;  %v631_v13 = vsel %vm513_vm2, %v1673_v18, 0.0  ;;  %v635_v18 = vsel %vm513_vm2, %v1739_v31, 0.0 }
 0x136   :  { %v797_v59 = vadd.f32 %v796_v32, %v795_v15  ;;  %v602_v30 = vadd.f32 %v601_v58, %v600_v54  ;;  %v816_v15 = vsel %vm513_vm2, %v700_v25, 0.0 }
 0x138   :  { %v799_v26 = vadd.f32 %v798_v45, %v797_v59  ;;  %v604_v39 = vadd.f32 %v603_v36, %v602_v30  ;;  %v703_v59 = vmul.f32 %v1565_v37, %v1565_v37  ;;  %v820_v36 = vsel %vm513_vm2, %v702_v21, 0.0 }
 0x139   :  { %v629_v37 = vsel %vm513_vm2, %v1645_v0, 0.0 }
 0x13a   :  { %v801_v35 = vadd.f32 %v800_v6, %v799_v26  ;;  %v606_v7 = vadd.f32 %v605_v1, %v604_v39  ;;  %v822_v6 = vsel %vm513_vm2, %v703_v59, 0.0  ;;  %v705_v1 = vmul.f32 %v1645_v0, %v1645_v0 }
 0x13b   :  { %v633_v0 = vsel %vm513_vm2, %v1715_v23, 0.0 }
 0x13c   :  { %v803_v55 = vadd.f32 %v802_v44, %v801_v35  ;;  %v608_v56 = vadd.f32 %v607_v14, %v606_v7  ;;  %v824_v7 = vsel %vm513_vm2, %v704_v2, 0.0 }
 0x13e   :  { %v610_v46 = vadd.f32 %v609_v50, %v608_v56  ;;  %v805_v29 = vadd.f32 %v804_v24, %v803_v55  ;;  %v826_v55 = vsel %vm513_vm2, %v705_v1, 0.0  ;;  %v707_v56 = vmul.f32 %v1715_v23, %v1715_v23 }
 0x13f   :  { %v828_v24 = vsel %vm513_vm2, %v706_v12, 0.0  ;;  %v637_v23 = vsel %vm513_vm2, %v1771_v47, 0.0 }
 0x140   :  { %v612_v4 = vadd.f32 %v611_v62, %v610_v46  ;;  %v807_v3 = vadd.f32 %v806_v38, %v805_v29  ;;  %v708_v46 = vmul.f32 %v1739_v31, %v1739_v31  ;;  %v830_v62 = vsel %vm513_vm2, %v707_v56, 0.0 }
 0x141   :  { %v639_v31 = vsel %vm513_vm2, %v1795_v33, 0.0 }
 0x142   :  { %v614_v10 = vadd.f32 %v613_v40, %v612_v4  ;;  %v809_v57 = vadd.f32 %v808_v41, %v807_v3  ;;  %v832_v41 = vsel %vm513_vm2, %v708_v46, 0.0  ;;  %v710_v40 = vmul.f32 %v1795_v33, %v1795_v33 }
 0x144   :  { %v616_v61 = vadd.f32 %v615_v51, %v614_v10  ;;  %v811_v27 = vadd.f32 %v810_v48, %v809_v57  ;;  %v834_v57 = vsel %vm513_vm2, %v709_v5, 0.0  ;;  %v836_v49 = vsel %vm513_vm2, %v710_v40, 0.0 }
 0x146   :  { %v618_v17 = vadd.f32 %v617_v63, %v616_v61  ;;  %v813_v19 = vadd.f32 %v812_v16, %v811_v27 }
 0x148   :  { %v620_v22 = vadd.f32 %v619_v11, %v618_v17  ;;  %v815_v54 = vadd.f32 %v814_v42, %v813_v19 }
 0x14a   :  { %v817_v32 = vadd.f32 %v816_v15, %v815_v54  ;;  %v622_v58 = vadd.f32 %v621_v28, %v620_v22 }
 0x14c   :  { %v624_v30 = vadd.f32 %v623_v43, %v622_v58  ;;  %v819_v45 = vadd.f32 %v818_v52, %v817_v32 }
 0x14e   :  { %v626_v26 = vadd.f32 %v625_v9, %v624_v30  ;;  %v821_v39 = vadd.f32 %v820_v36, %v819_v45 }
 0x150   :  { %v628_v34 = vadd.f32 %v627_v53, %v626_v26  ;;  %v823_v35 = vadd.f32 %v822_v6, %v821_v39 }
 0x152   :  { %v630_v44 = vadd.f32 %v629_v37, %v628_v34  ;;  %v825_v14 = vadd.f32 %v824_v7, %v823_v35 }
 0x154   :  { %v632_v50 = vadd.f32 %v631_v13, %v630_v44  ;;  %v827_v60 = vadd.f32 %v826_v55, %v825_v14 }
 0x156   :  { %v829_v29 = vadd.f32 %v828_v24, %v827_v60  ;;  %v634_v38 = vadd.f32 %v633_v0, %v632_v50 }
 0x158   :  { %v831_v4 = vadd.f32 %v830_v62, %v829_v29  ;;  %v636_v3 = vadd.f32 %v635_v18, %v634_v38 }
 0x15a   :  { %v833_v20 = vadd.f32 %v832_v41, %v831_v4  ;;  %v638_v10 = vadd.f32 %v637_v23, %v636_v3 }
 0x15c   :  { %v835_v48 = vadd.f32 %v834_v57, %v833_v20  ;;  %v640_v51 = vadd.f32 %v639_v31, %v638_v10 }
 0x15e   :  { %v837_v61 = vadd.f32 %v836_v49, %v835_v48  ;;  %v641_v19 = vrot.slane %v640_v51, 4 }
 0x160   :  { %v838_v27 = vrot.slane %v837_v61, 4  ;;  %v642_v42 = vadd.f32 %v641_v19, %v640_v51 }
 0x162   :  { %v839_v16 = vadd.f32 %v838_v27, %v837_v61  ;;  %v643_v11 = vrot.slane %v642_v42, 2 }
 0x164   :  { %v840_v63 = vrot.slane %v839_v16, 2  ;;  %v644_v8 = vadd.f32 %v643_v11, %v642_v42 }
 0x166   :  { %v841_v25 = vadd.f32 %v840_v63, %v839_v16  ;;  %v645_v22 = vrot.slane %v644_v8, 1 }
 0x168   :  { %v842_v47 = vrot.slane %v841_v25, 1  ;;  %v646_v54 = vadd.f32 %v645_v22, %v644_v8 }
 0x16a   :  { %v843_v17 = vadd.f32 %v842_v47, %v841_v25 }
 0x16c   :  { %845 = vrot.lane.b32.xlu0 %v843_v17, %s900_s2 }
 0x1de   :  { %v846_v33 = vpop.permute.xlu0 %845 }
 0x1df   :  { %v848_v15 = vsel %vm513_vm2, %v646_v54, %v846_v33 }
 0x1e0   :  { %850 = vst.msk [vmem:[%s1913_s3] sm:$0x1] %vm849_vm3, %v848_v15 }

// kernel: bottleneck_forward.6
= control target key start
LH: loop header
LB: loop body
LE: loop exit
PB: predicated region body
PF: predicated region fallthrough
CT: control target
= control target key end

     0   :  { %vm478_vm0 = vcmask 1041408   ;;  %vm381_vm1 = vcmask 31744   ;;  %vm651_vm2 = vcmask 130048   ;;  %vm1051_vm3 = vcmask 253952   ;;  %s2255_s3 = inlined_call_operand.vmem [shape: bf16[4,16], index: 3, kind: input, shape index: {}]   ;;  %s2256_s0 = inlined_call_operand.vmem [shape: bf16[512,4], index: 0, kind: input, shape index: {}]   ;;  %s2257_s1 = inlined_call_operand.vmem [shape: f32[1,4], index: 1, kind: input, shape index: {}]   ;;  %s2258_s2 = inlined_call_operand.vmem [shape: f32[1,4], index: 2, kind: input, shape index: {}]   ;;  %s2259_s4 = inlined_call_operand.vmem [shape: f32[512,16], index: 4, kind: output, shape index: {0}]   ;;  %s2260_s5 = inlined_call_operand.vmem [shape: f32[1,1,32], index: 5, kind: output, shape index: {1}]  }
   0x1   :  { %v380_v0 = vld [vmem:[%s2255_s3] sm:$0x3]  ;;  %v1221_v10 = vld [vmem:[%s2256_s0 + $0x8] sm:$0xff]   ;;  %v1222_v41 = vld [vmem:[%s2256_s0 + $0x10] sm:$0xff]  }
   0x2   :  { %v1094_v1 = vld [vmem:[%s2256_s0] sm:$0xff]   ;;  %v480_v2 = vsel %vm478_vm0, %v380_v0, 0  ;;  %v1099_v17 = vunpack.c.l.bf16 %v1221_v10  ;;  %v1100_v18 = vunpack.c.h.bf16 %v1221_v10  ;;  %v1229_v23 = vld [vmem:[%s2256_s0 + $0x48] sm:$0xff]   ;;  %v1103_v48 = vunpack.c.l.bf16 %v1222_v41  ;;  %v1230_v54 = vld [vmem:[%s2256_s0 + $0x50] sm:$0xff]  }
   0x3   :  { %v1095_v3 = vunpack.c.l.bf16 %v1094_v1  ;;  %v1096_v4 = vunpack.c.h.bf16 %v1094_v1  ;;  %v1298_v5 = vld [vmem:[%s2257_s1] ss:$0 sm:$0xff]  ;;  %489 = vmatpush.bf16.msra.mxu0 %v480_v2  ;;  %1252 = vmatpush.bf16.msra.mxu1 %v480_v2  ;;  %v1131_v27 = vunpack.c.l.bf16 %v1229_v23  ;;  %v1132_v28 = vunpack.c.h.bf16 %v1229_v23 }
   0x4   :  { %v1303_v6 = vld [vmem:[%s2258_s2] ss:$0 sm:$0xff]  ;;  %1253 = vmatpush.bf16.msra.mxu2 %v480_v2  ;;  %1254 = vmatpush.bf16.msra.mxu3 %v480_v2  ;;  %v154_v29 = vmul.f32 %v1298_v5, %v1099_v17  ;;  %v155_v30 = vmul.f32 %v1298_v5, %v1100_v18  ;;  %v1104_v50 = vunpack.c.h.bf16 %v1222_v41  ;;  %v1135_v57 = vunpack.c.l.bf16 %v1230_v54 }
   0x5   :  { %v1228_v7 = vld [vmem:[%s2256_s0 + $0x40] sm:$0xff]   ;;  %v152_v8 = vmul.f32 %v1298_v5, %v1095_v3  ;;  %v153_v9 = vmul.f32 %v1298_v5, %v1096_v4  ;;  %v170_v32 = vmul.f32 %v1298_v5, %v1131_v27  ;;  %v171_v33 = vmul.f32 %v1298_v5, %v1132_v28  ;;  %v1237_v4 = vld [vmem:[%s2256_s0 + $0x88] sm:$0xff]  }
   0x6   :  { %v1127_v11 = vunpack.c.l.bf16 %v1228_v7  ;;  %v1128_v12 = vunpack.c.h.bf16 %v1228_v7  ;;  %v222_v34 = vadd.f32 %v1303_v6, %v154_v29  ;;  %v223_v35 = vadd.f32 %v1303_v6, %v155_v30  ;;  %v1236_v38 = vld [vmem:[%s2256_s0 + $0x80] sm:$0xff]  }
   0x7   :  { %v220_v13 = vadd.f32 %v1303_v6, %v152_v8  ;;  %v221_v14 = vadd.f32 %v1303_v6, %v153_v9  ;;  %v238_v36 = vadd.f32 %v1303_v6, %v170_v32  ;;  %v239_v37 = vadd.f32 %v1303_v6, %v171_v33  ;;  %v1223_v9 = vld [vmem:[%s2256_s0 + $0x18] sm:$0xff]  }
   0x8   :  { %v168_v15 = vmul.f32 %v1298_v5, %v1127_v11  ;;  %v169_v16 = vmul.f32 %v1298_v5, %v1128_v12  ;;  %v286_v39 = vmax.f32 %v222_v34, 0.0  ;;  %v287_v40 = vmax.f32 %v223_v35, 0.0 }
   0x9   :  { %v284_v19 = vmax.f32 %v220_v13, 0.0  ;;  %v285_v20 = vmax.f32 %v221_v14, 0.0  ;;  %v1159_v42 = vunpack.c.l.bf16 %v1236_v38  ;;  %v1160_v43 = vunpack.c.h.bf16 %v1236_v38  ;;  %v1238_v38 = vld [vmem:[%s2256_s0 + $0x90] sm:$0xff]  }
   0xa   :  { %v236_v21 = vadd.f32 %v1303_v6, %v168_v15  ;;  %v237_v22 = vadd.f32 %v1303_v6, %v169_v16  ;;  %v302_v44 = vmax.f32 %v238_v36, 0.0  ;;  %v303_v45 = vmax.f32 %v239_v37, 0.0 }
   0xb   :  { %v348_v24 = vpack.c.bf16 %v285_v20, %v284_v19  ;;  %v184_v46 = vmul.f32 %v1298_v5, %v1159_v42  ;;  %v185_v47 = vmul.f32 %v1298_v5, %v1160_v43  ;;  %v349_v49 = vpack.c.bf16 %v287_v40, %v286_v39  ;;  %v1244_v39 = vld [vmem:[%s2256_s0 + $0xc0] sm:$0xff]  }
   0xc   :  { %v300_v25 = vmax.f32 %v236_v21, 0.0  ;;  %v301_v26 = vmax.f32 %v237_v22, 0.0  ;;  %v357_v53 = vpack.c.bf16 %v303_v45, %v302_v44  ;;  %v1136_v58 = vunpack.c.h.bf16 %v1230_v54  ;;  %v1231_v22 = vld [vmem:[%s2256_s0 + $0x58] sm:$0xff]   ;;  %v1224_v40 = vld [vmem:[%s2256_s0 + $0x20] sm:$0xff]  }
   0xd   :  { %1061 = vmatmul.msk.bf16.vlgmr.msra.gmra.mxu0 %vm381_vm1, %v348_v24  ;;  %v252_v51 = vadd.f32 %v1303_v6, %v184_v46  ;;  %v253_v52 = vadd.f32 %v1303_v6, %v185_v47  ;;  %v156_v59 = vmul.f32 %v1298_v5, %v1103_v48  ;;  %v157_v60 = vmul.f32 %v1298_v5, %v1104_v50 }
   0xe   :  { %v356_v31 = vpack.c.bf16 %v301_v26, %v300_v25  ;;  %v172_v62 = vmul.f32 %v1298_v5, %v1135_v57  ;;  %v173_v63 = vmul.f32 %v1298_v5, %v1136_v58  ;;  %v1163_v10 = vunpack.c.l.bf16 %v1237_v4 }
   0xf   :  { %v316_v55 = vmax.f32 %v252_v51, 0.0  ;;  %v317_v56 = vmax.f32 %v253_v52, 0.0  ;;  %v224_v0 = vadd.f32 %v1303_v6, %v156_v59  ;;  %v225_v1 = vadd.f32 %v1303_v6, %v157_v60  ;;  %v1232_v59 = vld [vmem:[%s2256_s0 + $0x60] sm:$0xff]  }
  0x10   :  { %1069 = vmatmul.msk.bf16.vlgmr.msra.gmra.mxu1 %vm381_vm1, %v356_v31  ;;  %v240_v2 = vadd.f32 %v1303_v6, %v172_v62  ;;  %v241_v3 = vadd.f32 %v1303_v6, %v173_v63  ;;  %v1164_v11 = vunpack.c.h.bf16 %v1237_v4  ;;  %v186_v14 = vmul.f32 %v1298_v5, %v1163_v10 }
  0x11   :  { %v364_v61 = vpack.c.bf16 %v317_v56, %v316_v55  ;;  %v288_v7 = vmax.f32 %v224_v0, 0.0  ;;  %v289_v8 = vmax.f32 %v225_v1, 0.0  ;;  %v1107_v16 = vunpack.c.l.bf16 %v1223_v9 }
  0x12   :  { %v304_v12 = vmax.f32 %v240_v2, 0.0  ;;  %v305_v13 = vmax.f32 %v241_v3, 0.0  ;;  %v187_v15 = vmul.f32 %v1298_v5, %v1164_v11  ;;  %v1108_v17 = vunpack.c.h.bf16 %v1223_v9 }
  0x13   :  { %1077 = vmatmul.msk.bf16.vlgmr.msra.gmra.mxu2 %vm381_vm1, %v364_v61  ;;  %v350_v18 = vpack.c.bf16 %v289_v8, %v288_v7  ;;  %v254_v19 = vadd.f32 %v1303_v6, %v186_v14  ;;  %v1139_v25 = vunpack.c.l.bf16 %v1231_v22  ;;  %v1140_v26 = vunpack.c.h.bf16 %v1231_v22 }
  0x14   :  { %v255_v20 = vadd.f32 %v1303_v6, %v187_v15  ;;  %v358_v21 = vpack.c.bf16 %v305_v13, %v304_v12  ;;  %v158_v27 = vmul.f32 %v1298_v5, %v1107_v16  ;;  %v159_v28 = vmul.f32 %v1298_v5, %v1108_v17  ;;  %v1239_v16 = vld [vmem:[%s2256_s0 + $0x98] sm:$0xff]   ;;  %v1245_v17 = vld [vmem:[%s2256_s0 + $0xc8] sm:$0xff]  }
  0x15   :  { %v318_v23 = vmax.f32 %v254_v19, 0.0  ;;  %v174_v30 = vmul.f32 %v1298_v5, %v1139_v25  ;;  %v175_v31 = vmul.f32 %v1298_v5, %v1140_v26  ;;  %v1167_v41 = vunpack.c.l.bf16 %v1238_v38 }
  0x16   :  { %v319_v24 = vmax.f32 %v255_v20, 0.0  ;;  %v226_v32 = vadd.f32 %v1303_v6, %v158_v27  ;;  %v227_v33 = vadd.f32 %v1303_v6, %v159_v28  ;;  %v1168_v42 = vunpack.c.h.bf16 %v1238_v38 }
  0x17   :  { %v242_v34 = vadd.f32 %v1303_v6, %v174_v30  ;;  %v243_v35 = vadd.f32 %v1303_v6, %v175_v31  ;;  %v1191_v43 = vunpack.c.l.bf16 %v1244_v39  ;;  %v1192_v44 = vunpack.c.h.bf16 %v1244_v39 }
  0x18   :  { %v365_v29 = vpack.c.bf16 %v319_v24, %v318_v23  ;;  %v290_v36 = vmax.f32 %v226_v32, 0.0  ;;  %v291_v37 = vmax.f32 %v227_v33, 0.0  ;;  %v188_v47 = vmul.f32 %v1298_v5, %v1167_v41 }
  0x19   :  { %v306_v45 = vmax.f32 %v242_v34, 0.0  ;;  %v307_v46 = vmax.f32 %v243_v35, 0.0  ;;  %v189_v48 = vmul.f32 %v1298_v5, %v1168_v42  ;;  %v201_v50 = vmul.f32 %v1298_v5, %v1192_v44 }
  0x1a   :  { %v351_v51 = vpack.c.bf16 %v291_v37, %v290_v36  ;;  %v1111_v52 = vunpack.c.l.bf16 %v1224_v40  ;;  %v256_v54 = vadd.f32 %v1303_v6, %v188_v47  ;;  %v1143_v2 = vunpack.c.l.bf16 %v1232_v59  ;;  %v1233_v37 = vld [vmem:[%s2256_s0 + $0x68] sm:$0xff]  }
  0x1b   :  { %v257_v55 = vadd.f32 %v1303_v6, %v189_v48  ;;  %v269_v57 = vadd.f32 %v1303_v6, %v201_v50  ;;  %v359_v58 = vpack.c.bf16 %v307_v46, %v306_v45  ;;  %v1144_v3 = vunpack.c.h.bf16 %v1232_v59 }
  0x1c   :  { %v320_v60 = vmax.f32 %v256_v54, 0.0  ;;  %v160_v0 = vmul.f32 %v1298_v5, %v1111_v52  ;;  %v176_v8 = vmul.f32 %v1298_v5, %v1143_v2  ;;  %v1171_v19 = vunpack.c.l.bf16 %v1239_v16 }
  0x1d   :  { %1062 = vmatmul.msk.bf16.gmra.mxu0 %vm381_vm1, %v349_v49  ;;  %v200_v49 = vmul.f32 %v1298_v5, %v1191_v43  ;;  %v321_v61 = vmax.f32 %v257_v55, 0.0  ;;  %v333_v63 = vmax.f32 %v269_v57, 0.0  ;;  %v177_v9 = vmul.f32 %v1298_v5, %v1144_v3  ;;  %v1246_v57 = vld [vmem:[%s2256_s0 + $0xd0] sm:$0xff]  }
  0x1e   :  { %v228_v10 = vadd.f32 %v1303_v6, %v160_v0  ;;  %v244_v12 = vadd.f32 %v1303_v6, %v176_v8  ;;  %v1172_v20 = vunpack.c.h.bf16 %v1239_v16  ;;  %v1196_v22 = vunpack.c.h.bf16 %v1245_v17 }
  0x1f   :  { %v268_v56 = vadd.f32 %v1303_v6, %v200_v49  ;;  %v366_v4 = vpack.c.bf16 %v321_v61, %v320_v60  ;;  %v245_v13 = vadd.f32 %v1303_v6, %v177_v9  ;;  %v190_v25 = vmul.f32 %v1298_v5, %v1171_v19 }
  0x20   :  { %1070 = vmatmul.msk.bf16.gmra.mxu1 %vm381_vm1, %v357_v53  ;;  %v1112_v53 = vunpack.c.h.bf16 %v1224_v40  ;;  %v292_v14 = vmax.f32 %v228_v10, 0.0  ;;  %v308_v23 = vmax.f32 %v244_v12, 0.0  ;;  %v191_v26 = vmul.f32 %v1298_v5, %v1172_v20 }
  0x21   :  { %v332_v62 = vmax.f32 %v268_v56, 0.0  ;;  %v309_v24 = vmax.f32 %v245_v13, 0.0  ;;  %v203_v28 = vmul.f32 %v1298_v5, %v1196_v22  ;;  %v258_v32 = vadd.f32 %v1303_v6, %v190_v25  ;;  %v1240_v56 = vld [vmem:[%s2256_s0 + $0xa0] sm:$0xff]  }
  0x22   :  { %v161_v1 = vmul.f32 %v1298_v5, %v1112_v53  ;;  %v259_v33 = vadd.f32 %v1303_v6, %v191_v26  ;;  %v1147_v44 = vunpack.c.l.bf16 %v1233_v37  ;;  %v1148_v45 = vunpack.c.h.bf16 %v1233_v37 }
  0x23   :  { %1078 = vmatmul.msk.bf16.gmra.mxu2 %vm381_vm1, %v365_v29  ;;  %v372_v7 = vpack.c.bf16 %v333_v63, %v332_v62  ;;  %v271_v35 = vadd.f32 %v1303_v6, %v203_v28  ;;  %v360_v36 = vpack.c.bf16 %v309_v24, %v308_v23  ;;  %v322_v38 = vmax.f32 %v258_v32, 0.0 }
  0x24   :  { %v229_v11 = vadd.f32 %v1303_v6, %v161_v1  ;;  %v323_v39 = vmax.f32 %v259_v33, 0.0  ;;  %v178_v48 = vmul.f32 %v1298_v5, %v1147_v44  ;;  %v179_v49 = vmul.f32 %v1298_v5, %v1148_v45 }
  0x25   :  { %1085 = vmatmul.msk.bf16.vlgmr.msra.gmra.mxu3 %vm381_vm1, %v372_v7  ;;  %v335_v41 = vmax.f32 %v271_v35, 0.0  ;;  %v1175_v59 = vunpack.c.l.bf16 %v1240_v56  ;;  %v1176_v60 = vunpack.c.h.bf16 %v1240_v56  ;;  %v1199_v61 = vunpack.c.l.bf16 %v1246_v57  ;;  %v1247_v35 = vld [vmem:[%s2256_s0 + $0xd8] sm:$0xff]  }
  0x26   :  { %v293_v15 = vmax.f32 %v229_v11, 0.0  ;;  %v367_v46 = vpack.c.bf16 %v323_v39, %v322_v38  ;;  %v246_v52 = vadd.f32 %v1303_v6, %v178_v48  ;;  %v247_v53 = vadd.f32 %v1303_v6, %v179_v49 }
  0x27   :  { %v1200_v62 = vunpack.c.h.bf16 %v1246_v57  ;;  %v192_v1 = vmul.f32 %v1298_v5, %v1175_v59  ;;  %v193_v2 = vmul.f32 %v1298_v5, %v1176_v60  ;;  %v204_v3 = vmul.f32 %v1298_v5, %v1199_v61 }
  0x28   :  { %v352_v29 = vpack.c.bf16 %v293_v15, %v292_v14  ;;  %v310_v63 = vmax.f32 %v246_v52, 0.0  ;;  %v311_v0 = vmax.f32 %v247_v53, 0.0  ;;  %v1234_v15 = vld [vmem:[%s2256_s0 + $0x70] sm:$0xff]   ;;  %v1203_v39 = vunpack.c.l.bf16 %v1247_v35 }
  0x29   :  { %v260_v10 = vadd.f32 %v1303_v6, %v192_v1  ;;  %v261_v11 = vadd.f32 %v1303_v6, %v193_v2  ;;  %v272_v12 = vadd.f32 %v1303_v6, %v204_v3  ;;  %v1151_v22 = vunpack.c.l.bf16 %v1234_v15 }
  0x2a   :  { %v361_v14 = vpack.c.bf16 %v311_v0, %v310_v63  ;;  %v1152_v23 = vunpack.c.h.bf16 %v1234_v15  ;;  %v206_v45 = vmul.f32 %v1298_v5, %v1203_v39 }
  0x2b   :  { %v324_v16 = vmax.f32 %v260_v10, 0.0  ;;  %v180_v26 = vmul.f32 %v1298_v5, %v1151_v22 }
  0x2c   :  { %v274_v52 = vadd.f32 %v1303_v6, %v206_v45 }
  0x2d   :  { %1063 = vmatmul.msk.bf16.gmra.mxu0 %vm381_vm1, %v350_v18  ;;  %v1225_v18 = vld [vmem:[%s2256_s0 + $0x28] sm:$0xff]  }
  0x2e   :  { %v1115_v30 = vunpack.c.l.bf16 %v1225_v18  ;;  %v1116_v31 = vunpack.c.h.bf16 %v1225_v18  ;;  %v336_v18 = vmax.f32 %v272_v12, 0.0  ;;  %v1242_v12 = vld [vmem:[%s2256_s0 + $0xb0] sm:$0xff]  }
  0x2f   :  { %v1184_v15 = vunpack.c.h.bf16 %v1242_v12 }
  0x30   :  { %1071 = vmatmul.msk.bf16.gmra.mxu1 %vm381_vm1, %v358_v21  ;;  %v1195_v21 = vunpack.c.l.bf16 %v1245_v17  ;;  %v162_v42 = vmul.f32 %v1298_v5, %v1115_v30  ;;  %v163_v43 = vmul.f32 %v1298_v5, %v1116_v31  ;;  %v325_v17 = vmax.f32 %v261_v11, 0.0 }
  0x31   :  { %v248_v30 = vadd.f32 %v1303_v6, %v180_v26 }
  0x32   :  { %v202_v27 = vmul.f32 %v1298_v5, %v1195_v21  ;;  %v230_v50 = vadd.f32 %v1303_v6, %v162_v42  ;;  %v368_v24 = vpack.c.bf16 %v325_v17, %v324_v16 }
  0x33   :  { %1079 = vmatmul.msk.bf16.gmra.mxu2 %vm381_vm1, %v366_v4  ;;  %v205_v4 = vmul.f32 %v1298_v5, %v1200_v62 }
  0x34   :  { %v270_v34 = vadd.f32 %v1303_v6, %v202_v27  ;;  %v294_v54 = vmax.f32 %v230_v50, 0.0  ;;  %v181_v27 = vmul.f32 %v1298_v5, %v1152_v23 }
  0x35   :  { %v273_v13 = vadd.f32 %v1303_v6, %v205_v4 }
  0x36   :  { %v334_v40 = vmax.f32 %v270_v34, 0.0  ;;  %v249_v31 = vadd.f32 %v1303_v6, %v181_v27  ;;  %v1241_v34 = vld [vmem:[%s2256_s0 + $0xa8] sm:$0xff]  }
  0x37   :  { %v337_v19 = vmax.f32 %v273_v13, 0.0  ;;  %v1179_v37 = vunpack.c.l.bf16 %v1241_v34  ;;  %v1180_v38 = vunpack.c.h.bf16 %v1241_v34  ;;  %v1248_v13 = vld [vmem:[%s2256_s0 + $0xe0] sm:$0xff]  }
  0x38   :  { %v373_v47 = vpack.c.bf16 %v335_v41, %v334_v40  ;;  %v1204_v40 = vunpack.c.h.bf16 %v1247_v35  ;;  %v312_v41 = vmax.f32 %v248_v30, 0.0  ;;  %v313_v42 = vmax.f32 %v249_v31, 0.0 }
  0x39   :  { %v374_v25 = vpack.c.bf16 %v337_v19, %v336_v18  ;;  %v195_v44 = vmul.f32 %v1298_v5, %v1180_v38  ;;  %v1207_v16 = vunpack.c.l.bf16 %v1248_v13  ;;  %v1208_v17 = vunpack.c.h.bf16 %v1248_v13 }
  0x3a   :  { %1086 = vmatmul.msk.bf16.gmra.mxu3 %vm381_vm1, %v373_v47 }
  0x3b   :  { %v208_v22 = vmul.f32 %v1298_v5, %v1207_v16  ;;  %v209_v23 = vmul.f32 %v1298_v5, %v1208_v17 }
  0x3d   :  { %1064 = vmatmul.msk.bf16.gmra.mxu0 %vm381_vm1, %v351_v51  ;;  %v231_v51 = vadd.f32 %v1303_v6, %v163_v43  ;;  %v194_v43 = vmul.f32 %v1298_v5, %v1179_v37  ;;  %v276_v27 = vadd.f32 %v1303_v6, %v208_v22  ;;  %v1249_v37 = vld [vmem:[%s2256_s0 + $0xe8] sm:$0xff]  }
  0x3f   :  { %v295_v55 = vmax.f32 %v231_v51, 0.0  ;;  %v262_v50 = vadd.f32 %v1303_v6, %v194_v43  ;;  %v263_v51 = vadd.f32 %v1303_v6, %v195_v44 }
  0x40   :  { %1072 = vmatmul.msk.bf16.gmra.mxu1 %vm381_vm1, %v359_v58  ;;  %v1226_v58 = vld [vmem:[%s2256_s0 + $0x30] sm:$0xff]  }
  0x41   :  { %v353_v7 = vpack.c.bf16 %v295_v55, %v294_v54  ;;  %v1119_v8 = vunpack.c.l.bf16 %v1226_v58  ;;  %v1120_v9 = vunpack.c.h.bf16 %v1226_v58  ;;  %v362_v54 = vpack.c.bf16 %v313_v42, %v312_v41  ;;  %v1235_v55 = vld [vmem:[%s2256_s0 + $0x78] sm:$0xff]  }
  0x42   :  { %v326_v56 = vmax.f32 %v262_v50, 0.0  ;;  %v327_v57 = vmax.f32 %v263_v51, 0.0  ;;  %v338_v58 = vmax.f32 %v274_v52, 0.0  ;;  %v1155_v62 = vunpack.c.l.bf16 %v1235_v55 }
  0x43   :  { %1080 = vmatmul.msk.bf16.gmra.mxu2 %vm381_vm1, %v367_v46  ;;  %v164_v20 = vmul.f32 %v1298_v5, %v1119_v8  ;;  %v165_v21 = vmul.f32 %v1298_v5, %v1120_v9  ;;  %v207_v46 = vmul.f32 %v1298_v5, %v1204_v40  ;;  %v1156_v63 = vunpack.c.h.bf16 %v1235_v55 }
  0x44   :  { %v369_v0 = vpack.c.bf16 %v327_v57, %v326_v56  ;;  %v182_v2 = vmul.f32 %v1298_v5, %v1155_v62  ;;  %v1211_v40 = vunpack.c.l.bf16 %v1249_v37  ;;  %v1212_v41 = vunpack.c.h.bf16 %v1249_v37 }
  0x45   :  { %v232_v28 = vadd.f32 %v1303_v6, %v164_v20  ;;  %v275_v53 = vadd.f32 %v1303_v6, %v207_v46  ;;  %v183_v3 = vmul.f32 %v1298_v5, %v1156_v63 }
  0x46   :  { %v250_v8 = vadd.f32 %v1303_v6, %v182_v2  ;;  %v210_v44 = vmul.f32 %v1298_v5, %v1211_v40  ;;  %v211_v45 = vmul.f32 %v1298_v5, %v1212_v41 }
  0x47   :  { %v296_v32 = vmax.f32 %v232_v28, 0.0  ;;  %v339_v59 = vmax.f32 %v275_v53, 0.0  ;;  %v251_v9 = vadd.f32 %v1303_v6, %v183_v3  ;;  %v277_v28 = vadd.f32 %v1303_v6, %v209_v23 }
  0x48   :  { %v314_v18 = vmax.f32 %v250_v8, 0.0 }
  0x49   :  { %v375_v1 = vpack.c.bf16 %v339_v59, %v338_v58  ;;  %v315_v19 = vmax.f32 %v251_v9, 0.0 }
  0x4a   :  { %1087 = vmatmul.msk.bf16.gmra.mxu3 %vm381_vm1, %v374_v25 }
  0x4d   :  { %1065 = vmatmul.msk.bf16.gmra.mxu0 %vm381_vm1, %v352_v29  ;;  %v233_v29 = vadd.f32 %v1303_v6, %v165_v21  ;;  %v197_v21 = vmul.f32 %v1298_v5, %v1184_v15 }
  0x4f   :  { %v297_v33 = vmax.f32 %v233_v29, 0.0  ;;  %v265_v26 = vadd.f32 %v1303_v6, %v197_v21  ;;  %v363_v29 = vpack.c.bf16 %v315_v19, %v314_v18 }
  0x50   :  { %1073 = vmatmul.msk.bf16.gmra.mxu1 %vm381_vm1, %v360_v36  ;;  %v1227_v36 = vld [vmem:[%s2256_s0 + $0x38] sm:$0xff]  }
  0x51   :  { %v354_v47 = vpack.c.bf16 %v297_v33, %v296_v32  ;;  %v1123_v48 = vunpack.c.l.bf16 %v1227_v36  ;;  %v1124_v49 = vunpack.c.h.bf16 %v1227_v36  ;;  %v329_v31 = vmax.f32 %v265_v26, 0.0  ;;  %v1243_v36 = vld [vmem:[%s2256_s0 + $0xb8] sm:$0xff]  }
  0x52   :  { %v340_v32 = vmax.f32 %v276_v27, 0.0  ;;  %v341_v33 = vmax.f32 %v277_v28, 0.0  ;;  %v1187_v38 = vunpack.c.l.bf16 %v1243_v36  ;;  %v1188_v39 = vunpack.c.h.bf16 %v1243_v36 }
  0x53   :  { %1081 = vmatmul.msk.bf16.gmra.mxu2 %vm381_vm1, %v368_v24  ;;  %v166_v60 = vmul.f32 %v1298_v5, %v1123_v48  ;;  %v167_v61 = vmul.f32 %v1298_v5, %v1124_v49  ;;  %v278_v48 = vadd.f32 %v1303_v6, %v210_v44  ;;  %v279_v49 = vadd.f32 %v1303_v6, %v211_v45 }
  0x54   :  { %v376_v35 = vpack.c.bf16 %v341_v33, %v340_v32  ;;  %v198_v42 = vmul.f32 %v1298_v5, %v1187_v38  ;;  %v199_v43 = vmul.f32 %v1298_v5, %v1188_v39 }
  0x55   :  { %v234_v4 = vadd.f32 %v1303_v6, %v166_v60  ;;  %v343_v55 = vmax.f32 %v279_v49, 0.0 }
  0x56   :  { %v266_v46 = vadd.f32 %v1303_v6, %v198_v42 }
  0x57   :  { %v298_v10 = vmax.f32 %v234_v4, 0.0 }
  0x58   :  { %v330_v51 = vmax.f32 %v266_v46, 0.0 }
  0x5a   :  { %1088 = vmatmul.msk.bf16.gmra.mxu3 %vm381_vm1, %v375_v1  ;;  %v1250_v1 = vld [vmem:[%s2256_s0 + $0xf0] sm:$0xff]  }
  0x5b   :  { %v1215_v4 = vunpack.c.l.bf16 %v1250_v1  ;;  %v1216_v8 = vunpack.c.h.bf16 %v1250_v1 }
  0x5d   :  { %1066 = vmatmul.msk.bf16.gmra.mxu0 %vm381_vm1, %v353_v7  ;;  %v235_v7 = vadd.f32 %v1303_v6, %v167_v61  ;;  %v212_v9 = vmul.f32 %v1298_v5, %v1215_v4 }
  0x5f   :  { %v299_v11 = vmax.f32 %v235_v7, 0.0 }
  0x60   :  { %1074 = vmatmul.msk.bf16.gmra.mxu1 %vm381_vm1, %v361_v14  ;;  %v1183_v14 = vunpack.c.l.bf16 %v1242_v12 }
  0x61   :  { %v355_v24 = vpack.c.bf16 %v299_v11, %v298_v10  ;;  %v213_v10 = vmul.f32 %v1298_v5, %v1216_v8  ;;  %v280_v11 = vadd.f32 %v1303_v6, %v212_v9 }
  0x62   :  { %v196_v20 = vmul.f32 %v1298_v5, %v1183_v14 }
  0x63   :  { %1082 = vmatmul.msk.bf16.gmra.mxu2 %vm381_vm1, %v369_v0  ;;  %v281_v13 = vadd.f32 %v1303_v6, %v213_v10  ;;  %v344_v16 = vmax.f32 %v280_v11, 0.0 }
  0x64   :  { %v264_v25 = vadd.f32 %v1303_v6, %v196_v20 }
  0x65   :  { %v345_v19 = vmax.f32 %v281_v13, 0.0 }
  0x66   :  { %v328_v30 = vmax.f32 %v264_v25, 0.0 }
  0x67   :  { %v378_v22 = vpack.c.bf16 %v345_v19, %v344_v16 }
  0x68   :  { %v370_v34 = vpack.c.bf16 %v329_v31, %v328_v30 }
  0x6a   :  { %1089 = vmatmul.msk.bf16.gmra.mxu3 %vm381_vm1, %v376_v35 }
  0x6d   :  { %1067 = vmatmul.msk.bf16.gmra.mxu0 %vm381_vm1, %v354_v47  ;;  %v267_v47 = vadd.f32 %v1303_v6, %v199_v43 }
  0x6f   :  { %v331_v52 = vmax.f32 %v267_v47, 0.0 }
  0x70   :  { %1075 = vmatmul.msk.bf16.gmra.mxu1 %vm381_vm1, %v362_v54  ;;  %v342_v54 = vmax.f32 %v278_v48, 0.0 }
  0x71   :  { %v371_v56 = vpack.c.bf16 %v331_v52, %v330_v51 }
  0x72   :  { %v377_v57 = vpack.c.bf16 %v343_v55, %v342_v54 }
  0x73   :  { %1083 = vmatmul.msk.bf16.gmra.mxu2 %vm381_vm1, %v370_v34 }
  0x7a   :  { %1090 = vmatmul.msk.bf16.gmra.mxu3 %vm381_vm1, %v377_v57 }
  0x7d   :  { %1068 = vmatmul.msk.bf16.gmra.mxu0 %vm381_vm1, %v355_v24 }
  0x80   :  { %1076 = vmatmul.msk.bf16.gmra.mxu1 %vm381_vm1, %v363_v29  ;;  %v1251_v29 = vld [vmem:[%s2256_s0 + $0xf8] sm:$0xff]  }
  0x81   :  { %v1219_v31 = vunpack.c.l.bf16 %v1251_v29  ;;  %v1220_v33 = vunpack.c.h.bf16 %v1251_v29 }
  0x83   :  { %1084 = vmatmul.msk.bf16.gmra.mxu2 %vm381_vm1, %v371_v56  ;;  %v214_v34 = vmul.f32 %v1298_v5, %v1219_v31  ;;  %v215_v35 = vmul.f32 %v1298_v5, %v1220_v33 }
  0x85   :  { %v282_v36 = vadd.f32 %v1303_v6, %v214_v34  ;;  %v283_v39 = vadd.f32 %v1303_v6, %v215_v35 }
  0x87   :  { %v346_v5 = vmax.f32 %v282_v36, 0.0  ;;  %v347_v44 = vmax.f32 %v283_v39, 0.0 }
  0x89   :  { %v379_v46 = vpack.c.bf16 %v347_v44, %v346_v5 }
  0x8a   :  { %v491_v50 = vpop.f32.mrf.mxu0  ;;  %1091 = vmatmul.msk.bf16.gmra.mxu3 %vm381_vm1, %v378_v22 }
  0x8b   :  { %652 = vst.msk [vmem:[%s2259_s4] sm:$0xff] %vm651_vm2, %v491_v50  ;;  %v849_v58 = vmul.f32 %v491_v50, %v491_v50  ;;  %v716_v60 = vsel %vm651_vm2, %v491_v50, 0.0 }
  0x8d   :  { %v1544_v53 = vpop.f32.mrf.mxu1  ;;  %v913_v2 = vsel %vm651_vm2, %v849_v58, 0.0 }
  0x8e   :  { %668 = vst.msk [vmem:[%s2259_s4 + $0x80] sm:$0xff] %vm651_vm2, %v1544_v53 }
  0x92   :  { %v493_v59 = vpop.f32.mrf.mxu0 }
  0x93   :  { %653 = vst.msk [vmem:[%s2259_s4 + $0x8] sm:$0xff] %vm651_vm2, %v493_v59  ;;  %v717_v61 = vsel %vm651_vm2, %v493_v59, 0.0  ;;  %v850_v62 = vmul.f32 %v493_v59, %v493_v59 }
  0x94   :  { %v718_v63 = vadd.f32 %v717_v61, %v716_v60 }
  0x95   :  { %v1559_v0 = vpop.f32.mrf.mxu1  ;;  %v914_v3 = vsel %vm651_vm2, %v850_v62, 0.0 }
  0x96   :  { %669 = vst.msk [vmem:[%s2259_s4 + $0x88] sm:$0xff] %vm651_vm2, %v1559_v0  ;;  %v915_v7 = vadd.f32 %v914_v3, %v913_v2  ;;  %v1589_v24 = vpop.f32.mrf.mxu2 }
  0x97   :  { %684 = vst.msk [vmem:[%s2259_s4 + $0x100] sm:$0xff] %vm651_vm2, %v1589_v24 }
  0x9a   :  { %v496_v12 = vpop.f32.mrf.mxu0  ;;  %1092 = vmatmul.msk.bf16.gmra.mxu3 %vm381_vm1, %v379_v46 }
  0x9b   :  { %654 = vst.msk [vmem:[%s2259_s4 + $0x10] sm:$0xff] %vm651_vm2, %v496_v12  ;;  %v719_v14 = vsel %vm651_vm2, %v496_v12, 0.0  ;;  %v851_v15 = vmul.f32 %v496_v12, %v496_v12 }
  0x9c   :  { %v720_v17 = vadd.f32 %v719_v14, %v718_v63 }
  0x9d   :  { %v1580_v18 = vpop.f32.mrf.mxu1  ;;  %v916_v20 = vsel %vm651_vm2, %v851_v15, 0.0 }
  0x9e   :  { %670 = vst.msk [vmem:[%s2259_s4 + $0x90] sm:$0xff] %vm651_vm2, %v1580_v18  ;;  %v917_v21 = vadd.f32 %v916_v20, %v915_v7  ;;  %v1615_v38 = vpop.f32.mrf.mxu2 }
  0x9f   :  { %685 = vst.msk [vmem:[%s2259_s4 + $0x108] sm:$0xff] %vm651_vm2, %v1615_v38 }
  0xa2   :  { %v498_v23 = vpop.f32.mrf.mxu0 }
  0xa3   :  { %655 = vst.msk [vmem:[%s2259_s4 + $0x18] sm:$0xff] %vm651_vm2, %v498_v23  ;;  %v721_v25 = vsel %vm651_vm2, %v498_v23, 0.0  ;;  %v852_v26 = vmul.f32 %v498_v23, %v498_v23 }
  0xa4   :  { %v722_v27 = vadd.f32 %v721_v25, %v720_v17 }
  0xa5   :  { %v1596_v28 = vpop.f32.mrf.mxu1  ;;  %v918_v30 = vsel %vm651_vm2, %v852_v26, 0.0 }
  0xa6   :  { %671 = vst.msk [vmem:[%s2259_s4 + $0x98] sm:$0xff] %vm651_vm2, %v1596_v28  ;;  %v919_v32 = vadd.f32 %v918_v30, %v917_v21  ;;  %v1641_v48 = vpop.f32.mrf.mxu2 }
  0xa7   :  { %686 = vst.msk [vmem:[%s2259_s4 + $0x110] sm:$0xff] %vm651_vm2, %v1641_v48 }
  0xa8   :  { %v1696_v61 = vpop.f32.mrf.mxu3 }
  0xa9   :  { %700 = vst.msk [vmem:[%s2259_s4 + $0x180] sm:$0xff] %vm651_vm2, %v1696_v61 }
  0xaa   :  { %v501_v37 = vpop.f32.mrf.mxu0 }
  0xab   :  { %656 = vst.msk [vmem:[%s2259_s4 + $0x20] sm:$0xff] %vm651_vm2, %v501_v37  ;;  %v723_v40 = vsel %vm651_vm2, %v501_v37, 0.0  ;;  %v853_v41 = vmul.f32 %v501_v37, %v501_v37 }
  0xac   :  { %v724_v42 = vadd.f32 %v723_v40, %v722_v27 }
  0xad   :  { %v1623_v43 = vpop.f32.mrf.mxu1  ;;  %v920_v6 = vsel %vm651_vm2, %v853_v41, 0.0 }
  0xae   :  { %672 = vst.msk [vmem:[%s2259_s4 + $0xa0] sm:$0xff] %vm651_vm2, %v1623_v43  ;;  %v1636_v45 = vadd.f32 %v920_v6, %v919_v32  ;;  %v1664_v54 = vpop.f32.mrf.mxu2 }
  0xaf   :  { %687 = vst.msk [vmem:[%s2259_s4 + $0x118] sm:$0xff] %vm651_vm2, %v1664_v54 }
  0xb0   :  { %v1722_v4 = vpop.f32.mrf.mxu3 }
  0xb1   :  { %701 = vst.msk [vmem:[%s2259_s4 + $0x188] sm:$0xff] %vm651_vm2, %v1722_v4 }
  0xb2   :  { %v1639_v47 = vpop.f32.mrf.mxu0 }
  0xb3   :  { %657 = vst.msk [vmem:[%s2259_s4 + $0x28] sm:$0xff] %vm651_vm2, %v1639_v47  ;;  %v725_v49 = vsel %vm651_vm2, %v1639_v47, 0.0  ;;  %v854_v32 = vmul.f32 %v1639_v47, %v1639_v47 }
  0xb4   :  { %v726_v50 = vadd.f32 %v725_v49, %v724_v42 }
  0xb5   :  { %v1650_v51 = vpop.f32.mrf.mxu1  ;;  %v922_v39 = vsel %vm651_vm2, %v854_v32, 0.0 }
  0xb6   :  { %673 = vst.msk [vmem:[%s2259_s4 + $0xa8] sm:$0xff] %vm651_vm2, %v1650_v51  ;;  %v1687_v59 = vpop.f32.mrf.mxu2  ;;  %v923_v5 = vadd.f32 %v922_v39, %v1636_v45 }
  0xb7   :  { %688 = vst.msk [vmem:[%s2259_s4 + $0x120] sm:$0xff] %vm651_vm2, %v1687_v59 }
  0xba   :  { %v1662_v52 = vpop.f32.mrf.mxu0 }
  0xbb   :  { %658 = vst.msk [vmem:[%s2259_s4 + $0x30] sm:$0xff] %vm651_vm2, %v1662_v52  ;;  %v727_v55 = vsel %vm651_vm2, %v1662_v52, 0.0  ;;  %v855_v37 = vmul.f32 %v1662_v52, %v1662_v52 }
  0xbc   :  { %v728_v56 = vadd.f32 %v727_v55, %v726_v50 }
  0xbd   :  { %v1673_v57 = vpop.f32.mrf.mxu1  ;;  %v1748_v12 = vpop.f32.mrf.mxu3  ;;  %v924_v41 = vsel %vm651_vm2, %v855_v37, 0.0 }
  0xbe   :  { %674 = vst.msk [vmem:[%s2259_s4 + $0xb0] sm:$0xff] %vm651_vm2, %v1673_v57  ;;  %v1715_v2 = vpop.f32.mrf.mxu2  ;;  %v925_v52 = vadd.f32 %v924_v41, %v923_v5 }
  0xbf   :  { %689 = vst.msk [vmem:[%s2259_s4 + $0x128] sm:$0xff] %vm651_vm2, %v1715_v2 }
  0xc0   :  { %702 = vst.msk [vmem:[%s2259_s4 + $0x190] sm:$0xff] %vm651_vm2, %v1748_v12 }
  0xc2   :  { %v1685_v58 = vpop.f32.mrf.mxu0 }
  0xc3   :  { %659 = vst.msk [vmem:[%s2259_s4 + $0x38] sm:$0xff] %vm651_vm2, %v1685_v58  ;;  %v729_v60 = vsel %vm651_vm2, %v1685_v58, 0.0  ;;  %v856_v40 = vmul.f32 %v1685_v58, %v1685_v58 }
  0xc4   :  { %v730_v62 = vadd.f32 %v729_v60, %v728_v56 }
  0xc5   :  { %v1698_v63 = vpop.f32.mrf.mxu1  ;;  %v1774_v19 = vpop.f32.mrf.mxu3  ;;  %v926_v46 = vsel %vm651_vm2, %v856_v40, 0.0 }
  0xc6   :  { %675 = vst.msk [vmem:[%s2259_s4 + $0xb8] sm:$0xff] %vm651_vm2, %v1698_v63  ;;  %v1741_v10 = vpop.f32.mrf.mxu2  ;;  %v927_v60 = vadd.f32 %v926_v46, %v925_v52  ;;  %v865_v46 = vmul.f32 %v1544_v53, %v1544_v53 }
  0xc7   :  { %690 = vst.msk [vmem:[%s2259_s4 + $0x130] sm:$0xff] %vm651_vm2, %v1741_v10 }
  0xc8   :  { %703 = vst.msk [vmem:[%s2259_s4 + $0x198] sm:$0xff] %vm651_vm2, %v1774_v19 }
  0xca   :  { %v511_v1 = vpop.f32.mrf.mxu0 }
  0xcb   :  { %660 = vst.msk [vmem:[%s2259_s4 + $0x40] sm:$0xff] %vm651_vm2, %v511_v1  ;;  %v731_v3 = vsel %vm651_vm2, %v511_v1, 0.0  ;;  %v857_v42 = vmul.f32 %v511_v1, %v511_v1 }
  0xcc   :  { %v732_v7 = vadd.f32 %v731_v3, %v730_v62 }
  0xcd   :  { %v1724_v8 = vpop.f32.mrf.mxu1  ;;  %v1800_v26 = vpop.f32.mrf.mxu3  ;;  %v928_v45 = vsel %vm651_vm2, %v857_v42, 0.0 }
  0xce   :  { %676 = vst.msk [vmem:[%s2259_s4 + $0xc0] sm:$0xff] %vm651_vm2, %v1724_v8  ;;  %v1767_v16 = vpop.f32.mrf.mxu2  ;;  %v929_v3 = vadd.f32 %v928_v45, %v927_v60  ;;  %v747_v60 = vsel %vm651_vm2, %v1544_v53, 0.0  ;;  %v944_v53 = vsel %vm651_vm2, %v865_v46, 0.0 }
  0xcf   :  { %691 = vst.msk [vmem:[%s2259_s4 + $0x138] sm:$0xff] %vm651_vm2, %v1767_v16 }
  0xd0   :  { %704 = vst.msk [vmem:[%s2259_s4 + $0x1a0] sm:$0xff] %vm651_vm2, %v1800_v26 }
  0xd2   :  { %v513_v9 = vpop.f32.mrf.mxu0 }
  0xd3   :  { %661 = vst.msk [vmem:[%s2259_s4 + $0x48] sm:$0xff] %vm651_vm2, %v513_v9  ;;  %v733_v11 = vsel %vm651_vm2, %v513_v9, 0.0  ;;  %v858_v47 = vmul.f32 %v513_v9, %v513_v9 }
  0xd4   :  { %v734_v13 = vadd.f32 %v733_v11, %v732_v7 }
  0xd5   :  { %v1750_v14 = vpop.f32.mrf.mxu1  ;;  %v1828_v34 = vpop.f32.mrf.mxu3  ;;  %v930_v62 = vsel %vm651_vm2, %v858_v47, 0.0 }
  0xd6   :  { %677 = vst.msk [vmem:[%s2259_s4 + $0xc8] sm:$0xff] %vm651_vm2, %v1750_v14  ;;  %v1793_v23 = vpop.f32.mrf.mxu2  ;;  %v931_v11 = vadd.f32 %v930_v62, %v929_v3  ;;  %v866_v62 = vmul.f32 %v1559_v0, %v1559_v0 }
  0xd7   :  { %692 = vst.msk [vmem:[%s2259_s4 + $0x140] sm:$0xff] %vm651_vm2, %v1793_v23 }
  0xd8   :  { %705 = vst.msk [vmem:[%s2259_s4 + $0x1a8] sm:$0xff] %vm651_vm2, %v1828_v34 }
  0xda   :  { %v516_v15 = vpop.f32.mrf.mxu0 }
  0xdb   :  { %662 = vst.msk [vmem:[%s2259_s4 + $0x50] sm:$0xff] %vm651_vm2, %v516_v15  ;;  %v735_v17 = vsel %vm651_vm2, %v516_v15, 0.0  ;;  %v859_v58 = vmul.f32 %v516_v15, %v516_v15 }
  0xdc   :  { %v736_v20 = vadd.f32 %v735_v17, %v734_v13 }
  0xdd   :  { %v1776_v21 = vpop.f32.mrf.mxu1  ;;  %v1862_v50 = vpop.f32.mrf.mxu3  ;;  %v932_v7 = vsel %vm651_vm2, %v859_v58, 0.0 }
  0xde   :  { %678 = vst.msk [vmem:[%s2259_s4 + $0xd0] sm:$0xff] %vm651_vm2, %v1776_v21  ;;  %v1819_v31 = vpop.f32.mrf.mxu2 }
  0xdf   :  { %693 = vst.msk [vmem:[%s2259_s4 + $0x148] sm:$0xff] %vm651_vm2, %v1819_v31 }
  0xe0   :  { %706 = vst.msk [vmem:[%s2259_s4 + $0x1b0] sm:$0xff] %vm651_vm2, %v1862_v50 }
  0xe2   :  { %v518_v22 = vpop.f32.mrf.mxu0 }
  0xe3   :  { %663 = vst.msk [vmem:[%s2259_s4 + $0x58] sm:$0xff] %vm651_vm2, %v518_v22  ;;  %v737_v25 = vsel %vm651_vm2, %v518_v22, 0.0  ;;  %v860_v1 = vmul.f32 %v518_v22, %v518_v22  ;;  %v933_v22 = vadd.f32 %v932_v7, %v931_v11  ;;  %v867_v11 = vmul.f32 %v1580_v18, %v1580_v18 }
  0xe4   :  { %v738_v27 = vadd.f32 %v737_v25, %v736_v20 }
  0xe5   :  { %v1802_v29 = vpop.f32.mrf.mxu1  ;;  %v934_v17 = vsel %vm651_vm2, %v860_v1, 0.0 }
  0xe6   :  { %679 = vst.msk [vmem:[%s2259_s4 + $0xd8] sm:$0xff] %vm651_vm2, %v1802_v29  ;;  %v1854_v6 = vpop.f32.mrf.mxu2  ;;  %v935_v37 = vadd.f32 %v934_v17, %v933_v22  ;;  %v868_v22 = vmul.f32 %v1596_v28, %v1596_v28 }
  0xe7   :  { %694 = vst.msk [vmem:[%s2259_s4 + $0x150] sm:$0xff] %vm651_vm2, %v1854_v6 }
  0xea   :  { %v521_v30 = vpop.f32.mrf.mxu0 }
  0xeb   :  { %664 = vst.msk [vmem:[%s2259_s4 + $0x60] sm:$0xff] %vm651_vm2, %v521_v30  ;;  %v739_v33 = vsel %vm651_vm2, %v521_v30, 0.0  ;;  %v861_v9 = vmul.f32 %v521_v30, %v521_v30 }
  0xec   :  { %v740_v35 = vadd.f32 %v739_v33, %v738_v27  ;;  %v1892_v27 = vpop.f32.mrf.mxu3 }
  0xed   :  { %v1830_v36 = vpop.f32.mrf.mxu1  ;;  %v936_v30 = vsel %vm651_vm2, %v861_v9, 0.0  ;;  %707 = vst.msk [vmem:[%s2259_s4 + $0x1b8] sm:$0xff] %vm651_vm2, %v1892_v27  ;;  %v749_v9 = vsel %vm651_vm2, %v1559_v0, 0.0  ;;  %v753_v0 = vsel %vm651_vm2, %v1596_v28, 0.0  ;;  %v950_v28 = vsel %vm651_vm2, %v868_v22, 0.0 }
  0xee   :  { %680 = vst.msk [vmem:[%s2259_s4 + $0xe0] sm:$0xff] %vm651_vm2, %v1830_v36  ;;  %v1884_v15 = vpop.f32.mrf.mxu2  ;;  %v937_v40 = vadd.f32 %v936_v30, %v935_v37  ;;  %v948_v37 = vsel %vm651_vm2, %v867_v11, 0.0  ;;  %v874_v22 = vmul.f32 %v1750_v14, %v1750_v14 }
  0xef   :  { %695 = vst.msk [vmem:[%s2259_s4 + $0x158] sm:$0xff] %vm651_vm2, %v1884_v15 }
  0xf2   :  { %v523_v44 = vpop.f32.mrf.mxu0 }
  0xf3   :  { %665 = vst.msk [vmem:[%s2259_s4 + $0x68] sm:$0xff] %vm651_vm2, %v523_v44  ;;  %v741_v49 = vsel %vm651_vm2, %v523_v44, 0.0  ;;  %v862_v20 = vmul.f32 %v523_v44, %v523_v44 }
  0xf4   :  { %v742_v55 = vadd.f32 %v741_v49, %v740_v35  ;;  %v1923_v52 = vpop.f32.mrf.mxu3 }
  0xf5   :  { %v1864_v56 = vpop.f32.mrf.mxu1  ;;  %v938_v39 = vsel %vm651_vm2, %v862_v20, 0.0  ;;  %708 = vst.msk [vmem:[%s2259_s4 + $0x1c0] sm:$0xff] %vm651_vm2, %v1923_v52  ;;  %v946_v20 = vsel %vm651_vm2, %v866_v62, 0.0 }
  0xf6   :  { %681 = vst.msk [vmem:[%s2259_s4 + $0xe8] sm:$0xff] %vm651_vm2, %v1864_v56  ;;  %v939_v42 = vadd.f32 %v938_v39, %v937_v40  ;;  %v1914_v44 = vpop.f32.mrf.mxu2  ;;  %v869_v39 = vmul.f32 %v1623_v43, %v1623_v43 }
  0xf7   :  { %696 = vst.msk [vmem:[%s2259_s4 + $0x160] sm:$0xff] %vm651_vm2, %v1914_v44 }
  0xfa   :  { %v526_v13 = vpop.f32.mrf.mxu0 }
  0xfb   :  { %666 = vst.msk [vmem:[%s2259_s4 + $0x70] sm:$0xff] %vm651_vm2, %v526_v13  ;;  %v743_v25 = vsel %vm651_vm2, %v526_v13, 0.0  ;;  %v863_v35 = vmul.f32 %v526_v13, %v526_v13 }
  0xfc   :  { %v744_v32 = vadd.f32 %v743_v25, %v742_v55  ;;  %v751_v25 = vsel %vm651_vm2, %v1580_v18, 0.0  ;;  %v1969_v18 = vpop.f32.mrf.mxu3 }
  0xfd   :  { %v1894_v33 = vpop.f32.mrf.mxu1  ;;  %v940_v41 = vsel %vm651_vm2, %v863_v35, 0.0  ;;  %709 = vst.msk [vmem:[%s2259_s4 + $0x1c8] sm:$0xff] %vm651_vm2, %v1969_v18 }
  0xfe   :  { %682 = vst.msk [vmem:[%s2259_s4 + $0xf0] sm:$0xff] %vm651_vm2, %v1894_v33  ;;  %v941_v55 = vadd.f32 %v940_v41, %v939_v42  ;;  %v1957_v35 = vpop.f32.mrf.mxu2  ;;  %v755_v42 = vsel %vm651_vm2, %v1623_v43, 0.0  ;;  %v759_v43 = vsel %vm651_vm2, %v1673_v57, 0.0 }
  0xff   :  { %697 = vst.msk [vmem:[%s2259_s4 + $0x168] sm:$0xff] %vm651_vm2, %v1957_v35 }
 0x102   :  { %v528_v5 = vpop.f32.mrf.mxu0 }
 0x103   :  { %667 = vst.msk [vmem:[%s2259_s4 + $0x78] sm:$0xff] %vm651_vm2, %v528_v5  ;;  %v745_v47 = vsel %vm651_vm2, %v528_v5, 0.0  ;;  %v864_v49 = vmul.f32 %v528_v5, %v528_v5  ;;  %v870_v5 = vmul.f32 %v1650_v51, %v1650_v51 }
 0x104   :  { %v746_v45 = vadd.f32 %v745_v47, %v744_v32 }
 0x105   :  { %v1925_v58 = vpop.f32.mrf.mxu1  ;;  %v942_v1 = vsel %vm651_vm2, %v864_v49, 0.0  ;;  %v952_v49 = vsel %vm651_vm2, %v869_v39, 0.0  ;;  %v875_v39 = vmul.f32 %v1776_v21, %v1776_v21 }
 0x106   :  { %683 = vst.msk [vmem:[%s2259_s4 + $0xf8] sm:$0xff] %vm651_vm2, %v1925_v58  ;;  %v748_v3 = vadd.f32 %v747_v60, %v746_v45  ;;  %v943_v7 = vadd.f32 %v942_v1, %v941_v55  ;;  %v757_v55 = vsel %vm651_vm2, %v1650_v51, 0.0  ;;  %v871_v45 = vmul.f32 %v1673_v57, %v1673_v57  ;;  %v2003_v57 = vpop.f32.mrf.mxu3 }
 0x107   :  { %v954_v1 = vsel %vm651_vm2, %v870_v5, 0.0  ;;  %v761_v51 = vsel %vm651_vm2, %v1698_v63, 0.0  ;;  %710 = vst.msk [vmem:[%s2259_s4 + $0x1d0] sm:$0xff] %vm651_vm2, %v2003_v57 }
 0x108   :  { %v750_v13 = vadd.f32 %v749_v9, %v748_v3  ;;  %v945_v17 = vadd.f32 %v944_v53, %v943_v7  ;;  %v872_v3 = vmul.f32 %v1698_v63, %v1698_v63  ;;  %v1991_v9 = vpop.f32.mrf.mxu2  ;;  %v956_v11 = vsel %vm651_vm2, %v871_v45, 0.0 }
 0x109   :  { %698 = vst.msk [vmem:[%s2259_s4 + $0x170] sm:$0xff] %vm651_vm2, %v1991_v9 }
 0x10a   :  { %v752_v32 = vadd.f32 %v751_v25, %v750_v13  ;;  %v947_v30 = vadd.f32 %v946_v20, %v945_v17  ;;  %v873_v13 = vmul.f32 %v1724_v8, %v1724_v8  ;;  %v958_v63 = vsel %vm651_vm2, %v872_v3, 0.0 }
 0x10b   :  { %v763_v25 = vsel %vm651_vm2, %v1724_v8, 0.0  ;;  %v767_v8 = vsel %vm651_vm2, %v1776_v21, 0.0 }
 0x10c   :  { %v754_v40 = vadd.f32 %v753_v0, %v752_v32  ;;  %v949_v41 = vadd.f32 %v948_v37, %v947_v30  ;;  %v960_v37 = vsel %vm651_vm2, %v873_v13, 0.0  ;;  %v765_v0 = vsel %vm651_vm2, %v1750_v14, 0.0 }
 0x10d   :  { %v769_v14 = vsel %vm651_vm2, %v1802_v29, 0.0 }
 0x10e   :  { %v756_v46 = vadd.f32 %v755_v42, %v754_v40  ;;  %v951_v47 = vadd.f32 %v950_v28, %v949_v41  ;;  %v962_v28 = vsel %vm651_vm2, %v874_v22, 0.0  ;;  %v876_v42 = vmul.f32 %v1802_v29, %v1802_v29  ;;  %v2037_v21 = vpop.f32.mrf.mxu3 }
 0x10f   :  { %711 = vst.msk [vmem:[%s2259_s4 + $0x1d8] sm:$0xff] %vm651_vm2, %v2037_v21  ;;  %v881_v22 = vmul.f32 %v1589_v24, %v1589_v24 }
 0x110   :  { %v758_v60 = vadd.f32 %v757_v55, %v756_v46  ;;  %v953_v62 = vadd.f32 %v952_v49, %v951_v47  ;;  %v2025_v47 = vpop.f32.mrf.mxu2  ;;  %v964_v49 = vsel %vm651_vm2, %v875_v39, 0.0  ;;  %v877_v55 = vmul.f32 %v1830_v36, %v1830_v36 }
 0x111   :  { %699 = vst.msk [vmem:[%s2259_s4 + $0x178] sm:$0xff] %vm651_vm2, %v2025_v47  ;;  %v966_v29 = vsel %vm651_vm2, %v876_v42, 0.0  ;;  %v882_v39 = vmul.f32 %v1615_v38, %v1615_v38  ;;  %v883_v42 = vmul.f32 %v1641_v48, %v1641_v48 }
 0x112   :  { %v955_v7 = vadd.f32 %v954_v1, %v953_v62  ;;  %v760_v53 = vadd.f32 %v759_v43, %v758_v60  ;;  %v771_v62 = vsel %vm651_vm2, %v1830_v36, 0.0  ;;  %v878_v1 = vmul.f32 %v1864_v56, %v1864_v56 }
 0x113   :  { %v775_v36 = vsel %vm651_vm2, %v1894_v33, 0.0 }
 0x114   :  { %v762_v17 = vadd.f32 %v761_v51, %v760_v53  ;;  %v957_v20 = vadd.f32 %v956_v11, %v955_v7  ;;  %v968_v7 = vsel %vm651_vm2, %v877_v55, 0.0  ;;  %v773_v53 = vsel %vm651_vm2, %v1864_v56, 0.0 }
 0x115   :  { %v879_v11 = vmul.f32 %v1894_v33, %v1894_v33  ;;  %v779_v33 = vsel %vm651_vm2, %v1589_v24, 0.0  ;;  %v783_v24 = vsel %vm651_vm2, %v1641_v48, 0.0 }
 0x116   :  { %v764_v32 = vadd.f32 %v763_v25, %v762_v17  ;;  %v959_v30 = vadd.f32 %v958_v63, %v957_v20  ;;  %v970_v17 = vsel %vm651_vm2, %v878_v1, 0.0  ;;  %v880_v20 = vmul.f32 %v1925_v58, %v1925_v58 }
 0x117   :  { %v972_v56 = vsel %vm651_vm2, %v879_v11, 0.0 }
 0x118   :  { %v766_v40 = vadd.f32 %v765_v0, %v764_v32  ;;  %v961_v41 = vadd.f32 %v960_v37, %v959_v30  ;;  %v777_v32 = vsel %vm651_vm2, %v1925_v58, 0.0  ;;  %v2064_v30 = vpop.f32.mrf.mxu3 }
 0x119   :  { %712 = vst.msk [vmem:[%s2259_s4 + $0x1e0] sm:$0xff] %vm651_vm2, %v2064_v30 }
 0x11a   :  { %v768_v5 = vadd.f32 %v767_v8, %v766_v40  ;;  %v963_v46 = vadd.f32 %v962_v28, %v961_v41  ;;  %v974_v40 = vsel %vm651_vm2, %v880_v20, 0.0  ;;  %v976_v28 = vsel %vm651_vm2, %v881_v22, 0.0 }
 0x11b   :  { %v781_v8 = vsel %vm651_vm2, %v1615_v38, 0.0  ;;  %v785_v38 = vsel %vm651_vm2, %v1664_v54, 0.0 }
 0x11c   :  { %v770_v45 = vadd.f32 %v769_v14, %v768_v5  ;;  %v965_v60 = vadd.f32 %v964_v49, %v963_v46  ;;  %v978_v49 = vsel %vm651_vm2, %v882_v39, 0.0  ;;  %v884_v14 = vmul.f32 %v1664_v54, %v1664_v54 }
 0x11d   :  { %v886_v54 = vmul.f32 %v1715_v2, %v1715_v2  ;;  %v795_v39 = vsel %vm651_vm2, %v1793_v23, 0.0 }
 0x11e   :  { %v772_v43 = vadd.f32 %v771_v62, %v770_v45  ;;  %v967_v3 = vadd.f32 %v966_v29, %v965_v60  ;;  %v980_v60 = vsel %vm651_vm2, %v883_v42, 0.0  ;;  %v885_v29 = vmul.f32 %v1687_v59, %v1687_v59 }
 0x11f   :  { %v982_v48 = vsel %vm651_vm2, %v884_v14, 0.0  ;;  %v986_v20 = vsel %vm651_vm2, %v886_v54, 0.0  ;;  %v805_v54 = vsel %vm651_vm2, %v1957_v35, 0.0 }
 0x120   :  { %v969_v51 = vadd.f32 %v968_v7, %v967_v3  ;;  %v774_v13 = vadd.f32 %v773_v53, %v772_v43  ;;  %v2091_v62 = vpop.f32.mrf.mxu3  ;;  %v787_v3 = vsel %vm651_vm2, %v1687_v59, 0.0  ;;  %v984_v11 = vsel %vm651_vm2, %v885_v29, 0.0 }
 0x121   :  { %713 = vst.msk [vmem:[%s2259_s4 + $0x1e8] sm:$0xff] %vm651_vm2, %v2091_v62  ;;  %v791_v59 = vsel %vm651_vm2, %v1741_v10, 0.0 }
 0x122   :  { %v971_v63 = vadd.f32 %v970_v17, %v969_v51  ;;  %v776_v25 = vadd.f32 %v775_v36, %v774_v13  ;;  %v789_v51 = vsel %vm651_vm2, %v1715_v2, 0.0  ;;  %v887_v13 = vmul.f32 %v1741_v10, %v1741_v10 }
 0x123   :  { %v793_v2 = vsel %vm651_vm2, %v1767_v16, 0.0 }
 0x124   :  { %v973_v37 = vadd.f32 %v972_v56, %v971_v63  ;;  %v778_v0 = vadd.f32 %v777_v32, %v776_v25  ;;  %v888_v63 = vmul.f32 %v1767_v16, %v1767_v16  ;;  %v988_v56 = vsel %vm651_vm2, %v887_v13, 0.0 }
 0x125   :  { %v889_v32 = vmul.f32 %v1793_v23, %v1793_v23  ;;  %v890_v16 = vmul.f32 %v1819_v31, %v1819_v31  ;;  %v799_v23 = vsel %vm651_vm2, %v1854_v6, 0.0  ;;  %v896_v13 = vmul.f32 %v2025_v47, %v2025_v47 }
 0x126   :  { %v780_v41 = vadd.f32 %v779_v33, %v778_v0  ;;  %v975_v58 = vadd.f32 %v974_v40, %v973_v37  ;;  %v990_v10 = vsel %vm651_vm2, %v888_v63, 0.0 }
 0x128   :  { %v782_v5 = vadd.f32 %v781_v8, %v780_v41  ;;  %v977_v46 = vadd.f32 %v976_v28, %v975_v58  ;;  %v2118_v37 = vpop.f32.mrf.mxu3  ;;  %v992_v58 = vsel %vm651_vm2, %v889_v32, 0.0  ;;  %v797_v28 = vsel %vm651_vm2, %v1819_v31, 0.0 }
 0x129   :  { %714 = vst.msk [vmem:[%s2259_s4 + $0x1f0] sm:$0xff] %vm651_vm2, %v2118_v37  ;;  %v891_v8 = vmul.f32 %v1854_v6, %v1854_v6  ;;  %v801_v31 = vsel %vm651_vm2, %v1884_v15, 0.0 }
 0x12a   :  { %v784_v55 = vadd.f32 %v783_v24, %v782_v5  ;;  %v979_v45 = vadd.f32 %v978_v49, %v977_v46  ;;  %v994_v46 = vsel %vm651_vm2, %v890_v16, 0.0  ;;  %v892_v49 = vmul.f32 %v1884_v15, %v1884_v15 }
 0x12b   :  { %v894_v15 = vmul.f32 %v1957_v35, %v1957_v35 }
 0x12c   :  { %v786_v1 = vadd.f32 %v785_v38, %v784_v55  ;;  %v981_v43 = vadd.f32 %v980_v60, %v979_v45  ;;  %v996_v55 = vsel %vm651_vm2, %v891_v8, 0.0  ;;  %v893_v45 = vmul.f32 %v1914_v44, %v1914_v44 }
 0x12d   :  { %v998_v6 = vsel %vm651_vm2, %v892_v49, 0.0  ;;  %v901_v8 = vmul.f32 %v1800_v26, %v1800_v26 }
 0x12e   :  { %v788_v7 = vadd.f32 %v787_v3, %v786_v1  ;;  %v983_v53 = vadd.f32 %v982_v48, %v981_v43  ;;  %v803_v1 = vsel %vm651_vm2, %v1914_v44, 0.0  ;;  %v1000_v3 = vsel %vm651_vm2, %v893_v45, 0.0 }
 0x12f   :  { %v807_v44 = vsel %vm651_vm2, %v1991_v9, 0.0 }
 0x130   :  { %v790_v17 = vadd.f32 %v789_v51, %v788_v7  ;;  %v985_v36 = vadd.f32 %v984_v11, %v983_v53  ;;  %v2145_v60 = vpop.f32.mrf.mxu3  ;;  %v895_v7 = vmul.f32 %v1991_v9, %v1991_v9  ;;  %v1002_v51 = vsel %vm651_vm2, %v894_v15, 0.0 }
 0x131   :  { %715 = vst.msk [vmem:[%s2259_s4 + $0x1f8] sm:$0xff] %vm651_vm2, %v2145_v60  ;;  %v898_v9 = vmul.f32 %v1722_v4, %v1722_v4  ;;  %s1258_s4 = smov 16  }
 0x132   :  { %v987_v25 = vadd.f32 %v986_v20, %v985_v36  ;;  %v792_v22 = vadd.f32 %v791_v59, %v790_v17  ;;  %v897_v20 = vmul.f32 %v1696_v61, %v1696_v61  ;;  %v1004_v35 = vsel %vm651_vm2, %v895_v7, 0.0 }
 0x133   :  { %v809_v59 = vsel %vm651_vm2, %v2025_v47, 0.0  ;;  %v899_v47 = vmul.f32 %v1748_v12, %v1748_v12  ;;  %v1010_v16 = vsel %vm651_vm2, %v898_v9, 0.0  ;;  %v906_v7 = vmul.f32 %v1969_v18, %v1969_v18 }
 0x134   :  { %v794_v0 = vadd.f32 %v793_v2, %v792_v22  ;;  %v989_v33 = vadd.f32 %v988_v56, %v987_v25  ;;  %v811_v22 = vsel %vm651_vm2, %v1696_v61, 0.0  ;;  %v1006_v56 = vsel %vm651_vm2, %v896_v13, 0.0 }
 0x135   :  { %v815_v61 = vsel %vm651_vm2, %v1748_v12, 0.0  ;;  %v819_v12 = vsel %vm651_vm2, %v1800_v26, 0.0  ;;  %v823_v26 = vsel %vm651_vm2, %v1862_v50, 0.0 }
 0x136   :  { %v796_v40 = vadd.f32 %v795_v39, %v794_v0  ;;  %v991_v41 = vadd.f32 %v990_v10, %v989_v33  ;;  %v1008_v0 = vsel %vm651_vm2, %v897_v20, 0.0  ;;  %v813_v33 = vsel %vm651_vm2, %v1722_v4, 0.0 }
 0x137   :  { %v817_v4 = vsel %vm651_vm2, %v1774_v19, 0.0  ;;  %v908_v20 = vmul.f32 %v2037_v21, %v2037_v21 }
 0x138   :  { %v798_v42 = vadd.f32 %v797_v28, %v796_v40  ;;  %v993_v5 = vadd.f32 %v992_v58, %v991_v41  ;;  %v900_v40 = vmul.f32 %v1774_v19, %v1774_v19  ;;  %v1012_v28 = vsel %vm651_vm2, %v899_v47, 0.0 }
 0x139   :  { %v821_v19 = vsel %vm651_vm2, %v1828_v34, 0.0  ;;  %v911_v47 = vmul.f32 %v2118_v37, %v2118_v37 }
 0x13a   :  { %v800_v24 = vadd.f32 %v799_v23, %v798_v42  ;;  %v995_v14 = vadd.f32 %v994_v46, %v993_v5  ;;  %v1014_v46 = vsel %vm651_vm2, %v900_v40, 0.0  ;;  %v902_v23 = vmul.f32 %v1828_v34, %v1828_v34 }
 0x13b   :  { %v825_v34 = vsel %vm651_vm2, %v1892_v27, 0.0 }
 0x13c   :  { %v802_v38 = vadd.f32 %v801_v31, %v800_v24  ;;  %v997_v29 = vadd.f32 %v996_v55, %v995_v14  ;;  %v1016_v14 = vsel %vm651_vm2, %v901_v8, 0.0  ;;  %v903_v55 = vmul.f32 %v1862_v50, %v1862_v50 }
 0x13d   :  { %v827_v50 = vsel %vm651_vm2, %v1923_v52, 0.0 }
 0x13e   :  { %v999_v43 = vadd.f32 %v998_v6, %v997_v29  ;;  %v804_v48 = vadd.f32 %v803_v1, %v802_v38  ;;  %v1018_v38 = vsel %vm651_vm2, %v902_v23, 0.0  ;;  %v904_v29 = vmul.f32 %v1892_v27, %v1892_v27 }
 0x13f   :  { %v1020_v15 = vsel %vm651_vm2, %v903_v55, 0.0  ;;  %v829_v27 = vsel %vm651_vm2, %v1969_v18, 0.0  ;;  %v833_v18 = vsel %vm651_vm2, %v2037_v21, 0.0  ;;  %v837_v21 = vsel %vm651_vm2, %v2091_v62, 0.0 }
 0x140   :  { %v1001_v53 = vadd.f32 %v1000_v3, %v999_v43  ;;  %v806_v11 = vadd.f32 %v805_v54, %v804_v48  ;;  %v905_v43 = vmul.f32 %v1923_v52, %v1923_v52  ;;  %v1022_v54 = vsel %vm651_vm2, %v904_v29, 0.0 }
 0x141   :  { %v831_v52 = vsel %vm651_vm2, %v2003_v57, 0.0 }
 0x142   :  { %v1003_v17 = vadd.f32 %v1002_v51, %v1001_v53  ;;  %v808_v36 = vadd.f32 %v807_v44, %v806_v11  ;;  %v1024_v51 = vsel %vm651_vm2, %v905_v43, 0.0  ;;  %v907_v44 = vmul.f32 %v2003_v57, %v2003_v57 }
 0x143   :  { %v835_v57 = vsel %vm651_vm2, %v2064_v30, 0.0 }
 0x144   :  { %v1005_v63 = vadd.f32 %v1004_v35, %v1003_v17  ;;  %v810_v25 = vadd.f32 %v809_v59, %v808_v36  ;;  %v1026_v36 = vsel %vm651_vm2, %v906_v7, 0.0 }
 0x146   :  { %v812_v2 = vadd.f32 %v811_v22, %v810_v25  ;;  %v1007_v32 = vadd.f32 %v1006_v56, %v1005_v63  ;;  %v1028_v63 = vsel %vm651_vm2, %v907_v44, 0.0  ;;  %v909_v25 = vmul.f32 %v2064_v30, %v2064_v30 }
 0x147   :  { %v1030_v56 = vsel %vm651_vm2, %v908_v20, 0.0  ;;  %v839_v30 = vsel %vm651_vm2, %v2118_v37, 0.0 }
 0x148   :  { %v814_v10 = vadd.f32 %v813_v33, %v812_v2  ;;  %v1009_v39 = vadd.f32 %v1008_v0, %v1007_v32  ;;  %v910_v2 = vmul.f32 %v2091_v62, %v2091_v62  ;;  %v1032_v33 = vsel %vm651_vm2, %v909_v25, 0.0 }
 0x149   :  { %v841_v62 = vsel %vm651_vm2, %v2145_v60, 0.0 }
 0x14a   :  { %v816_v41 = vadd.f32 %v815_v61, %v814_v10  ;;  %v1011_v58 = vadd.f32 %v1010_v16, %v1009_v39  ;;  %v1034_v16 = vsel %vm651_vm2, %v910_v2, 0.0  ;;  %v912_v61 = vmul.f32 %v2145_v60, %v2145_v60 }
 0x14c   :  { %v818_v42 = vadd.f32 %v817_v4, %v816_v41  ;;  %v1013_v5 = vadd.f32 %v1012_v28, %v1011_v58  ;;  %v1036_v58 = vsel %vm651_vm2, %v911_v47, 0.0  ;;  %v1038_v8 = vsel %vm651_vm2, %v912_v61, 0.0 }
 0x14e   :  { %v820_v49 = vadd.f32 %v819_v12, %v818_v42  ;;  %v1015_v24 = vadd.f32 %v1014_v46, %v1013_v5 }
 0x150   :  { %v822_v31 = vadd.f32 %v821_v19, %v820_v49  ;;  %v1017_v45 = vadd.f32 %v1016_v14, %v1015_v24 }
 0x152   :  { %v1019_v6 = vadd.f32 %v1018_v38, %v1017_v45  ;;  %v824_v1 = vadd.f32 %v823_v26, %v822_v31 }
 0x154   :  { %v826_v48 = vadd.f32 %v825_v34, %v824_v1  ;;  %v1021_v3 = vadd.f32 %v1020_v15, %v1019_v6 }
 0x156   :  { %v828_v53 = vadd.f32 %v827_v50, %v826_v48  ;;  %v1023_v11 = vadd.f32 %v1022_v54, %v1021_v3 }
 0x158   :  { %v830_v13 = vadd.f32 %v829_v27, %v828_v53  ;;  %v1025_v17 = vadd.f32 %v1024_v51, %v1023_v11 }
 0x15a   :  { %v832_v35 = vadd.f32 %v831_v52, %v830_v13  ;;  %v1027_v59 = vadd.f32 %v1026_v36, %v1025_v17 }
 0x15c   :  { %v834_v22 = vadd.f32 %v833_v18, %v832_v35  ;;  %v1029_v9 = vadd.f32 %v1028_v63, %v1027_v59 }
 0x15e   :  { %v1031_v32 = vadd.f32 %v1030_v56, %v1029_v9  ;;  %v836_v0 = vadd.f32 %v835_v57, %v834_v22 }
 0x160   :  { %v1033_v10 = vadd.f32 %v1032_v33, %v1031_v32  ;;  %v838_v39 = vadd.f32 %v837_v21, %v836_v0 }
 0x162   :  { %v1035_v40 = vadd.f32 %v1034_v16, %v1033_v10  ;;  %v840_v41 = vadd.f32 %v839_v30, %v838_v39 }
 0x164   :  { %v1037_v28 = vadd.f32 %v1036_v58, %v1035_v40  ;;  %v842_v4 = vadd.f32 %v841_v62, %v840_v41 }
 0x166   :  { %v1039_v42 = vadd.f32 %v1038_v8, %v1037_v28  ;;  %v843_v24 = vrot.slane %v842_v4, 4 }
 0x168   :  { %v1040_v5 = vrot.slane %v1039_v42, 4  ;;  %v844_v14 = vadd.f32 %v843_v24, %v842_v4 }
 0x16a   :  { %v1041_v46 = vadd.f32 %v1040_v5, %v1039_v42  ;;  %v845_v19 = vrot.slane %v844_v14, 2 }
 0x16c   :  { %v1042_v12 = vrot.slane %v1041_v46, 2  ;;  %v846_v55 = vadd.f32 %v845_v19, %v844_v14 }
 0x16e   :  { %v1043_v23 = vadd.f32 %v1042_v12, %v1041_v46  ;;  %v847_v31 = vrot.slane %v846_v55, 1 }
 0x170   :  { %v1044_v37 = vrot.slane %v1043_v23, 1  ;;  %v848_v45 = vadd.f32 %v847_v31, %v846_v55 }
 0x172   :  { %v1045_v49 = vadd.f32 %v1044_v37, %v1043_v23 }
 0x174   :  { %1047 = vrot.lane.b32.xlu0 %v1045_v49, %s1258_s4 }
 0x1e6   :  { %v1048_v60 = vpop.permute.xlu0 %1047 }
 0x1e7   :  { %v1050_v38 = vsel %vm651_vm2, %v848_v45, %v1048_v60 }
 0x1e8   :  { %1052 = vst.msk [vmem:[%s2260_s5] sm:$0x1] %vm1051_vm3, %v1050_v38 }

// kernel: bottleneck_forward.5
= control target key start
LH: loop header
LB: loop body
LE: loop exit
PB: predicated region body
PF: predicated region fallthrough
CT: control target
= control target key end

     0   :  { %s5872_s18 = smov 0   ;;  %s7577_s0 = inlined_call_operand.vmem [shape: bf16[2,16,16,4], index: 0, kind: input, shape index: {}]   ;;  %s7578_s1 = inlined_call_operand.vmem [shape: f32[1,4], index: 1, kind: input, shape index: {}]   ;;  %s7579_s2 = inlined_call_operand.vmem [shape: f32[1,4], index: 2, kind: input, shape index: {}]   ;;  %s7580_s3 = inlined_call_operand.vmem [shape: bf16[9,4,4], index: 3, kind: input, shape index: {}]   ;;  %s7581_s4 = inlined_call_operand.vmem [shape: bf16[2,16,16,4], index: 4, kind: output, shape index: {0}]   ;;  %s7582_s5 = inlined_call_operand.vmem [shape: f32[2,1,8], index: 5, kind: output, shape index: {1}]  }
   0x1 LB: > { %s5225_s19 = sadd.s32 4294967295, %s5838_s18   ;;  %p5229_p0 = scmp.ge.s32.totalorder %s5838_s18, 1  ;;  %s5838_s18 = sphi %s5872_s18, %s16_s18  }
   0x2   : > { %p190_p1 = scmp.lt.s32.totalorder %s5838_s18, 3 }
   0x4   : > { %p191_p2 = pnand %p5229_p0, %p190_p1 }
   0x6   : > { %194 = sbr.rel (%p191_p2) target bundleno = 992 (0x3e0), region = 36 }
   0xb   : > { %v5234_v0 = vld [vmem:[%s7580_s3 + $0x2] sm:$0x3]  ;;  %vm1529_vm0 = vcmask 1041408   ;;  %p221_p3 = scmp.lt.s32.totalorder %s5225_s19, 1  ;;  %vm759_vm1 = vcmask 27648   ;;  %v5840_v3 = vmov 0  }
   0xc   : > { %v1531_v1 = vsel %vm1529_vm0, %v5234_v0, 0  ;;  %v5897_v2 = vld [vmem:[%s7578_s1] ss:$0 sm:$0xff]  ;;  %877 = vst.msk [vmem:[#allocation2] sm:$0xf] %vm759_vm1, %v5840_v3  ;;  %vm767_vm2 = vcmask 24576  }
   0xd   : > { %5757 = vmatpush.bf16.msra.mxu1 %v1531_v1  ;;  %5758 = vmatpush.bf16.msra.mxu2 %v1531_v1  ;;  %s7620_s19 = smov (!%p221_p3, %s5225_s19), 1  ;;  %878 = vst.msk [vmem:[#allocation2 + $0x4] sm:$0xf] %vm759_vm1, %v5840_v3  ;;  %v5906_v8 = vld [vmem:[%s7579_s2] ss:$0 sm:$0xff]  ;;  %vm1480_vm13 = vcmask 31744  }
   0xe   : > { %5759 = vmatpush.bf16.msra.mxu3 %v1531_v1  ;;  %1540 = vmatpush.bf16.msra.mxu0 %v1531_v1  ;;  %s5628_s22 = sshll.u32 %s7620_s19, 7  ;;  %880 = vst.msk [vmem:[#allocation2 + $0x8] sm:$0x1] %vm767_vm2, %v5840_v3  ;;  %vm435_vm3 = vsmask.f32 256  ;;  %vm1890_vm14 = vcmask 1042432   ;;  %s233_s12 = scalar_lea.vmem %s7582_s5, %s7620_s19 }
   0xf   : > { %s5892_s25 = scalar_lea.vmem %s7577_s0, %s5628_s22  ;;  %882 = vst.msk [vmem:[#allocation2 + $0xcc] sm:$0xf] %vm759_vm1, %v5840_v3  ;;  %vm436_vm4 = vsmask.f32 4368  ;;  %vm760_vm5 = vsmask.f32 7938  ;;  %vm5929_vm6 = vmand %vm767_vm2, %vm435_vm3  ;;  %s7197_s9 = scalar_lea.vmem %s7581_s4, %s5628_s22 }
  0x10   : > { %v5744_v4 = vld [vmem:[%s5892_s25 + $0x18] sm:$0xff]   ;;  %v5745_v12 = vld [vmem:[%s5892_s25 + $0x20] sm:$0xff]   ;;  %883 = vst.msk [vmem:[#allocation2 + $0xd0] sm:$0xf] %vm759_vm1, %v5840_v3  ;;  %vm5938_vm7 = vmand %vm767_vm2, %vm760_vm5  ;;  %vm1043_vm10 = vsmask.f32 3328 }
  0x11   : > { %v5748_v5 = vld [vmem:[%s5892_s25 + $0x38] sm:$0xff]   ;;  %v5692_v6 = vunpack.c.l.bf16 %v5744_v4  ;;  %v5693_v7 = vunpack.c.h.bf16 %v5744_v4  ;;  %v5696_v15 = vunpack.c.l.bf16 %v5745_v12  ;;  %884 = vst.msk [vmem:[#allocation2 + $0xd4] sm:$0x1] %vm767_vm2, %v5840_v3  ;;  %v5697_v22 = vunpack.c.h.bf16 %v5745_v12  ;;  %vm5951_vm8 = vmor %vm435_vm3, %vm436_vm4  ;;  %v786_v61 = vld [vmem:[#allocation2 + $0x30] sm:$0xf]  ;;  %s5841_s22 = smov 4  }
  0x12   : > { %v5708_v9 = vunpack.c.l.bf16 %v5748_v5  ;;  %v5709_v10 = vunpack.c.h.bf16 %v5748_v5  ;;  %v5752_v11 = vld [vmem:[%s5892_s25 + $0x58] sm:$0xff]   ;;  %vm5960_vm9 = vmand %vm759_vm1, %vm760_vm5  ;;  %v814_v12 = vld [vmem:[#allocation2 + $0x60] sm:$0xf]  ;;  %vm1044_vm11 = vsmask.f32 7440  ;;  %vm1891_vm15 = vcmask 1046532  }
  0x13   : > { %v5724_v13 = vunpack.c.l.bf16 %v5752_v11  ;;  %v5725_v14 = vunpack.c.h.bf16 %v5752_v11  ;;  %v309_v16 = vmul.f32 %v5897_v2, %v5692_v6  ;;  %v310_v17 = vmul.f32 %v5897_v2, %v5693_v7  ;;  %v885_v29 = vld [vmem:[#allocation2] sm:$0x1]  ;;  %v790_v1 = vld [vmem:[#allocation2 + $0x38] sm:$0x1]  ;;  %vm6007_vm12 = vmor %vm1043_vm10, %vm1044_vm11 }
  0x14   : > { %v317_v18 = vmul.f32 %v5897_v2, %v5708_v9  ;;  %v318_v19 = vmul.f32 %v5897_v2, %v5709_v10  ;;  %v311_v30 = vmul.f32 %v5897_v2, %v5696_v15  ;;  %v886_v38 = vsel %vm5929_vm6, 0, %v885_v29  ;;  %v846_v29 = vld [vmem:[#allocation2 + $0x98] sm:$0x1]  ;;  %vm6405_vm2 = vmor %vm1890_vm14, %vm1891_vm15 }
  0x15   : > { %v325_v20 = vmul.f32 %v5897_v2, %v5724_v13  ;;  %v326_v21 = vmul.f32 %v5897_v2, %v5725_v14  ;;  %v345_v23 = vadd.f32 %v5906_v8, %v309_v16  ;;  %v346_v24 = vadd.f32 %v5906_v8, %v310_v17  ;;  %v940_v39 = vld [vmem:[#allocation2 + $0x8] sm:$0x1]  ;;  %887 = vst [vmem:[#allocation2] sm:$0x1] %v886_v38 }
  0x16   : > { %v353_v25 = vadd.f32 %v5906_v8, %v317_v18  ;;  %v354_v26 = vadd.f32 %v5906_v8, %v318_v19  ;;  %v312_v40 = vmul.f32 %v5897_v2, %v5697_v22  ;;  %v941_v48 = vsel %vm5938_vm7, 0, %v940_v39  ;;  %v818_v13 = vld [vmem:[#allocation2 + $0x68] sm:$0x1] }
  0x17   : > { %v361_v27 = vadd.f32 %v5906_v8, %v325_v20  ;;  %v362_v28 = vadd.f32 %v5906_v8, %v326_v21  ;;  %v377_v31 = vmax.f32 %v345_v23, 0.0  ;;  %v378_v32 = vmax.f32 %v346_v24, 0.0  ;;  %942 = vst [vmem:[#allocation2 + $0x8] sm:$0x1] %v941_v48  ;;  %v842_v23 = vld [vmem:[#allocation2 + $0x90] sm:$0xf] }
  0x18   : > { %v385_v34 = vmax.f32 %v353_v25, 0.0  ;;  %v386_v35 = vmax.f32 %v354_v26, 0.0  ;;  %v5947_v49 = vadd.f32 %v5906_v8, %v311_v30  ;;  %v5956_v63 = vadd.f32 %v5906_v8, %v312_v40  ;;  %v995_v24 = vld [vmem:[#allocation2 + $0x4] sm:$0xf] }
  0x19   : > { %v393_v36 = vmax.f32 %v361_v27, 0.0  ;;  %v394_v37 = vmax.f32 %v362_v28, 0.0  ;;  %v409_v41 = vpack.c.bf16 %v377_v31, %v377_v31  ;;  %v410_v42 = vpack.c.bf16 %v378_v32, %v378_v32 }
  0x1a   : > { %v417_v44 = vpack.c.bf16 %v385_v34, %v385_v34  ;;  %v418_v45 = vpack.c.bf16 %v386_v35, %v386_v35  ;;  %v1056_v39 = vshll.u32 %v995_v24, 16  ;;  %v1060_v40 = vshrl.u32 %v995_v24, 16 }
  0x1b   : > { %v425_v46 = vpack.c.bf16 %v393_v36, %v393_v36  ;;  %v5942_v47 = vpack.c.bf16 %v394_v37, %v394_v37  ;;  %v490_v50 = vshrl.u32 %v409_v41, 16  ;;  %v493_v51 = vshll.u32 %v409_v41, 16  ;;  %v5749_v36 = vld [vmem:[%s5892_s25 + $0x40] sm:$0xff]  }
  0x1c   : > { %v498_v52 = vshrl.u32 %v410_v42, 16  ;;  %v501_v53 = vshll.u32 %v410_v42, 16  ;;  %v558_v54 = vshrl.u32 %v417_v44, 16  ;;  %v561_v55 = vshll.u32 %v417_v44, 16  ;;  %v994_v18 = vld [vmem:[#allocation2] sm:$0xf] }
  0x1d   : > { %v566_v56 = vshrl.u32 %v418_v45, 16  ;;  %v569_v57 = vshll.u32 %v418_v45, 16  ;;  %v492_v59 = vrot.slane %v490_v50, 7  ;;  %v626_v62 = vshrl.u32 %v425_v46, 16 }
  0x1e   : > { %v500_v60 = vrot.slane %v498_v52, 7  ;;  %v560_v3 = vrot.slane %v558_v54, 7  ;;  %v629_v5 = vshll.u32 %v425_v46, 16  ;;  %v634_v6 = vshrl.u32 %v5942_v47, 16  ;;  %v1027_v30 = vld [vmem:[#allocation2 + $0x8] sm:$0x1] }
  0x1f   : > { %v568_v4 = vrot.slane %v566_v56, 7  ;;  %v495_v7 = vor.u32 %v493_v51, %v492_v59  ;;  %v496_v9 = vrot.slane %v492_v59, 4  ;;  %v628_v22 = vrot.slane %v626_v62, 7  ;;  %v5347_v46 = vld [vmem:[%s7580_s3 + $0x4] sm:$0x3] }
  0x20   : > { %v503_v10 = vor.u32 %v501_v53, %v500_v60  ;;  %v505_v11 = vrot.slane %v500_v60, 4  ;;  %v563_v14 = vor.u32 %v561_v55, %v560_v3  ;;  %v564_v15 = vrot.slane %v560_v3, 4 }
  0x21   : > { %v571_v16 = vor.u32 %v569_v57, %v568_v4  ;;  %v573_v17 = vrot.slane %v568_v4, 4  ;;  %v787_v20 = vsel %vm5960_vm9, %v495_v7, %v786_v61  ;;  %v636_v28 = vrot.slane %v634_v6, 7  ;;  %v5364_v57 = vld [vmem:[%s7580_s3 + $0x6] sm:$0x3] }
  0x22   : > { %v504_v19 = vsel %vm5951_vm8, %v496_v9, %v503_v10  ;;  %v791_v21 = vsel %vm5929_vm6, %v505_v11, %v790_v1  ;;  %788 = vst [vmem:[#allocation2 + $0x30] sm:$0xf] %v787_v20  ;;  %v815_v26 = vsel %vm5960_vm9, %v563_v14, %v814_v12  ;;  %v631_v31 = vor.u32 %v629_v5, %v628_v22  ;;  %v6000_v5 = vld [vmem:[%s5892_s25 + $0x60] sm:$0xff]  }
  0x23   : > { %v572_v25 = vsel %vm5951_vm8, %v564_v15, %v571_v16  ;;  %v819_v27 = vsel %vm5929_vm6, %v573_v17, %v818_v13  ;;  %789 = vst.msk [vmem:[#allocation2 + $0x34] sm:$0xf] %vm759_vm1, %v504_v19  ;;  %v632_v32 = vrot.slane %v628_v22, 4  ;;  %v637_v34 = vshll.u32 %v5942_v47, 16 }
  0x24   : > { %v1047_v35 = vshrl.u32 %v994_v18, 16  ;;  %792 = vst [vmem:[#allocation2 + $0x38] sm:$0x1] %v791_v21  ;;  %v641_v37 = vrot.slane %v636_v28, 4  ;;  %v1050_v38 = vshll.u32 %v994_v18, 16  ;;  %v843_v42 = vsel %vm5960_vm9, %v631_v31, %v842_v23 }
  0x25   : > { %816 = vst [vmem:[#allocation2 + $0x60] sm:$0xf] %v815_v26  ;;  %v639_v41 = vor.u32 %v637_v34, %v636_v28  ;;  %v1066_v45 = vshll.u32 %v1027_v30, 16  ;;  %v1058_v48 = vrot.slane %v1056_v39, 5  ;;  %v5712_v50 = vunpack.c.l.bf16 %v5749_v36  ;;  %v1026_v18 = vld [vmem:[%s7580_s3] sm:$0x3] }
  0x26   : > { %v1049_v44 = vrot.slane %v1047_v35, 4  ;;  %817 = vst.msk [vmem:[#allocation2 + $0x64] sm:$0xf] %vm759_vm1, %v572_v25  ;;  %v1052_v47 = vrot.slane %v1050_v38, 5  ;;  %v847_v52 = vsel %vm5929_vm6, %v641_v37, %v846_v29  ;;  %v2104_v53 = vsel %vm1529_vm0, %v5347_v46, 0 }
  0x27   : > { %820 = vst [vmem:[#allocation2 + $0x68] sm:$0x1] %v819_v27  ;;  %v640_v51 = vsel %vm5951_vm8, %v632_v32, %v639_v41  ;;  %v1062_v54 = vrot.slane %v1060_v40, 4  ;;  %2113 = vmatpush.bf16.msrb.mxu2 %v2104_v53  ;;  %v1068_v56 = vrot.slane %v1066_v45, 5  ;;  %v379_v59 = vmax.f32 %v5947_v49, 0.0 }
  0x28   : > { %844 = vst [vmem:[#allocation2 + $0x90] sm:$0xf] %v843_v42  ;;  %v1053_v55 = vor.u32 %v1052_v47, %v1049_v44  ;;  %v5713_v60 = vunpack.c.h.bf16 %v5749_v36  ;;  %v2390_v1 = vsel %vm1529_vm0, %v5364_v57, 0  ;;  %v380_v3 = vmax.f32 %v5956_v63, 0.0  ;;  %v6039_v36 = vld [vmem:[%s5892_s25] sm:$0xff]  }
  0x29   : > { %v897_v61 = vld [vmem:[#allocation2 + $0x30] sm:$0x1]  ;;  %845 = vst.msk [vmem:[#allocation2 + $0x94] sm:$0xf] %vm759_vm1, %v640_v51  ;;  %v1063_v62 = vor.u32 %v1062_v54, %v1058_v48  ;;  %v319_v4 = vmul.f32 %v5897_v2, %v5712_v50  ;;  %2399 = vmatpush.bf16.msrb.mxu3 %v2390_v1  ;;  %v6011_v13 = vpack.c.bf16 %v379_v59, %v379_v59  ;;  %v5728_v29 = vunpack.c.l.bf16 %v6000_v5  ;;  %v5445_v57 = vld [vmem:[%s7580_s3 + $0x8] sm:$0x3] }
  0x2a   : > { %v898_v6 = vsel %vm5929_vm6, 0, %v897_v61  ;;  %v1003_v7 = vld [vmem:[#allocation2 + $0x34] sm:$0xf]  ;;  %848 = vst [vmem:[#allocation2 + $0x98] sm:$0x1] %v847_v52  ;;  %v1054_v9 = vrot.slane %v1053_v55, 4  ;;  %v320_v49 = vmul.f32 %v5897_v2, %v5713_v60  ;;  %v6020_v19 = vpack.c.bf16 %v380_v3, %v380_v3 }
  0x2b   : > { %899 = vst [vmem:[#allocation2 + $0x30] sm:$0x1] %v898_v6  ;;  %v952_v10 = vld [vmem:[#allocation2 + $0x38] sm:$0x1]  ;;  %v1152_v63 = vshll.u32 %v1003_v7, 16  ;;  %v1156_v12 = vshrl.u32 %v1003_v7, 16  ;;  %v6027_v23 = vadd.f32 %v5906_v8, %v319_v4  ;;  %v5729_v41 = vunpack.c.h.bf16 %v6000_v5 }
  0x2c   : > { %v953_v14 = vsel %vm5938_vm7, 0, %v952_v10  ;;  %v909_v15 = vld [vmem:[#allocation2 + $0x60] sm:$0x1]  ;;  %v1059_v16 = vsel %vm6007_vm12, %v1054_v9, %v1058_v48  ;;  %v1064_v17 = vrot.slane %v1063_v62, 4  ;;  %v6032_v28 = vadd.f32 %v5906_v8, %v320_v49 }
  0x2d   : > { %954 = vst [vmem:[#allocation2 + $0x38] sm:$0x1] %v953_v14  ;;  %v6022_v20 = vrot.slane %v1152_v63, 5  ;;  %v1158_v21 = vrot.slane %v1156_v12, 4  ;;  %v910_v22 = vsel %vm5929_vm6, 0, %v909_v15  ;;  %v1432_v27 = vunpack.c.l.b16 %v1059_v16 }
  0x2e   : > { %911 = vst [vmem:[#allocation2 + $0x60] sm:$0x1] %v910_v22  ;;  %v964_v24 = vld [vmem:[#allocation2 + $0x68] sm:$0x1]  ;;  %v1011_v25 = vld [vmem:[#allocation2 + $0x64] sm:$0xf]  ;;  %v1069_v26 = vsel %vm6007_vm12, %v1064_v17, %v1068_v56  ;;  %v327_v46 = vmul.f32 %v5897_v2, %v5728_v29  ;;  %v5680_v53 = vunpack.c.l.bf16 %v6039_v36  ;;  %v328_v3 = vmul.f32 %v5897_v2, %v5729_v41 }
  0x2f   : > { %v1159_v30 = vor.u32 %v1158_v21, %v6022_v20  ;;  %v965_v31 = vsel %vm5938_vm7, 0, %v964_v24  ;;  %v1248_v32 = vshll.u32 %v1011_v25, 16  ;;  %v1252_v34 = vshrl.u32 %v1011_v25, 16  ;;  %v921_v35 = vld [vmem:[#allocation2 + $0x90] sm:$0x1] }
  0x30   : > { %966 = vst [vmem:[#allocation2 + $0x68] sm:$0x1] %v965_v31  ;;  %v922_v37 = vsel %vm5929_vm6, 0, %v921_v35  ;;  %v1019_v38 = vld [vmem:[#allocation2 + $0x94] sm:$0xf]  ;;  %v1433_v39 = vunpack.c.l.b16 %v1069_v26  ;;  %v1751_v40 = vsel %vm1529_vm0, %v1026_v18, 0  ;;  %v6061_v9 = vadd.f32 %v5906_v8, %v327_v46 }
  0x31   : > { %v6045_v42 = vrot.slane %v1248_v32, 5  ;;  %v1254_v44 = vrot.slane %v1252_v34, 4  ;;  %923 = vst [vmem:[#allocation2 + $0x90] sm:$0x1] %v922_v37  ;;  %v1344_v45 = vshll.u32 %v1019_v38, 16  ;;  %1760 = vmatpush.bf16.msrb.mxu1 %v1751_v40  ;;  %v1160_v48 = vrot.slane %v1159_v30, 4 }
  0x32   : > { %v1002_v47 = vld [vmem:[#allocation2 + $0x30] sm:$0xf]  ;;  %v976_v50 = vld [vmem:[#allocation2 + $0x98] sm:$0x1]  ;;  %v1348_v51 = vshrl.u32 %v1019_v38, 16  ;;  %v1464_v52 = vpack.c.b16 %v1433_v39, %v1432_v27  ;;  %v507_v59 = vshrl.u32 %v6011_v13, 16 }
  0x33   : > { %v1143_v54 = vshrl.u32 %v1002_v47, 16  ;;  %v1146_v55 = vshll.u32 %v1002_v47, 16  ;;  %v977_v56 = vsel %vm5938_vm7, 0, %v976_v50  ;;  %v1255_v61 = vor.u32 %v1254_v44, %v6045_v42 }
  0x34   : > { %v1031_v60 = vld [vmem:[#allocation2 + $0x38] sm:$0x1]  ;;  %978 = vst [vmem:[#allocation2 + $0x98] sm:$0x1] %v977_v56  ;;  %v6056_v62 = vrot.slane %v1344_v45, 5  ;;  %v1350_v1 = vrot.slane %v1348_v51, 4  ;;  %5235 = vmatmul.msk.bf16.vlgmr.msra.gmra.mxu0 %vm1480_vm13, %v1464_v52 }
  0x35   : > { %v1145_v4 = vrot.slane %v1143_v54, 4  ;;  %v1148_v5 = vrot.slane %v1146_v55, 5  ;;  %v1162_v6 = vshll.u32 %v1031_v60, 16  ;;  %v1010_v7 = vld [vmem:[#allocation2 + $0x60] sm:$0xf]  ;;  %v3044_v12 = vsel %vm1529_vm0, %v5445_v57, 0 }
  0x36   : > { %v1239_v49 = vshrl.u32 %v1010_v7, 16  ;;  %v1242_v10 = vshll.u32 %v1010_v7, 16  ;;  %v1351_v63 = vor.u32 %v1350_v1, %v6056_v62  ;;  %3053 = vmatpush.bf16.msrb.mxu0 %v3044_v12  ;;  %v509_v17 = vrot.slane %v507_v59, 7 }
  0x37   : > { %v1149_v14 = vor.u32 %v1148_v5, %v1145_v4  ;;  %v1164_v15 = vrot.slane %v1162_v6, 5  ;;  %v1035_v16 = vld [vmem:[#allocation2 + $0x68] sm:$0x1]  ;;  %v510_v18 = vshll.u32 %v6011_v13, 16  ;;  %v1256_v24 = vrot.slane %v1255_v61, 4 }
  0x38   : > { %v1241_v21 = vrot.slane %v1239_v49, 4  ;;  %v1244_v22 = vrot.slane %v1242_v10, 5  ;;  %v1258_v25 = vshll.u32 %v1035_v16, 16  ;;  %v1018_v26 = vld [vmem:[#allocation2 + $0x90] sm:$0xf]  ;;  %v1352_v37 = vrot.slane %v1351_v63, 4 }
  0x39   : > { %v1150_v27 = vrot.slane %v1149_v14, 4  ;;  %v1165_v29 = vsel %vm6007_vm12, %v1160_v48, %v1164_v15  ;;  %v1335_v30 = vshrl.u32 %v1018_v26, 16  ;;  %v1338_v31 = vshll.u32 %v1018_v26, 16  ;;  %v793_v48 = vld [vmem:[#allocation2 + $0x3c] sm:$0xf] }
  0x3a   : > { %v1441_v32 = vunpack.c.l.b16 %v1165_v29  ;;  %v1245_v34 = vor.u32 %v1244_v22, %v1241_v21  ;;  %v1260_v35 = vrot.slane %v1258_v25, 5  ;;  %v512_v41 = vor.u32 %v510_v18, %v509_v17  ;;  %v797_v49 = vld [vmem:[#allocation2 + $0x44] sm:$0x1]  ;;  %v821_v26 = vld [vmem:[#allocation2 + $0x6c] sm:$0xf] }
  0x3b   : > { %v1155_v38 = vsel %vm6007_vm12, %v1150_v27, %v6022_v20  ;;  %v1039_v13 = vld [vmem:[#allocation2 + $0x98] sm:$0x1]  ;;  %v1337_v39 = vrot.slane %v1335_v30, 4  ;;  %v1340_v40 = vrot.slane %v1338_v31, 5  ;;  %v513_v52 = vrot.slane %v509_v17, 4 }
  0x3c   : > { %v1440_v44 = vunpack.c.l.b16 %v1155_v38  ;;  %v1246_v45 = vrot.slane %v1245_v34, 4  ;;  %v1261_v46 = vsel %vm6007_vm12, %v1256_v24, %v1260_v35  ;;  %v1354_v47 = vshll.u32 %v1039_v13, 16 }
  0x3d   : > { %v1449_v50 = vunpack.c.l.b16 %v1261_v46  ;;  %v1341_v51 = vor.u32 %v1340_v40, %v1337_v39  ;;  %v364_v54 = vadd.f32 %v5906_v8, %v328_v3  ;;  %v515_v57 = vshrl.u32 %v6020_v19, 16  ;;  %v5746_v46 = vld [vmem:[%s5892_s25 + $0x28] sm:$0xff]  }
  0x3e   : > { %v1468_v55 = vpack.c.b16 %v1441_v32, %v1440_v44  ;;  %v1251_v20 = vsel %vm6007_vm12, %v1246_v45, %v6045_v42  ;;  %v1356_v56 = vrot.slane %v1354_v47, 5  ;;  %v518_v61 = vshll.u32 %v6020_v19, 16  ;;  %v825_v44 = vld [vmem:[#allocation2 + $0x74] sm:$0x1] }
  0x3f   : > { %v1448_v59 = vunpack.c.l.b16 %v1251_v20  ;;  %v1342_v60 = vrot.slane %v1341_v51, 4  ;;  %v794_v1 = vsel %vm5960_vm9, %v512_v41, %v793_v48  ;;  %v517_v4 = vrot.slane %v515_v57, 7 }
  0x40   : > { %5239 = vmatmul.msk.bf16.vlgmr.msra.gmra.mxu1 %vm1480_vm13, %v1468_v55  ;;  %v1357_v3 = vsel %vm6007_vm12, %v1352_v37, %v1356_v56  ;;  %795 = vst [vmem:[#allocation2 + $0x3c] sm:$0xf] %v794_v1  ;;  %v387_v5 = vmax.f32 %v6027_v23, 0.0  ;;  %v388_v42 = vmax.f32 %v6032_v28, 0.0  ;;  %v395_v10 = vmax.f32 %v6061_v9, 0.0 }
  0x41   : > { %v1472_v6 = vpack.c.b16 %v1449_v50, %v1448_v59  ;;  %v1347_v7 = vsel %vm6007_vm12, %v1342_v60, %v6056_v62  ;;  %v1457_v19 = vunpack.c.l.b16 %v1357_v3  ;;  %v520_v12 = vor.u32 %v518_v61, %v517_v4  ;;  %v853_v55 = vld [vmem:[#allocation2 + $0xa4] sm:$0x1]  ;;  %v6114_v61 = vld [vmem:[%s5892_s25 + $0x48] sm:$0xff]  }
  0x42   : > { %v1456_v63 = vunpack.c.l.b16 %v1347_v7  ;;  %v522_v14 = vrot.slane %v517_v4, 4  ;;  %v419_v15 = vpack.c.bf16 %v387_v5, %v387_v5  ;;  %v420_v16 = vpack.c.bf16 %v388_v42, %v388_v42 }
  0x43   : > { %5243 = vmatmul.msk.bf16.vlgmr.msra.gmra.mxu2 %vm1480_vm13, %v1472_v6  ;;  %v396_v17 = vmax.f32 %v364_v54, 0.0  ;;  %v427_v23 = vpack.c.bf16 %v395_v10, %v395_v10  ;;  %v5681_v28 = vunpack.c.h.bf16 %v6039_v36  ;;  %v521_v21 = vsel %vm5951_vm8, %v513_v52, %v520_v12 }
  0x44   : > { %v1476_v18 = vpack.c.b16 %v1457_v19, %v1456_v63  ;;  %v798_v62 = vsel %vm5929_vm6, %v522_v14, %v797_v49  ;;  %v575_v22 = vshrl.u32 %v419_v15, 16  ;;  %796 = vst.msk [vmem:[#allocation2 + $0x40] sm:$0xf] %vm759_vm1, %v521_v21  ;;  %v578_v9 = vshll.u32 %v419_v15, 16 }
  0x45   : > { %v583_v24 = vshrl.u32 %v420_v16, 16  ;;  %v586_v25 = vshll.u32 %v420_v16, 16  ;;  %v428_v27 = vpack.c.bf16 %v396_v17, %v396_v17  ;;  %799 = vst [vmem:[#allocation2 + $0x44] sm:$0x1] %v798_v62  ;;  %v643_v30 = vshrl.u32 %v427_v23, 16 }
  0x46   : > { %5247 = vmatmul.msk.bf16.vlgmr.msra.gmra.mxu3 %vm1480_vm13, %v1476_v18  ;;  %v577_v29 = vrot.slane %v575_v22, 7  ;;  %v646_v31 = vshll.u32 %v427_v23, 16  ;;  %v303_v32 = vmul.f32 %v5897_v2, %v5680_v53  ;;  %v304_v13 = vmul.f32 %v5897_v2, %v5681_v28  ;;  %v849_v53 = vld [vmem:[#allocation2 + $0x9c] sm:$0xf] }
  0x47   : > { %v900_v34 = vld [vmem:[#allocation2 + $0x3c] sm:$0x1]  ;;  %v585_v35 = vrot.slane %v583_v24, 7  ;;  %v651_v37 = vshrl.u32 %v428_v27, 16  ;;  %v654_v38 = vshll.u32 %v428_v27, 16  ;;  %v645_v45 = vrot.slane %v643_v30, 7 }
  0x48   : > { %v901_v39 = vsel %vm5929_vm6, 0, %v900_v34  ;;  %v580_v40 = vor.u32 %v578_v9, %v577_v29  ;;  %v581_v41 = vrot.slane %v577_v29, 4  ;;  %v339_v50 = vadd.f32 %v5906_v8, %v303_v32 }
  0x49   : > { %902 = vst [vmem:[#allocation2 + $0x3c] sm:$0x1] %v901_v39  ;;  %v588_v47 = vor.u32 %v586_v25, %v585_v35  ;;  %v590_v36 = vrot.slane %v585_v35, 4  ;;  %v653_v48 = vrot.slane %v651_v37, 7  ;;  %v648_v52 = vor.u32 %v646_v31, %v645_v45  ;;  %v762_v31 = vld [vmem:[#allocation2 + $0xc] sm:$0xf] }
  0x4a   : > { %v822_v51 = vsel %vm5960_vm9, %v580_v40, %v821_v26  ;;  %v649_v54 = vrot.slane %v645_v45, 4  ;;  %v340_v20 = vadd.f32 %v5906_v8, %v304_v13  ;;  %v371_v4 = vmax.f32 %v339_v50, 0.0 }
  0x4b   : > { %v589_v56 = vsel %vm5951_vm8, %v581_v41, %v588_v47  ;;  %823 = vst [vmem:[#allocation2 + $0x6c] sm:$0xf] %v822_v51  ;;  %v826_v57 = vsel %vm5929_vm6, %v590_v36, %v825_v44  ;;  %v656_v59 = vor.u32 %v654_v38, %v653_v48  ;;  %v658_v60 = vrot.slane %v653_v48, 4  ;;  %v1005_v1 = vld [vmem:[#allocation2 + $0x40] sm:$0xf] }
  0x4c   : > { %824 = vst.msk [vmem:[#allocation2 + $0x70] sm:$0xf] %vm759_vm1, %v589_v56  ;;  %v850_v3 = vsel %vm5960_vm9, %v648_v52, %v849_v53  ;;  %v372_v5 = vmax.f32 %v340_v20, 0.0  ;;  %v5700_v42 = vunpack.c.l.bf16 %v5746_v46  ;;  %v955_v6 = vld [vmem:[#allocation2 + $0x44] sm:$0x1]  ;;  %v1176_v7 = vshll.u32 %v1005_v1, 16 }
  0x4d   : > { %v1180_v19 = vshrl.u32 %v1005_v1, 16  ;;  %827 = vst [vmem:[#allocation2 + $0x74] sm:$0x1] %v826_v57  ;;  %v657_v49 = vsel %vm5951_vm8, %v649_v54, %v656_v59  ;;  %v854_v10 = vsel %vm5929_vm6, %v658_v60, %v853_v55  ;;  %v956_v63 = vsel %vm5938_vm7, 0, %v955_v6 }
  0x4e   : > { %851 = vst [vmem:[#allocation2 + $0x9c] sm:$0xf] %v850_v3  ;;  %v403_v12 = vpack.c.bf16 %v371_v4, %v371_v4  ;;  %v404_v14 = vpack.c.bf16 %v372_v5, %v372_v5  ;;  %v5701_v15 = vunpack.c.h.bf16 %v5746_v46  ;;  %v1178_v16 = vrot.slane %v1176_v7, 5 }
  0x4f   : > { %957 = vst [vmem:[#allocation2 + $0x44] sm:$0x1] %v956_v63  ;;  %v1182_v17 = vrot.slane %v1180_v19, 4  ;;  %v313_v23 = vmul.f32 %v5897_v2, %v5700_v42  ;;  %v5716_v22 = vunpack.c.l.bf16 %v6114_v61  ;;  %v5717_v34 = vunpack.c.h.bf16 %v6114_v61 }
  0x50   : > { %v1004_v28 = vld [vmem:[#allocation2 + $0x3c] sm:$0xf]  ;;  %852 = vst.msk [vmem:[#allocation2 + $0xa0] sm:$0xf] %vm759_vm1, %v657_v49  ;;  %v439_v18 = vshrl.u32 %v403_v12, 16  ;;  %v442_v21 = vshll.u32 %v403_v12, 16  ;;  %v314_v62 = vmul.f32 %v5897_v2, %v5701_v15 }
  0x51   : > { %v1167_v9 = vshrl.u32 %v1004_v28, 16  ;;  %v1170_v24 = vshll.u32 %v1004_v28, 16  ;;  %v1183_v25 = vor.u32 %v1182_v17, %v1178_v16  ;;  %855 = vst [vmem:[#allocation2 + $0xa4] sm:$0x1] %v854_v10  ;;  %v447_v26 = vshrl.u32 %v404_v14, 16 }
  0x52   : > { %v912_v27 = vld [vmem:[#allocation2 + $0x6c] sm:$0x1]  ;;  %v441_v29 = vrot.slane %v439_v18, 7  ;;  %v450_v30 = vshll.u32 %v404_v14, 16  ;;  %v349_v32 = vadd.f32 %v5906_v8, %v313_v23  ;;  %v350_v46 = vadd.f32 %v5906_v8, %v314_v62  ;;  %v769_v14 = vld [vmem:[#allocation2 + $0x14] sm:$0x1] }
  0x53   : > { %v1169_v35 = vrot.slane %v1167_v9, 4  ;;  %v1172_v37 = vrot.slane %v1170_v24, 5  ;;  %v1184_v38 = vrot.slane %v1183_v25, 4  ;;  %v913_v13 = vsel %vm5929_vm6, 0, %v912_v27  ;;  %v1013_v39 = vld [vmem:[#allocation2 + $0x70] sm:$0xf] }
  0x54   : > { %914 = vst [vmem:[#allocation2 + $0x6c] sm:$0x1] %v913_v13  ;;  %v967_v40 = vld [vmem:[#allocation2 + $0x74] sm:$0x1]  ;;  %v1272_v41 = vshll.u32 %v1013_v39, 16  ;;  %v1276_v44 = vshrl.u32 %v1013_v39, 16  ;;  %v444_v45 = vor.u32 %v442_v21, %v441_v29  ;;  %v321_v20 = vmul.f32 %v5897_v2, %v5716_v22 }
  0x55   : > { %v1173_v47 = vor.u32 %v1172_v37, %v1169_v35  ;;  %v968_v36 = vsel %vm5938_vm7, 0, %v967_v40  ;;  %v924_v48 = vld [vmem:[#allocation2 + $0x9c] sm:$0x1]  ;;  %v445_v53 = vrot.slane %v441_v29, 4  ;;  %v449_v50 = vrot.slane %v447_v26, 7 }
  0x56   : > { %v1032_v51 = vld [vmem:[#allocation2 + $0x44] sm:$0x1]  ;;  %969 = vst [vmem:[#allocation2 + $0x74] sm:$0x1] %v968_v36  ;;  %v6136_v52 = vrot.slane %v1272_v41, 5  ;;  %v1278_v54 = vrot.slane %v1276_v44, 4  ;;  %v763_v55 = vsel %vm5960_vm9, %v444_v45, %v762_v31  ;;  %v322_v42 = vmul.f32 %v5897_v2, %v5717_v34 }
  0x57   : > { %v1174_v56 = vrot.slane %v1173_v47, 4  ;;  %v1186_v57 = vshll.u32 %v1032_v51, 16  ;;  %v925_v59 = vsel %vm5929_vm6, 0, %v924_v48  ;;  %v1021_v60 = vld [vmem:[#allocation2 + $0xa0] sm:$0xf]  ;;  %v452_v61 = vor.u32 %v450_v30, %v449_v50 }
  0x58   : > { %v1279_v1 = vor.u32 %v1278_v54, %v6136_v52  ;;  %926 = vst [vmem:[#allocation2 + $0x9c] sm:$0x1] %v925_v59  ;;  %v979_v3 = vld [vmem:[#allocation2 + $0xa4] sm:$0x1]  ;;  %v1368_v4 = vshll.u32 %v1021_v60, 16  ;;  %v1372_v5 = vshrl.u32 %v1021_v60, 16  ;;  %v6157_v28 = vadd.f32 %v5906_v8, %v321_v20 }
  0x59   : > { %v1179_v6 = vsel %vm6007_vm12, %v1174_v56, %v1178_v16  ;;  %v1188_v7 = vrot.slane %v1186_v57, 5  ;;  %v980_v19 = vsel %vm5938_vm7, 0, %v979_v3  ;;  %v453_v49 = vsel %vm5951_vm8, %v445_v53, %v452_v61  ;;  %764 = vst [vmem:[#allocation2 + $0xc] sm:$0xf] %v763_v55 }
  0x5a   : > { %v1442_v10 = vunpack.c.l.b16 %v1179_v6  ;;  %981 = vst [vmem:[#allocation2 + $0xa4] sm:$0x1] %v980_v19  ;;  %v6151_v63 = vrot.slane %v1368_v4, 5  ;;  %v1374_v12 = vrot.slane %v1372_v5, 4  ;;  %v454_v23 = vrot.slane %v449_v50, 4 }
  0x5b   : > { %v1189_v15 = vsel %vm6007_vm12, %v1184_v38, %v1188_v7  ;;  %v1012_v17 = vld [vmem:[#allocation2 + $0x6c] sm:$0xf]  ;;  %766 = vst.msk [vmem:[#allocation2 + $0x10] sm:$0xf] %vm759_vm1, %v453_v49  ;;  %v381_v16 = vmax.f32 %v349_v32, 0.0  ;;  %v1280_v22 = vrot.slane %v1279_v1, 4  ;;  %v6162_v27 = vadd.f32 %v5906_v8, %v322_v42 }
  0x5c   : > { %v1443_v18 = vunpack.c.l.b16 %v1189_v15  ;;  %v1263_v21 = vshrl.u32 %v1012_v17, 16  ;;  %v1266_v62 = vshll.u32 %v1012_v17, 16  ;;  %v770_v24 = vsel %vm5929_vm6, %v454_v23, %v769_v14  ;;  %v800_v5 = vld [vmem:[#allocation2 + $0x48] sm:$0xf] }
  0x5d   : > { %v1036_v9 = vld [vmem:[#allocation2 + $0x74] sm:$0x1]  ;;  %v382_v25 = vmax.f32 %v350_v46, 0.0  ;;  %v413_v26 = vpack.c.bf16 %v381_v16, %v381_v16  ;;  %771 = vst [vmem:[#allocation2 + $0x14] sm:$0x1] %v770_v24  ;;  %v1375_v35 = vor.u32 %v1374_v12, %v6151_v63  ;;  %v389_v13 = vmax.f32 %v6157_v28, 0.0 }
  0x5e   : > { %v1469_v29 = vpack.c.b16 %v1443_v18, %v1442_v10  ;;  %v1265_v30 = vrot.slane %v1263_v21, 4  ;;  %v1268_v31 = vrot.slane %v1266_v62, 5  ;;  %v1282_v32 = vshll.u32 %v1036_v9, 16  ;;  %v5754_v9 = vld [vmem:[%s5892_s25 + $0x68] sm:$0xff]  }
  0x5f   : > { %v1020_v34 = vld [vmem:[#allocation2 + $0x9c] sm:$0xf]  ;;  %v414_v37 = vpack.c.bf16 %v382_v25, %v382_v25  ;;  %v524_v38 = vshrl.u32 %v413_v26, 16  ;;  %v527_v48 = vshll.u32 %v413_v26, 16  ;;  %v1376_v56 = vrot.slane %v1375_v35, 4 }
  0x60   : > { %5240 = vmatmul.msk.bf16.gmra.mxu1 %vm1480_vm13, %v1469_v29  ;;  %v1269_v39 = vor.u32 %v1268_v31, %v1265_v30  ;;  %v1284_v40 = vrot.slane %v1282_v32, 5  ;;  %v1359_v41 = vshrl.u32 %v1020_v34, 16  ;;  %v1362_v44 = vshll.u32 %v1020_v34, 16  ;;  %v888_v45 = vld [vmem:[#allocation2 + $0xc] sm:$0x1] }
  0x61   : > { %v1040_v46 = vld [vmem:[#allocation2 + $0xa4] sm:$0x1]  ;;  %v889_v47 = vsel %vm5929_vm6, 0, %v888_v45  ;;  %v526_v36 = vrot.slane %v524_v38, 7  ;;  %v532_v53 = vshrl.u32 %v414_v37, 16  ;;  %v535_v16 = vshll.u32 %v414_v37, 16 }
  0x62   : > { %v1270_v50 = vrot.slane %v1269_v39, 4  ;;  %v1285_v51 = vsel %vm6007_vm12, %v1280_v22, %v1284_v40  ;;  %v1361_v54 = vrot.slane %v1359_v41, 4  ;;  %v1364_v55 = vrot.slane %v1362_v44, 5  ;;  %890 = vst [vmem:[#allocation2 + $0xc] sm:$0x1] %v889_v47  ;;  %v5742_v40 = vld [vmem:[%s5892_s25 + $0x8] sm:$0xff]  }
  0x63   : > { %v1451_v20 = vunpack.c.l.b16 %v1285_v51  ;;  %v1378_v57 = vshll.u32 %v1040_v46, 16  ;;  %v6171_v59 = vld [vmem:[#allocation2 + $0x10] sm:$0xf]  ;;  %v529_v60 = vor.u32 %v527_v48, %v526_v36  ;;  %v530_v19 = vrot.slane %v526_v36, 4 }
  0x64   : > { %v1275_v61 = vsel %vm6007_vm12, %v1270_v50, %v6136_v52  ;;  %v1365_v1 = vor.u32 %v1364_v55, %v1361_v54  ;;  %v1080_v3 = vshll.u32 %v6171_v59, 16  ;;  %v1084_v4 = vshrl.u32 %v6171_v59, 16  ;;  %v943_v7 = vld [vmem:[#allocation2 + $0x14] sm:$0x1]  ;;  %v804_v52 = vld [vmem:[#allocation2 + $0x50] sm:$0x1] }
  0x65   : > { %v1450_v42 = vunpack.c.l.b16 %v1275_v61  ;;  %v1380_v6 = vrot.slane %v1378_v57, 5  ;;  %v534_v49 = vrot.slane %v532_v53, 7  ;;  %v944_v12 = vsel %vm5938_vm7, 0, %v943_v7  ;;  %v6207_v57 = vld [vmem:[%s7578_s1] ss:$0 sm:$0xff] }
  0x66   : > { %v1366_v10 = vrot.slane %v1365_v1, 4  ;;  %v6180_v14 = vrot.slane %v1080_v3, 5  ;;  %v1086_v15 = vrot.slane %v1084_v4, 4  ;;  %945 = vst [vmem:[#allocation2 + $0x14] sm:$0x1] %v944_v12  ;;  %v801_v22 = vsel %vm5960_vm9, %v529_v60, %v800_v5 }
  0x67   : > { %v1473_v17 = vpack.c.b16 %v1451_v20, %v1450_v42  ;;  %v1381_v23 = vsel %vm6007_vm12, %v1376_v56, %v1380_v6  ;;  %v539_v28 = vrot.slane %v534_v49, 4  ;;  %v537_v26 = vor.u32 %v535_v16, %v534_v49  ;;  %802 = vst [vmem:[#allocation2 + $0x48] sm:$0xf] %v801_v22  ;;  %v828_v56 = vld [vmem:[#allocation2 + $0x78] sm:$0xf] }
  0x68   : > { %v1371_v18 = vsel %vm6007_vm12, %v1366_v10, %v6151_v63  ;;  %v1459_v21 = vunpack.c.l.b16 %v1381_v23  ;;  %v1087_v62 = vor.u32 %v1086_v15, %v6180_v14  ;;  %v390_v30 = vmax.f32 %v6162_v27, 0.0  ;;  %v832_v5 = vld [vmem:[#allocation2 + $0x80] sm:$0x1]  ;;  %v5747_v23 = vld [vmem:[%s5892_s25 + $0x30] sm:$0xff]  }
  0x69   : > { %5244 = vmatmul.msk.bf16.gmra.mxu2 %vm1480_vm13, %v1473_v17  ;;  %v1458_v24 = vunpack.c.l.b16 %v1371_v18  ;;  %v996_v25 = vld [vmem:[#allocation2 + $0xc] sm:$0xf]  ;;  %v805_v29 = vsel %vm5929_vm6, %v539_v28, %v804_v52  ;;  %v421_v34 = vpack.c.bf16 %v389_v13, %v389_v13  ;;  %v538_v37 = vsel %vm5951_vm8, %v530_v19, %v537_v26  ;;  %v6224_v52 = vld [vmem:[%s7579_s2] ss:$0 sm:$0xff] }
  0x6a   : > { %v1071_v63 = vshrl.u32 %v996_v25, 16  ;;  %v1074_v31 = vshll.u32 %v996_v25, 16  ;;  %v1088_v32 = vrot.slane %v1087_v62, 4  ;;  %806 = vst [vmem:[#allocation2 + $0x50] sm:$0x1] %v805_v29  ;;  %v422_v38 = vpack.c.bf16 %v390_v30, %v390_v30 }
  0x6b   : > { %v1477_v35 = vpack.c.b16 %v1459_v21, %v1458_v24  ;;  %v5732_v39 = vunpack.c.l.bf16 %v5754_v9  ;;  %803 = vst.msk [vmem:[#allocation2 + $0x4c] sm:$0xf] %vm759_vm1, %v538_v37  ;;  %v592_v45 = vshrl.u32 %v421_v34, 16  ;;  %v595_v46 = vshll.u32 %v421_v34, 16 }
  0x6c   : > { %v1073_v41 = vrot.slane %v1071_v63, 4  ;;  %v1076_v44 = vrot.slane %v1074_v31, 5  ;;  %v600_v27 = vshrl.u32 %v422_v38, 16  ;;  %v603_v47 = vshll.u32 %v422_v38, 16 }
  0x6d   : > { %5248 = vmatmul.msk.bf16.gmra.mxu3 %vm1480_vm13, %v1477_v35  ;;  %v5733_v36 = vunpack.c.h.bf16 %v5754_v9  ;;  %v329_v13 = vmul.f32 %v5897_v2, %v5732_v39  ;;  %v6201_v48 = vld [vmem:[#allocation2 + $0x14] sm:$0x1]  ;;  %v594_v50 = vrot.slane %v592_v45, 7  ;;  %v5684_v51 = vunpack.c.l.bf16 %v5742_v40 }
  0x6e   : > { %v1077_v53 = vor.u32 %v1076_v44, %v1073_v41  ;;  %v5685_v54 = vunpack.c.h.bf16 %v5742_v40  ;;  %v1090_v55 = vshll.u32 %v6201_v48, 16  ;;  %v602_v20 = vrot.slane %v600_v27, 7  ;;  %v903_v1 = vld [vmem:[#allocation2 + $0x48] sm:$0x1] }
  0x6f   : > { %v330_v60 = vmul.f32 %v6207_v57, %v5733_v36  ;;  %v365_v61 = vadd.f32 %v5906_v8, %v329_v13  ;;  %v597_v3 = vor.u32 %v595_v46, %v594_v50  ;;  %v598_v4 = vrot.slane %v594_v50, 4 }
  0x70   : > { %v1078_v2 = vrot.slane %v1077_v53, 4  ;;  %v305_v42 = vmul.f32 %v6207_v57, %v5684_v51  ;;  %v1092_v6 = vrot.slane %v1090_v55, 5  ;;  %v904_v7 = vsel %vm5929_vm6, 0, %v903_v1 }
  0x71   : > { %v958_v19 = vld [vmem:[#allocation2 + $0x50] sm:$0x1]  ;;  %v605_v49 = vor.u32 %v603_v47, %v602_v20  ;;  %v607_v10 = vrot.slane %v602_v20, 4  ;;  %905 = vst [vmem:[#allocation2 + $0x48] sm:$0x1] %v904_v7  ;;  %v829_v15 = vsel %vm5960_vm9, %v597_v3, %v828_v56  ;;  %v366_v17 = vadd.f32 %v6224_v52, %v330_v60 }
  0x72   : > { %v1083_v12 = vsel %vm6007_vm12, %v1078_v2, %v6180_v14  ;;  %v959_v8 = vsel %vm5938_vm7, 0, %v958_v19  ;;  %v1093_v16 = vsel %vm6007_vm12, %v1088_v32, %v1092_v6  ;;  %v1007_v14 = vld [vmem:[#allocation2 + $0x4c] sm:$0xf]  ;;  %830 = vst [vmem:[#allocation2 + $0x78] sm:$0xf] %v829_v15  ;;  %v397_v24 = vmax.f32 %v365_v61, 0.0 }
  0x73   : > { %v1434_v28 = vunpack.c.l.b16 %v1083_v12  ;;  %960 = vst [vmem:[#allocation2 + $0x50] sm:$0x1] %v959_v8  ;;  %v606_v18 = vsel %vm5951_vm8, %v598_v4, %v605_v49  ;;  %v833_v21 = vsel %vm5929_vm6, %v607_v10, %v832_v5  ;;  %v1435_v62 = vunpack.c.l.b16 %v1093_v16  ;;  %v856_v20 = vld [vmem:[#allocation2 + $0xa8] sm:$0xf]  ;;  %v860_v16 = vld [vmem:[#allocation2 + $0xb0] sm:$0x1] }
  0x74   : > { %v1200_v22 = vshll.u32 %v1007_v14, 16  ;;  %v1204_v9 = vshrl.u32 %v1007_v14, 16  ;;  %831 = vst.msk [vmem:[#allocation2 + $0x7c] sm:$0xf] %vm759_vm1, %v606_v18  ;;  %v398_v25 = vmax.f32 %v366_v17, 0.0  ;;  %v306_v26 = vmul.f32 %v6207_v57, %v5685_v54 }
  0x75   : > { %v341_v29 = vadd.f32 %v6224_v52, %v305_v42  ;;  %v5704_v30 = vunpack.c.l.bf16 %v5747_v23  ;;  %v1465_v63 = vpack.c.b16 %v1435_v62, %v1434_v28  ;;  %834 = vst [vmem:[#allocation2 + $0x80] sm:$0x1] %v833_v21  ;;  %v429_v34 = vpack.c.bf16 %v397_v24, %v397_v24 }
  0x76   : > { %v6237_v31 = vrot.slane %v1200_v22, 5  ;;  %v1206_v32 = vrot.slane %v1204_v9, 4  ;;  %v430_v35 = vpack.c.bf16 %v398_v25, %v398_v25  ;;  %v342_v37 = vadd.f32 %v6224_v52, %v306_v26 }
  0x77   : > { %v373_v38 = vmax.f32 %v341_v29, 0.0  ;;  %v5705_v39 = vunpack.c.h.bf16 %v5747_v23  ;;  %5236 = vmatmul.msk.bf16.gmra.mxu0 %vm1480_vm13, %v1465_v63  ;;  %v660_v41 = vshrl.u32 %v429_v34, 16  ;;  %v663_v44 = vshll.u32 %v429_v34, 16 }
  0x78   : > { %v1207_v40 = vor.u32 %v1206_v32, %v6237_v31  ;;  %v315_v45 = vmul.f32 %v6207_v57, %v5704_v30  ;;  %v1006_v46 = vld [vmem:[#allocation2 + $0x48] sm:$0xf]  ;;  %v668_v27 = vshrl.u32 %v430_v35, 16  ;;  %v671_v47 = vshll.u32 %v430_v35, 16 }
  0x79   : > { %v374_v36 = vmax.f32 %v342_v37, 0.0  ;;  %v405_v13 = vpack.c.bf16 %v373_v38, %v373_v38  ;;  %v1191_v50 = vshrl.u32 %v1006_v46, 16  ;;  %v1194_v51 = vshll.u32 %v1006_v46, 16  ;;  %v915_v60 = vld [vmem:[#allocation2 + $0x78] sm:$0x1] }
  0x7a   : > { %v1033_v53 = vld [vmem:[#allocation2 + $0x50] sm:$0x1]  ;;  %v1208_v54 = vrot.slane %v1207_v40, 4  ;;  %v662_v55 = vrot.slane %v660_v41, 7  ;;  %v670_v61 = vrot.slane %v668_v27, 7  ;;  %v916_v5 = vsel %vm5929_vm6, 0, %v915_v60 }
  0x7b   : > { %v1210_v56 = vshll.u32 %v1033_v53, 16  ;;  %v406_v2 = vpack.c.bf16 %v374_v36, %v374_v36  ;;  %v456_v1 = vshrl.u32 %v405_v13, 16  ;;  %v1193_v3 = vrot.slane %v1191_v50, 4  ;;  %v1015_v42 = vld [vmem:[#allocation2 + $0x7c] sm:$0xf]  ;;  %v5751_v36 = vld [vmem:[%s5892_s25 + $0x50] sm:$0xff]  }
  0x7c   : > { %v1196_v4 = vrot.slane %v1194_v51, 5  ;;  %v665_v6 = vor.u32 %v663_v44, %v662_v55  ;;  %917 = vst [vmem:[#allocation2 + $0x78] sm:$0x1] %v916_v5  ;;  %v970_v19 = vld [vmem:[#allocation2 + $0x80] sm:$0x1]  ;;  %v1296_v49 = vshll.u32 %v1015_v42, 16  ;;  %v673_v10 = vor.u32 %v671_v47, %v670_v61 }
  0x7d   : > { %v1212_v7 = vrot.slane %v1210_v56, 5  ;;  %v316_v12 = vmul.f32 %v6207_v57, %v5705_v39  ;;  %v971_v15 = vsel %vm5938_vm7, 0, %v970_v19  ;;  %v1300_v17 = vshrl.u32 %v1015_v42, 16  ;;  %v772_v40 = vld [vmem:[#allocation2 + $0x18] sm:$0xf] }
  0x7e   : > { %v1197_v8 = vor.u32 %v1196_v4, %v1193_v3  ;;  %v666_v23 = vrot.slane %v662_v55, 4  ;;  %972 = vst [vmem:[#allocation2 + $0x80] sm:$0x1] %v971_v15  ;;  %v6250_v14 = vrot.slane %v1296_v49, 5  ;;  %v675_v18 = vrot.slane %v670_v61, 4 }
  0x7f   : > { %v1213_v28 = vsel %vm6007_vm12, %v1208_v54, %v1212_v7  ;;  %v857_v21 = vsel %vm5960_vm9, %v665_v6, %v856_v20  ;;  %v1302_v9 = vrot.slane %v1300_v17, 4  ;;  %v458_v26 = vrot.slane %v456_v1, 7  ;;  %v776_v51 = vld [vmem:[#allocation2 + $0x20] sm:$0x1] }
  0x80   : > { %v1198_v62 = vrot.slane %v1197_v8, 4  ;;  %v1445_v22 = vunpack.c.l.b16 %v1213_v28  ;;  %v674_v24 = vsel %vm5951_vm8, %v666_v23, %v673_v10  ;;  %858 = vst [vmem:[#allocation2 + $0xa8] sm:$0xf] %v857_v21  ;;  %v861_v25 = vsel %vm5929_vm6, %v675_v18, %v860_v16 }
  0x81   : > { %859 = vst.msk [vmem:[#allocation2 + $0xac] sm:$0xf] %vm759_vm1, %v674_v24  ;;  %v459_v29 = vshll.u32 %v405_v13, 16  ;;  %v464_v30 = vshrl.u32 %v406_v2, 16  ;;  %v1303_v32 = vor.u32 %v1302_v9, %v6250_v14  ;;  %v467_v34 = vshll.u32 %v406_v2, 16 }
  0x82   : > { %v1203_v63 = vsel %vm6007_vm12, %v1198_v62, %v6237_v31  ;;  %862 = vst [vmem:[#allocation2 + $0xb0] sm:$0x1] %v861_v25  ;;  %v351_v35 = vadd.f32 %v6224_v52, %v315_v45  ;;  %v462_v46 = vrot.slane %v458_v26, 4  ;;  %v352_v27 = vadd.f32 %v6224_v52, %v316_v12 }
  0x83   : > { %v1444_v37 = vunpack.c.l.b16 %v1203_v63  ;;  %v461_v38 = vor.u32 %v459_v29, %v458_v26  ;;  %v466_v39 = vrot.slane %v464_v30, 7  ;;  %v1014_v41 = vld [vmem:[#allocation2 + $0x78] sm:$0xf]  ;;  %v1304_v44 = vrot.slane %v1303_v32, 4  ;;  %v807_v30 = vld [vmem:[#allocation2 + $0x54] sm:$0xf] }
  0x84   : > { %v383_v47 = vmax.f32 %v351_v35, 0.0  ;;  %v1287_v53 = vshrl.u32 %v1014_v41, 16  ;;  %v1290_v31 = vshll.u32 %v1014_v41, 16  ;;  %v384_v20 = vmax.f32 %v352_v27, 0.0 }
  0x85   : > { %v1470_v13 = vpack.c.b16 %v1445_v22, %v1444_v37  ;;  %v469_v50 = vor.u32 %v467_v34, %v466_v39  ;;  %v1037_v54 = vld [vmem:[#allocation2 + $0x80] sm:$0x1]  ;;  %v471_v55 = vrot.slane %v466_v39, 4  ;;  %v773_v45 = vsel %vm5960_vm9, %v461_v38, %v772_v40 }
  0x86   : > { %v415_v56 = vpack.c.bf16 %v383_v47, %v383_v47  ;;  %v1289_v60 = vrot.slane %v1287_v53, 4  ;;  %v1292_v61 = vrot.slane %v1290_v31, 5  ;;  %v1306_v2 = vshll.u32 %v1037_v54, 16  ;;  %774 = vst [vmem:[#allocation2 + $0x18] sm:$0xf] %v773_v45 }
  0x87   : > { %5241 = vmatmul.msk.bf16.gmra.mxu1 %vm1480_vm13, %v1470_v13  ;;  %v927_v1 = vld [vmem:[#allocation2 + $0xa8] sm:$0x1]  ;;  %v5720_v3 = vunpack.c.l.bf16 %v5751_v36  ;;  %v470_v42 = vsel %vm5951_vm8, %v462_v46, %v469_v50  ;;  %v777_v6 = vsel %vm5929_vm6, %v471_v55, %v776_v51  ;;  %v416_v7 = vpack.c.bf16 %v384_v20, %v384_v20  ;;  %v5755_v46 = vld [vmem:[%s5892_s25 + $0x70] sm:$0xff]   ;;  %v811_v53 = vld [vmem:[#allocation2 + $0x5c] sm:$0x1] }
  0x88   : > { %v928_v4 = vsel %vm5929_vm6, 0, %v927_v1  ;;  %v1023_v5 = vld [vmem:[#allocation2 + $0xac] sm:$0xf]  ;;  %v1293_v19 = vor.u32 %v1292_v61, %v1289_v60  ;;  %v1308_v49 = vrot.slane %v1306_v2, 5  ;;  %v5721_v8 = vunpack.c.h.bf16 %v5751_v36  ;;  %775 = vst.msk [vmem:[#allocation2 + $0x1c] sm:$0xf] %vm759_vm1, %v470_v42 }
  0x89   : > { %929 = vst [vmem:[#allocation2 + $0xa8] sm:$0x1] %v928_v4  ;;  %v982_v10 = vld [vmem:[#allocation2 + $0xb0] sm:$0x1]  ;;  %v1392_v12 = vshll.u32 %v1023_v5, 16  ;;  %v1396_v17 = vshrl.u32 %v1023_v5, 16  ;;  %v323_v63 = vmul.f32 %v6207_v57, %v5720_v3  ;;  %v5736_v60 = vunpack.c.l.bf16 %v5755_v46 }
  0x8a   : > { %v983_v15 = vsel %vm5938_vm7, 0, %v982_v10  ;;  %v541_v23 = vshrl.u32 %v415_v56, 16  ;;  %v544_v16 = vshll.u32 %v415_v56, 16  ;;  %v1294_v28 = vrot.slane %v1293_v19, 4  ;;  %778 = vst [vmem:[#allocation2 + $0x20] sm:$0x1] %v777_v6 }
  0x8b   : > { %v1309_v18 = vsel %vm6007_vm12, %v1304_v44, %v1308_v49  ;;  %984 = vst [vmem:[#allocation2 + $0xb0] sm:$0x1] %v983_v15  ;;  %v6280_v21 = vrot.slane %v1392_v12, 5  ;;  %v549_v62 = vshrl.u32 %v416_v7, 16  ;;  %v1398_v9 = vrot.slane %v1396_v17, 4  ;;  %v6305_v42 = vld [vmem:[%s5892_s25 + $0x10] sm:$0xff]  }
  0x8c   : > { %v1453_v22 = vunpack.c.l.b16 %v1309_v18  ;;  %v543_v24 = vrot.slane %v541_v23, 7  ;;  %v552_v25 = vshll.u32 %v416_v7, 16  ;;  %v1299_v26 = vsel %vm6007_vm12, %v1294_v28, %v6250_v14  ;;  %v5796_v0 = vld [vmem:[#allocation2 + $0xac] sm:$0xf] }
  0x8d   : > { %v551_v29 = vrot.slane %v549_v62, 7  ;;  %v324_v32 = vmul.f32 %v6207_v57, %v5721_v8  ;;  %v1452_v34 = vunpack.c.l.b16 %v1299_v26  ;;  %v1399_v35 = vor.u32 %v1398_v9, %v6280_v21  ;;  %v891_v39 = vld [vmem:[#allocation2 + $0x18] sm:$0x1] }
  0x8e   : > { %v546_v37 = vor.u32 %v544_v16, %v543_v24  ;;  %v547_v38 = vrot.slane %v543_v24, 4  ;;  %v359_v44 = vadd.f32 %v6224_v52, %v323_v63  ;;  %v892_v36 = vsel %vm5929_vm6, 0, %v891_v39 }
  0x8f   : > { %v554_v40 = vor.u32 %v552_v25, %v551_v29  ;;  %v556_v41 = vrot.slane %v551_v29, 4  ;;  %v1474_v27 = vpack.c.b16 %v1453_v22, %v1452_v34  ;;  %v1400_v14 = vrot.slane %v1399_v35, 4  ;;  %893 = vst [vmem:[#allocation2 + $0x18] sm:$0x1] %v892_v36  ;;  %v6294_v51 = vld [vmem:[#allocation2 + $0x1c] sm:$0xf] }
  0x90   : > { %v1022_v47 = vld [vmem:[#allocation2 + $0xa8] sm:$0xf]  ;;  %v808_v13 = vsel %vm5960_vm9, %v546_v37, %v807_v30  ;;  %v360_v55 = vadd.f32 %v6224_v52, %v324_v32  ;;  %v1104_v20 = vshll.u32 %v6294_v51, 16  ;;  %v1108_v56 = vshrl.u32 %v6294_v51, 16 }
  0x91   : > { %v1383_v31 = vshrl.u32 %v1022_v47, 16  ;;  %v1386_v50 = vshll.u32 %v1022_v47, 16  ;;  %v555_v54 = vsel %vm5951_vm8, %v547_v38, %v554_v40  ;;  %5245 = vmatmul.msk.bf16.gmra.mxu2 %vm1480_vm13, %v1474_v27  ;;  %809 = vst [vmem:[#allocation2 + $0x54] sm:$0xf] %v808_v13  ;;  %v5737_v61 = vunpack.c.h.bf16 %v5755_v46  ;;  %v946_v4 = vld [vmem:[#allocation2 + $0x20] sm:$0x1] }
  0x92   : > { %v1041_v45 = vld [vmem:[#allocation2 + $0xb0] sm:$0x1]  ;;  %v812_v5 = vsel %vm5929_vm6, %v556_v41, %v811_v53  ;;  %v947_v6 = vsel %vm5938_vm7, 0, %v946_v4  ;;  %v6309_v7 = vrot.slane %v1104_v20, 5  ;;  %v1110_v19 = vrot.slane %v1108_v56, 4 }
  0x93   : > { %v1385_v2 = vrot.slane %v1383_v31, 4  ;;  %v1388_v1 = vrot.slane %v1386_v50, 5  ;;  %v1402_v3 = vshll.u32 %v1041_v45, 16  ;;  %810 = vst.msk [vmem:[#allocation2 + $0x58] sm:$0xf] %vm759_vm1, %v555_v54  ;;  %v391_v49 = vmax.f32 %v359_v44, 0.0 }
  0x94   : > { %948 = vst [vmem:[#allocation2 + $0x20] sm:$0x1] %v947_v6  ;;  %v392_v8 = vmax.f32 %v360_v55, 0.0  ;;  %v331_v15 = vmul.f32 %v6207_v57, %v5736_v60  ;;  %v1111_v17 = vor.u32 %v1110_v19, %v6309_v7  ;;  %v332_v16 = vmul.f32 %v6207_v57, %v5737_v61  ;;  %v835_v44 = vld [vmem:[#allocation2 + $0x84] sm:$0xf] }
  0x95   : > { %v1389_v10 = vor.u32 %v1388_v1, %v1385_v2  ;;  %v1404_v12 = vrot.slane %v1402_v3, 5  ;;  %813 = vst [vmem:[#allocation2 + $0x5c] sm:$0x1] %v812_v5  ;;  %v423_v23 = vpack.c.bf16 %v391_v49, %v391_v49  ;;  %v5688_v28 = vunpack.c.l.bf16 %v6305_v42  ;;  %v839_v3 = vld [vmem:[#allocation2 + $0x8c] sm:$0x1] }
  0x96   : > { %v424_v22 = vpack.c.bf16 %v392_v8, %v392_v8  ;;  %v367_v9 = vadd.f32 %v6224_v52, %v331_v15  ;;  %v998_v25 = vld [vmem:[#allocation2 + $0x18] sm:$0xf]  ;;  %v1112_v26 = vrot.slane %v1111_v17, 4 }
  0x97   : > { %v1390_v18 = vrot.slane %v1389_v10, 4  ;;  %v1405_v62 = vsel %vm6007_vm12, %v1400_v14, %v1404_v12  ;;  %v609_v29 = vshrl.u32 %v423_v23, 16  ;;  %v612_v30 = vshll.u32 %v423_v23, 16 }
  0x98   : > { %v1461_v24 = vunpack.c.l.b16 %v1405_v62  ;;  %v1095_v32 = vshrl.u32 %v998_v25, 16  ;;  %v1098_v34 = vshll.u32 %v998_v25, 16  ;;  %v906_v35 = vld [vmem:[#allocation2 + $0x54] sm:$0x1]  ;;  %v617_v37 = vshrl.u32 %v424_v22, 16 }
  0x99   : > { %v1395_v63 = vsel %vm6007_vm12, %v1390_v18, %v6280_v21  ;;  %v907_v39 = vsel %vm5929_vm6, 0, %v906_v35  ;;  %v611_v40 = vrot.slane %v609_v29, 7  ;;  %v620_v41 = vshll.u32 %v424_v22, 16 }
  0x9a   : > { %v1460_v38 = vunpack.c.l.b16 %v1395_v63  ;;  %v1097_v46 = vrot.slane %v1095_v32, 4  ;;  %v1100_v27 = vrot.slane %v1098_v34, 5  ;;  %908 = vst [vmem:[#allocation2 + $0x54] sm:$0x1] %v907_v39  ;;  %v6324_v47 = vld [vmem:[#allocation2 + $0x58] sm:$0xf]  ;;  %v368_v14 = vadd.f32 %v6224_v52, %v332_v16 }
  0x9b   : > { %v5689_v21 = vunpack.c.h.bf16 %v6305_v42  ;;  %v6328_v13 = vld [vmem:[#allocation2 + $0x20] sm:$0x1]  ;;  %v1224_v53 = vshll.u32 %v6324_v47, 16  ;;  %v1228_v31 = vshrl.u32 %v6324_v47, 16  ;;  %v614_v50 = vor.u32 %v612_v30, %v611_v40  ;;  %v863_v39 = vld [vmem:[#allocation2 + $0xb4] sm:$0xf] }
  0x9c   : > { %v1478_v36 = vpack.c.b16 %v1461_v24, %v1460_v38  ;;  %v1101_v54 = vor.u32 %v1100_v27, %v1097_v46  ;;  %v1114_v55 = vshll.u32 %v6328_v13, 16  ;;  %v961_v45 = vld [vmem:[#allocation2 + $0x5c] sm:$0x1]  ;;  %v615_v20 = vrot.slane %v611_v40, 4 }
  0x9d   : > { %v619_v56 = vrot.slane %v617_v37, 7  ;;  %v962_v60 = vsel %vm5938_vm7, 0, %v961_v45  ;;  %v6336_v61 = vrot.slane %v1224_v53, 5  ;;  %v1230_v2 = vrot.slane %v1228_v31, 4  ;;  %v867_v31 = vld [vmem:[#allocation2 + $0xbc] sm:$0x1] }
  0x9e   : > { %5249 = vmatmul.msk.bf16.gmra.mxu3 %vm1480_vm13, %v1478_v36  ;;  %v836_v1 = vsel %vm5960_vm9, %v614_v50, %v835_v44  ;;  %v1102_v4 = vrot.slane %v1101_v54, 4  ;;  %v1116_v5 = vrot.slane %v1114_v55, 5  ;;  %963 = vst [vmem:[#allocation2 + $0x5c] sm:$0x1] %v962_v60  ;;  %v399_v19 = vmax.f32 %v367_v9, 0.0 }
  0x9f   : > { %v622_v42 = vor.u32 %v620_v41, %v619_v56  ;;  %v624_v6 = vrot.slane %v619_v56, 4  ;;  %837 = vst [vmem:[#allocation2 + $0x84] sm:$0xf] %v836_v1  ;;  %v400_v49 = vmax.f32 %v368_v14, 0.0  ;;  %v307_v10 = vmul.f32 %v6207_v57, %v5688_v28 }
  0xa0   : > { %v1107_v12 = vsel %vm6007_vm12, %v1102_v4, %v6309_v7  ;;  %v1117_v8 = vsel %vm6007_vm12, %v1112_v26, %v1116_v5  ;;  %v1231_v62 = vor.u32 %v1230_v2, %v6336_v61  ;;  %v431_v28 = vpack.c.bf16 %v399_v19, %v399_v19 }
  0xa1   : > { %v623_v15 = vsel %vm5951_vm8, %v615_v20, %v622_v42  ;;  %v840_v17 = vsel %vm5929_vm6, %v624_v6, %v839_v3  ;;  %v1436_v23 = vunpack.c.l.b16 %v1107_v12  ;;  %v1437_v16 = vunpack.c.l.b16 %v1117_v8  ;;  %v1008_v18 = vld [vmem:[#allocation2 + $0x54] sm:$0xf] }
  0xa2   : > { %838 = vst.msk [vmem:[#allocation2 + $0x88] sm:$0xf] %vm759_vm1, %v623_v15  ;;  %v1215_v22 = vshrl.u32 %v1008_v18, 16  ;;  %v1218_v9 = vshll.u32 %v1008_v18, 16  ;;  %v432_v7 = vpack.c.bf16 %v400_v49, %v400_v49  ;;  %v308_v24 = vmul.f32 %v6207_v57, %v5689_v21 }
  0xa3   : > { %841 = vst [vmem:[#allocation2 + $0x8c] sm:$0x1] %v840_v17  ;;  %v1466_v25 = vpack.c.b16 %v1437_v16, %v1436_v23  ;;  %v677_v26 = vshrl.u32 %v431_v28, 16  ;;  %v680_v29 = vshll.u32 %v431_v28, 16  ;;  %v343_v30 = vadd.f32 %v6224_v52, %v307_v10 }
  0xa4   : > { %v1217_v63 = vrot.slane %v1215_v22, 4  ;;  %v1220_v32 = vrot.slane %v1218_v9, 5  ;;  %v685_v34 = vshrl.u32 %v432_v7, 16  ;;  %v688_v35 = vshll.u32 %v432_v7, 16  ;;  %v779_v9 = vld [vmem:[#allocation2 + $0x24] sm:$0xf] }
  0xa5   : > { %5237 = vmatmul.msk.bf16.gmra.mxu0 %vm1480_vm13, %v1466_v25  ;;  %v6355_v37 = vld [vmem:[#allocation2 + $0x5c] sm:$0x1]  ;;  %v679_v38 = vrot.slane %v677_v26, 7  ;;  %v344_v40 = vadd.f32 %v6224_v52, %v308_v24  ;;  %v375_v41 = vmax.f32 %v343_v30, 0.0  ;;  %v1232_v57 = vrot.slane %v1231_v62, 4 }
  0xa6   : > { %v1221_v44 = vor.u32 %v1220_v32, %v1217_v63  ;;  %v1234_v46 = vshll.u32 %v6355_v37, 16  ;;  %v918_v27 = vld [vmem:[#allocation2 + $0x84] sm:$0x1]  ;;  %v687_v14 = vrot.slane %v685_v34, 7  ;;  %v783_v63 = vld [vmem:[#allocation2 + $0x2c] sm:$0x1] }
  0xa7   : > { %v919_v21 = vsel %vm5929_vm6, 0, %v918_v27  ;;  %v682_v36 = vor.u32 %v680_v29, %v679_v38  ;;  %v683_v53 = vrot.slane %v679_v38, 4  ;;  %v376_v50 = vmax.f32 %v344_v40, 0.0 }
  0xa8   : > { %v1222_v54 = vrot.slane %v1221_v44, 4  ;;  %v1236_v55 = vrot.slane %v1234_v46, 5  ;;  %920 = vst [vmem:[#allocation2 + $0x84] sm:$0x1] %v919_v21  ;;  %v690_v20 = vor.u32 %v688_v35, %v687_v14  ;;  %v407_v52 = vpack.c.bf16 %v375_v41, %v375_v41 }
  0xa9   : > { %v1017_v45 = vld [vmem:[#allocation2 + $0x88] sm:$0xf]  ;;  %v692_v1 = vrot.slane %v687_v14, 4  ;;  %v864_v3 = vsel %vm5960_vm9, %v682_v36, %v863_v39  ;;  %v408_v8 = vpack.c.bf16 %v376_v50, %v376_v50 }
  0xaa   : > { %v973_v56 = vld [vmem:[#allocation2 + $0x8c] sm:$0x1]  ;;  %v1320_v60 = vshll.u32 %v1017_v45, 16  ;;  %v1324_v2 = vshrl.u32 %v1017_v45, 16  ;;  %v1227_v4 = vsel %vm6007_vm12, %v1222_v54, %v6336_v61  ;;  %v1237_v5 = vsel %vm6007_vm12, %v1232_v57, %v1236_v55  ;;  %865 = vst [vmem:[#allocation2 + $0xb4] sm:$0xf] %v864_v3 }
  0xab   : > { %v974_v42 = vsel %vm5938_vm7, 0, %v973_v56  ;;  %v691_v6 = vsel %vm5951_vm8, %v683_v53, %v690_v20  ;;  %v1446_v19 = vunpack.c.l.b16 %v1227_v4  ;;  %v1447_v49 = vunpack.c.l.b16 %v1237_v5  ;;  %v1842_v4 = vld [vmem:[#allocation2] sm:$0xe] }
  0xac   : > { %975 = vst [vmem:[#allocation2 + $0x8c] sm:$0x1] %v974_v42  ;;  %v1322_v10 = vrot.slane %v1320_v60, 5  ;;  %v1326_v12 = vrot.slane %v1324_v2, 4  ;;  %v868_v61 = vsel %vm5929_vm6, %v692_v1, %v867_v31  ;;  %v473_v15 = vshrl.u32 %v407_v52, 16 }
  0xad   : > { %866 = vst.msk [vmem:[#allocation2 + $0xb8] sm:$0xf] %vm759_vm1, %v691_v6  ;;  %v476_v17 = vshll.u32 %v407_v52, 16  ;;  %v1471_v23 = vpack.c.b16 %v1447_v49, %v1446_v19  ;;  %v481_v18 = vshrl.u32 %v408_v8, 16  ;;  %v484_v22 = vshll.u32 %v408_v8, 16  ;;  %v5630_v8 = vld [vmem:[#allocation2] sm:$0xff] }
  0xae   : > { %869 = vst [vmem:[#allocation2 + $0xbc] sm:$0x1] %v868_v61  ;;  %v475_v16 = vrot.slane %v473_v15, 7  ;;  %v1327_v28 = vor.u32 %v1326_v12, %v1322_v10  ;;  %v5495_v2 = vld [vmem:[%s7580_s3 + $0xc] sm:$0x3] }
  0xaf   : > { %5242 = vmatmul.msk.bf16.gmra.mxu1 %vm1480_vm13, %v1471_v23  ;;  %v1016_v62 = vld [vmem:[#allocation2 + $0x84] sm:$0xf]  ;;  %v483_v30 = vrot.slane %v481_v18, 7  ;;  %v3729_v5 = vsel %vm1529_vm0, %v5495_v2, 0  ;;  %v5331_v23 = vrot.slane %v1842_v4, 9 }
  0xb0   : > { %v1311_v7 = vshrl.u32 %v1016_v62, 16  ;;  %v1314_v24 = vshll.u32 %v1016_v62, 16  ;;  %v478_v25 = vor.u32 %v476_v17, %v475_v16  ;;  %v479_v29 = vrot.slane %v475_v16, 4  ;;  %v5774_v6 = vld [vmem:[#allocation2 + $0x4] sm:$0xf]  ;;  %3738 = vmatpush.bf16.msra.mxu2 %v3729_v5 }
  0xb1   : > { %v930_v26 = vld [vmem:[#allocation2 + $0xb4] sm:$0x1]  ;;  %v1328_v40 = vrot.slane %v1327_v28, 4  ;;  %v486_v57 = vor.u32 %v484_v22, %v483_v30  ;;  %v488_v36 = vrot.slane %v483_v30, 4  ;;  %v1895_v19 = vrot.slane %v5774_v6, 5 }
  0xb2   : > { %v1313_v34 = vrot.slane %v1311_v7, 4  ;;  %v1316_v35 = vrot.slane %v1314_v24, 5  ;;  %v931_v38 = vsel %vm5929_vm6, 0, %v930_v26  ;;  %v780_v39 = vsel %vm5960_vm9, %v478_v25, %v779_v9 }
  0xb3   : > { %v1038_v32 = vld [vmem:[#allocation2 + $0x8c] sm:$0x1]  ;;  %932 = vst [vmem:[#allocation2 + $0xb4] sm:$0x1] %v931_v38  ;;  %v487_v50 = vsel %vm5951_vm8, %v479_v29, %v486_v57  ;;  %v784_v20 = vsel %vm5929_vm6, %v488_v36, %v783_v63  ;;  %v1897_v24 = vrot.slane %v1895_v19, 4 }
  0xb4   : > { %v1330_v41 = vshll.u32 %v1038_v32, 16  ;;  %v1025_v44 = vld [vmem:[#allocation2 + $0xb8] sm:$0xf]  ;;  %v1317_v46 = vor.u32 %v1316_v35, %v1313_v34  ;;  %781 = vst [vmem:[#allocation2 + $0x24] sm:$0xf] %v780_v39 }
  0xb5   : > { %v985_v27 = vld [vmem:[#allocation2 + $0xbc] sm:$0x1]  ;;  %v1416_v14 = vshll.u32 %v1025_v44, 16  ;;  %v1420_v21 = vshrl.u32 %v1025_v44, 16  ;;  %782 = vst.msk [vmem:[#allocation2 + $0x28] sm:$0xf] %vm759_vm1, %v487_v50 }
  0xb6   : > { %v1332_v53 = vrot.slane %v1330_v41, 5  ;;  %v986_v31 = vsel %vm5938_vm7, 0, %v985_v27  ;;  %v1318_v54 = vrot.slane %v1317_v46, 4  ;;  %785 = vst [vmem:[#allocation2 + $0x2c] sm:$0x1] %v784_v20  ;;  %v1896_v41 = vsel %vm6405_vm2, %v5331_v23, %v1895_v19 }
  0xb7   : > { %987 = vst [vmem:[#allocation2 + $0xbc] sm:$0x1] %v986_v31  ;;  %v1418_v55 = vrot.slane %v1416_v14, 5  ;;  %v1422_v45 = vrot.slane %v1420_v21, 4  ;;  %v5576_v27 = vld [vmem:[%s7580_s3 + $0xe] sm:$0x3] }
  0xb8   : > { %v1333_v52 = vsel %vm6007_vm12, %v1328_v40, %v1332_v53  ;;  %v1323_v56 = vsel %vm6007_vm12, %v1318_v54, %v1322_v10  ;;  %v5775_v10 = vld [vmem:[#allocation2 + $0x8] sm:$0x1]  ;;  %v2513_v21 = vld [vmem:[#allocation2 + $0xc] sm:$0xf]  ;;  %v5478_v36 = vld [vmem:[%s7580_s3 + $0xa] sm:$0x3]  ;;  %v2007_v54 = vunpack.c.l.b16 %v1896_v41 }
  0xb9   : > { %v1455_v60 = vunpack.c.l.b16 %v1333_v52  ;;  %v1454_v1 = vunpack.c.l.b16 %v1323_v56  ;;  %v1423_v3 = vor.u32 %v1422_v45, %v1418_v55  ;;  %v1898_v15 = vrot.slane %v5775_v10, 5  ;;  %v5609_v53 = vld [vmem:[%s7580_s3 + $0x10] sm:$0x3] }
  0xba   : > { %v1024_v42 = vld [vmem:[#allocation2 + $0xb4] sm:$0xf]  ;;  %v4383_v20 = vsel %vm1529_vm0, %v5576_v27, 0  ;;  %v2562_v2 = vshrl.u32 %v2513_v21, 16  ;;  %v4781_v4 = vsel %vm1529_vm0, %v5609_v53, 0  ;;  %v5646_v27 = vld [vmem:[#allocation2 + $0xc] sm:$0xff] }
  0xbb   : > { %v1475_v49 = vpack.c.b16 %v1455_v60, %v1454_v1  ;;  %v1407_v12 = vshrl.u32 %v1024_v42, 16  ;;  %v1410_v61 = vshll.u32 %v1024_v42, 16  ;;  %v894_v17 = vld [vmem:[#allocation2 + $0x24] sm:$0x1]  ;;  %v1424_v28 = vrot.slane %v1423_v3, 4  ;;  %4392 = vmatpush.bf16.msra.mxu3 %v4383_v20  ;;  %4790 = vmatpush.bf16.msra.mxu0 %v4781_v4 }
  0xbc   : > { %v895_v22 = vsel %vm5929_vm6, 0, %v894_v17  ;;  %v6398_v7 = vld [vmem:[#allocation2 + $0x28] sm:$0xf]  ;;  %v1899_v44 = vsel %vm6405_vm2, %v1897_v24, %v1898_v15  ;;  %v2565_v1 = vshll.u32 %v2513_v21, 16  ;;  %v3442_v3 = vsel %vm1529_vm0, %v5478_v36, 0 }
  0xbd   : > { %5246 = vmatmul.msk.bf16.gmra.mxu2 %vm1480_vm13, %v1475_v49  ;;  %v1409_v18 = vrot.slane %v1407_v12, 4  ;;  %v1412_v62 = vrot.slane %v1410_v61, 5  ;;  %896 = vst [vmem:[#allocation2 + $0x24] sm:$0x1] %v895_v22  ;;  %v949_v26 = vld [vmem:[#allocation2 + $0x2c] sm:$0x1]  ;;  %v2008_v45 = vunpack.c.l.b16 %v1899_v44  ;;  %3451 = vmatpush.bf16.msra.mxu1 %v3442_v3 }
  0xbe   : > { %v1042_v16 = vld [vmem:[#allocation2 + $0xbc] sm:$0x1]  ;;  %v1128_v29 = vshll.u32 %v6398_v7, 16  ;;  %v1132_v30 = vshrl.u32 %v6398_v7, 16  ;;  %v950_v34 = vsel %vm5938_vm7, 0, %v949_v26  ;;  %v1902_v17 = vrot.slane %v6171_v59, 5 }
  0xbf   : > { %v1426_v9 = vshll.u32 %v1042_v16, 16  ;;  %v1413_v25 = vor.u32 %v1412_v62, %v1409_v18  ;;  %5315 = vmatmul.msk.bf16.vlgmr.msrb.gmra.mxu1 %vm1480_vm13, %v5630_v8  ;;  %951 = vst [vmem:[#allocation2 + $0x2c] sm:$0x1] %v950_v34  ;;  %v2039_v8 = vpack.c.b16 %v2008_v45, %v2007_v54  ;;  %v1843_v15 = vld [vmem:[#allocation2 + $0xc] sm:$0xe]  ;;  %v2564_v16 = vrot.slane %v2562_v2, 4 }
  0xc0   : > { %v1130_v38 = vrot.slane %v1128_v29, 5  ;;  %v1134_v39 = vrot.slane %v1132_v30, 4  ;;  %v2567_v18 = vrot.slane %v2565_v1, 5  ;;  %v5631_v62 = vld [vmem:[#allocation2 + $0xc] sm:$0xff]  ;;  %v5332_v26 = vrot.slane %v1843_v15, 9 }
  0xc1   : > { %v1428_v32 = vrot.slane %v1426_v9, 5  ;;  %v1414_v35 = vrot.slane %v1413_v25, 4  ;;  %v2515_v25 = vld [vmem:[#allocation2 + $0x14] sm:$0x1]  ;;  %v1905_v59 = vrot.slane %v6201_v48, 5  ;;  %v1909_v2 = vrot.slane %v6294_v51, 5 }
  0xc2   : > { %v1135_v50 = vor.u32 %v1134_v39, %v1130_v38  ;;  %v1903_v44 = vsel %vm6405_vm2, %v5332_v26, %v1902_v17  ;;  %v2517_v21 = vld [vmem:[#allocation2 + $0x1c] sm:$0xf]  ;;  %vm5143_vm0 = vcmask 57344  }
  0xc3   : > { %v1429_v40 = vsel %vm6007_vm12, %v1424_v28, %v1428_v32  ;;  %v1419_v57 = vsel %vm6007_vm12, %v1414_v35, %v1418_v55  ;;  %v2514_v55 = vld [vmem:[#allocation2 + $0x10] sm:$0xf]  ;;  %v1904_v32 = vrot.slane %v1902_v17, 4  ;;  %v2568_v35 = vor.u32 %v2567_v18, %v2564_v16 }
  0xc4   : > { %v1463_v46 = vunpack.c.l.b16 %v1429_v40  ;;  %v1462_v14 = vunpack.c.l.b16 %v1419_v57  ;;  %v1000_v31 = vld [vmem:[#allocation2 + $0x24] sm:$0xf]  ;;  %v2571_v19 = vshll.u32 %v2514_v55, 16  ;;  %v2575_v49 = vshrl.u32 %v2514_v55, 16 }
  0xc5   : > { %v1119_v56 = vshrl.u32 %v1000_v31, 16  ;;  %v1122_v60 = vshll.u32 %v1000_v31, 16  ;;  %v1136_v12 = vrot.slane %v1135_v50, 4  ;;  %v2581_v40 = vshll.u32 %v2515_v25, 16  ;;  %v2520_v25 = vld [vmem:[#allocation2 + $0x28] sm:$0xf] }
  0xc6   : > { %v1479_v52 = vpack.c.b16 %v1463_v46, %v1462_v14  ;;  %v6432_v5 = vld [vmem:[#allocation2 + $0x2c] sm:$0x1]  ;;  %v2573_v22 = vrot.slane %v2571_v19, 5  ;;  %v2577_v9 = vrot.slane %v2575_v49, 4  ;;  %v1906_v57 = vsel %vm6405_vm2, %v1904_v32, %v1905_v59  ;;  %v2516_v46 = vld [vmem:[#allocation2 + $0x18] sm:$0xf] }
  0xc7   : > { %v1121_v42 = vrot.slane %v1119_v56, 4  ;;  %v1124_v6 = vrot.slane %v1122_v60, 5  ;;  %v1138_v61 = vshll.u32 %v6432_v5, 16  ;;  %v2583_v48 = vrot.slane %v2581_v40, 5  ;;  %v1844_v19 = vld [vmem:[#allocation2 + $0x18] sm:$0xe] }
  0xc8   : > { %5250 = vmatmul.msk.bf16.gmra.mxu3 %vm1480_vm13, %v1479_v52  ;;  %v2578_v39 = vor.u32 %v2577_v9, %v2573_v22  ;;  %v2009_v36 = vunpack.c.l.b16 %v1903_v44  ;;  %v2010_v53 = vunpack.c.l.b16 %v1906_v57  ;;  %v2586_v31 = vshrl.u32 %v2516_v46, 16  ;;  %v2518_v49 = vld [vmem:[#allocation2 + $0x20] sm:$0x1]  ;;  %v5633_v44 = vld [vmem:[#allocation2 + $0x24] sm:$0xff] }
  0xc9   : > { %v1125_v10 = vor.u32 %v1124_v6, %v1121_v42  ;;  %v1140_v23 = vrot.slane %v1138_v61, 5  ;;  %v2589_v54 = vshll.u32 %v2516_v46, 16  ;;  %v2595_v45 = vshll.u32 %v2517_v21, 16  ;;  %v5632_v6 = vld [vmem:[#allocation2 + $0x18] sm:$0xff]  ;;  %v1845_v57 = vld [vmem:[#allocation2 + $0x24] sm:$0xe] }
  0xca   : > { %v2579_v14 = vrot.slane %v2578_v39, 4  ;;  %v2599_v55 = vshrl.u32 %v2517_v21, 16  ;;  %v2040_v52 = vpack.c.b16 %v2010_v53, %v2009_v36  ;;  %v2588_v60 = vrot.slane %v2586_v31, 4 }
  0xcb   : > { %v1126_v28 = vrot.slane %v1125_v10, 4  ;;  %v1141_v24 = vsel %vm6007_vm12, %v1136_v12, %v1140_v23  ;;  %v2591_v3 = vrot.slane %v2589_v54, 5  ;;  %v2597_v4 = vrot.slane %v2595_v45, 5 }
  0xcc   : > { %v1439_v30 = vunpack.c.l.b16 %v1141_v24  ;;  %v2584_v20 = vsel %vm6007_vm12, %v2579_v14, %v2583_v48  ;;  %v2601_v42 = vrot.slane %v2599_v55, 4  ;;  %v5333_v12 = vrot.slane %v1844_v19, 9  ;;  %v2519_v24 = vld [vmem:[#allocation2 + $0x24] sm:$0xf]  ;;  %v2521_v48 = vld [vmem:[#allocation2 + $0x2c] sm:$0x1] }
  0xcd   : > { %5348 = vmatmul.msk.bf16.vlgmr.msrb.gmra.mxu2 %vm1480_vm13, %v2039_v8  ;;  %v1131_v29 = vsel %vm6007_vm12, %v1126_v28, %v1130_v38  ;;  %v2569_v38 = vrot.slane %v2568_v35, 4  ;;  %v2948_v1 = vunpack.c.l.b16 %v2584_v20  ;;  %v1911_v61 = vrot.slane %v1909_v2, 4  ;;  %v5648_v20 = vld [vmem:[#allocation2 + $0x24] sm:$0xff] }
  0xce   : > { %v1438_v34 = vunpack.c.l.b16 %v1131_v29  ;;  %v1912_v8 = vrot.slane %v6328_v13, 5  ;;  %v2592_v15 = vor.u32 %v2591_v3, %v2588_v60  ;;  %v2602_v17 = vor.u32 %v2601_v42, %v2597_v4  ;;  %v2523_v3 = vld [vmem:[#allocation2 + $0x34] sm:$0xf] }
  0xcf   : > { %5316 = vmatmul.msk.bf16.gmra.mxu1 %vm1480_vm13, %v5631_v62  ;;  %v2574_v50 = vsel %vm6007_vm12, %v2569_v38, %v2573_v22  ;;  %v2605_v23 = vshll.u32 %v2518_v49, 16  ;;  %v1910_v51 = vsel %vm6405_vm2, %v5333_v12, %v1909_v2  ;;  %v5647_v22 = vld [vmem:[#allocation2 + $0x18] sm:$0xff]  ;;  %v2613_v32 = vshll.u32 %v2519_v24, 16  ;;  %v2522_v2 = vld [vmem:[#allocation2 + $0x30] sm:$0xf] }
  0xd0   : > { %v1467_v41 = vpack.c.b16 %v1439_v30, %v1438_v34  ;;  %v2947_v56 = vunpack.c.l.b16 %v2574_v50  ;;  %v1913_v16 = vsel %vm6405_vm2, %v1911_v61, %v1912_v8  ;;  %v2593_v18 = vrot.slane %v2592_v15, 4  ;;  %v6481_v8 = vpop.f32.mrf.mxu1 }
  0xd1   : > { %v2603_v62 = vrot.slane %v2602_v17, 4  ;;  %v2607_v28 = vrot.slane %v2605_v23, 5  ;;  %v2011_v9 = vunpack.c.l.b16 %v1910_v51  ;;  %v2012_v13 = vunpack.c.l.b16 %v1913_v16 }
  0xd2   : > { %5238 = vmatmul.msk.bf16.gmra.mxu0 %vm1480_vm13, %v1467_v41  ;;  %v2979_v10 = vpack.c.b16 %v2948_v1, %v2947_v56  ;;  %v2598_v26 = vsel %vm6007_vm12, %v2593_v18, %v2597_v4  ;;  %v2610_v30 = vshrl.u32 %v2519_v24, 16  ;;  %v2619_v59 = vshll.u32 %v2520_v25, 16  ;;  %v5634_v18 = vld [vmem:[#allocation2 + $0x30] sm:$0xff] }
  0xd3   : > { %v2608_v29 = vsel %vm6007_vm12, %v2603_v62, %v2607_v28  ;;  %v2623_v34 = vshrl.u32 %v2520_v25, 16  ;;  %v2041_v35 = vpack.c.b16 %v2012_v13, %v2011_v9  ;;  %v1916_v39 = vrot.slane %v6398_v7, 5  ;;  %v1846_v62 = vld [vmem:[#allocation2 + $0x30] sm:$0xe]  ;;  %v2524_v9 = vld [vmem:[#allocation2 + $0x38] sm:$0x1] }
  0xd4   : > { %v2949_v40 = vunpack.c.l.b16 %v2598_v26  ;;  %v2950_v41 = vunpack.c.l.b16 %v2608_v29  ;;  %v2612_v38 = vrot.slane %v2610_v30, 4  ;;  %v2615_v46 = vrot.slane %v2613_v32, 5  ;;  %v5777_v25 = vld [vmem:[#allocation2 + $0x38] sm:$0x1] }
  0xd5   : > { %v2625_v14 = vrot.slane %v2623_v34, 4  ;;  %v5334_v21 = vrot.slane %v1845_v57, 9  ;;  %v1918_v36 = vrot.slane %v1916_v39, 4  ;;  %v1919_v53 = vrot.slane %v6432_v5, 5 }
  0xd6   : > { %v2980_v31 = vpack.c.b16 %v2950_v41, %v2949_v40  ;;  %v2616_v50 = vor.u32 %v2615_v46, %v2612_v38  ;;  %v2629_v54 = vshll.u32 %v2521_v48, 16  ;;  %v2634_v4 = vshrl.u32 %v2522_v2, 16  ;;  %v2525_v40 = vld [vmem:[#allocation2 + $0x3c] sm:$0xf]  ;;  %v5649_v41 = vld [vmem:[#allocation2 + $0x30] sm:$0xff]  ;;  %v6490_v46 = vpop.f32.mrf.mxu2 }
  0xd7   : > { %v1917_v45 = vsel %vm6405_vm2, %v5334_v21, %v1916_v39  ;;  %v1920_v55 = vsel %vm6405_vm2, %v1918_v36, %v1919_v53  ;;  %v2637_v42 = vshll.u32 %v2522_v2, 16  ;;  %v2643_v49 = vshll.u32 %v2523_v3, 16  ;;  %v2526_v38 = vld [vmem:[#allocation2 + $0x40] sm:$0xf] }
  0xd8   : > { %5429 = vmatmul.msk.bf16.vlgmr.msrb.gmra.mxu3 %vm1480_vm13, %v5646_v27  ;;  %v2621_v27 = vrot.slane %v2619_v59, 5  ;;  %v2631_v60 = vrot.slane %v2629_v54, 5  ;;  %v2013_v5 = vunpack.c.l.b16 %v1917_v45  ;;  %v2014_v1 = vunpack.c.l.b16 %v1920_v55 }
  0xd9   : > { %v2647_v12 = vshrl.u32 %v2523_v3, 16  ;;  %v2636_v51 = vrot.slane %v2634_v4, 4  ;;  %v2639_v16 = vrot.slane %v2637_v42, 5  ;;  %v2645_v28 = vrot.slane %v2643_v49, 5  ;;  %v1847_v3 = vld [vmem:[#allocation2 + $0x3c] sm:$0xe] }
  0xda   : > { %v2626_v7 = vor.u32 %v2625_v14, %v2621_v27  ;;  %v2042_v61 = vpack.c.b16 %v2014_v1, %v2013_v5  ;;  %v5335_v13 = vrot.slane %v1846_v62, 9  ;;  %v1926_v26 = vrot.slane %v5777_v25, 5  ;;  %v5635_v1 = vld [vmem:[#allocation2 + $0x3c] sm:$0xff]  ;;  %v2527_v4 = vld [vmem:[#allocation2 + $0x44] sm:$0x1] }
  0xdb   : > { %v2640_v30 = vor.u32 %v2639_v16, %v2636_v51  ;;  %v2653_v59 = vshll.u32 %v2524_v9, 16  ;;  %v2658_v21 = vshrl.u32 %v2525_v40, 16  ;;  %v2661_v53 = vshll.u32 %v2525_v40, 16  ;;  %v6504_v51 = vpop.f32.mrf.mxu3  ;;  %v6512_v9 = vpop.f32.mrf.mxu0 }
  0xdc   : > { %v2627_v56 = vrot.slane %v2626_v7, 4 }
  0xdd   : > { %5349 = vmatmul.msk.bf16.gmra.mxu2 %vm1480_vm13, %v2040_v52  ;;  %v2617_v52 = vrot.slane %v2616_v50, 4  ;;  %v2641_v39 = vrot.slane %v2640_v30, 4  ;;  %v2655_v57 = vrot.slane %v2653_v59, 5  ;;  %v2671_v50 = vshrl.u32 %v2526_v38, 16  ;;  %v2529_v30 = vld [vmem:[#allocation2 + $0x4c] sm:$0xf] }
  0xde   : > { %v2632_v19 = vsel %vm6007_vm12, %v2627_v56, %v2631_v60  ;;  %v2660_v55 = vrot.slane %v2658_v21, 4  ;;  %v2663_v60 = vrot.slane %v2661_v53, 5  ;;  %v2695_v40 = vshrl.u32 %v2529_v30, 16  ;;  %v1848_v53 = vld [vmem:[#allocation2 + $0x48] sm:$0xe] }
  0xdf   : > { %5317 = vmatmul.msk.bf16.gmra.mxu1 %vm1480_vm13, %v5632_v6  ;;  %v2622_v6 = vsel %vm6007_vm12, %v2617_v52, %v2621_v27  ;;  %v2952_v23 = vunpack.c.l.b16 %v2632_v19  ;;  %v6492_v27 = vpop.f32.mrf.mxu1  ;;  %v2646_v36 = vsel %vm6007_vm12, %v2641_v39, %v2645_v28  ;;  %v2673_v5 = vrot.slane %v2671_v50, 4 }
  0xe0   : > { %v2951_v17 = vunpack.c.l.b16 %v2622_v6  ;;  %v2953_v45 = vunpack.c.l.b16 %v2646_v36  ;;  %v6502_v6 = vpop.f32.mrf.mxu2  ;;  %v5336_v19 = vrot.slane %v1847_v3, 9  ;;  %v2691_v39 = vshll.u32 %v2529_v30, 16  ;;  %v5636_v36 = vld [vmem:[#allocation2 + $0x48] sm:$0xff] }
  0xe2   : > { %5446 = vmatmul.msk.bf16.vlgmr.msrb.gmra.mxu0 %vm1480_vm13, %v2979_v10  ;;  %v5776_v10 = vld [vmem:[#allocation2 + $0x34] sm:$0xf]  ;;  %v2981_v29 = vpack.c.b16 %v2952_v23, %v2951_v17  ;;  %v2677_v23 = vshll.u32 %v2527_v4, 16 }
  0xe3   : > { %v1923_v15 = vrot.slane %v5776_v10, 5 }
  0xe5   : > { %v1925_v24 = vrot.slane %v1923_v15, 4  ;;  %v1924_v34 = vsel %vm6405_vm2, %v5335_v13, %v1923_v15  ;;  %v2664_v15 = vor.u32 %v2663_v60, %v2660_v55  ;;  %v5650_v13 = vld [vmem:[#allocation2 + $0x3c] sm:$0xff]  ;;  %v2530_v55 = vld [vmem:[#allocation2 + $0x50] sm:$0x1] }
  0xe6   : > { %v2015_v14 = vunpack.c.l.b16 %v1924_v34  ;;  %v5781_v60 = vld [vmem:[#allocation2 + $0x50] sm:$0x1]  ;;  %v2701_v4 = vshll.u32 %v2530_v55, 16 }
  0xe7   : > { %v6499_v42 = vpop.f32.mrf.mxu1  ;;  %v2665_v62 = vrot.slane %v2664_v15, 4  ;;  %v2532_v15 = vld [vmem:[#allocation2 + $0x58] sm:$0xf] }
  0xe8   : > { %5430 = vmatmul.msk.bf16.gmra.mxu3 %vm1480_vm13, %v5647_v22  ;;  %v2649_v22 = vrot.slane %v2647_v12, 4  ;;  %v5779_v12 = vld [vmem:[#allocation2 + $0x44] sm:$0x1] }
  0xea   : > { %v2650_v32 = vor.u32 %v2649_v22, %v2645_v28  ;;  %v2679_v22 = vrot.slane %v2677_v23, 5 }
  0xed   : > { %5350 = vmatmul.msk.bf16.gmra.mxu2 %vm1480_vm13, %v2041_v35  ;;  %v1927_v35 = vsel %vm6405_vm2, %v1925_v24, %v1926_v26 }
  0xee   : > { %v2016_v48 = vunpack.c.l.b16 %v1927_v35 }
  0xef   : > { %5318 = vmatmul.msk.bf16.gmra.mxu1 %vm1480_vm13, %v5633_v44  ;;  %v2651_v44 = vrot.slane %v2650_v32, 4  ;;  %v6514_v24 = vpop.f32.mrf.mxu1 }
  0xf0   : > { %v2043_v54 = vpack.c.b16 %v2016_v48, %v2015_v14 }
  0xf1   : > { %v2656_v7 = vsel %vm6007_vm12, %v2651_v44, %v2655_v57  ;;  %v6523_v44 = vpop.f32.mrf.mxu3 }
  0xf2   : > { %5447 = vmatmul.msk.bf16.gmra.mxu0 %vm1480_vm13, %v2980_v31  ;;  %v2667_v31 = vshll.u32 %v2526_v38, 16  ;;  %v2954_v56 = vunpack.c.l.b16 %v2656_v7  ;;  %v5780_v38 = vld [vmem:[#allocation2 + $0x4c] sm:$0xf]  ;;  %v2693_v7 = vrot.slane %v2691_v39, 5 }
  0xf3   : > { %v1937_v14 = vrot.slane %v5780_v38, 5 }
  0xf4   : > { %v2669_v2 = vrot.slane %v2667_v31, 5  ;;  %v2982_v10 = vpack.c.b16 %v2954_v56, %v2953_v45 }
  0xf5   : > { %v1939_v56 = vrot.slane %v1937_v14, 4 }
  0xf6   : > { %v2674_v17 = vor.u32 %v2673_v5, %v2669_v2  ;;  %v2670_v32 = vsel %vm6007_vm12, %v2665_v62, %v2669_v2  ;;  %v1940_v2 = vrot.slane %v5781_v60, 5  ;;  %v1947_v60 = vrot.slane %v6355_v37, 5  ;;  %v2535_v37 = vld [vmem:[#allocation2 + $0x64] sm:$0xf] }
  0xf7   : > { %v2955_v48 = vunpack.c.l.b16 %v2670_v32 }
  0xf8   : > { %5431 = vmatmul.msk.bf16.gmra.mxu3 %vm1480_vm13, %v5648_v20  ;;  %v5778_v20 = vld [vmem:[#allocation2 + $0x40] sm:$0xf]  ;;  %v2675_v28 = vrot.slane %v2674_v17, 4  ;;  %v5651_v17 = vld [vmem:[#allocation2 + $0x48] sm:$0xff] }
  0xf9   : > { %v1930_v52 = vrot.slane %v5778_v20, 5  ;;  %v6528_v20 = vpop.f32.mrf.mxu0 }
  0xfa   : > { %v2680_v59 = vsel %vm6007_vm12, %v2675_v28, %v2679_v22 }
  0xfb   : > { %v1932_v49 = vrot.slane %v1930_v52, 4  ;;  %v1931_v16 = vsel %vm6405_vm2, %v5336_v19, %v1930_v52  ;;  %v2956_v21 = vunpack.c.l.b16 %v2680_v59  ;;  %v5337_v52 = vrot.slane %v1848_v53, 9 }
  0xfc   : > { %v2017_v25 = vunpack.c.l.b16 %v1931_v16 }
  0xfd   : > { %5351 = vmatmul.msk.bf16.gmra.mxu2 %vm1480_vm13, %v2042_v61  ;;  %v1933_v61 = vrot.slane %v5779_v12, 5  ;;  %v2983_v5 = vpack.c.b16 %v2956_v21, %v2955_v48  ;;  %v1941_v12 = vsel %vm6405_vm2, %v1939_v56, %v1940_v2 }
  0xfe   : > { %v2020_v22 = vunpack.c.l.b16 %v1941_v12 }
  0xff   : > { %5319 = vmatmul.msk.bf16.gmra.mxu1 %vm1480_vm13, %v5634_v18  ;;  %v1934_v18 = vsel %vm6405_vm2, %v1932_v49, %v1933_v61  ;;  %v1938_v49 = vsel %vm6405_vm2, %v5337_v52, %v1937_v14  ;;  %v2531_v61 = vld [vmem:[#allocation2 + $0x54] sm:$0xf]  ;;  %v1944_v14 = vrot.slane %v6324_v47, 5 }
 0x100   : > { %v2018_v26 = vunpack.c.l.b16 %v1934_v18  ;;  %v2703_v18 = vrot.slane %v2701_v4, 5  ;;  %v2019_v28 = vunpack.c.l.b16 %v1938_v49  ;;  %v5637_v47 = vld [vmem:[#allocation2 + $0x54] sm:$0xff] }
 0x101   : > { %v6542_v30 = vpop.f32.mrf.mxu0  ;;  %v1946_v56 = vrot.slane %v1944_v14, 4 }
 0x102   : > { %5448 = vmatmul.msk.bf16.gmra.mxu0 %vm1480_vm13, %v2981_v29  ;;  %v2528_v29 = vld [vmem:[#allocation2 + $0x48] sm:$0xf]  ;;  %v2044_v57 = vpack.c.b16 %v2018_v26, %v2017_v25  ;;  %v2709_v25 = vshll.u32 %v2531_v61, 16  ;;  %v2715_v26 = vshll.u32 %v2532_v15, 16 }
 0x103   : > { %v2682_v34 = vshrl.u32 %v2528_v29, 16  ;;  %v2685_v35 = vshll.u32 %v2528_v29, 16  ;;  %v2719_v29 = vshrl.u32 %v2532_v15, 16  ;;  %v1948_v12 = vsel %vm6405_vm2, %v1946_v56, %v1947_v60  ;;  %v2534_v15 = vld [vmem:[#allocation2 + $0x60] sm:$0xf] }
 0x104   : > { %v6525_v45 = vpop.f32.mrf.mxu1  ;;  %v2711_v39 = vrot.slane %v2709_v25, 5  ;;  %v2730_v25 = vshrl.u32 %v2534_v15, 16 }
 0x105   : > { %v2684_v31 = vrot.slane %v2682_v34, 4  ;;  %v2687_v50 = vrot.slane %v2685_v35, 5  ;;  %v2045_v34 = vpack.c.b16 %v2020_v22, %v2019_v28  ;;  %v2721_v38 = vrot.slane %v2719_v29, 4 }
 0x106   : > { %v2739_v29 = vshll.u32 %v2535_v37, 16 }
 0x108   : > { %5432 = vmatmul.msk.bf16.gmra.mxu3 %vm1480_vm13, %v5649_v41  ;;  %v6521_v41 = vpop.f32.mrf.mxu2 }
 0x10c   : > { %v6540_v62 = vpop.f32.mrf.mxu1 }
 0x10d   : > { %5352 = vmatmul.msk.bf16.gmra.mxu2 %vm1480_vm13, %v2043_v54  ;;  %v2697_v54 = vrot.slane %v2695_v40, 4  ;;  %v2533_v40 = vld [vmem:[#allocation2 + $0x5c] sm:$0x1] }
 0x10f   : > { %5320 = vmatmul.msk.bf16.gmra.mxu1 %vm1480_vm13, %v5635_v1  ;;  %v2688_v1 = vor.u32 %v2687_v50, %v2684_v31  ;;  %v2698_v3 = vor.u32 %v2697_v54, %v2693_v7  ;;  %v2725_v54 = vshll.u32 %v2533_v40, 16 }
 0x110   : > { %v6531_v19 = vpop.f32.mrf.mxu2 }
 0x111   : > { %v2689_v23 = vrot.slane %v2688_v1, 4  ;;  %v2699_v16 = vrot.slane %v2698_v3, 4  ;;  %v6559_v1 = vpop.f32.mrf.mxu0 }
 0x112   : > { %5449 = vmatmul.msk.bf16.gmra.mxu0 %vm1480_vm13, %v2982_v10  ;;  %v6538_v10 = vpop.f32.mrf.mxu3 }
 0x113   : > { %v2694_v32 = vsel %vm6007_vm12, %v2689_v23, %v2693_v7  ;;  %v2704_v59 = vsel %vm6007_vm12, %v2699_v16, %v2703_v18  ;;  %v2022_v16 = vunpack.c.l.b16 %v1948_v12 }
 0x114   : > { %v2957_v48 = vunpack.c.l.b16 %v2694_v32  ;;  %v2958_v21 = vunpack.c.l.b16 %v2704_v59  ;;  %v2743_v32 = vshrl.u32 %v2535_v37, 16 }
 0x116   : > { %v2984_v2 = vpack.c.b16 %v2958_v21, %v2957_v48  ;;  %v2745_v48 = vrot.slane %v2743_v32, 4  ;;  %v1850_v21 = vld [vmem:[#allocation2 + $0x60] sm:$0xe]  ;;  %v2538_v32 = vld [vmem:[#allocation2 + $0x70] sm:$0xf] }
 0x117   : > { %v5339_v60 = vrot.slane %v1850_v21, 9 }
 0x118   : > { %5433 = vmatmul.msk.bf16.gmra.mxu3 %vm1480_vm13, %v5650_v13  ;;  %v2706_v13 = vshrl.u32 %v2531_v61, 16  ;;  %v6550_v53 = vpop.f32.mrf.mxu2  ;;  %v5652_v61 = vld [vmem:[#allocation2 + $0x54] sm:$0xff] }
 0x11a   : > { %v2708_v35 = vrot.slane %v2706_v13, 4  ;;  %v6554_v50 = vpop.f32.mrf.mxu3 }
 0x11c   : > { %v2712_v7 = vor.u32 %v2711_v39, %v2708_v35  ;;  %v5782_v39 = vld [vmem:[#allocation2 + $0x64] sm:$0xf] }
 0x11d   : > { %5353 = vmatmul.msk.bf16.gmra.mxu2 %vm1480_vm13, %v2044_v57  ;;  %v2717_v57 = vrot.slane %v2715_v26, 5  ;;  %v2733_v26 = vshll.u32 %v2534_v15, 16  ;;  %v1951_v40 = vrot.slane %v5782_v39, 5 }
 0x11e   : > { %v2713_v3 = vrot.slane %v2712_v7, 4  ;;  %v2536_v7 = vld [vmem:[#allocation2 + $0x68] sm:$0x1] }
 0x11f   : > { %5321 = vmatmul.msk.bf16.gmra.mxu1 %vm1480_vm13, %v5636_v36  ;;  %v1849_v36 = vld [vmem:[#allocation2 + $0x54] sm:$0xe]  ;;  %v2722_v55 = vor.u32 %v2721_v38, %v2717_v57  ;;  %v2732_v38 = vrot.slane %v2730_v25, 4  ;;  %v1952_v15 = vsel %vm6405_vm2, %v5339_v60, %v1951_v40 }
 0x120   : > { %v5338_v52 = vrot.slane %v1849_v36, 9  ;;  %v2718_v18 = vsel %vm6007_vm12, %v2713_v3, %v2717_v57  ;;  %v6572_v22 = vpop.f32.mrf.mxu2  ;;  %v2735_v57 = vrot.slane %v2733_v26, 5  ;;  %v2023_v25 = vunpack.c.l.b16 %v1952_v15 }
 0x121   : > { %v2723_v4 = vrot.slane %v2722_v55, 4 }
 0x122   : > { %5450 = vmatmul.msk.bf16.gmra.mxu0 %vm1480_vm13, %v2983_v5  ;;  %v2727_v5 = vrot.slane %v2725_v54, 5  ;;  %v1945_v49 = vsel %vm6405_vm2, %v5338_v52, %v1944_v14  ;;  %v6574_v13 = vpop.f32.mrf.mxu3  ;;  %v2741_v14 = vrot.slane %v2739_v29, 5  ;;  %v6577_v36 = vpop.f32.mrf.mxu0  ;;  %v5783_v52 = vld [vmem:[#allocation2 + $0x68] sm:$0x1]  ;;  %v2537_v29 = vld [vmem:[#allocation2 + $0x6c] sm:$0xf] }
 0x123   : > { %v2021_v23 = vunpack.c.l.b16 %v1945_v49  ;;  %v1954_v56 = vrot.slane %v5783_v52, 5  ;;  %v5638_v49 = vld [vmem:[#allocation2 + $0x60] sm:$0xff] }
 0x124   : > { %v2728_v28 = vsel %vm6007_vm12, %v2723_v4, %v2727_v5  ;;  %v2736_v5 = vor.u32 %v2735_v57, %v2732_v38  ;;  %v2746_v3 = vor.u32 %v2745_v48, %v2741_v14  ;;  %v2749_v4 = vshll.u32 %v2536_v7, 16  ;;  %v5784_v7 = vld [vmem:[#allocation2 + $0x70] sm:$0xf] }
 0x125   : > { %v2046_v59 = vpack.c.b16 %v2022_v16, %v2021_v23  ;;  %v2960_v35 = vunpack.c.l.b16 %v2728_v28  ;;  %v2757_v38 = vshll.u32 %v2537_v29, 16  ;;  %v2763_v57 = vshll.u32 %v2538_v32, 16 }
 0x126   : > { %v2737_v37 = vrot.slane %v2736_v5, 4  ;;  %v2747_v23 = vrot.slane %v2746_v3, 4  ;;  %v2751_v16 = vrot.slane %v2749_v4, 5  ;;  %v2767_v48 = vshrl.u32 %v2538_v32, 16 }
 0x127   : > { %v2765_v5 = vrot.slane %v2763_v57, 5  ;;  %v2540_v57 = vld [vmem:[#allocation2 + $0x78] sm:$0xf] }
 0x128   : > { %5434 = vmatmul.msk.bf16.gmra.mxu3 %vm1480_vm13, %v5651_v17  ;;  %v2769_v3 = vrot.slane %v2767_v48, 4 }
 0x12a   : > { %v2770_v32 = vor.u32 %v2769_v3, %v2765_v5  ;;  %v2778_v3 = vshrl.u32 %v2540_v57, 16 }
 0x12c   : > { %v6552_v31 = vpop.f32.mrf.mxu1 }
 0x12d   : > { %5354 = vmatmul.msk.bf16.gmra.mxu2 %vm1480_vm13, %v2045_v34  ;;  %v2959_v34 = vunpack.c.l.b16 %v2718_v18  ;;  %v5653_v18 = vld [vmem:[#allocation2 + $0x60] sm:$0xff] }
 0x12f   : > { %5322 = vmatmul.msk.bf16.gmra.mxu1 %vm1480_vm13, %v5637_v47  ;;  %v2985_v47 = vpack.c.b16 %v2960_v35, %v2959_v34  ;;  %v2742_v34 = vsel %vm6007_vm12, %v2737_v37, %v2741_v14  ;;  %v2752_v35 = vsel %vm6007_vm12, %v2747_v23, %v2751_v16 }
 0x130   : > { %v2961_v52 = vunpack.c.l.b16 %v2742_v34 }
 0x132   : > { %5451 = vmatmul.msk.bf16.gmra.mxu0 %vm1480_vm13, %v2984_v2  ;;  %v1953_v2 = vrot.slane %v1951_v40, 4  ;;  %v2754_v40 = vshrl.u32 %v2537_v29, 16 }
 0x134   : > { %v6566_v17 = vpop.f32.mrf.mxu1  ;;  %v2756_v14 = vrot.slane %v2754_v40, 4 }
 0x138   : > { %5435 = vmatmul.msk.bf16.gmra.mxu3 %vm1480_vm13, %v5652_v61  ;;  %v6583_v61 = vpop.f32.mrf.mxu3 }
 0x139   : > { %7595 = vst [vmem:[#allocation3_spill] sm:$0xff] %v6583_v61 }
 0x13c   : > { %v1762_v54 = vpop.f32.mrf.mxu1 }
 0x13d   : > { %5355 = vmatmul.msk.bf16.gmra.mxu2 %vm1480_vm13, %v2046_v59  ;;  %v1763_v55 = vadd.f32 %v1762_v54, %v6512_v9  ;;  %v1955_v9 = vsel %vm6405_vm2, %v1953_v2, %v1954_v56  ;;  %v6591_v59 = vpop.f32.mrf.mxu0  ;;  %v1958_v54 = vrot.slane %v5784_v7, 5  ;;  %v2962_v56 = vunpack.c.l.b16 %v2752_v35  ;;  %v1851_v2 = vld [vmem:[#allocation2 + $0x6c] sm:$0xe] }
 0x13e   : > { %v2024_v26 = vunpack.c.l.b16 %v1955_v9  ;;  %v5785_v9 = vld [vmem:[#allocation2 + $0x74] sm:$0x1]  ;;  %v5340_v23 = vrot.slane %v1851_v2, 9  ;;  %v5654_v7 = vld [vmem:[#allocation2 + $0x6c] sm:$0xff] }
 0x13f   : > { %5323 = vmatmul.msk.bf16.gmra.mxu1 %vm1480_vm13, %v5638_v49  ;;  %v2539_v49 = vld [vmem:[#allocation2 + $0x74] sm:$0x1]  ;;  %v1961_v37 = vrot.slane %v5785_v9, 5  ;;  %v1960_v16 = vrot.slane %v1958_v54, 4 }
 0x140   : > { %v6581_v12 = vpop.f32.mrf.mxu2  ;;  %v2047_v21 = vpack.c.b16 %v2024_v26, %v2023_v25  ;;  %v5639_v25 = vld [vmem:[#allocation2 + $0x6c] sm:$0xff]  ;;  %v2773_v34 = vshll.u32 %v2539_v49, 16 }
 0x142   : > { %5452 = vmatmul.msk.bf16.gmra.mxu0 %vm1480_vm13, %v2985_v47  ;;  %v2759_v47 = vrot.slane %v2757_v38, 5  ;;  %v1959_v38 = vsel %vm6405_vm2, %v5340_v23, %v1958_v54  ;;  %v2775_v2 = vrot.slane %v2773_v34, 5 }
 0x144   : > { %v1764_v28 = vpop.f32.mrf.mxu1  ;;  %v2760_v29 = vor.u32 %v2759_v47, %v2756_v14 }
 0x145   : > { %v1765_v9 = vadd.f32 %v1764_v28, %v6528_v20 }
 0x148   : > { %5436 = vmatmul.msk.bf16.gmra.mxu3 %vm1480_vm13, %v5653_v18  ;;  %v6598_v39 = vpop.f32.mrf.mxu2  ;;  %v2986_v18 = vpack.c.b16 %v2962_v56, %v2961_v52  ;;  %v2761_v52 = vrot.slane %v2760_v29, 4  ;;  %v2771_v56 = vrot.slane %v2770_v32, 4  ;;  %v2780_v32 = vrot.slane %v2778_v3, 4 }
 0x14a   : > { %v2766_v23 = vsel %vm6007_vm12, %v2761_v52, %v2765_v5  ;;  %v5787_v5 = vld [vmem:[#allocation2 + $0x80] sm:$0x1] }
 0x14b   : > { %v6600_v60 = vpop.f32.mrf.mxu3  ;;  %v2963_v20 = vunpack.c.l.b16 %v2766_v23  ;;  %v1968_v52 = vrot.slane %v5787_v5, 5 }
 0x14c   : > { %7596 = vst [vmem:[#allocation4_spill] sm:$0xff] %v6600_v60  ;;  %v1767_v4 = vpop.f32.mrf.mxu1 }
 0x14d   : > { %5356 = vmatmul.msk.bf16.gmra.mxu2 %vm1480_vm13, %v2047_v21  ;;  %v6604_v15 = vadd.f32 %v1767_v4, %v6542_v30  ;;  %v1962_v30 = vsel %vm6405_vm2, %v1960_v16, %v1961_v37  ;;  %v2541_v21 = vld [vmem:[#allocation2 + $0x7c] sm:$0xf]  ;;  %v2781_v4 = vshll.u32 %v2540_v57, 16  ;;  %v2776_v16 = vsel %vm6007_vm12, %v2771_v56, %v2775_v2 }
 0x14e   : > { %v2026_v47 = vunpack.c.l.b16 %v1962_v30  ;;  %v2787_v49 = vshll.u32 %v2541_v21, 16  ;;  %v2791_v54 = vshrl.u32 %v2541_v21, 16  ;;  %v5786_v30 = vld [vmem:[#allocation2 + $0x7c] sm:$0xf]  ;;  %v2964_v28 = vunpack.c.l.b16 %v2776_v16 }
 0x14f   : > { %v6606_v26 = vpop.f32.mrf.mxu0  ;;  %5324 = vmatmul.msk.bf16.gmra.mxu1 %vm1480_vm13, %v5639_v25  ;;  %v2783_v34 = vrot.slane %v2781_v4, 5  ;;  %v1965_v57 = vrot.slane %v5786_v30, 5  ;;  %v2543_v30 = vld [vmem:[#allocation2 + $0x84] sm:$0xf] }
 0x150   : > { %v2115_v35 = vpop.f32.mrf.mxu2 }
 0x151   : > { %v2195_v40 = vadd.f32 %v2115_v35, %v1763_v55  ;;  %v2025_v55 = vunpack.c.l.b16 %v1959_v38  ;;  %v2789_v35 = vrot.slane %v2787_v49, 5  ;;  %v2793_v38 = vrot.slane %v2791_v54, 4  ;;  %v5640_v54 = vld [vmem:[#allocation2 + $0x78] sm:$0xff] }
 0x152   : > { %5453 = vmatmul.msk.bf16.gmra.mxu0 %vm1480_vm13, %v2986_v18  ;;  %v2784_v56 = vor.u32 %v2783_v34, %v2780_v32  ;;  %v1967_v4 = vrot.slane %v1965_v57, 4  ;;  %v2987_v49 = vpack.c.b16 %v2964_v28, %v2963_v20  ;;  %v2544_v20 = vld [vmem:[#allocation2 + $0x88] sm:$0xf] }
 0x153   : > { %v6614_v48 = vpop.f32.mrf.mxu3  ;;  %v2048_v29 = vpack.c.b16 %v2026_v47, %v2025_v55  ;;  %v2794_v55 = vor.u32 %v2793_v38, %v2789_v35  ;;  %v5655_v38 = vld [vmem:[#allocation2 + $0x78] sm:$0xff] }
 0x154   : > { %7597 = vst [vmem:[#allocation5_spill] sm:$0xff] %v6614_v48  ;;  %v1769_v14 = vpop.f32.mrf.mxu1  ;;  %v2542_v48 = vld [vmem:[#allocation2 + $0x80] sm:$0x1]  ;;  %v2785_v16 = vrot.slane %v2784_v56, 4  ;;  %v2805_v56 = vshll.u32 %v2543_v30, 16 }
 0x155   : > { %v2797_v47 = vshll.u32 %v2542_v48, 16  ;;  %v1770_v5 = vadd.f32 %v1769_v14, %v6559_v1 }
 0x157   : > { %v6617_v37 = vpop.f32.mrf.mxu0  ;;  %v2799_v32 = vrot.slane %v2797_v47, 5 }
 0x158   : > { %5437 = vmatmul.msk.bf16.gmra.mxu3 %vm1480_vm13, %v5654_v7  ;;  %v2117_v18 = vpop.f32.mrf.mxu2  ;;  %v1852_v7 = vld [vmem:[#allocation2 + $0x78] sm:$0xe] }
 0x159   : > { %v2196_v25 = vadd.f32 %v2117_v18, %v1765_v9  ;;  %v5341_v3 = vrot.slane %v1852_v7, 9  ;;  %v2790_v7 = vsel %vm6007_vm12, %v2785_v16, %v2789_v35  ;;  %v5788_v35 = vld [vmem:[#allocation2 + $0x88] sm:$0xf] }
 0x15b   : > { %v2401_v21 = vpop.f32.mrf.mxu3 }
 0x15c   : > { %v2481_v60 = vadd.f32 %v2401_v21, %v2195_v40  ;;  %v1772_v61 = vpop.f32.mrf.mxu1 }
 0x15d   : > { %5357 = vmatmul.msk.bf16.gmra.mxu2 %vm1480_vm13, %v2048_v29  ;;  %v6626_v2 = vadd.f32 %v1772_v61, %v6577_v36  ;;  %v2795_v29 = vrot.slane %v2794_v55, 4  ;;  %v1966_v36 = vsel %vm6405_vm2, %v5341_v3, %v1965_v57  ;;  %v1969_v61 = vsel %vm6405_vm2, %v1967_v4, %v1968_v52 }
 0x15e   : > { %v2027_v28 = vunpack.c.l.b16 %v1966_v36  ;;  %v2028_v21 = vunpack.c.l.b16 %v1969_v61  ;;  %v2802_v52 = vshrl.u32 %v2543_v30, 16  ;;  %v2815_v55 = vshrl.u32 %v2544_v20, 16  ;;  %v1853_v36 = vld [vmem:[#allocation2 + $0x84] sm:$0xe] }
 0x15f   : > { %v3055_v9 = vpop.f32.mrf.mxu0  ;;  %5325 = vmatmul.msk.bf16.gmra.mxu1 %vm1480_vm13, %v5640_v54  ;;  %v2800_v57 = vsel %vm6007_vm12, %v2795_v29, %v2799_v32  ;;  %v2965_v54 = vunpack.c.l.b16 %v2790_v7  ;;  %v2807_v32 = vrot.slane %v2805_v56, 5 }
 0x160   : > { %v2120_v23 = vpop.f32.mrf.mxu2  ;;  %v6630_v18 = vadd.f32 %v3055_v9, %v2481_v60  ;;  %v2966_v9 = vunpack.c.l.b16 %v2800_v57  ;;  %v2804_v29 = vrot.slane %v2802_v52, 4  ;;  %v2817_v14 = vrot.slane %v2815_v55, 4  ;;  %v5641_v52 = vld [vmem:[#allocation2 + $0x84] sm:$0xff]  ;;  %v2546_v55 = vld [vmem:[#allocation2 + $0x90] sm:$0xf] }
 0x161   : > { %v2197_v40 = vadd.f32 %v2120_v23, %v6604_v15  ;;  %v1972_v23 = vrot.slane %v5788_v35, 5 }
 0x162   : > { %5454 = vmatmul.msk.bf16.gmra.mxu0 %vm1480_vm13, %v2987_v49  ;;  %v2049_v49 = vpack.c.b16 %v2028_v21, %v2027_v28  ;;  %v2988_v21 = vpack.c.b16 %v2966_v9, %v2965_v54  ;;  %v2808_v7 = vor.u32 %v2807_v32, %v2804_v29  ;;  %v2826_v32 = vshrl.u32 %v2546_v55, 16 }
 0x163   : > { %v2403_v48 = vpop.f32.mrf.mxu3  ;;  %v1974_v28 = vrot.slane %v1972_v23, 4 }
 0x164   : > { %v2482_v34 = vadd.f32 %v2403_v48, %v2196_v25  ;;  %v1774_v15 = vpop.f32.mrf.mxu1  ;;  %v2811_v25 = vshll.u32 %v2544_v20, 16  ;;  %v2545_v48 = vld [vmem:[#allocation2 + $0x8c] sm:$0x1]  ;;  %v2809_v9 = vrot.slane %v2808_v7, 4 }
 0x165   : > { %v6638_v60 = vadd.f32 %v1774_v15, %v6591_v59  ;;  %v5342_v15 = vrot.slane %v1853_v36, 9 }
 0x166   : > { %v2813_v1 = vrot.slane %v2811_v25, 5 }
 0x167   : > { %v3057_v47 = vpop.f32.mrf.mxu0 }
 0x168   : > { %5438 = vmatmul.msk.bf16.gmra.mxu3 %vm1480_vm13, %v5655_v38  ;;  %v2122_v3 = vpop.f32.mrf.mxu2  ;;  %v6646_v59 = vadd.f32 %v3057_v47, %v2482_v34  ;;  %v5789_v34 = vld [vmem:[#allocation2 + $0x8c] sm:$0x1]  ;;  %v2818_v57 = vor.u32 %v2817_v14, %v2813_v1  ;;  %v2547_v47 = vld [vmem:[#allocation2 + $0x94] sm:$0xf]  ;;  %v2829_v14 = vshll.u32 %v2546_v55, 16 }
 0x169   : > { %v2198_v4 = vadd.f32 %v2122_v3, %v1770_v5  ;;  %v1975_v20 = vrot.slane %v5789_v34, 5  ;;  %v2821_v5 = vshll.u32 %v2545_v48, 16  ;;  %v2835_v36 = vshll.u32 %v2547_v47, 16  ;;  %v5790_v55 = vld [vmem:[#allocation2 + $0x94] sm:$0xf] }
 0x16a   : > { %v2819_v35 = vrot.slane %v2818_v57, 4  ;;  %v2839_v34 = vshrl.u32 %v2547_v47, 16  ;;  %v2831_v7 = vrot.slane %v2829_v14, 5  ;;  %v1979_v47 = vrot.slane %v5790_v55, 5  ;;  %v5756_v55 = vld [vmem:[%s5892_s25 + $0x78] sm:$0xff]  }
 0x16b   : > { %v2406_v16 = vpop.f32.mrf.mxu3  ;;  %v2837_v57 = vrot.slane %v2835_v36, 5 }
 0x16c   : > { %v2483_v61 = vadd.f32 %v2406_v16, %v2197_v40  ;;  %v1777_v30 = vpop.f32.mrf.mxu1  ;;  %v2823_v16 = vrot.slane %v2821_v5, 5 }
 0x16d   : > { %5358 = vmatmul.msk.bf16.gmra.mxu2 %vm1480_vm13, %v2049_v49  ;;  %v6650_v38 = vadd.f32 %v1777_v30, %v6606_v26  ;;  %v1973_v26 = vsel %vm6405_vm2, %v5342_v15, %v1972_v23  ;;  %v1976_v49 = vsel %vm6405_vm2, %v1974_v28, %v1975_v20  ;;  %v2814_v20 = vsel %vm6007_vm12, %v2809_v9, %v2813_v1 }
 0x16e   : > { %v2030_v30 = vunpack.c.l.b16 %v1976_v49  ;;  %v2967_v1 = vunpack.c.l.b16 %v2814_v20 }
 0x16f   : > { %v3060_v56 = vpop.f32.mrf.mxu0  ;;  %5326 = vmatmul.msk.bf16.gmra.mxu1 %vm1480_vm13, %v5641_v52 }
 0x170   : > { %v2125_v25 = vpop.f32.mrf.mxu2  ;;  %v6654_v3 = vadd.f32 %v3060_v56, %v2483_v61  ;;  %v2029_v61 = vunpack.c.l.b16 %v1973_v26  ;;  %v2841_v56 = vrot.slane %v2839_v34, 4 }
 0x171   : > { %v2199_v40 = vadd.f32 %v2125_v25, %v6626_v2  ;;  %v5656_v2 = vld [vmem:[#allocation2 + $0x84] sm:$0xff] }
 0x172   : > { %5455 = vmatmul.msk.bf16.gmra.mxu0 %vm1480_vm13, %v2988_v21  ;;  %v2828_v21 = vrot.slane %v2826_v32, 4  ;;  %v2050_v52 = vpack.c.b16 %v2030_v30, %v2029_v61  ;;  %v5642_v61 = vld [vmem:[#allocation2 + $0x90] sm:$0xff] }
 0x173   : > { %v2408_v54 = vpop.f32.mrf.mxu3 }
 0x174   : > { %v2484_v29 = vadd.f32 %v2408_v54, %v2198_v4  ;;  %v1779_v48 = vpop.f32.mrf.mxu1  ;;  %v2824_v4 = vsel %vm6007_vm12, %v2819_v35, %v2823_v16  ;;  %v1854_v54 = vld [vmem:[#allocation2 + $0x90] sm:$0xe]  ;;  %v2842_v16 = vor.u32 %v2841_v56, %v2837_v57  ;;  %v2549_v56 = vld [vmem:[#allocation2 + $0x9c] sm:$0xf] }
 0x175   : > { %v6662_v23 = vadd.f32 %v1779_v48, %v6617_v37  ;;  %v2548_v37 = vld [vmem:[#allocation2 + $0x98] sm:$0x1]  ;;  %v2968_v26 = vunpack.c.l.b16 %v2824_v4  ;;  %v5343_v36 = vrot.slane %v1854_v54, 9 }
 0x176   : > { %v2845_v32 = vshll.u32 %v2548_v37, 16  ;;  %v2550_v37 = vld [vmem:[#allocation2 + $0xa0] sm:$0xf] }
 0x177   : > { %v3062_v15 = vpop.f32.mrf.mxu0  ;;  %v2989_v48 = vpack.c.b16 %v2968_v26, %v2967_v1  ;;  %v5657_v26 = vld [vmem:[#allocation2 + $0x90] sm:$0xff] }
 0x178   : > { %5439 = vmatmul.msk.bf16.gmra.mxu3 %vm1480_vm13, %v5656_v2  ;;  %v2127_v28 = vpop.f32.mrf.mxu2  ;;  %v6670_v25 = vadd.f32 %v3062_v15, %v2484_v29  ;;  %v2832_v2 = vor.u32 %v2831_v7, %v2828_v21  ;;  %v1981_v29 = vrot.slane %v1979_v47, 4  ;;  %v2843_v15 = vrot.slane %v2842_v16, 4 }
 0x179   : > { %v2200_v5 = vadd.f32 %v2127_v28, %v6638_v60  ;;  %v5791_v60 = vld [vmem:[#allocation2 + $0x98] sm:$0x1]  ;;  %v2847_v4 = vrot.slane %v2845_v32, 5  ;;  %v1980_v21 = vsel %vm6405_vm2, %v5343_v36, %v1979_v47  ;;  %v2850_v16 = vshrl.u32 %v2549_v56, 16 }
 0x17a   : > { %7598 = vst [vmem:[#allocation6_spill] sm:$0xff] %v6670_v25  ;;  %v1982_v14 = vrot.slane %v5791_v60, 5  ;;  %v2833_v34 = vrot.slane %v2832_v2, 4  ;;  %v2853_v32 = vshll.u32 %v2549_v56, 16  ;;  %v2859_v60 = vshll.u32 %v2550_v37, 16 }
 0x17b   : > { %v2411_v49 = vpop.f32.mrf.mxu3  ;;  %v2848_v47 = vsel %vm6007_vm12, %v2843_v15, %v2847_v4  ;;  %v5793_v15 = vld [vmem:[%s7579_s2] ss:$0 sm:$0xff] }
 0x17c   : > { %v2485_v9 = vadd.f32 %v2411_v49, %v2199_v40  ;;  %v6672_v35 = vpop.f32.mrf.mxu1  ;;  %v1983_v7 = vsel %vm6405_vm2, %v1981_v29, %v1982_v14  ;;  %v2838_v54 = vsel %vm6007_vm12, %v2833_v34, %v2837_v57  ;;  %v2863_v14 = vshrl.u32 %v2550_v37, 16  ;;  %v5794_v56 = vld [vmem:[#allocation2 + $0xa0] sm:$0xf] }
 0x17d   : > { %5359 = vmatmul.msk.bf16.gmra.mxu2 %vm1480_vm13, %v2050_v52  ;;  %v2032_v2 = vunpack.c.l.b16 %v1983_v7  ;;  %v2855_v7 = vrot.slane %v2853_v32, 5  ;;  %v1986_v37 = vrot.slane %v5794_v56, 5 }
 0x17f   : > { %v3065_v30 = vpop.f32.mrf.mxu0  ;;  %5327 = vmatmul.msk.bf16.gmra.mxu1 %vm1480_vm13, %v5642_v61  ;;  %v2970_v61 = vunpack.c.l.b16 %v2848_v47 }
 0x180   : > { %v2130_v20 = vpop.f32.mrf.mxu2  ;;  %v6677_v28 = vadd.f32 %v3065_v30, %v2485_v9  ;;  %v2031_v9 = vunpack.c.l.b16 %v1980_v21  ;;  %v2852_v21 = vrot.slane %v2850_v16, 4  ;;  %v2551_v16 = vld [vmem:[#allocation2 + $0xa4] sm:$0x1] }
 0x181   : > { %v2201_v40 = vadd.f32 %v2130_v20, %v6650_v38  ;;  %v5740_v38 = vunpack.c.l.bf16 %v5756_v55  ;;  %v5741_v20 = vunpack.c.h.bf16 %v5756_v55 }
 0x182   : > { %7599 = vst [vmem:[#allocation7_spill] sm:$0xff] %v6677_v28  ;;  %5456 = vmatmul.msk.bf16.gmra.mxu0 %vm1480_vm13, %v2989_v48  ;;  %v2969_v48 = vunpack.c.l.b16 %v2838_v54  ;;  %v2051_v34 = vpack.c.b16 %v2032_v2, %v2031_v9  ;;  %v1855_v54 = vld [vmem:[#allocation2 + $0x9c] sm:$0xe]  ;;  %v5795_v9 = vld [vmem:[#allocation2 + $0xa4] sm:$0x1] }
 0x183   : > { %v2413_v52 = vpop.f32.mrf.mxu3  ;;  %v1989_v2 = vrot.slane %v5795_v9, 5  ;;  %v5344_v32 = vrot.slane %v1855_v54, 9 }
 0x184   : > { %v2486_v1 = vadd.f32 %v2413_v52, %v2200_v5  ;;  %v6685_v49 = vpop.f32.mrf.mxu1  ;;  %v5792_v5 = vld [vmem:[%s7578_s1] ss:$0 sm:$0xff]  ;;  %v6699_v52 = vrot.slane %v2859_v60, 5  ;;  %v1988_v60 = vrot.slane %v1986_v37, 4  ;;  %v2990_v56 = vpack.c.b16 %v2970_v61, %v2969_v48 }
 0x185   : > { %v333_v36 = vmul.f32 %v5792_v5, %v5740_v38  ;;  %v334_v47 = vmul.f32 %v5792_v5, %v5741_v20  ;;  %v2856_v5 = vor.u32 %v2855_v7, %v2852_v21  ;;  %v2869_v20 = vshll.u32 %v2551_v16, 16  ;;  %v2552_v7 = vld [vmem:[#allocation2 + $0xa8] sm:$0xf] }
 0x187   : > { %v3067_v29 = vpop.f32.mrf.mxu0  ;;  %v369_v4 = vadd.f32 %v5793_v15, %v333_v36  ;;  %v370_v36 = vadd.f32 %v5793_v15, %v334_v47  ;;  %v2857_v15 = vrot.slane %v2856_v5, 4  ;;  %v5658_v47 = vld [vmem:[#allocation2 + $0x9c] sm:$0xff]  ;;  %v2871_v16 = vrot.slane %v2869_v20, 5 }
 0x188   : > { %5440 = vmatmul.msk.bf16.gmra.mxu3 %vm1480_vm13, %v5657_v26  ;;  %v2132_v57 = vpop.f32.mrf.mxu2  ;;  %v2865_v26 = vrot.slane %v2863_v14, 4  ;;  %v6701_v25 = vadd.f32 %v3067_v29, %v2486_v1  ;;  %v1783_v14 = vadd.f32 %v6672_v35, %v6481_v8  ;;  %v5643_v29 = vld [vmem:[#allocation2 + $0x9c] sm:$0xff]  ;;  %v1990_v8 = vsel %vm6405_vm2, %v1988_v60, %v1989_v2 }
 0x189   : > { %v2202_v30 = vadd.f32 %v2132_v57, %v6662_v23  ;;  %v401_v28 = vmax.f32 %v369_v4, 0.0  ;;  %v2874_v2 = vshrl.u32 %v2552_v7, 16  ;;  %v2877_v60 = vshll.u32 %v2552_v7, 16 }
 0x18a   : > { %7600 = vst [vmem:[#allocation8_spill] sm:$0xff] %v6701_v25  ;;  %v2866_v1 = vor.u32 %v2865_v26, %v6699_v52  ;;  %v1785_v5 = vadd.f32 %v6685_v49, %v6492_v27 }
 0x18b   : > { %v2416_v38 = vpop.f32.mrf.mxu3  ;;  %v433_v57 = vpack.c.bf16 %v401_v28, %v401_v28  ;;  %v1987_v28 = vsel %vm6405_vm2, %v5344_v32, %v1986_v37  ;;  %v2034_v32 = vunpack.c.l.b16 %v1990_v8  ;;  %v2876_v49 = vrot.slane %v2874_v2, 4 }
 0x18c   : > { %v2487_v23 = vadd.f32 %v2416_v38, %v2201_v40  ;;  %v6703_v55 = vpop.f32.mrf.mxu1  ;;  %v402_v38 = vmax.f32 %v370_v36, 0.0  ;;  %v2867_v21 = vrot.slane %v2866_v1, 4  ;;  %v2033_v37 = vunpack.c.l.b16 %v1987_v28 }
 0x18d   : > { %5360 = vmatmul.msk.bf16.gmra.mxu2 %vm1480_vm13, %v2051_v34  ;;  %v694_v9 = vshrl.u32 %v433_v57, 16  ;;  %v697_v25 = vshll.u32 %v433_v57, 16 }
 0x18e   : > { %v434_v35 = vpack.c.bf16 %v402_v38, %v402_v38  ;;  %v2052_v28 = vpack.c.b16 %v2034_v32, %v2033_v37  ;;  %v2554_v32 = vld [vmem:[#allocation2 + $0xb0] sm:$0x1] }
 0x18f   : > { %v3070_v40 = vpop.f32.mrf.mxu0  ;;  %5328 = vmatmul.msk.bf16.gmra.mxu1 %vm1480_vm13, %v5643_v29  ;;  %v696_v48 = vrot.slane %v694_v9, 7  ;;  %v2553_v29 = vld [vmem:[#allocation2 + $0xac] sm:$0xf] }
 0x190   : > { %v2135_v4 = vpop.f32.mrf.mxu2  ;;  %v6710_v54 = vadd.f32 %v3070_v40, %v2487_v23  ;;  %v702_v57 = vshrl.u32 %v434_v35, 16  ;;  %v2887_v38 = vshrl.u32 %v2553_v29, 16 }
 0x191   : > { %v2203_v34 = vadd.f32 %v2135_v4, %v1783_v14  ;;  %v699_v23 = vor.u32 %v697_v25, %v696_v48  ;;  %v870_v14 = vld [vmem:[#allocation2 + $0xc0] sm:$0xf]  ;;  %v2872_v25 = vsel %vm6007_vm12, %v2867_v21, %v2871_v16  ;;  %v2883_v4 = vshll.u32 %v2553_v29, 16  ;;  %v874_v16 = vld [vmem:[#allocation2 + $0xc8] sm:$0x1] }
 0x192   : > { %7601 = vst [vmem:[#allocation9_spill] sm:$0xff] %v6710_v54  ;;  %5457 = vmatmul.msk.bf16.gmra.mxu0 %vm1480_vm13, %v2990_v56  ;;  %v2862_v56 = vsel %vm6007_vm12, %v2857_v15, %v6699_v52  ;;  %v705_v52 = vshll.u32 %v434_v35, 16  ;;  %v1993_v15 = vrot.slane %v5796_v0, 5  ;;  %v2972_v7 = vunpack.c.l.b16 %v2872_v25  ;;  %v5797_v35 = vld [vmem:[#allocation2 + $0xb0] sm:$0x1] }
 0x193   : > { %v2418_v61 = vpop.f32.mrf.mxu3  ;;  %v871_v1 = vsel %vm5960_vm9, %v699_v23, %v870_v14  ;;  %v2971_v27 = vunpack.c.l.b16 %v2862_v56  ;;  %v6731_v29 = vrot.slane %v2883_v4, 5 }
 0x194   : > { %v2488_v26 = vadd.f32 %v2418_v61, %v2202_v30  ;;  %v6717_v36 = vpop.f32.mrf.mxu1  ;;  %v704_v30 = vrot.slane %v702_v57, 7  ;;  %872 = vst [vmem:[#allocation2 + $0xc0] sm:$0xf] %v871_v1  ;;  %v2879_v61 = vrot.slane %v2877_v60, 5  ;;  %v700_v57 = vrot.slane %v696_v48, 4 }
 0x195   : > { %v1995_v60 = vrot.slane %v1993_v15, 4 }
 0x196   : > { %v707_v14 = vor.u32 %v705_v52, %v704_v30  ;;  %v709_v21 = vrot.slane %v704_v30, 4  ;;  %v2991_v30 = vpack.c.b16 %v2972_v7, %v2971_v27  ;;  %v2880_v1 = vor.u32 %v2879_v61, %v2876_v49  ;;  %v2555_v27 = vld [vmem:[#allocation2 + $0xb4] sm:$0xf]  ;;  %v2556_v7 = vld [vmem:[#allocation2 + $0xb8] sm:$0xf] }
 0x197   : > { %v3072_v40 = vpop.f32.mrf.mxu0 }
 0x198   : > { %5441 = vmatmul.msk.bf16.gmra.mxu3 %vm1480_vm13, %v5658_v47  ;;  %v2137_v20 = vpop.f32.mrf.mxu2  ;;  %v6729_v8 = vadd.f32 %v3072_v40, %v2488_v26  ;;  %v1856_v47 = vld [vmem:[#allocation2 + $0xa8] sm:$0xe]  ;;  %v1996_v26 = vrot.slane %v5797_v35, 5  ;;  %v708_v56 = vsel %vm5951_vm8, %v700_v57, %v707_v14  ;;  %v875_v48 = vsel %vm5929_vm6, %v709_v21, %v874_v16 }
 0x199   : > { %v2204_v9 = vadd.f32 %v2137_v20, %v1785_v5  ;;  %v2889_v5 = vrot.slane %v2887_v38, 4  ;;  %v5345_v2 = vrot.slane %v1856_v47, 9  ;;  %v5644_v40 = vld [vmem:[#allocation2 + $0xa8] sm:$0xff]  ;;  %873 = vst.msk [vmem:[#allocation2 + $0xc4] sm:$0xf] %vm759_vm1, %v708_v56  ;;  %v2893_v38 = vshll.u32 %v2554_v32, 16 }
 0x19a   : > { %876 = vst [vmem:[#allocation2 + $0xc8] sm:$0x1] %v875_v48  ;;  %v1997_v49 = vsel %vm6405_vm2, %v1995_v60, %v1996_v26  ;;  %v2881_v0 = vrot.slane %v2880_v1, 4  ;;  %v5659_v47 = vld [vmem:[#allocation2 + $0xa8] sm:$0xff]  ;;  %v2898_v21 = vshrl.u32 %v2555_v27, 16  ;;  %v2901_v35 = vshll.u32 %v2555_v27, 16 }
 0x19b   : > { %v2421_v23 = vpop.f32.mrf.mxu3  ;;  %v933_v25 = vld [vmem:[#allocation2 + $0xc0] sm:$0x1]  ;;  %v2890_v4 = vor.u32 %v2889_v5, %v6731_v29  ;;  %v2895_v14 = vrot.slane %v2893_v38, 5  ;;  %v2036_v5 = vunpack.c.l.b16 %v1997_v49  ;;  %v2907_v32 = vshll.u32 %v2556_v7, 16  ;;  %v2557_v27 = vld [vmem:[#allocation2 + $0xbc] sm:$0x1] }
 0x19c   : > { %v2489_v54 = vadd.f32 %v2421_v23, %v2203_v34  ;;  %v6733_v37 = vpop.f32.mrf.mxu1  ;;  %v1788_v34 = vadd.f32 %v6703_v55, %v6499_v42  ;;  %v934_v58 = vsel %vm5929_vm6, 0, %v933_v25  ;;  %v1994_v55 = vsel %vm6405_vm2, %v5345_v2, %v1993_v15 }
 0x19d   : > { %5361 = vmatmul.msk.bf16.gmra.mxu2 %vm1480_vm13, %v2052_v28  ;;  %935 = vst [vmem:[#allocation2 + $0xc0] sm:$0x1] %v934_v58  ;;  %v2891_v57 = vrot.slane %v2890_v4, 4  ;;  %v2911_v15 = vshrl.u32 %v2556_v7, 16  ;;  %v1790_v26 = vadd.f32 %v6717_v36, %v6514_v24  ;;  %v2903_v25 = vrot.slane %v2901_v35, 5  ;;  %v5645_v35 = vld [vmem:[#allocation2 + $0xb4] sm:$0xff] }
 0x19e   : > { %v6768_v36 = vrot.slane %v2907_v32, 5  ;;  %v5798_v4 = vld [vmem:[#allocation2 + $0xb8] sm:$0xf] }
 0x19f   : > { %v3075_v20 = vpop.f32.mrf.mxu0  ;;  %5329 = vmatmul.msk.bf16.gmra.mxu1 %vm1480_vm13, %v5644_v40  ;;  %v2896_v56 = vsel %vm6007_vm12, %v2891_v57, %v2895_v14  ;;  %v2000_v38 = vrot.slane %v5798_v4, 5  ;;  %v5660_v4 = vld [vmem:[#allocation2 + $0xb4] sm:$0xff] }
 0x1a0   : > { %v2140_v28 = vpop.f32.mrf.mxu2  ;;  %v6747_v42 = vadd.f32 %v3075_v20, %v2489_v54  ;;  %v2035_v54 = vunpack.c.l.b16 %v1994_v55  ;;  %v2913_v20 = vrot.slane %v2911_v15, 4  ;;  %v1857_v55 = vld [vmem:[#allocation2 + $0xb4] sm:$0xe] }
 0x1a1   : > { %v2205_v52 = vadd.f32 %v2140_v28, %v1788_v34  ;;  %v988_v2 = vld [vmem:[#allocation2 + $0xc8] sm:$0x1]  ;;  %v2974_v28 = vunpack.c.l.b16 %v2896_v56  ;;  %v5346_v14 = vrot.slane %v1857_v55, 9 }
 0x1a2   : > { %5458 = vmatmul.msk.bf16.gmra.mxu0 %vm1480_vm13, %v2991_v30  ;;  %v2900_v30 = vrot.slane %v2898_v21, 4  ;;  %v989_v34 = vsel %vm5938_vm7, 0, %v988_v2  ;;  %v2053_v40 = vpack.c.b16 %v2036_v5, %v2035_v54  ;;  %v2002_v21 = vrot.slane %v2000_v38, 4 }
 0x1a3   : > { %v2423_v61 = vpop.f32.mrf.mxu3  ;;  %990 = vst [vmem:[#allocation2 + $0xc8] sm:$0x1] %v989_v34  ;;  %v1793_v5 = vadd.f32 %v6733_v37, %v6525_v45 }
 0x1a4   : > { %v2490_v23 = vadd.f32 %v2423_v61, %v2204_v9  ;;  %v6754_v16 = vpop.f32.mrf.mxu1  ;;  %v2886_v9 = vsel %vm6007_vm12, %v2881_v0, %v6731_v29  ;;  %v5799_v61 = vld [vmem:[#allocation2 + $0xbc] sm:$0x1]  ;;  %v2904_v7 = vor.u32 %v2903_v25, %v2900_v30 }
 0x1a5   : > { %v2973_v29 = vunpack.c.l.b16 %v2886_v9  ;;  %v2003_v0 = vrot.slane %v5799_v61, 5  ;;  %v1795_v55 = vadd.f32 %v6754_v16, %v6540_v62 }
 0x1a7   : > { %v3077_v60 = vpop.f32.mrf.mxu0  ;;  %v2992_v54 = vpack.c.b16 %v2974_v28, %v2973_v29  ;;  %v2004_v30 = vsel %vm6405_vm2, %v2002_v21, %v2003_v0  ;;  %v2559_v29 = vld [vmem:[#allocation2 + $0xc4] sm:$0xf] }
 0x1a8   : > { %5442 = vmatmul.msk.bf16.gmra.mxu3 %vm1480_vm13, %v5659_v47  ;;  %v2142_v48 = vpop.f32.mrf.mxu2  ;;  %v6766_v24 = vadd.f32 %v3077_v60, %v2490_v23  ;;  %v2914_v47 = vor.u32 %v2913_v20, %v6768_v36  ;;  %v2917_v23 = vshll.u32 %v2557_v27, 16 }
 0x1a9   : > { %v2206_v1 = vadd.f32 %v2142_v48, %v1790_v26  ;;  %v2905_v26 = vrot.slane %v2904_v7, 4  ;;  %v2001_v48 = vsel %vm6405_vm2, %v5346_v14, %v2000_v38  ;;  %v2931_v7 = vshll.u32 %v2559_v29, 16 }
 0x1aa   : > { %v2915_v9 = vrot.slane %v2914_v47, 4  ;;  %v2919_v56 = vrot.slane %v2917_v23, 5  ;;  %v2037_v28 = vunpack.c.l.b16 %v2001_v48  ;;  %v5801_v23 = vld [vmem:[#allocation2 + $0x14] sm:$0x1] }
 0x1ab   : > { %v2426_v58 = vpop.f32.mrf.mxu3  ;;  %v2910_v27 = vsel %vm6007_vm12, %v2905_v26, %v6768_v36  ;;  %v3236_v14 = vrot.slane %v5801_v23, 5  ;;  %v3852_v36 = vld [vmem:[#allocation2 + $0x18] sm:$0xf]  ;;  %v6796_v26 = vld [vmem:[#allocation2 + $0x1c] sm:$0xf]  ;;  %v2933_v48 = vrot.slane %v2931_v7, 5 }
 0x1ac   : > { %v2491_v49 = vadd.f32 %v2426_v58, %v2205_v52  ;;  %v6772_v57 = vpop.f32.mrf.mxu1  ;;  %v2558_v52 = vld [vmem:[#allocation2 + $0xc0] sm:$0xf]  ;;  %v2038_v58 = vunpack.c.l.b16 %v2004_v30  ;;  %v2920_v38 = vsel %vm6007_vm12, %v2915_v9, %v2919_v56  ;;  %v2975_v62 = vunpack.c.l.b16 %v2910_v27 }
 0x1ad   : > { %5362 = vmatmul.msk.bf16.gmra.mxu2 %vm1480_vm13, %v2053_v40  ;;  %v2922_v37 = vshrl.u32 %v2558_v52, 16  ;;  %v2925_v34 = vshll.u32 %v2558_v52, 16  ;;  %v5800_v40 = vld [vmem:[#allocation2 + $0x10] sm:$0xf]  ;;  %v2976_v16 = vunpack.c.l.b16 %v2920_v38  ;;  %v3914_v27 = vshrl.u32 %v6796_v26, 16 }
 0x1ae   : > { %v3233_v25 = vrot.slane %v5800_v40, 5 }
 0x1af   : > { %v3080_v32 = vpop.f32.mrf.mxu0  ;;  %5330 = vmatmul.msk.bf16.gmra.mxu1 %vm1480_vm13, %v5645_v35  ;;  %v2924_v61 = vrot.slane %v2922_v37, 4  ;;  %v2927_v0 = vrot.slane %v2925_v34, 5  ;;  %v2054_v35 = vpack.c.b16 %v2038_v58, %v2037_v28  ;;  %v2560_v34 = vld [vmem:[#allocation2 + $0xc8] sm:$0x1]  ;;  %v3910_v58 = vshll.u32 %v6796_v26, 16 }
 0x1b0   : > { %v2145_v15 = vpop.f32.mrf.mxu2  ;;  %v6777_v60 = vadd.f32 %v3080_v32, %v2491_v49  ;;  %v3235_v47 = vrot.slane %v3233_v25, 4  ;;  %v3167_v32 = vld [vmem:[#allocation2 + $0xc] sm:$0xe]  ;;  %v2993_v38 = vpack.c.b16 %v2976_v16, %v2975_v62 }
 0x1b1   : > { %v2207_v2 = vadd.f32 %v2145_v15, %v1793_v5  ;;  %v5462_v52 = vrot.slane %v3167_v32, 9  ;;  %v2928_v56 = vor.u32 %v2927_v0, %v2924_v61  ;;  %v6812_v32 = vld [vmem:[#allocation2 + $0x20] sm:$0x1] }
 0x1b2   : > { %5459 = vmatmul.msk.bf16.gmra.mxu0 %vm1480_vm13, %v2992_v54 }
 0x1b3   : > { %v2428_v45 = vpop.f32.mrf.mxu3  ;;  %v3234_v40 = vsel %vm6405_vm2, %v5462_v52, %v3233_v25  ;;  %v2941_v25 = vshll.u32 %v2560_v34, 16  ;;  %v5661_v52 = vld [vmem:[#allocation2 + $0xc0] sm:$0xff] }
 0x1b4   : > { %v2492_v20 = vadd.f32 %v2428_v45, %v2206_v1  ;;  %v6791_v49 = vpop.f32.mrf.mxu1  ;;  %v2935_v1 = vshrl.u32 %v2559_v29, 16  ;;  %v3901_v45 = vshrl.u32 %v3852_v36, 16  ;;  %v3345_v29 = vunpack.c.l.b16 %v3234_v40 }
 0x1b5   : > { %v2943_v62 = vrot.slane %v2941_v25, 5  ;;  %v1800_v40 = vadd.f32 %v6791_v49, %v6566_v17  ;;  %v5662_v25 = vld [vmem:[#allocation2 + $0x18] sm:$0xff] }
 0x1b6   : > { %v2937_v30 = vrot.slane %v2935_v1, 4  ;;  %v2929_v1 = vrot.slane %v2928_v56, 4  ;;  %v3903_v23 = vrot.slane %v3901_v45, 4  ;;  %v3920_v45 = vshll.u32 %v6812_v32, 16 }
 0x1b7   : > { %v3082_v21 = vpop.f32.mrf.mxu0 }
 0x1b8   : > { %5443 = vmatmul.msk.bf16.gmra.mxu3 %vm1480_vm13, %v5660_v4  ;;  %v2147_v54 = vpop.f32.mrf.mxu2  ;;  %v6794_v15 = vadd.f32 %v3082_v21, %v2492_v20  ;;  %v3237_v4 = vsel %vm6405_vm2, %v3235_v47, %v3236_v14  ;;  %v3904_v20 = vshll.u32 %v3852_v36, 16  ;;  %v2938_v61 = vor.u32 %v2937_v30, %v2933_v48 }
 0x1b9   : > { %v2208_v5 = vadd.f32 %v2147_v54, %v1795_v55  ;;  %v3346_v28 = vunpack.c.l.b16 %v3237_v4  ;;  %v3912_v54 = vrot.slane %v3910_v58, 5  ;;  %v3916_v36 = vrot.slane %v3914_v27, 4  ;;  %v3855_v4 = vld [vmem:[#allocation2 + $0x24] sm:$0xf]  ;;  %v5803_v27 = vld [vmem:[#allocation2 + $0x1c] sm:$0xf] }
 0x1ba   : > { %v3906_v14 = vrot.slane %v3904_v20, 5  ;;  %v2934_v56 = vsel %vm6007_vm12, %v2929_v1, %v2933_v48  ;;  %v5802_v20 = vld [vmem:[#allocation2 + $0x20] sm:$0x1]  ;;  %v3168_v1 = vld [vmem:[#allocation2 + $0x18] sm:$0xe] }
 0x1bb   : > { %v2431_v9 = vpop.f32.mrf.mxu3  ;;  %v3377_v0 = vpack.c.b16 %v3346_v28, %v3345_v29  ;;  %v3917_v30 = vor.u32 %v3916_v36, %v3912_v54  ;;  %v3243_v29 = vrot.slane %v5802_v20, 5  ;;  %v2977_v28 = vunpack.c.l.b16 %v2934_v56 }
 0x1bc   : > { %v2493_v37 = vadd.f32 %v2431_v9, %v2207_v2  ;;  %v6805_v55 = vpop.f32.mrf.mxu1  ;;  %v1798_v2 = vadd.f32 %v6772_v57, %v6552_v31  ;;  %v2939_v57 = vrot.slane %v2938_v61, 4  ;;  %v3907_v9 = vor.u32 %v3906_v14, %v3903_v23 }
 0x1bd   : > { %5363 = vmatmul.msk.bf16.gmra.mxu2 %vm1480_vm13, %v2054_v35  ;;  %v5463_v49 = vrot.slane %v3168_v1, 9  ;;  %v3925_v14 = vshrl.u32 %v3855_v4, 16 }
 0x1be   : > { %v3908_v48 = vrot.slane %v3907_v9, 4 }
 0x1bf   : > { %v3085_v7 = vpop.f32.mrf.mxu0  ;;  %5479 = vmatmul.msk.bf16.vlgmr.msra.gmra.mxu1 %vm1480_vm13, %v3377_v0  ;;  %v3918_v0 = vrot.slane %v3917_v30, 4 }
 0x1c0   : > { %v2150_v47 = vpop.f32.mrf.mxu2  ;;  %v6810_v35 = vadd.f32 %v3085_v7, %v2493_v37  ;;  %v2944_v37 = vsel %vm6007_vm12, %v2939_v57, %v2943_v62  ;;  %v3922_v7 = vrot.slane %v3920_v45, 5 }
 0x1c1   : > { %v2209_v21 = vadd.f32 %v2150_v47, %v1798_v2  ;;  %v6825_v2 = vld [vmem:[#allocation2 + $0x28] sm:$0xf]  ;;  %v2978_v17 = vunpack.c.l.b16 %v2944_v37 }
 0x1c2   : > { %5460 = vmatmul.msk.bf16.gmra.mxu0 %vm1480_vm13, %v2993_v38  ;;  %v3240_v38 = vrot.slane %v5803_v27, 5  ;;  %v3934_v57 = vshll.u32 %v6825_v2, 16  ;;  %v3938_v62 = vshrl.u32 %v6825_v2, 16  ;;  %v3923_v30 = vsel %vm6007_vm12, %v3918_v0, %v3922_v7  ;;  %v6845_v7 = vld [vmem:[#allocation2 + $0x2c] sm:$0x1] }
 0x1c3   : > { %v2433_v31 = vpop.f32.mrf.mxu3  ;;  %v4287_v1 = vunpack.c.l.b16 %v3923_v30 }
 0x1c4   : > { %v2494_v16 = vadd.f32 %v2433_v31, %v2208_v5  ;;  %v6818_v34 = vpop.f32.mrf.mxu1  ;;  %v3242_v23 = vrot.slane %v3240_v38, 4  ;;  %v3928_v31 = vshll.u32 %v3855_v4, 16  ;;  %v3241_v9 = vsel %vm6405_vm2, %v5463_v49, %v3240_v38 }
 0x1c5   : > { %v3347_v45 = vunpack.c.l.b16 %v3241_v9  ;;  %v4572_v4 = vrot.slane %v6796_v26, 5  ;;  %v3936_v38 = vrot.slane %v3934_v57, 5 }
 0x1c6   : > { %v3244_v56 = vsel %vm6405_vm2, %v3242_v23, %v3243_v29  ;;  %v4506_v29 = vld [vmem:[#allocation2 + $0x18] sm:$0xe]  ;;  %v3930_v27 = vrot.slane %v3928_v31, 5 }
 0x1c7   : > { %v3087_v5 = vpop.f32.mrf.mxu0  ;;  %v3348_v37 = vunpack.c.l.b16 %v3244_v56  ;;  %v5593_v26 = vrot.slane %v4506_v29, 9 }
 0x1c8   : > { %5444 = vmatmul.msk.bf16.gmra.mxu3 %vm1480_vm13, %v5661_v52  ;;  %v2152_v58 = vpop.f32.mrf.mxu2  ;;  %v6827_v47 = vadd.f32 %v3087_v5, %v2494_v16  ;;  %v3913_v16 = vsel %vm6007_vm12, %v3908_v48, %v3912_v54  ;;  %v3927_v5 = vrot.slane %v3925_v14, 4 }
 0x1c9   : > { %v2210_v61 = vadd.f32 %v2152_v58, %v1800_v40  ;;  %v2994_v40 = vpack.c.b16 %v2978_v17, %v2977_v28  ;;  %v3378_v58 = vpack.c.b16 %v3348_v37, %v3347_v45  ;;  %v4286_v48 = vunpack.c.l.b16 %v3913_v16  ;;  %v5804_v45 = vld [vmem:[#allocation2 + $0x2c] sm:$0x1] }
 0x1ca   : > { %v4575_v17 = vrot.slane %v6812_v32, 5  ;;  %v3931_v23 = vor.u32 %v3930_v27, %v3927_v5  ;;  %v1805_v32 = vadd.f32 %v6818_v34, %v6502_v6  ;;  %v3250_v37 = vrot.slane %v5804_v45, 5  ;;  %v3169_v27 = vld [vmem:[#allocation2 + $0x24] sm:$0xe] }
 0x1cb   : > { %v2436_v36 = vpop.f32.mrf.mxu3  ;;  %v4318_v57 = vpack.c.b16 %v4287_v1, %v4286_v48  ;;  %v5464_v6 = vrot.slane %v3169_v27, 9  ;;  %v6864_v1 = vld [vmem:[#allocation2 + $0x34] sm:$0xf] }
 0x1cc   : > { %v2495_v52 = vadd.f32 %v2436_v36, %v2209_v21  ;;  %v1803_v21 = vadd.f32 %v6805_v55, %v6490_v46  ;;  %v6843_v20 = vpop.f32.mrf.mxu1  ;;  %v4574_v55 = vrot.slane %v4572_v4, 4  ;;  %v3944_v36 = vshll.u32 %v6845_v7, 16 }
 0x1cd   : > { %5560 = vmatmul.msk.bf16.vlgmr.msra.gmra.mxu2 %vm1480_vm13, %v5662_v25  ;;  %v3940_v25 = vrot.slane %v3938_v62, 4  ;;  %v4573_v62 = vsel %vm6405_vm2, %v5593_v26, %v4572_v4  ;;  %v3932_v56 = vrot.slane %v3931_v23, 4  ;;  %v3858_v4 = vld [vmem:[#allocation2 + $0x30] sm:$0xf] }
 0x1ce   : > { %v3946_v30 = vrot.slane %v3944_v36, 5  ;;  %v3952_v36 = vshll.u32 %v3858_v4, 16 }
 0x1cf   : > { %v3090_v54 = vpop.f32.mrf.mxu0  ;;  %5480 = vmatmul.msk.bf16.gmra.mxu1 %vm1480_vm13, %v3378_v58  ;;  %v3941_v14 = vor.u32 %v3940_v25, %v3936_v38  ;;  %v5663_v58 = vld [vmem:[#allocation2 + $0x24] sm:$0xff]  ;;  %v3937_v26 = vsel %vm6007_vm12, %v3932_v56, %v3936_v38  ;;  %v3962_v38 = vshrl.u32 %v6864_v1, 16 }
 0x1d0   : > { %v2155_v0 = vpop.f32.mrf.mxu2  ;;  %v6848_v46 = vadd.f32 %v3090_v54, %v2495_v52  ;;  %v4576_v52 = vsel %vm6405_vm2, %v4574_v55, %v4575_v17  ;;  %v4684_v54 = vunpack.c.l.b16 %v4573_v62  ;;  %v3949_v17 = vshrl.u32 %v3858_v4, 16 }
 0x1d1   : > { %v2211_v28 = vadd.f32 %v2155_v0, %v1803_v21  ;;  %v3942_v16 = vrot.slane %v3941_v14, 4  ;;  %v5805_v21 = vld [vmem:[#allocation2 + $0x28] sm:$0xf]  ;;  %v4685_v48 = vunpack.c.l.b16 %v4576_v52  ;;  %v3958_v52 = vshll.u32 %v6864_v1, 16 }
 0x1d2   : > { %5461 = vmatmul.msk.bf16.gmra.mxu0 %vm1480_vm13, %v2994_v40  ;;  %v3247_v5 = vrot.slane %v5805_v21, 5  ;;  %v3954_v4 = vrot.slane %v3952_v36, 5 }
 0x1d3   : > { %v2438_v49 = vpop.f32.mrf.mxu3  ;;  %v3947_v55 = vsel %vm6007_vm12, %v3942_v16, %v3946_v30  ;;  %v4288_v16 = vunpack.c.l.b16 %v3937_v26  ;;  %v4579_v30 = vrot.slane %v6825_v2, 5  ;;  %v3960_v27 = vrot.slane %v3958_v52, 5 }
 0x1d4   : > { %v2496_v31 = vadd.f32 %v2438_v49, %v2210_v61  ;;  %v6857_v9 = vpop.f32.mrf.mxu1  ;;  %v3249_v34 = vrot.slane %v3247_v5, 4  ;;  %v3248_v23 = vsel %vm6405_vm2, %v5464_v6, %v3247_v5  ;;  %v3951_v5 = vrot.slane %v3949_v17, 4  ;;  %v6885_v6 = vld [vmem:[#allocation2 + $0x38] sm:$0x1] }
 0x1d5   : > { %v4581_v2 = vrot.slane %v4579_v30, 4  ;;  %v1810_v36 = vadd.f32 %v6857_v9, %v6531_v19 }
 0x1d6   : > { %v3251_v14 = vsel %vm6405_vm2, %v3249_v34, %v3250_v37  ;;  %v3955_v26 = vor.u32 %v3954_v4, %v3951_v5 }
 0x1d7   : > { %v3092_v40 = vpop.f32.mrf.mxu0  ;;  %v3350_v62 = vunpack.c.l.b16 %v3251_v14 }
 0x1d8   : > { %5577 = vmatmul.msk.bf16.vlgmr.msra.gmra.mxu3 %vm1480_vm13, %v4318_v57  ;;  %v2157_v61 = vpop.f32.mrf.mxu2  ;;  %v6862_v25 = vadd.f32 %v3092_v40, %v2496_v31  ;;  %v4507_v31 = vld [vmem:[#allocation2 + $0x24] sm:$0xe]  ;;  %v3349_v57 = vunpack.c.l.b16 %v3248_v23  ;;  %v4289_v40 = vunpack.c.l.b16 %v3947_v55  ;;  %v3968_v23 = vshll.u32 %v6885_v6, 16 }
 0x1d9   : > { %v2212_v29 = vadd.f32 %v2157_v61, %v1805_v32  ;;  %v4716_v32 = vpack.c.b16 %v4685_v48, %v4684_v54  ;;  %v5594_v61 = vrot.slane %v4507_v31, 9  ;;  %v3964_v54 = vrot.slane %v3962_v38, 4  ;;  %v3861_v31 = vld [vmem:[#allocation2 + $0x3c] sm:$0xf] }
 0x1da   : > { %v3379_v45 = vpack.c.b16 %v3350_v62, %v3349_v57  ;;  %v5806_v57 = vld [vmem:[#allocation2 + $0x38] sm:$0x1]  ;;  %v3956_v38 = vrot.slane %v3955_v26, 4  ;;  %v3973_v4 = vshrl.u32 %v3861_v31, 16 }
 0x1db   : > { %v2441_v0 = vpop.f32.mrf.mxu3  ;;  %v4580_v55 = vsel %vm6405_vm2, %v5594_v61, %v4579_v30  ;;  %v3965_v17 = vor.u32 %v3964_v54, %v3960_v27  ;;  %v3170_v61 = vld [vmem:[#allocation2 + $0x30] sm:$0xe] }
 0x1dc   : > { %v2497_v49 = vadd.f32 %v2441_v0, %v2211_v28  ;;  %v6877_v56 = vpop.f32.mrf.mxu1  ;;  %v1808_v28 = vadd.f32 %v6843_v20, %v6521_v41  ;;  %v4582_v20 = vrot.slane %v6845_v7, 5  ;;  %v4319_v0 = vpack.c.b16 %v4289_v40, %v4288_v16  ;;  %v6899_v16 = vld [vmem:[#allocation2 + $0x40] sm:$0xf] }
 0x1dd   : > { %5561 = vmatmul.msk.bf16.gmra.mxu2 %vm1480_vm13, %v5663_v58  ;;  %v3257_v7 = vrot.slane %v5806_v57, 5  ;;  %v4686_v62 = vunpack.c.l.b16 %v4580_v55  ;;  %v3970_v40 = vrot.slane %v3968_v23, 5  ;;  %v5465_v9 = vrot.slane %v3170_v61, 9 }
 0x1df   : > { %v3095_v37 = vpop.f32.mrf.mxu0  ;;  %5481 = vmatmul.msk.bf16.gmra.mxu1 %vm1480_vm13, %v3379_v45  ;;  %v5664_v45 = vld [vmem:[#allocation2 + $0x30] sm:$0xff] }
 0x1e0   : > { %v2160_v21 = vpop.f32.mrf.mxu2  ;;  %v6883_v48 = vadd.f32 %v3095_v37, %v2497_v49  ;;  %v4583_v49 = vsel %vm6405_vm2, %v4581_v2, %v4582_v20  ;;  %v3966_v37 = vrot.slane %v3965_v17, 4  ;;  %v3982_v2 = vshll.u32 %v6899_v16, 16 }
 0x1e1   : > { %v2213_v58 = vadd.f32 %v2160_v21, %v1808_v28  ;;  %v4687_v19 = vunpack.c.l.b16 %v4583_v49  ;;  %v3986_v20 = vshrl.u32 %v6899_v16, 16 }
 0x1e2   : > { %5610 = vmatmul.msk.bf16.vlgmr.msra.gmra.mxu0 %vm1480_vm13, %v4716_v32  ;;  %v5807_v32 = vld [vmem:[#allocation2 + $0x34] sm:$0xf]  ;;  %v3971_v17 = vsel %vm6007_vm12, %v3966_v37, %v3970_v40  ;;  %v6919_v40 = vld [vmem:[#allocation2 + $0x44] sm:$0x1] }
 0x1e3   : > { %v2443_v41 = vpop.f32.mrf.mxu3  ;;  %v3254_v28 = vrot.slane %v5807_v32, 5  ;;  %v4291_v61 = vunpack.c.l.b16 %v3971_v17 }
 0x1e4   : > { %v2498_v34 = vadd.f32 %v2443_v41, %v2212_v29  ;;  %v6892_v14 = vpop.f32.mrf.mxu1  ;;  %v3976_v41 = vshll.u32 %v3861_v31, 16  ;;  %v4586_v31 = vrot.slane %v6864_v1, 5 }
 0x1e5   : > { %v3256_v5 = vrot.slane %v3254_v28, 4  ;;  %v3255_v26 = vsel %vm6405_vm2, %v5465_v9, %v3254_v28  ;;  %v3984_v28 = vrot.slane %v3982_v2, 5 }
 0x1e6   : > { %v3351_v23 = vunpack.c.l.b16 %v3255_v26  ;;  %v3978_v32 = vrot.slane %v3976_v41, 5 }
 0x1e7   : > { %v3097_v29 = vpop.f32.mrf.mxu0  ;;  %v3258_v55 = vsel %vm6405_vm2, %v3256_v5, %v3257_v7  ;;  %v4508_v7 = vld [vmem:[#allocation2 + $0x30] sm:$0xe] }
 0x1e8   : > { %5578 = vmatmul.msk.bf16.gmra.mxu3 %vm1480_vm13, %v4319_v0  ;;  %v2162_v52 = vpop.f32.mrf.mxu2  ;;  %v6901_v21 = vadd.f32 %v3097_v29, %v2498_v34  ;;  %v3961_v34 = vsel %vm6007_vm12, %v3956_v38, %v3960_v27  ;;  %v3352_v49 = vunpack.c.l.b16 %v3258_v55  ;;  %v3975_v29 = vrot.slane %v3973_v4, 4 }
 0x1e9   : > { %v2214_v30 = vadd.f32 %v2162_v52, %v1810_v36  ;;  %v4717_v36 = vpack.c.b16 %v4687_v19, %v4686_v62  ;;  %v4290_v38 = vunpack.c.l.b16 %v3961_v34  ;;  %v5595_v1 = vrot.slane %v4508_v7, 9 }
 0x1ea   : > { %v3380_v52 = vpack.c.b16 %v3352_v49, %v3351_v23  ;;  %v4589_v19 = vrot.slane %v6885_v6, 5  ;;  %v3979_v5 = vor.u32 %v3978_v32, %v3975_v29  ;;  %v1815_v6 = vadd.f32 %v6892_v14, %v6572_v22  ;;  %v5808_v23 = vld [vmem:[#allocation2 + $0x44] sm:$0x1]  ;;  %v3171_v32 = vld [vmem:[#allocation2 + $0x3c] sm:$0xe] }
 0x1eb   : > { %v2446_v54 = vpop.f32.mrf.mxu3  ;;  %v4320_v2 = vpack.c.b16 %v4291_v61, %v4290_v38  ;;  %v3264_v49 = vrot.slane %v5808_v23, 5  ;;  %v5466_v22 = vrot.slane %v3171_v32, 9  ;;  %v6938_v61 = vld [vmem:[#allocation2 + $0x4c] sm:$0xf] }
 0x1ec   : > { %v2499_v0 = vadd.f32 %v2446_v54, %v2213_v58  ;;  %v1813_v58 = vadd.f32 %v6877_v56, %v6550_v53  ;;  %v6917_v57 = vpop.f32.mrf.mxu1  ;;  %v4588_v56 = vrot.slane %v4586_v31, 4  ;;  %v3992_v54 = vshll.u32 %v6919_v40, 16 }
 0x1ed   : > { %5562 = vmatmul.msk.bf16.gmra.mxu2 %vm1480_vm13, %v5664_v45  ;;  %v3988_v45 = vrot.slane %v3986_v20, 4  ;;  %v4587_v20 = vsel %vm6405_vm2, %v5595_v1, %v4586_v31  ;;  %v3980_v55 = vrot.slane %v3979_v5, 4  ;;  %v3864_v31 = vld [vmem:[#allocation2 + $0x48] sm:$0xf] }
 0x1ee   : > { %v3994_v17 = vrot.slane %v3992_v54, 5  ;;  %v4000_v54 = vshll.u32 %v3864_v31, 16 }
 0x1ef   : > { %v3100_v27 = vpop.f32.mrf.mxu0  ;;  %5482 = vmatmul.msk.bf16.gmra.mxu1 %vm1480_vm13, %v3380_v52  ;;  %v3989_v4 = vor.u32 %v3988_v45, %v3984_v28  ;;  %v5665_v52 = vld [vmem:[#allocation2 + $0x3c] sm:$0xff]  ;;  %v3985_v1 = vsel %vm6007_vm12, %v3980_v55, %v3984_v28  ;;  %v4010_v28 = vshrl.u32 %v6938_v61, 16 }
 0x1f0   : > { %v2165_v37 = vpop.f32.mrf.mxu2  ;;  %v6922_v53 = vadd.f32 %v3100_v27, %v2499_v0  ;;  %v4590_v0 = vsel %vm6405_vm2, %v4588_v56, %v4589_v19  ;;  %v4688_v27 = vunpack.c.l.b16 %v4587_v20  ;;  %v3997_v19 = vshrl.u32 %v3864_v31, 16 }
 0x1f1   : > { %v2215_v62 = vadd.f32 %v2165_v37, %v1813_v58  ;;  %v3990_v34 = vrot.slane %v3989_v4, 4  ;;  %v5809_v58 = vld [vmem:[#allocation2 + $0x40] sm:$0xf]  ;;  %v4689_v38 = vunpack.c.l.b16 %v4590_v0  ;;  %v4006_v0 = vshll.u32 %v6938_v61, 16 }
 0x1f2   : > { %5611 = vmatmul.msk.bf16.gmra.mxu0 %vm1480_vm13, %v4717_v36  ;;  %v3261_v29 = vrot.slane %v5809_v58, 5  ;;  %v4002_v31 = vrot.slane %v4000_v54, 5 }
 0x1f3   : > { %v2448_v9 = vpop.f32.mrf.mxu3  ;;  %v3995_v56 = vsel %vm6007_vm12, %v3990_v34, %v3994_v17  ;;  %v4292_v34 = vunpack.c.l.b16 %v3985_v1  ;;  %v4593_v17 = vrot.slane %v6899_v16, 5  ;;  %v4008_v32 = vrot.slane %v4006_v0, 5 }
 0x1f4   : > { %v2500_v41 = vadd.f32 %v2448_v9, %v2214_v30  ;;  %v6931_v26 = vpop.f32.mrf.mxu1  ;;  %v3263_v14 = vrot.slane %v3261_v29, 4  ;;  %v3262_v5 = vsel %vm6405_vm2, %v5466_v22, %v3261_v29  ;;  %v3999_v29 = vrot.slane %v3997_v19, 4  ;;  %v6959_v22 = vld [vmem:[#allocation2 + $0x50] sm:$0x1] }
 0x1f5   : > { %v4595_v16 = vrot.slane %v4593_v17, 4  ;;  %v1820_v54 = vadd.f32 %v6931_v26, %v6598_v39 }
 0x1f6   : > { %v3265_v4 = vsel %vm6405_vm2, %v3263_v14, %v3264_v49  ;;  %v4003_v1 = vor.u32 %v4002_v31, %v3999_v29 }
 0x1f7   : > { %v3102_v36 = vpop.f32.mrf.mxu0  ;;  %v3354_v20 = vunpack.c.l.b16 %v3265_v4 }
 0x1f8   : > { %5579 = vmatmul.msk.bf16.gmra.mxu3 %vm1480_vm13, %v4320_v2  ;;  %v2167_v30 = vpop.f32.mrf.mxu2  ;;  %v6936_v45 = vadd.f32 %v3102_v36, %v2500_v41  ;;  %v4509_v41 = vld [vmem:[#allocation2 + $0x3c] sm:$0xe]  ;;  %v3353_v2 = vunpack.c.l.b16 %v3262_v5  ;;  %v4293_v36 = vunpack.c.l.b16 %v3995_v56  ;;  %v4016_v5 = vshll.u32 %v6959_v22, 16 }
 0x1f9   : > { %v2216_v7 = vadd.f32 %v2167_v30, %v1815_v6  ;;  %v4718_v6 = vpack.c.b16 %v4689_v38, %v4688_v27  ;;  %v5596_v30 = vrot.slane %v4509_v41, 9  ;;  %v4012_v27 = vrot.slane %v4010_v28, 4  ;;  %v3867_v41 = vld [vmem:[#allocation2 + $0x54] sm:$0xf] }
 0x1fa   : > { %v3381_v23 = vpack.c.b16 %v3354_v20, %v3353_v2  ;;  %v5810_v2 = vld [vmem:[#allocation2 + $0x50] sm:$0x1]  ;;  %v4004_v28 = vrot.slane %v4003_v1, 4  ;;  %v4021_v31 = vshrl.u32 %v3867_v41, 16 }
 0x1fb   : > { %v2451_v37 = vpop.f32.mrf.mxu3  ;;  %v4594_v56 = vsel %vm6405_vm2, %v5596_v30, %v4593_v17  ;;  %v4013_v19 = vor.u32 %v4012_v27, %v4008_v32  ;;  %v3172_v30 = vld [vmem:[#allocation2 + $0x48] sm:$0xe] }
 0x1fc   : > { %v2501_v9 = vadd.f32 %v2451_v37, %v2215_v62  ;;  %v6951_v55 = vpop.f32.mrf.mxu1  ;;  %v1818_v62 = vadd.f32 %v6917_v57, %v6581_v12  ;;  %v4596_v57 = vrot.slane %v6919_v40, 5  ;;  %v4321_v37 = vpack.c.b16 %v4293_v36, %v4292_v34  ;;  %v6973_v34 = vld [vmem:[#allocation2 + $0x58] sm:$0xf] }
 0x1fd   : > { %5563 = vmatmul.msk.bf16.gmra.mxu2 %vm1480_vm13, %v5665_v52  ;;  %v3271_v40 = vrot.slane %v5810_v2, 5  ;;  %v4690_v20 = vunpack.c.l.b16 %v4594_v56  ;;  %v4018_v36 = vrot.slane %v4016_v5, 5  ;;  %v5467_v26 = vrot.slane %v3172_v30, 9 }
 0x1ff   : > { %v3105_v49 = vpop.f32.mrf.mxu0  ;;  %5483 = vmatmul.msk.bf16.gmra.mxu1 %vm1480_vm13, %v3381_v23  ;;  %v5666_v23 = vld [vmem:[#allocation2 + $0x48] sm:$0xff] }
 0x200   : > { %v2170_v58 = vpop.f32.mrf.mxu2  ;;  %v6957_v38 = vadd.f32 %v3105_v49, %v2501_v9  ;;  %v4597_v9 = vsel %vm6405_vm2, %v4595_v16, %v4596_v57  ;;  %v4014_v49 = vrot.slane %v4013_v19, 4  ;;  %v4030_v16 = vshll.u32 %v6973_v34, 16 }
 0x201   : > { %v2217_v52 = vadd.f32 %v2170_v58, %v1818_v62  ;;  %v4691_v39 = vunpack.c.l.b16 %v4597_v9  ;;  %v4034_v57 = vshrl.u32 %v6973_v34, 16 }
 0x202   : > { %5612 = vmatmul.msk.bf16.gmra.mxu0 %vm1480_vm13, %v4718_v6  ;;  %v5811_v6 = vld [vmem:[#allocation2 + $0x4c] sm:$0xf]  ;;  %v4019_v19 = vsel %vm6007_vm12, %v4014_v49, %v4018_v36  ;;  %v6993_v36 = vld [vmem:[#allocation2 + $0x5c] sm:$0x1] }
 0x203   : > { %v2453_v12 = vpop.f32.mrf.mxu3  ;;  %v3268_v62 = vrot.slane %v5811_v6, 5  ;;  %v4295_v30 = vunpack.c.l.b16 %v4019_v19 }
 0x204   : > { %v2502_v14 = vadd.f32 %v2453_v12, %v2216_v7  ;;  %v6966_v4 = vpop.f32.mrf.mxu1  ;;  %v4024_v12 = vshll.u32 %v3867_v41, 16  ;;  %v4600_v41 = vrot.slane %v6938_v61, 5 }
 0x205   : > { %v3270_v29 = vrot.slane %v3268_v62, 4  ;;  %v3269_v1 = vsel %vm6405_vm2, %v5467_v26, %v3268_v62  ;;  %v4032_v62 = vrot.slane %v4030_v16, 5 }
 0x206   : > { %v3355_v5 = vunpack.c.l.b16 %v3269_v1  ;;  %v4026_v6 = vrot.slane %v4024_v12, 5 }
 0x207   : > { %v3107_v7 = vpop.f32.mrf.mxu0  ;;  %v3272_v56 = vsel %vm6405_vm2, %v3270_v29, %v3271_v40  ;;  %v4510_v40 = vld [vmem:[#allocation2 + $0x48] sm:$0xe] }
 0x208   : > { %5580 = vmatmul.msk.bf16.gmra.mxu3 %vm1480_vm13, %v4321_v37  ;;  %v2172_v0 = vpop.f32.mrf.mxu2  ;;  %v6975_v58 = vadd.f32 %v3107_v7, %v2502_v14  ;;  %v4009_v14 = vsel %vm6007_vm12, %v4004_v28, %v4008_v32  ;;  %v3356_v9 = vunpack.c.l.b16 %v3272_v56  ;;  %v4023_v7 = vrot.slane %v4021_v31, 4 }
 0x209   : > { %v2218_v17 = vadd.f32 %v2172_v0, %v1820_v54  ;;  %v4719_v54 = vpack.c.b16 %v4691_v39, %v4690_v20  ;;  %v4294_v28 = vunpack.c.l.b16 %v4009_v14  ;;  %v5597_v61 = vrot.slane %v4510_v40, 9 }
 0x20a   : > { %v3382_v0 = vpack.c.b16 %v3356_v9, %v3355_v5  ;;  %v4603_v39 = vrot.slane %v6959_v22, 5  ;;  %v4027_v29 = vor.u32 %v4026_v6, %v4023_v7  ;;  %v1825_v22 = vadd.f32 %v6966_v4, %v6523_v44  ;;  %v5812_v5 = vld [vmem:[#allocation2 + $0x5c] sm:$0x1]  ;;  %v3173_v6 = vld [vmem:[#allocation2 + $0x54] sm:$0xe] }
 0x20b   : > { %v2456_v27 = vpop.f32.mrf.mxu3  ;;  %v4322_v16 = vpack.c.b16 %v4295_v30, %v4294_v28  ;;  %v3278_v9 = vrot.slane %v5812_v5, 5  ;;  %v5468_v44 = vrot.slane %v3173_v6, 9  ;;  %v7012_v30 = vld [vmem:[#allocation2 + $0x64] sm:$0xf] }
 0x20c   : > { %v2503_v37 = vadd.f32 %v2456_v27, %v2217_v52  ;;  %v1823_v52 = vadd.f32 %v6951_v55, %v6504_v51  ;;  %v6991_v2 = vpop.f32.mrf.mxu1  ;;  %v4602_v55 = vrot.slane %v4600_v41, 4  ;;  %v4040_v27 = vshll.u32 %v6993_v36, 16 }
 0x20d   : > { %5564 = vmatmul.msk.bf16.gmra.mxu2 %vm1480_vm13, %v5666_v23  ;;  %v4036_v23 = vrot.slane %v4034_v57, 4  ;;  %v4601_v57 = vsel %vm6405_vm2, %v5597_v61, %v4600_v41  ;;  %v4028_v56 = vrot.slane %v4027_v29, 4  ;;  %v3870_v41 = vld [vmem:[#allocation2 + $0x60] sm:$0xf] }
 0x20e   : > { %v4042_v19 = vrot.slane %v4040_v27, 5 }
 0x20f   : > { %v3110_v32 = vpop.f32.mrf.mxu0  ;;  %5484 = vmatmul.msk.bf16.gmra.mxu1 %vm1480_vm13, %v3382_v0  ;;  %v4037_v31 = vor.u32 %v4036_v23, %v4032_v62  ;;  %v5667_v0 = vld [vmem:[#allocation2 + $0x54] sm:$0xff]  ;;  %v4033_v61 = vsel %vm6007_vm12, %v4028_v56, %v4032_v62  ;;  %v4054_v62 = vshll.u32 %v7012_v30, 16 }
 0x210   : > { %v2175_v49 = vpop.f32.mrf.mxu2  ;;  %v6996_v51 = vadd.f32 %v3110_v32, %v2503_v37  ;;  %v4604_v37 = vsel %vm6405_vm2, %v4602_v55, %v4603_v39  ;;  %v4692_v32 = vunpack.c.l.b16 %v4601_v57  ;;  %v4607_v39 = vrot.slane %v6973_v34, 5 }
 0x211   : > { %v2219_v20 = vadd.f32 %v2175_v49, %v1823_v52  ;;  %v4038_v14 = vrot.slane %v4037_v31, 4  ;;  %v5813_v52 = vld [vmem:[#allocation2 + $0x58] sm:$0xf]  ;;  %v4693_v28 = vunpack.c.l.b16 %v4604_v37  ;;  %v4511_v31 = vld [vmem:[#allocation2 + $0x54] sm:$0xe]  ;;  %v4296_v34 = vunpack.c.l.b16 %v4033_v61 }
 0x212   : > { %5613 = vmatmul.msk.bf16.gmra.mxu0 %vm1480_vm13, %v4719_v54  ;;  %v3275_v7 = vrot.slane %v5813_v52, 5  ;;  %v5598_v5 = vrot.slane %v4511_v31, 9  ;;  %v4610_v52 = vrot.slane %v6993_v36, 5 }
 0x213   : > { %v2458_v26 = vpop.f32.mrf.mxu3  ;;  %v4043_v55 = vsel %vm6007_vm12, %v4038_v14, %v4042_v19  ;;  %v4720_v56 = vpack.c.b16 %v4693_v28, %v4692_v32  ;;  %v4056_v32 = vrot.slane %v4054_v62, 5 }
 0x214   : > { %v2504_v12 = vadd.f32 %v2458_v26, %v2218_v17  ;;  %v7005_v1 = vpop.f32.mrf.mxu1  ;;  %v3277_v4 = vrot.slane %v3275_v7, 4  ;;  %v4045_v26 = vshrl.u32 %v3870_v41, 16  ;;  %v3276_v27 = vsel %vm6405_vm2, %v5468_v44, %v3275_v7 }
 0x215   : > { %v3357_v57 = vunpack.c.l.b16 %v3276_v27  ;;  %v4297_v19 = vunpack.c.l.b16 %v4043_v55  ;;  %v4608_v36 = vsel %vm6405_vm2, %v5598_v5, %v4607_v39  ;;  %v5668_v5 = vld [vmem:[#allocation2 + $0x60] sm:$0xff] }
 0x217   : > { %v3112_v54 = vpop.f32.mrf.mxu0 }
 0x218   : > { %5581 = vmatmul.msk.bf16.gmra.mxu3 %vm1480_vm13, %v4322_v16  ;;  %v2177_v17 = vpop.f32.mrf.mxu2  ;;  %v7010_v23 = vadd.f32 %v3112_v54, %v2504_v12  ;;  %v3279_v12 = vsel %vm6405_vm2, %v3277_v4, %v3278_v9  ;;  %v4048_v16 = vshll.u32 %v3870_v41, 16  ;;  %v4047_v41 = vrot.slane %v4045_v26, 4  ;;  %v7034_v4 = vld [vmem:[#allocation2 + $0x68] sm:$0x1] }
 0x219   : > { %v2220_v40 = vadd.f32 %v2177_v17, %v1825_v22  ;;  %v3358_v37 = vunpack.c.l.b16 %v3279_v12  ;;  %v4058_v22 = vshrl.u32 %v7012_v30, 16  ;;  %v4609_v17 = vrot.slane %v4607_v39, 4 }
 0x21a   : > { %v4064_v31 = vshll.u32 %v7034_v4, 16 }
 0x21b   : > { %v2461_v49 = vpop.f32.mrf.mxu3  ;;  %v3383_v54 = vpack.c.b16 %v3358_v37, %v3357_v57  ;;  %v4060_v28 = vrot.slane %v4058_v22, 4  ;;  %v4611_v55 = vsel %vm6405_vm2, %v4609_v17, %v4610_v52  ;;  %v3873_v57 = vld [vmem:[#allocation2 + $0x6c] sm:$0xf]  ;;  %v4694_v37 = vunpack.c.l.b16 %v4608_v36  ;;  %v3174_v17 = vld [vmem:[#allocation2 + $0x60] sm:$0xe] }
 0x21c   : > { %v2505_v29 = vadd.f32 %v2461_v49, %v2219_v20  ;;  %v7026_v14 = vpop.f32.mrf.mxu1  ;;  %v1828_v20 = vadd.f32 %v6991_v2, %v6538_v10  ;;  %v4323_v49 = vpack.c.b16 %v4297_v19, %v4296_v34  ;;  %v4695_v62 = vunpack.c.l.b16 %v4611_v55 }
 0x21d   : > { %5565 = vmatmul.msk.bf16.gmra.mxu2 %vm1480_vm13, %v5667_v0  ;;  %v4050_v0 = vrot.slane %v4048_v16, 5  ;;  %v4061_v26 = vor.u32 %v4060_v28, %v4056_v32  ;;  %v1830_v16 = vadd.f32 %v7005_v1, %v6554_v50  ;;  %v5469_v50 = vrot.slane %v3174_v17, 9 }
 0x21f   : > { %v3115_v9 = vpop.f32.mrf.mxu0  ;;  %5485 = vmatmul.msk.bf16.gmra.mxu1 %vm1480_vm13, %v3383_v54  ;;  %v4051_v61 = vor.u32 %v4050_v0, %v4047_v41  ;;  %v4062_v54 = vrot.slane %v4061_v26, 4  ;;  %v4072_v41 = vshll.u32 %v3873_v57, 16 }
 0x220   : > { %v2180_v7 = vpop.f32.mrf.mxu2  ;;  %v7032_v44 = vadd.f32 %v3115_v9, %v2505_v29  ;;  %v5814_v29 = vld [vmem:[#allocation2 + $0x68] sm:$0x1]  ;;  %v4066_v9 = vrot.slane %v4064_v31, 5 }
 0x221   : > { %v2221_v6 = vadd.f32 %v2180_v7, %v1828_v20  ;;  %v3285_v12 = vrot.slane %v5814_v29, 5  ;;  %v4052_v22 = vrot.slane %v4051_v61, 4  ;;  %v7047_v20 = vld [vmem:[#allocation2 + $0x70] sm:$0xf]  ;;  %v4069_v7 = vshrl.u32 %v3873_v57, 16 }
 0x222   : > { %5614 = vmatmul.msk.bf16.gmra.mxu0 %vm1480_vm13, %v4720_v56  ;;  %v5815_v56 = vld [vmem:[#allocation2 + $0x64] sm:$0xf]  ;;  %v4078_v28 = vshll.u32 %v7047_v20, 16  ;;  %v4067_v55 = vsel %vm6007_vm12, %v4062_v54, %v4066_v9  ;;  %v4721_v29 = vpack.c.b16 %v4695_v62, %v4694_v37  ;;  %v7067_v9 = vld [vmem:[#allocation2 + $0x74] sm:$0x1] }
 0x223   : > { %v2463_v10 = vpop.f32.mrf.mxu3  ;;  %v3282_v34 = vrot.slane %v5815_v56, 5  ;;  %v4071_v57 = vrot.slane %v4069_v7, 4  ;;  %v4299_v17 = vunpack.c.l.b16 %v4067_v55 }
 0x224   : > { %v2506_v2 = vadd.f32 %v2463_v10, %v2220_v40  ;;  %v7042_v27 = vpop.f32.mrf.mxu1  ;;  %v4082_v10 = vshrl.u32 %v7047_v20, 16 }
 0x225   : > { %v3284_v1 = vrot.slane %v3282_v34, 4  ;;  %v3283_v61 = vsel %vm6405_vm2, %v5469_v50, %v3282_v34  ;;  %v4080_v34 = vrot.slane %v4078_v28, 5 }
 0x226   : > { %v3359_v26 = vunpack.c.l.b16 %v3283_v61 }
 0x227   : > { %v3117_v40 = vpop.f32.mrf.mxu0  ;;  %v3286_v36 = vsel %vm6405_vm2, %v3284_v1, %v3285_v12  ;;  %v1833_v12 = vadd.f32 %v7026_v14, %v6574_v13  ;;  %v4617_v1 = vrot.slane %v7034_v4, 5 }
 0x228   : > { %5582 = vmatmul.msk.bf16.gmra.mxu3 %vm1480_vm13, %v4323_v49  ;;  %v2182_v39 = vpop.f32.mrf.mxu2  ;;  %v7049_v52 = vadd.f32 %v3117_v40, %v2506_v2  ;;  %v4057_v2 = vsel %vm6007_vm12, %v4052_v22, %v4056_v32  ;;  %v3360_v31 = vunpack.c.l.b16 %v3286_v36  ;;  %v4074_v40 = vrot.slane %v4072_v41, 5 }
 0x229   : > { %v2222_v19 = vadd.f32 %v2182_v39, %v1830_v16  ;;  %v4614_v16 = vrot.slane %v7012_v30, 5  ;;  %v4512_v39 = vld [vmem:[#allocation2 + $0x60] sm:$0xe]  ;;  %v4298_v22 = vunpack.c.l.b16 %v4057_v2  ;;  %v4088_v41 = vshll.u32 %v7067_v9, 16  ;;  %v7602_v2 = vld [vmem:[#allocation3_spill] sm:$0xff] }
 0x22a   : > { %v3384_v56 = vpack.c.b16 %v3360_v31, %v3359_v26  ;;  %v5599_v62 = vrot.slane %v4512_v39, 9  ;;  %v4075_v13 = vor.u32 %v4074_v40, %v4071_v57  ;;  %v1835_v4 = vadd.f32 %v7042_v27, %v7602_v2  ;;  %v3876_v40 = vld [vmem:[#allocation2 + $0x78] sm:$0xf] }
 0x22b   : > { %v2466_v0 = vpop.f32.mrf.mxu3  ;;  %v4616_v50 = vrot.slane %v4614_v16, 4  ;;  %v4324_v28 = vpack.c.b16 %v4299_v17, %v4298_v22  ;;  %v4090_v26 = vrot.slane %v4088_v41, 5 }
 0x22c   : > { %v2507_v49 = vadd.f32 %v2466_v0, %v2221_v6  ;;  %v7063_v6 = vpop.f32.mrf.mxu1  ;;  %v4076_v61 = vrot.slane %v4075_v13, 4 }
 0x22d   : > { %5566 = vmatmul.msk.bf16.gmra.mxu2 %vm1480_vm13, %v5668_v5  ;;  %v4084_v5 = vrot.slane %v4082_v10, 4  ;;  %v4615_v10 = vsel %vm6405_vm2, %v5599_v62, %v4614_v16  ;;  %v5817_v62 = vld [vmem:[#allocation2 + $0x74] sm:$0x1] }
 0x22e   : > { %v4696_v16 = vunpack.c.l.b16 %v4615_v10  ;;  %v4081_v27 = vsel %vm6007_vm12, %v4076_v61, %v4080_v34 }
 0x22f   : > { %v3120_v32 = vpop.f32.mrf.mxu0  ;;  %5486 = vmatmul.msk.bf16.gmra.mxu1 %vm1480_vm13, %v3384_v56  ;;  %v4085_v7 = vor.u32 %v4084_v5, %v4080_v34  ;;  %v5669_v5 = vld [vmem:[#allocation2 + $0x6c] sm:$0xff] }
 0x230   : > { %v2185_v54 = vpop.f32.mrf.mxu2  ;;  %v7070_v30 = vadd.f32 %v3120_v32, %v2507_v49  ;;  %v4618_v49 = vsel %vm6405_vm2, %v4616_v50, %v4617_v1  ;;  %v3175_v32 = vld [vmem:[#allocation2 + $0x6c] sm:$0xe]  ;;  %v3292_v50 = vrot.slane %v5817_v62, 5 }
 0x231   : > { %v2223_v37 = vadd.f32 %v2185_v54, %v1833_v12  ;;  %v4086_v55 = vrot.slane %v4085_v7, 4  ;;  %v7084_v12 = vld [vmem:[#allocation2 + $0x7c] sm:$0xf]  ;;  %v4697_v39 = vunpack.c.l.b16 %v4618_v49  ;;  %v5470_v17 = vrot.slane %v3175_v32, 9 }
 0x232   : > { %5615 = vmatmul.msk.bf16.gmra.mxu0 %vm1480_vm13, %v4721_v29  ;;  %v4096_v7 = vshll.u32 %v3876_v40, 16  ;;  %v4102_v41 = vshll.u32 %v7084_v12, 16  ;;  %v4106_v34 = vshrl.u32 %v7084_v12, 16 }
 0x233   : > { %v2468_v14 = vpop.f32.mrf.mxu3  ;;  %v4091_v13 = vsel %vm6007_vm12, %v4086_v55, %v4090_v26  ;;  %v4722_v2 = vpack.c.b16 %v4697_v39, %v4696_v16  ;;  %v7603_v26 = vld [vmem:[#allocation4_spill] sm:$0xff] }
 0x234   : > { %v2508_v0 = vadd.f32 %v2468_v14, %v2222_v19  ;;  %v7079_v36 = vpop.f32.mrf.mxu1  ;;  %v5816_v19 = vld [vmem:[#allocation2 + $0x70] sm:$0xf]  ;;  %v4093_v14 = vshrl.u32 %v3876_v40, 16  ;;  %v4513_v40 = vld [vmem:[#allocation2 + $0x6c] sm:$0xe]  ;;  %v7104_v62 = vrot.slane %v4102_v41, 5 }
 0x235   : > { %v3289_v57 = vrot.slane %v5816_v19, 5  ;;  %v7109_v16 = vld [vmem:[#allocation2 + $0x80] sm:$0x1]  ;;  %v5600_v39 = vrot.slane %v4513_v40, 9  ;;  %v5670_v40 = vld [vmem:[#allocation2 + $0x78] sm:$0xff] }
 0x237   : > { %v3122_v31 = vpop.f32.mrf.mxu0  ;;  %v3291_v54 = vrot.slane %v3289_v57, 4 }
 0x238   : > { %5583 = vmatmul.msk.bf16.gmra.mxu3 %vm1480_vm13, %v4324_v28  ;;  %v2187_v29 = vpop.f32.mrf.mxu2  ;;  %v7086_v22 = vadd.f32 %v3122_v31, %v2508_v0  ;;  %v3290_v0 = vsel %vm6405_vm2, %v5470_v17, %v3289_v57  ;;  %v4300_v31 = vunpack.c.l.b16 %v4081_v27  ;;  %v4095_v17 = vrot.slane %v4093_v14, 4 }
 0x239   : > { %v2224_v56 = vadd.f32 %v2187_v29, %v1835_v4  ;;  %v3293_v10 = vsel %vm6405_vm2, %v3291_v54, %v3292_v50  ;;  %v3361_v49 = vunpack.c.l.b16 %v3290_v0  ;;  %v4621_v4 = vrot.slane %v7047_v20, 5 }
 0x23a   : > { %v3362_v61 = vunpack.c.l.b16 %v3293_v10  ;;  %v4301_v29 = vunpack.c.l.b16 %v4091_v13  ;;  %v4098_v54 = vrot.slane %v4096_v7, 5  ;;  %v4112_v0 = vshll.u32 %v7109_v16, 16 }
 0x23b   : > { %v2471_v1 = vpop.f32.mrf.mxu3  ;;  %v4623_v27 = vrot.slane %v4621_v4, 4 }
 0x23c   : > { %v2509_v28 = vadd.f32 %v2471_v1, %v2223_v37  ;;  %v7100_v55 = vpop.f32.mrf.mxu1  ;;  %v1838_v37 = vadd.f32 %v7063_v6, %v7603_v26  ;;  %v3385_v19 = vpack.c.b16 %v3362_v61, %v3361_v49  ;;  %v4624_v1 = vrot.slane %v7067_v9, 5  ;;  %v7605_v49 = vld [vmem:[#allocation5_spill] sm:$0xff] }
 0x23d   : > { %5567 = vmatmul.msk.bf16.gmra.mxu2 %vm1480_vm13, %v5669_v5  ;;  %v4108_v5 = vrot.slane %v4106_v34, 4  ;;  %v4325_v14 = vpack.c.b16 %v4301_v29, %v4300_v31  ;;  %v4099_v7 = vor.u32 %v4098_v54, %v4095_v17  ;;  %v4622_v34 = vsel %vm6405_vm2, %v5600_v39, %v4621_v4  ;;  %v5818_v31 = vld [vmem:[#allocation2 + $0x7c] sm:$0xf]  ;;  %v3176_v4 = vld [vmem:[#allocation2 + $0x78] sm:$0xe] }
 0x23e   : > { %v1840_v61 = vadd.f32 %v7079_v36, %v7605_v49  ;;  %v4625_v9 = vsel %vm6405_vm2, %v4623_v27, %v4624_v1  ;;  %v3296_v29 = vrot.slane %v5818_v31, 5  ;;  %v5471_v36 = vrot.slane %v3176_v4, 9 }
 0x23f   : > { %v3125_v57 = vpop.f32.mrf.mxu0  ;;  %5487 = vmatmul.msk.bf16.gmra.mxu1 %vm1480_vm13, %v3385_v19  ;;  %v4109_v41 = vor.u32 %v4108_v5, %v7104_v62  ;;  %v4100_v26 = vrot.slane %v4099_v7, 4  ;;  %v7124_v19 = vld [vmem:[#allocation2 + $0x88] sm:$0xf]  ;;  %v4698_v27 = vunpack.c.l.b16 %v4622_v34  ;;  %v4699_v1 = vunpack.c.l.b16 %v4625_v9 }
 0x240   : > { %v2190_v32 = vpop.f32.mrf.mxu2  ;;  %v7107_v20 = vadd.f32 %v3125_v57, %v2509_v28  ;;  %v3879_v28 = vld [vmem:[#allocation2 + $0x84] sm:$0xf]  ;;  %v3298_v5 = vrot.slane %v3296_v29, 4  ;;  %v4130_v49 = vshrl.u32 %v7124_v19, 16  ;;  %v4628_v9 = vrot.slane %v7084_v12, 5 }
 0x241   : > { %v2225_v50 = vadd.f32 %v2190_v32, %v1838_v37  ;;  %v4110_v37 = vrot.slane %v4109_v41, 4  ;;  %v4114_v32 = vrot.slane %v4112_v0, 5  ;;  %v4117_v17 = vshrl.u32 %v3879_v28, 16 }
 0x242   : > { %7604 = vst [vmem:[#allocation3_spill] sm:$0xff] %v7107_v20  ;;  %5616 = vmatmul.msk.bf16.gmra.mxu0 %vm1480_vm13, %v4722_v2  ;;  %v4126_v41 = vshll.u32 %v7124_v19, 16  ;;  %v3297_v0 = vsel %vm6405_vm2, %v5471_v36, %v3296_v29  ;;  %v4723_v4 = vpack.c.b16 %v4699_v1, %v4698_v27  ;;  %v4514_v36 = vld [vmem:[#allocation2 + $0x78] sm:$0xe]  ;;  %v7236_v20 = vld [vmem:[#allocation2 + $0xa4] sm:$0x1] }
 0x243   : > { %v2473_v6 = vpop.f32.mrf.mxu3  ;;  %v4115_v34 = vsel %vm6007_vm12, %v4110_v37, %v4114_v32  ;;  %v5601_v12 = vrot.slane %v4514_v36, 9  ;;  %v4630_v32 = vrot.slane %v4628_v9, 4 }
 0x244   : > { %v2510_v13 = vadd.f32 %v2473_v6, %v2224_v56  ;;  %v7115_v10 = vpop.f32.mrf.mxu1  ;;  %v5819_v6 = vld [vmem:[#allocation2 + $0x80] sm:$0x1] }
 0x245   : > { %v3299_v39 = vrot.slane %v5819_v6, 5  ;;  %v7143_v6 = vrot.slane %v4126_v41, 5 }
 0x247   : > { %v3127_v2 = vpop.f32.mrf.mxu0 }
 0x248   : > { %5584 = vmatmul.msk.bf16.gmra.mxu3 %vm1480_vm13, %v4325_v14  ;;  %v2192_v56 = vpop.f32.mrf.mxu2  ;;  %v7126_v54 = vadd.f32 %v3127_v2, %v2510_v13  ;;  %v4120_v14 = vshll.u32 %v3879_v28, 16  ;;  %v3300_v13 = vsel %vm6405_vm2, %v3298_v5, %v3299_v39  ;;  %v4105_v28 = vsel %vm6007_vm12, %v4100_v26, %v7104_v62 }
 0x249   : > { %v2226_v57 = vadd.f32 %v2192_v56, %v1840_v61  ;;  %v3363_v61 = vunpack.c.l.b16 %v3297_v0  ;;  %v3364_v2 = vunpack.c.l.b16 %v3300_v13  ;;  %v4119_v56 = vrot.slane %v4117_v17, 4  ;;  %v3882_v13 = vld [vmem:[#allocation2 + $0x90] sm:$0xf] }
 0x24a   : > { %7606 = vst [vmem:[#allocation4_spill] sm:$0xff] %v7126_v54  ;;  %v4122_v29 = vrot.slane %v4120_v14, 5  ;;  %v4303_v62 = vunpack.c.l.b16 %v4115_v34  ;;  %v7145_v54 = vld [vmem:[#allocation2 + $0x8c] sm:$0x1]  ;;  %v4631_v17 = vrot.slane %v7109_v16, 5  ;;  %v4629_v34 = vsel %vm6405_vm2, %v5601_v12, %v4628_v9  ;;  %v5671_v12 = vld [vmem:[#allocation2 + $0x84] sm:$0xff] }
 0x24b   : > { %v2476_v7 = vpop.f32.mrf.mxu3  ;;  %v3386_v5 = vpack.c.b16 %v3364_v2, %v3363_v61  ;;  %v4136_v41 = vshll.u32 %v7145_v54, 16  ;;  %v4700_v9 = vunpack.c.l.b16 %v4629_v34 }
 0x24c   : > { %v2511_v31 = vadd.f32 %v2476_v7, %v2225_v50  ;;  %v7141_v50 = vpop.f32.mrf.mxu1  ;;  %v4302_v7 = vunpack.c.l.b16 %v4105_v28  ;;  %v4123_v14 = vor.u32 %v4122_v29, %v4119_v56  ;;  %v7154_v28 = vld [vmem:[#allocation2 + $0x94] sm:$0xf]  ;;  %v4632_v16 = vsel %vm6405_vm2, %v4630_v32, %v4631_v17  ;;  %v3177_v32 = vld [vmem:[#allocation2 + $0x84] sm:$0xe] }
 0x24d   : > { %5568 = vmatmul.msk.bf16.gmra.mxu2 %vm1480_vm13, %v5670_v40  ;;  %v4132_v40 = vrot.slane %v4130_v49, 4  ;;  %v4138_v29 = vrot.slane %v4136_v41, 5  ;;  %v5821_v41 = vld [vmem:[#allocation2 + $0x8c] sm:$0x1] }
 0x24e   : > { %v4326_v0 = vpack.c.b16 %v4303_v62, %v4302_v7  ;;  %v4124_v61 = vrot.slane %v4123_v14, 4  ;;  %v4701_v7 = vunpack.c.l.b16 %v4632_v16  ;;  %v4635_v14 = vrot.slane %v7124_v19, 5 }
 0x24f   : > { %v3130_v39 = vpop.f32.mrf.mxu0  ;;  %5488 = vmatmul.msk.bf16.gmra.mxu1 %vm1480_vm13, %v3386_v5  ;;  %v4133_v1 = vor.u32 %v4132_v40, %v7143_v6  ;;  %v5820_v40 = vld [vmem:[#allocation2 + $0x88] sm:$0xf] }
 0x250   : > { %v3740_v26 = vpop.f32.mrf.mxu2  ;;  %v7148_v37 = vadd.f32 %v3130_v39, %v2511_v31  ;;  %v3533_v31 = vadd.f32 %v7100_v55, %v6630_v18  ;;  %v3303_v39 = vrot.slane %v5820_v40, 5  ;;  %v4150_v18 = vshll.u32 %v7154_v28, 16 }
 0x251   : > { %v4134_v56 = vrot.slane %v4133_v1, 4  ;;  %v4154_v55 = vshrl.u32 %v7154_v28, 16  ;;  %v4129_v40 = vsel %vm6007_vm12, %v4124_v61, %v7143_v6  ;;  %v7182_v61 = vld [vmem:[#allocation2 + $0x98] sm:$0x1] }
 0x252   : > { %7607 = vst [vmem:[#allocation5_spill] sm:$0xff] %v7148_v37  ;;  %5617 = vmatmul.msk.bf16.gmra.mxu0 %vm1480_vm13, %v4723_v4  ;;  %v4141_v4 = vshrl.u32 %v3882_v13, 16  ;;  %v3820_v62 = vadd.f32 %v3740_v26, %v3533_v31  ;;  %v3305_v1 = vrot.slane %v3303_v39, 4  ;;  %v4515_v31 = vld [vmem:[#allocation2 + $0x84] sm:$0xe] }
 0x253   : > { %v2478_v27 = vpop.f32.mrf.mxu3  ;;  %v4139_v34 = vsel %vm6007_vm12, %v4134_v56, %v4138_v29  ;;  %v4724_v56 = vpack.c.b16 %v4701_v7, %v4700_v9  ;;  %v3534_v29 = vadd.f32 %v7115_v10, %v6646_v59  ;;  %v4160_v9 = vshll.u32 %v7182_v61, 16  ;;  %v4516_v37 = vld [vmem:[#allocation2 + $0x90] sm:$0xe] }
 0x254   : > { %v2512_v49 = vadd.f32 %v2478_v27, %v2226_v57  ;;  %v7162_v2 = vpop.f32.mrf.mxu1  ;;  %v4144_v57 = vshll.u32 %v3882_v13, 16  ;;  %v5472_v27 = vrot.slane %v3177_v32, 9  ;;  %v4143_v16 = vrot.slane %v4141_v4, 4 }
 0x255   : > { %v4156_v32 = vrot.slane %v4154_v55, 4  ;;  %v4304_v4 = vunpack.c.l.b16 %v4129_v40  ;;  %v3885_v40 = vld [vmem:[#allocation2 + $0x9c] sm:$0xf] }
 0x256   : > { %v4146_v26 = vrot.slane %v4144_v57, 5 }
 0x257   : > { %v3132_v36 = vpop.f32.mrf.mxu0 }
 0x258   : > { %5585 = vmatmul.msk.bf16.gmra.mxu3 %vm1480_vm13, %v4326_v0  ;;  %v3742_v5 = vpop.f32.mrf.mxu2  ;;  %v7167_v17 = vadd.f32 %v3132_v36, %v2512_v49  ;;  %v3306_v0 = vrot.slane %v5821_v41, 5  ;;  %v3304_v49 = vsel %vm6405_vm2, %v5472_v27, %v3303_v39  ;;  %v7179_v36 = vrot.slane %v4150_v18, 5 }
 0x259   : > { %v4305_v39 = vunpack.c.l.b16 %v4139_v34  ;;  %v5602_v27 = vrot.slane %v4515_v31, 9  ;;  %v7204_v31 = vld [vmem:[#allocation2 + $0xa0] sm:$0xf] }
 0x25a   : > { %7608 = vst [vmem:[#allocation10_spill] sm:$0xff] %v7167_v17  ;;  %v3307_v19 = vsel %vm6405_vm2, %v3305_v1, %v3306_v0  ;;  %v3365_v17 = vunpack.c.l.b16 %v3304_v49  ;;  %v4147_v1 = vor.u32 %v4146_v26, %v4143_v16  ;;  %v3821_v49 = vadd.f32 %v3742_v5, %v3534_v29 }
 0x25b   : > { %v4394_v13 = vpop.f32.mrf.mxu3  ;;  %v3366_v6 = vunpack.c.l.b16 %v3307_v19  ;;  %v4327_v34 = vpack.c.b16 %v4305_v39, %v4304_v4  ;;  %v4162_v26 = vrot.slane %v4160_v9, 5  ;;  %v4168_v29 = vshll.u32 %v3885_v40, 16 }
 0x25c   : > { %v4474_v41 = vadd.f32 %v4394_v13, %v3820_v62  ;;  %v7186_v57 = vpop.f32.mrf.mxu1  ;;  %v4637_v62 = vrot.slane %v4635_v14, 4  ;;  %v4157_v13 = vor.u32 %v4156_v32, %v7179_v36 }
 0x25d   : > { %5569 = vmatmul.msk.bf16.gmra.mxu2 %vm1480_vm13, %v5671_v12  ;;  %v3387_v18 = vpack.c.b16 %v3366_v6, %v3365_v17  ;;  %v4638_v12 = vrot.slane %v7145_v54, 5  ;;  %v4636_v54 = vsel %vm6405_vm2, %v5602_v27, %v4635_v14  ;;  %v4148_v17 = vrot.slane %v4147_v1, 4 }
 0x25e   : > { %v4158_v16 = vrot.slane %v4157_v13, 4  ;;  %v3535_v6 = vadd.f32 %v7141_v50, %v6654_v3  ;;  %v5822_v50 = vld [vmem:[#allocation2 + $0x94] sm:$0xf]  ;;  %v4178_v13 = vshrl.u32 %v7204_v31, 16 }
 0x25f   : > { %v4792_v55 = vpop.f32.mrf.mxu0  ;;  %5489 = vmatmul.msk.bf16.gmra.mxu1 %vm1480_vm13, %v3387_v18  ;;  %v4639_v5 = vsel %vm6405_vm2, %v4637_v62, %v4638_v12  ;;  %v4153_v39 = vsel %vm6007_vm12, %v4148_v17, %v7179_v36  ;;  %v4174_v18 = vshll.u32 %v7204_v31, 16  ;;  %v3310_v12 = vrot.slane %v5822_v50, 5 }
 0x260   : > { %v3745_v0 = vpop.f32.mrf.mxu2  ;;  %v4872_v7 = vadd.f32 %v4792_v55, %v4474_v41  ;;  %v4165_v41 = vshrl.u32 %v3885_v40, 16  ;;  %v4703_v4 = vunpack.c.l.b16 %v4639_v5  ;;  %v4163_v3 = vsel %vm6007_vm12, %v4158_v16, %v4162_v26 }
 0x261   : > { %v3822_v55 = vadd.f32 %v3745_v0, %v3535_v6  ;;  %v3312_v40 = vrot.slane %v3310_v12, 4  ;;  %v5823_v0 = vld [vmem:[#allocation2 + $0x98] sm:$0x1]  ;;  %v4170_v5 = vrot.slane %v4168_v29, 5  ;;  %v7224_v27 = vrot.slane %v4174_v18, 5 }
 0x262   : > { %5618 = vmatmul.msk.bf16.gmra.mxu0 %vm1480_vm13, %v4724_v56  ;;  %v4904_v59 = vpack.c.bf16 %v4872_v7, %v4872_v7  ;;  %v5037_v19 = vmul.f32 %v4872_v7, %v4872_v7  ;;  %v4702_v56 = vunpack.c.l.b16 %v4636_v54  ;;  %v4968_v9 = vsel %vm1480_vm13, %v4872_v7, 0.0 }
 0x263   : > { %v4396_v10 = vpop.f32.mrf.mxu3  ;;  %v4167_v54 = vrot.slane %v4165_v41, 4  ;;  %v4180_v41 = vrot.slane %v4178_v13, 4 }
 0x264   : > { %4936 = vst.msk [vmem:[%s7197_s9] sm:$0xf] %vm759_vm1, %v4904_v59  ;;  %v4475_v32 = vadd.f32 %v4396_v10, %v3821_v49  ;;  %v7210_v14 = vpop.f32.mrf.mxu1  ;;  %v5069_v36 = vsel %vm1480_vm13, %v5037_v19, 0.0  ;;  %v5672_v59 = vld [vmem:[#allocation2 + $0x90] sm:$0xff] }
 0x265   : > { %v3178_v10 = vld [vmem:[#allocation2 + $0x90] sm:$0xe] }
 0x266   : > { %v5473_v17 = vrot.slane %v3178_v10, 9 }
 0x267   : > { %v4794_v1 = vpop.f32.mrf.mxu0 }
 0x268   : > { %5586 = vmatmul.msk.bf16.gmra.mxu3 %vm1480_vm13, %v4327_v34  ;;  %v3747_v62 = vpop.f32.mrf.mxu2  ;;  %v4873_v49 = vadd.f32 %v4794_v1, %v4475_v32  ;;  %v3313_v34 = vrot.slane %v5823_v0, 5  ;;  %v3311_v19 = vsel %vm6405_vm2, %v5473_v17, %v3310_v12  ;;  %v4306_v0 = vunpack.c.l.b16 %v4153_v39  ;;  %v7609_v17 = vld [vmem:[#allocation6_spill] sm:$0xff] }
 0x269   : > { %v4725_v12 = vpack.c.b16 %v4703_v4, %v4702_v56  ;;  %v3536_v13 = vadd.f32 %v7162_v2, %v7609_v17  ;;  %v4181_v39 = vor.u32 %v4180_v41, %v7224_v27  ;;  %v4184_v56 = vshll.u32 %v7236_v20, 16 }
 0x26a   : > { %v4905_v6 = vpack.c.bf16 %v4873_v49, %v4873_v49  ;;  %v4969_v16 = vsel %vm1480_vm13, %v4873_v49, 0.0  ;;  %v5038_v26 = vmul.f32 %v4873_v49, %v4873_v49  ;;  %v3314_v32 = vsel %vm6405_vm2, %v3312_v40, %v3313_v34 }
 0x26b   : > { %v4399_v50 = vpop.f32.mrf.mxu3  ;;  %v4970_v7 = vadd.f32 %v4969_v16, %v4968_v9  ;;  %v3367_v49 = vunpack.c.l.b16 %v3311_v19  ;;  %v3368_v10 = vunpack.c.l.b16 %v3314_v32  ;;  %v4307_v9 = vunpack.c.l.b16 %v4163_v3 }
 0x26c   : > { %4937 = vst.msk [vmem:[%s7197_s9 + $0x4] sm:$0xf] %vm759_vm1, %v4905_v6  ;;  %v5070_v29 = vsel %vm1480_vm13, %v5038_v26, 0.0  ;;  %v4476_v1 = vadd.f32 %v4399_v50, %v3822_v55  ;;  %v7234_v16 = vpop.f32.mrf.mxu1  ;;  %v5603_v40 = vrot.slane %v4516_v37, 9  ;;  %v7610_v55 = vrot.slane %v7154_v28, 5 }
 0x26d   : > { %5570 = vmatmul.msk.bf16.gmra.mxu2 %vm1480_vm13, %v5672_v59  ;;  %v5071_v18 = vadd.f32 %v5070_v29, %v5069_v36  ;;  %v3388_v34 = vpack.c.b16 %v3368_v10, %v3367_v49  ;;  %v4645_v59 = vrot.slane %v7182_v61, 5  ;;  %v4171_v36 = vor.u32 %v4170_v5, %v4167_v54  ;;  %v3888_v5 = vld [vmem:[#allocation2 + $0xa8] sm:$0xf]  ;;  %v7254_v10 = vld [vmem:[#allocation2 + $0xac] sm:$0xf] }
 0x26e   : > { %v4644_v26 = vrot.slane %v7610_v55, 4  ;;  %v3823_v19 = vadd.f32 %v3747_v62, %v3536_v13  ;;  %v4328_v2 = vpack.c.b16 %v4307_v9, %v4306_v0  ;;  %v7611_v61 = vmov %v7610_v55 }
 0x26f   : > { %v4797_v6 = vpop.f32.mrf.mxu0  ;;  %5490 = vmatmul.msk.bf16.gmra.mxu1 %vm1480_vm13, %v3388_v34  ;;  %v4643_v54 = vsel %vm6405_vm2, %v5603_v40, %v7611_v61  ;;  %v4182_v49 = vrot.slane %v4181_v39, 4  ;;  %v4189_v17 = vshrl.u32 %v3888_v5, 16  ;;  %v4192_v40 = vshll.u32 %v3888_v5, 16  ;;  %v7612_v34 = vld [vmem:[#allocation7_spill] sm:$0xff]  ;;  %v5825_v5 = vld [vmem:[#allocation2 + $0xa4] sm:$0x1] }
 0x270   : > { %v3750_v50 = vpop.f32.mrf.mxu2  ;;  %v4874_v3 = vadd.f32 %v4797_v6, %v4476_v1  ;;  %v4646_v41 = vsel %vm6405_vm2, %v4644_v26, %v4645_v59  ;;  %v4172_v1 = vrot.slane %v4171_v36, 4  ;;  %v4704_v6 = vunpack.c.l.b16 %v4643_v54 }
 0x271   : > { %v4705_v55 = vunpack.c.l.b16 %v4646_v41  ;;  %v4198_v26 = vshll.u32 %v7254_v10, 16  ;;  %v4191_v61 = vrot.slane %v4189_v17, 4  ;;  %v3320_v41 = vrot.slane %v5825_v5, 5 }
 0x272   : > { %5619 = vmatmul.msk.bf16.gmra.mxu0 %vm1480_vm13, %v4725_v12  ;;  %v4906_v37 = vpack.c.bf16 %v4874_v3, %v4874_v3  ;;  %v4971_v4 = vsel %vm1480_vm13, %v4874_v3, 0.0  ;;  %v5039_v32 = vmul.f32 %v4874_v3, %v4874_v3  ;;  %v4186_v12 = vrot.slane %v4184_v56, 5  ;;  %v5824_v3 = vld [vmem:[#allocation2 + $0xa0] sm:$0xf] }
 0x273   : > { %v4401_v29 = vpop.f32.mrf.mxu3  ;;  %v4972_v62 = vadd.f32 %v4971_v4, %v4970_v7  ;;  %v3537_v7 = vadd.f32 %v7186_v57, %v7612_v34  ;;  %v4177_v39 = vsel %vm6007_vm12, %v4172_v1, %v7224_v27  ;;  %v4202_v56 = vshrl.u32 %v7254_v10, 16  ;;  %v5673_v4 = vld [vmem:[#allocation2 + $0x9c] sm:$0xff] }
 0x274   : > { %4938 = vst.msk [vmem:[%s7197_s9 + $0x8] sm:$0xf] %vm759_vm1, %v4906_v37  ;;  %v5072_v0 = vsel %vm1480_vm13, %v5039_v32, 0.0  ;;  %v4477_v9 = vadd.f32 %v4401_v29, %v3823_v19  ;;  %v7259_v13 = vpop.f32.mrf.mxu1  ;;  %v3317_v19 = vrot.slane %v5824_v3, 5  ;;  %v4187_v32 = vsel %vm6007_vm12, %v4182_v49, %v4186_v12  ;;  %v3179_v29 = vld [vmem:[#allocation2 + $0x9c] sm:$0xe] }
 0x275   : > { %v5073_v28 = vadd.f32 %v5072_v0, %v5071_v18  ;;  %v4649_v18 = vrot.slane %v7204_v31, 5  ;;  %v3824_v57 = vadd.f32 %v3750_v50, %v3537_v7  ;;  %v4194_v27 = vrot.slane %v4192_v40, 5  ;;  %v4517_v3 = vld [vmem:[#allocation2 + $0x9c] sm:$0xe] }
 0x276   : > { %v3319_v54 = vrot.slane %v3317_v19, 4  ;;  %v4204_v17 = vrot.slane %v4202_v56, 4  ;;  %v5604_v5 = vrot.slane %v4517_v3, 9  ;;  %v4308_v56 = vunpack.c.l.b16 %v4177_v39 }
 0x277   : > { %v4799_v59 = vpop.f32.mrf.mxu0 }
 0x278   : > { %5587 = vmatmul.msk.bf16.gmra.mxu3 %vm1480_vm13, %v4328_v2  ;;  %v3752_v36 = vpop.f32.mrf.mxu2  ;;  %v4875_v37 = vadd.f32 %v4799_v59, %v4477_v9  ;;  %v5474_v2 = vrot.slane %v3179_v29, 9  ;;  %v7273_v9 = vrot.slane %v4198_v26, 5  ;;  %v3321_v12 = vsel %vm6405_vm2, %v3319_v54, %v3320_v41 }
 0x279   : > { %v4726_v26 = vpack.c.b16 %v4705_v55, %v4704_v6  ;;  %v4309_v54 = vunpack.c.l.b16 %v4187_v32 }
 0x27a   : > { %v4907_v1 = vpack.c.bf16 %v4875_v37, %v4875_v37  ;;  %v4973_v31 = vsel %vm1480_vm13, %v4875_v37, 0.0  ;;  %v5040_v0 = vmul.f32 %v4875_v37, %v4875_v37  ;;  %v3318_v49 = vsel %vm6405_vm2, %v5474_v2, %v3317_v19  ;;  %v7613_v19 = vld [vmem:[#allocation8_spill] sm:$0xff] }
 0x27b   : > { %v4404_v34 = vpop.f32.mrf.mxu3  ;;  %v4974_v50 = vadd.f32 %v4973_v31, %v4972_v62  ;;  %v3369_v59 = vunpack.c.l.b16 %v3318_v49  ;;  %v3370_v37 = vunpack.c.l.b16 %v3321_v12  ;;  %v7285_v31 = vld [vmem:[#allocation2 + $0xb0] sm:$0x1]  ;;  %v3538_v2 = vadd.f32 %v7210_v14, %v7613_v19 }
 0x27c   : > { %4939 = vst.msk [vmem:[%s7197_s9 + $0xc] sm:$0xf] %vm759_vm1, %v4907_v1  ;;  %v5074_v40 = vsel %vm1480_vm13, %v5040_v0, 0.0  ;;  %v4478_v7 = vadd.f32 %v4404_v34, %v3824_v57  ;;  %v7283_v62 = vpop.f32.mrf.mxu1  ;;  %v4651_v0 = vrot.slane %v4649_v18, 4  ;;  %v4652_v57 = vrot.slane %v7236_v20, 5 }
 0x27d   : > { %5571 = vmatmul.msk.bf16.gmra.mxu2 %vm1480_vm13, %v5673_v4  ;;  %v5075_v29 = vadd.f32 %v5074_v40, %v5073_v28  ;;  %v3389_v41 = vpack.c.b16 %v3370_v37, %v3369_v59  ;;  %v4195_v34 = vor.u32 %v4194_v27, %v4191_v61  ;;  %v4205_v28 = vor.u32 %v4204_v17, %v7273_v9  ;;  %v3891_v27 = vld [vmem:[#allocation2 + $0xb4] sm:$0xf] }
 0x27e   : > { %v3825_v55 = vadd.f32 %v3752_v36, %v3538_v2  ;;  %v4208_v3 = vshll.u32 %v7285_v31, 16  ;;  %v4650_v14 = vsel %vm6405_vm2, %v5604_v5, %v4649_v18  ;;  %v4329_v61 = vpack.c.b16 %v4309_v54, %v4308_v56  ;;  %v7614_v56 = vld [vmem:[#allocation9_spill] sm:$0xff] }
 0x27f   : > { %v4802_v1 = vpop.f32.mrf.mxu0  ;;  %5491 = vmatmul.msk.bf16.gmra.mxu1 %vm1480_vm13, %v3389_v41  ;;  %v4653_v36 = vsel %vm6405_vm2, %v4651_v0, %v4652_v57  ;;  %v4196_v17 = vrot.slane %v4195_v34, 4  ;;  %v4206_v40 = vrot.slane %v4205_v28, 4  ;;  %v4216_v2 = vshll.u32 %v3891_v27, 16  ;;  %v5826_v28 = vld [vmem:[#allocation2 + $0xac] sm:$0xf] }
 0x280   : > { %v3755_v4 = vpop.f32.mrf.mxu2  ;;  %v4876_v6 = vadd.f32 %v4802_v1, %v4478_v7  ;;  %v7299_v7 = vld [vmem:[#allocation2 + $0xb8] sm:$0xf]  ;;  %v4210_v37 = vrot.slane %v4208_v3, 5  ;;  %v4706_v54 = vunpack.c.l.b16 %v4650_v14  ;;  %v4707_v41 = vunpack.c.l.b16 %v4653_v36  ;;  %v5674_v14 = vld [vmem:[#allocation2 + $0xa8] sm:$0xff] }
 0x281   : > { %v4222_v1 = vshll.u32 %v7299_v7, 16  ;;  %v4201_v34 = vsel %vm6007_vm12, %v4196_v17, %v7273_v9  ;;  %v4218_v9 = vrot.slane %v4216_v2, 5 }
 0x282   : > { %5620 = vmatmul.msk.bf16.gmra.mxu0 %vm1480_vm13, %v4726_v26  ;;  %v4908_v39 = vpack.c.bf16 %v4876_v6, %v4876_v6  ;;  %v4975_v32 = vsel %vm1480_vm13, %v4876_v6, 0.0  ;;  %v5041_v20 = vmul.f32 %v4876_v6, %v4876_v6  ;;  %v4213_v26 = vshrl.u32 %v3891_v27, 16  ;;  %v5827_v27 = vld [vmem:[#allocation2 + $0xb0] sm:$0x1] }
 0x283   : > { %v4406_v49 = vpop.f32.mrf.mxu3  ;;  %v4976_v12 = vadd.f32 %v4975_v32, %v4974_v50  ;;  %v3539_v50 = vadd.f32 %v7234_v16, %v7614_v56  ;;  %v3324_v6 = vrot.slane %v5826_v28, 5  ;;  %v3180_v32 = vld [vmem:[#allocation2 + $0xa8] sm:$0xe]  ;;  %v3327_v36 = vrot.slane %v5827_v27, 5 }
 0x284   : > { %4940 = vst.msk [vmem:[%s7197_s9 + $0x10] sm:$0xf] %vm759_vm1, %v4908_v39  ;;  %v5076_v18 = vsel %vm1480_vm13, %v5041_v20, 0.0  ;;  %v4479_v59 = vadd.f32 %v4406_v49, %v3825_v55  ;;  %v7304_v19 = vpop.f32.mrf.mxu1  ;;  %v4226_v55 = vshrl.u32 %v7299_v7, 16  ;;  %v4211_v39 = vsel %vm6007_vm12, %v4206_v40, %v4210_v37  ;;  %v4518_v28 = vld [vmem:[#allocation2 + $0xa8] sm:$0xe] }
 0x285   : > { %v5077_v5 = vadd.f32 %v5076_v18, %v5075_v29  ;;  %v4656_v29 = vrot.slane %v7254_v10, 5  ;;  %v3826_v16 = vadd.f32 %v3755_v4, %v3539_v50  ;;  %v4215_v20 = vrot.slane %v4213_v26, 4 }
 0x286   : > { %v5475_v49 = vrot.slane %v3180_v32, 9  ;;  %v4228_v26 = vrot.slane %v4226_v55, 4  ;;  %v5605_v27 = vrot.slane %v4518_v28, 9  ;;  %v4310_v55 = vunpack.c.l.b16 %v4201_v34 }
 0x287   : > { %v4804_v0 = vpop.f32.mrf.mxu0 }
 0x288   : > { %5588 = vmatmul.msk.bf16.gmra.mxu3 %vm1480_vm13, %v4329_v61  ;;  %v3757_v57 = vpop.f32.mrf.mxu2  ;;  %v4877_v3 = vadd.f32 %v4804_v0, %v4479_v59  ;;  %v3326_v61 = vrot.slane %v3324_v6, 4  ;;  %v7318_v59 = vrot.slane %v4222_v1, 5  ;;  %v3325_v40 = vsel %vm6405_vm2, %v5475_v49, %v3324_v6 }
 0x289   : > { %v3371_v0 = vunpack.c.l.b16 %v3325_v40  ;;  %v4727_v1 = vpack.c.b16 %v4707_v41, %v4706_v54  ;;  %v3540_v6 = vadd.f32 %v7259_v13, %v6729_v8  ;;  %v4311_v49 = vunpack.c.l.b16 %v4211_v39 }
 0x28a   : > { %v4909_v17 = vpack.c.bf16 %v4877_v3, %v4877_v3  ;;  %v4977_v10 = vsel %vm1480_vm13, %v4877_v3, 0.0  ;;  %v5042_v18 = vmul.f32 %v4877_v3, %v4877_v3  ;;  %v3328_v37 = vsel %vm6405_vm2, %v3326_v61, %v3327_v36 }
 0x28b   : > { %v4409_v56 = vpop.f32.mrf.mxu3  ;;  %v4978_v4 = vadd.f32 %v4977_v10, %v4976_v12  ;;  %v3372_v3 = vunpack.c.l.b16 %v3328_v37  ;;  %v7330_v10 = vld [vmem:[#allocation2 + $0xbc] sm:$0x1]  ;;  %v3827_v41 = vadd.f32 %v3757_v57, %v3540_v6  ;;  %v7340_v8 = vsel %vm6405_vm2, %v5605_v27, %v4656_v29 }
 0x28c   : > { %4941 = vst.msk [vmem:[%s7197_s9 + $0x14] sm:$0xf] %vm759_vm1, %v4909_v17  ;;  %v5078_v2 = vsel %vm1480_vm13, %v5042_v18, 0.0  ;;  %v4480_v50 = vadd.f32 %v4409_v56, %v3826_v16  ;;  %v7328_v12 = vpop.f32.mrf.mxu1  ;;  %v4658_v17 = vrot.slane %v4656_v29, 4  ;;  %v4659_v16 = vrot.slane %v7285_v31, 5 }
 0x28d   : > { %5572 = vmatmul.msk.bf16.gmra.mxu2 %vm1480_vm13, %v5674_v14  ;;  %v5079_v32 = vadd.f32 %v5078_v2, %v5077_v5  ;;  %v3390_v61 = vpack.c.b16 %v3372_v3, %v3371_v0  ;;  %v4219_v18 = vor.u32 %v4218_v9, %v4215_v20  ;;  %v4229_v5 = vor.u32 %v4228_v26, %v7318_v59  ;;  %v3894_v9 = vld [vmem:[#allocation2 + $0xc0] sm:$0xf]  ;;  %v7346_v26 = vld [vmem:[#allocation2 + $0xc4] sm:$0xf] }
 0x28e   : > { %v4232_v56 = vshll.u32 %v7330_v10, 16  ;;  %v4330_v20 = vpack.c.b16 %v4311_v49, %v4310_v55  ;;  %v4660_v57 = vsel %vm6405_vm2, %v4658_v17, %v4659_v16  ;;  %v4237_v0 = vshrl.u32 %v3894_v9, 16  ;;  %v5828_v16 = vld [vmem:[#allocation2 + $0xb8] sm:$0xf] }
 0x28f   : > { %v4807_v36 = vpop.f32.mrf.mxu0  ;;  %5492 = vmatmul.msk.bf16.gmra.mxu1 %vm1480_vm13, %v3390_v61  ;;  %v4220_v40 = vrot.slane %v4219_v18, 4  ;;  %v4230_v37 = vrot.slane %v4229_v5, 4  ;;  %v4240_v27 = vshll.u32 %v3894_v9, 16  ;;  %v4708_v6 = vunpack.c.l.b16 %v7340_v8 }
 0x290   : > { %v3760_v14 = vpop.f32.mrf.mxu2  ;;  %v4878_v54 = vadd.f32 %v4807_v36, %v4480_v50  ;;  %v4234_v50 = vrot.slane %v4232_v56, 5  ;;  %v4709_v55 = vunpack.c.l.b16 %v4660_v57  ;;  %v4246_v49 = vshll.u32 %v7346_v26, 16  ;;  %v3181_v56 = vld [vmem:[#allocation2 + $0xb4] sm:$0xe] }
 0x291   : > { %v4225_v17 = vsel %vm6007_vm12, %v4220_v40, %v7318_v59  ;;  %v3331_v18 = vrot.slane %v5828_v16, 5  ;;  %v4250_v5 = vshrl.u32 %v7346_v26, 16  ;;  %v4239_v8 = vrot.slane %v4237_v0, 4 }
 0x292   : > { %5621 = vmatmul.msk.bf16.gmra.mxu0 %vm1480_vm13, %v4727_v1  ;;  %v4910_v13 = vpack.c.bf16 %v4878_v54, %v4878_v54  ;;  %v4979_v31 = vsel %vm1480_vm13, %v4878_v54, 0.0  ;;  %v5043_v34 = vmul.f32 %v4878_v54, %v4878_v54  ;;  %v5675_v54 = vld [vmem:[#allocation2 + $0xb4] sm:$0xff]  ;;  %v4242_v59 = vrot.slane %v4240_v27, 5 }
 0x293   : > { %v4411_v39 = vpop.f32.mrf.mxu3  ;;  %v4980_v28 = vadd.f32 %v4979_v31, %v4978_v4  ;;  %v3541_v4 = vadd.f32 %v7283_v62, %v6747_v42  ;;  %v3333_v31 = vrot.slane %v3331_v18, 4  ;;  %v7366_v40 = vrot.slane %v4246_v49, 5  ;;  %v936_v49 = vld [vmem:[#allocation2 + $0xcc] sm:$0x1] }
 0x294   : > { %4942 = vst.msk [vmem:[%s7197_s9 + $0x18] sm:$0xf] %vm759_vm1, %v4910_v13  ;;  %v5080_v29 = vsel %vm1480_vm13, %v5043_v34, 0.0  ;;  %v4481_v2 = vadd.f32 %v4411_v39, %v3827_v41  ;;  %v7351_v1 = vpop.f32.mrf.mxu1  ;;  %v4235_v41 = vsel %vm6007_vm12, %v4230_v37, %v4234_v50  ;;  %v5476_v13 = vrot.slane %v3181_v56, 9  ;;  %v5829_v34 = vld [vmem:[#allocation2 + $0xbc] sm:$0x1] }
 0x295   : > { %v5081_v3 = vadd.f32 %v5080_v29, %v5079_v32  ;;  %v4663_v32 = vrot.slane %v7299_v7, 5  ;;  %v3828_v62 = vadd.f32 %v3760_v14, %v3541_v4  ;;  %v3334_v39 = vrot.slane %v5829_v34, 5  ;;  %v4519_v29 = vld [vmem:[#allocation2 + $0xb4] sm:$0xe] }
 0x296   : > { %v3332_v37 = vsel %vm6405_vm2, %v5476_v13, %v3331_v18  ;;  %v4252_v50 = vrot.slane %v4250_v5, 4  ;;  %v4312_v18 = vunpack.c.l.b16 %v4225_v17  ;;  %v7380_v13 = vld [vmem:[#allocation2 + $0xc8] sm:$0x1]  ;;  %v991_v5 = vld [vmem:[#allocation2 + $0xd4] sm:$0x1]  ;;  %v5606_v34 = vrot.slane %v4519_v29, 9 }
 0x297   : > { %v4809_v61 = vpop.f32.mrf.mxu0  ;;  %v3373_v4 = vunpack.c.l.b16 %v3332_v37 }
 0x298   : > { %5589 = vmatmul.msk.bf16.gmra.mxu3 %vm1480_vm13, %v4330_v20  ;;  %v3762_v36 = vpop.f32.mrf.mxu2  ;;  %v4879_v42 = vadd.f32 %v4809_v61, %v4481_v2  ;;  %v3335_v2 = vsel %vm6405_vm2, %v3333_v31, %v3334_v39  ;;  %v4313_v31 = vunpack.c.l.b16 %v4235_v41  ;;  %v4664_v43 = vsel %vm6405_vm2, %v5606_v34, %v4663_v32 }
 0x299   : > { %v3374_v61 = vunpack.c.l.b16 %v3335_v2 }
 0x29a   : > { %v4911_v20 = vpack.c.bf16 %v4879_v42, %v4879_v42  ;;  %v4981_v7 = vsel %vm1480_vm13, %v4879_v42, 0.0  ;;  %v5044_v9 = vmul.f32 %v4879_v42, %v4879_v42  ;;  %v3542_v42 = vadd.f32 %v7304_v19, %v6766_v24 }
 0x29b   : > { %v4414_v57 = vpop.f32.mrf.mxu3  ;;  %v4982_v14 = vadd.f32 %v4981_v7, %v4980_v28  ;;  %v4728_v28 = vpack.c.b16 %v4709_v55, %v4708_v6  ;;  %v3391_v39 = vpack.c.b16 %v3374_v61, %v3373_v4  ;;  %v992_v24 = vsel %vm5938_vm7, 0, %v991_v5  ;;  %v7401_v61 = vld [vmem:[#allocation2 + $0xd0] sm:$0xf]  ;;  %v5830_v5 = vld [vmem:[#allocation2 + $0xc4] sm:$0xf] }
 0x29c   : > { %4943 = vst.msk [vmem:[%s7197_s9 + $0x1c] sm:$0xf] %vm759_vm1, %v4911_v20  ;;  %v5082_v0 = vsel %vm1480_vm13, %v5044_v9, 0.0  ;;  %v4482_v27 = vadd.f32 %v4414_v57, %v3828_v62  ;;  %v7378_v56 = vpop.f32.mrf.mxu1  ;;  %v4666_v62 = vrot.slane %v7330_v10, 5  ;;  %v4665_v20 = vrot.slane %v4663_v32, 4 }
 0x29d   : > { %5573 = vmatmul.msk.bf16.gmra.mxu2 %vm1480_vm13, %v5675_v54  ;;  %v5083_v16 = vadd.f32 %v5082_v0, %v5081_v3  ;;  %v4243_v9 = vor.u32 %v4242_v59, %v4239_v8  ;;  %v937_v3 = vsel %vm5929_vm6, 0, %v936_v49  ;;  %v3829_v6 = vadd.f32 %v3762_v36, %v3542_v42  ;;  %993 = vst [vmem:[#allocation2 + $0xd4] sm:$0x1] %v992_v24 }
 0x29e   : > { %v4253_v55 = vor.u32 %v4252_v50, %v7366_v40  ;;  %v4256_v10 = vshll.u32 %v7380_v13, 16  ;;  %938 = vst [vmem:[#allocation2 + $0xcc] sm:$0x1] %v937_v3  ;;  %v4331_v59 = vpack.c.b16 %v4313_v31, %v4312_v18  ;;  %v4667_v57 = vsel %vm6405_vm2, %v4665_v20, %v4666_v62  ;;  %v5831_v3 = vld [vmem:[#allocation2 + $0xc8] sm:$0x1] }
 0x29f   : > { %v4812_v54 = vpop.f32.mrf.mxu0  ;;  %5493 = vmatmul.msk.bf16.gmra.mxu1 %vm1480_vm13, %v3391_v39  ;;  %v4244_v29 = vrot.slane %v4243_v9, 4  ;;  %v3543_v32 = vadd.f32 %v7328_v12, %v6777_v60  ;;  %v4710_v49 = vunpack.c.l.b16 %v4664_v43  ;;  %v3338_v31 = vrot.slane %v5830_v5, 5  ;;  %v5676_v39 = vld [vmem:[#allocation2 + $0xc0] sm:$0xff] }
 0x2a0   : > { %v3765_v7 = vpop.f32.mrf.mxu2  ;;  %v4880_v19 = vadd.f32 %v4812_v54, %v4482_v27  ;;  %v4254_v50 = vrot.slane %v4253_v55, 4  ;;  %v4258_v0 = vrot.slane %v4256_v10, 5  ;;  %v3182_v60 = vld [vmem:[#allocation2 + $0xc0] sm:$0xe]  ;;  %v4270_v12 = vshll.u32 %v7401_v61, 16 }
 0x2a1   : > { %v4249_v18 = vsel %vm6007_vm12, %v4244_v29, %v7366_v40  ;;  %v3830_v62 = vadd.f32 %v3765_v7, %v3543_v32  ;;  %v5477_v20 = vrot.slane %v3182_v60, 9  ;;  %v3340_v9 = vrot.slane %v3338_v31, 4  ;;  %v4520_v32 = vld [vmem:[#allocation2 + $0xc0] sm:$0xe] }
 0x2a2   : > { %5622 = vmatmul.msk.bf16.gmra.mxu0 %vm1480_vm13, %v4728_v28  ;;  %v4912_v17 = vpack.c.bf16 %v4880_v19, %v4880_v19  ;;  %v4983_v33 = vsel %vm1480_vm13, %v4880_v19, 0.0  ;;  %v5045_v41 = vmul.f32 %v4880_v19, %v4880_v19  ;;  %v4711_v28 = vunpack.c.l.b16 %v4667_v57 }
 0x2a3   : > { %v4416_v8 = vpop.f32.mrf.mxu3  ;;  %v4984_v36 = vadd.f32 %v4983_v33, %v4982_v14  ;;  %v4259_v54 = vsel %vm6007_vm12, %v4254_v50, %v4258_v0  ;;  %v3341_v24 = vrot.slane %v5831_v3, 5  ;;  %v4274_v19 = vshrl.u32 %v7401_v61, 16 }
 0x2a4   : > { %4944 = vst.msk [vmem:[%s7197_s9 + $0x20] sm:$0xf] %vm759_vm1, %v4912_v17  ;;  %v5084_v37 = vsel %vm1480_vm13, %v5045_v41, 0.0  ;;  %v4483_v2 = vadd.f32 %v4416_v8, %v3829_v6  ;;  %v7399_v4 = vpop.f32.mrf.mxu1  ;;  %v3339_v33 = vsel %vm6405_vm2, %v5477_v20, %v3338_v31  ;;  %v3544_v50 = vadd.f32 %v7351_v1, %v6794_v15 }
 0x2a5   : > { %v5085_v27 = vadd.f32 %v5084_v37, %v5083_v16  ;;  %v3897_v16 = vld [vmem:[#allocation2 + $0xcc] sm:$0xf]  ;;  %v3342_v41 = vsel %vm6405_vm2, %v3340_v9, %v3341_v24  ;;  %v3375_v57 = vunpack.c.l.b16 %v3339_v33  ;;  %v4314_v0 = vunpack.c.l.b16 %v4249_v18  ;;  %v7428_v9 = vld [vmem:[#allocation2 + $0xd4] sm:$0x1] }
 0x2a6   : > { %v4261_v7 = vshrl.u32 %v3897_v16, 16  ;;  %v4264_v8 = vshll.u32 %v3897_v16, 16  ;;  %v3376_v29 = vunpack.c.l.b16 %v3342_v41  ;;  %v4315_v31 = vunpack.c.l.b16 %v4259_v54 }
 0x2a7   : > { %v4814_v14 = vpop.f32.mrf.mxu0  ;;  %v4670_v16 = vrot.slane %v7346_v26, 5  ;;  %v4276_v60 = vrot.slane %v4274_v19, 4  ;;  %v4673_v54 = vrot.slane %v7380_v13, 5  ;;  %v3545_v33 = vadd.f32 %v7378_v56, %v6810_v35 }
 0x2a8   : > { %5590 = vmatmul.msk.bf16.gmra.mxu3 %vm1480_vm13, %v4331_v59  ;;  %v3767_v42 = vpop.f32.mrf.mxu2  ;;  %v4881_v34 = vadd.f32 %v4814_v14, %v4483_v2  ;;  %v3392_v14 = vpack.c.b16 %v3376_v29, %v3375_v57  ;;  %v4332_v3 = vpack.c.b16 %v4315_v31, %v4314_v0  ;;  %v5677_v29 = vld [vmem:[#allocation2 + $0xcc] sm:$0xff] }
 0x2a9   : > { %v3831_v20 = vadd.f32 %v3767_v42, %v3544_v50  ;;  %v4672_v42 = vrot.slane %v4670_v16, 4 }
 0x2aa   : > { %v4913_v40 = vpack.c.bf16 %v4881_v34, %v4881_v34  ;;  %v4985_v6 = vsel %vm1480_vm13, %v4881_v34, 0.0  ;;  %v5046_v55 = vmul.f32 %v4881_v34, %v4881_v34 }
 0x2ab   : > { %v4419_v10 = vpop.f32.mrf.mxu3  ;;  %v4986_v17 = vadd.f32 %v4985_v6, %v4984_v36  ;;  %v4729_v36 = vpack.c.b16 %v4711_v28, %v4710_v49  ;;  %v4266_v49 = vrot.slane %v4264_v8, 5  ;;  %v5607_v28 = vrot.slane %v4520_v32, 9 }
 0x2ac   : > { %4945 = vst.msk [vmem:[%s7197_s9 + $0x24] sm:$0xf] %vm759_vm1, %v4913_v40  ;;  %v5086_v43 = vsel %vm1480_vm13, %v5046_v55, 0.0  ;;  %v4484_v59 = vadd.f32 %v4419_v10, %v3830_v62  ;;  %v7422_v2 = vpop.f32.mrf.mxu1  ;;  %v4272_v62 = vrot.slane %v4270_v12, 5  ;;  %v4280_v55 = vshll.u32 %v7428_v9, 16 }
 0x2ad   : > { %5574 = vmatmul.msk.bf16.gmra.mxu2 %vm1480_vm13, %v5676_v39  ;;  %v5087_v37 = vadd.f32 %v5086_v43, %v5085_v27  ;;  %v4263_v27 = vrot.slane %v4261_v7, 4  ;;  %v4671_v13 = vsel %vm6405_vm2, %v5607_v28, %v4670_v16  ;;  %v4674_v41 = vsel %vm6405_vm2, %v4672_v42, %v4673_v54 }
 0x2ae   : > { %v4277_v24 = vor.u32 %v4276_v60, %v4272_v62  ;;  %v4712_v50 = vunpack.c.l.b16 %v4671_v13  ;;  %v4713_v32 = vunpack.c.l.b16 %v4674_v41  ;;  %v3547_v13 = vadd.f32 %v7422_v2, %v6848_v46 }
 0x2af   : > { %v4817_v5 = vpop.f32.mrf.mxu0  ;;  %5494 = vmatmul.msk.bf16.gmra.mxu1 %vm1480_vm13, %v3392_v14  ;;  %v4267_v6 = vor.u32 %v4266_v49, %v4263_v27  ;;  %v3546_v49 = vadd.f32 %v7399_v4, %v6827_v47 }
 0x2b0   : > { %v3770_v34 = vpop.f32.mrf.mxu2  ;;  %v4882_v39 = vadd.f32 %v4817_v5, %v4484_v59  ;;  %v4278_v43 = vrot.slane %v4277_v24, 4  ;;  %v4730_v27 = vpack.c.b16 %v4713_v32, %v4712_v50 }
 0x2b1   : > { %v3832_v57 = vadd.f32 %v3770_v34, %v3545_v33 }
 0x2b2   : > { %5623 = vmatmul.msk.bf16.gmra.mxu0 %vm1480_vm13, %v4729_v36  ;;  %v4914_v15 = vpack.c.bf16 %v4882_v39, %v4882_v39  ;;  %v4987_v1 = vsel %vm1480_vm13, %v4882_v39, 0.0  ;;  %v5047_v18 = vmul.f32 %v4882_v39, %v4882_v39  ;;  %v4282_v36 = vrot.slane %v4280_v55, 5 }
 0x2b3   : > { %v4421_v26 = vpop.f32.mrf.mxu3  ;;  %v4988_v12 = vadd.f32 %v4987_v1, %v4986_v17 }
 0x2b4   : > { %4946 = vst.msk [vmem:[%s7197_s9 + $0x28] sm:$0xf] %vm759_vm1, %v4914_v15  ;;  %v5088_v19 = vsel %vm1480_vm13, %v5047_v18, 0.0  ;;  %v4485_v40 = vadd.f32 %v4421_v26, %v3831_v20  ;;  %v7437_v7 = vpop.f32.mrf.mxu1  ;;  %v4283_v60 = vsel %vm6007_vm12, %v4278_v43, %v4282_v36  ;;  %v4521_v18 = vld [vmem:[#allocation2 + $0xcc] sm:$0xe]  ;;  %v4677_v26 = vrot.slane %v7401_v61, 5 }
 0x2b5   : > { %v5089_v10 = vadd.f32 %v5088_v19, %v5087_v37  ;;  %v4268_v37 = vrot.slane %v4267_v6, 4  ;;  %v4317_v1 = vunpack.c.l.b16 %v4283_v60  ;;  %v5608_v19 = vrot.slane %v4521_v18, 9 }
 0x2b6   : > { %v4679_v4 = vrot.slane %v4677_v26, 4  ;;  %v4680_v6 = vrot.slane %v7428_v9, 5 }
 0x2b7   : > { %v4819_v17 = vpop.f32.mrf.mxu0  ;;  %v4273_v34 = vsel %vm6007_vm12, %v4268_v37, %v4272_v62 }
 0x2b8   : > { %5591 = vmatmul.msk.bf16.gmra.mxu3 %vm1480_vm13, %v4332_v3  ;;  %v3772_v8 = vpop.f32.mrf.mxu2  ;;  %v4883_v59 = vadd.f32 %v4819_v17, %v4485_v40  ;;  %v4316_v15 = vunpack.c.l.b16 %v4273_v34  ;;  %v4678_v17 = vsel %vm6405_vm2, %v5608_v19, %v4677_v26  ;;  %v4681_v9 = vsel %vm6405_vm2, %v4679_v4, %v4680_v6 }
 0x2b9   : > { %v3833_v62 = vadd.f32 %v3772_v8, %v3546_v49  ;;  %v4715_v50 = vunpack.c.l.b16 %v4681_v9 }
 0x2ba   : > { %v4915_v0 = vpack.c.bf16 %v4883_v59, %v4883_v59  ;;  %v4989_v35 = vsel %vm1480_vm13, %v4883_v59, 0.0  ;;  %v5048_v56 = vmul.f32 %v4883_v59, %v4883_v59  ;;  %v4333_v47 = vpack.c.b16 %v4317_v1, %v4316_v15 }
 0x2bb   : > { %v4424_v14 = vpop.f32.mrf.mxu3  ;;  %v4990_v5 = vadd.f32 %v4989_v35, %v4988_v12 }
 0x2bc   : > { %4947 = vst.msk [vmem:[%s7197_s9 + $0x2c] sm:$0xf] %vm759_vm1, %v4915_v0  ;;  %v5090_v31 = vsel %vm1480_vm13, %v5048_v56, 0.0  ;;  %v4486_v16 = vadd.f32 %v4424_v14, %v3832_v57  ;;  %v7455_v20 = vpop.f32.mrf.mxu1  ;;  %v4714_v57 = vunpack.c.l.b16 %v4678_v17  ;;  %v3548_v14 = vadd.f32 %v7437_v7, %v6862_v25 }
 0x2bd   : > { %5575 = vmatmul.msk.bf16.gmra.mxu2 %vm1480_vm13, %v5677_v29  ;;  %v5091_v39 = vadd.f32 %v5090_v31, %v5089_v10  ;;  %v3549_v7 = vadd.f32 %v7455_v20, %v6883_v48 }
 0x2be   : > { %v4731_v32 = vpack.c.b16 %v4715_v50, %v4714_v57 }
 0x2bf   : > { %v4822_v28 = vpop.f32.mrf.mxu0 }
 0x2c0   : > { %v3775_v54 = vpop.f32.mrf.mxu2  ;;  %v4884_v12 = vadd.f32 %v4822_v28, %v4486_v16 }
 0x2c1   : > { %v3834_v59 = vadd.f32 %v3775_v54, %v3547_v13 }
 0x2c2   : > { %5624 = vmatmul.msk.bf16.gmra.mxu0 %vm1480_vm13, %v4730_v27  ;;  %v4916_v11 = vpack.c.bf16 %v4884_v12, %v4884_v12  ;;  %v4991_v3 = vsel %vm1480_vm13, %v4884_v12, 0.0  ;;  %v5049_v42 = vmul.f32 %v4884_v12, %v4884_v12 }
 0x2c3   : > { %v4426_v24 = vpop.f32.mrf.mxu3  ;;  %v4992_v40 = vadd.f32 %v4991_v3, %v4990_v5 }
 0x2c4   : > { %4948 = vst.msk [vmem:[%s7197_s9 + $0x30] sm:$0xf] %vm759_vm1, %v4916_v11  ;;  %v5092_v61 = vsel %vm1480_vm13, %v5049_v42, 0.0  ;;  %v4487_v55 = vadd.f32 %v4426_v24, %v3833_v62  ;;  %v3495_v33 = vpop.f32.mrf.mxu1 }
 0x2c5   : > { %v5093_v10 = vadd.f32 %v5092_v61, %v5091_v39  ;;  %v3550_v48 = vadd.f32 %v3495_v33, %v6901_v21 }
 0x2c7   : > { %v4824_v41 = vpop.f32.mrf.mxu0 }
 0x2c8   : > { %5592 = vmatmul.msk.bf16.gmra.mxu3 %vm1480_vm13, %v4333_v47  ;;  %v3777_v8 = vpop.f32.mrf.mxu2  ;;  %v4885_v43 = vadd.f32 %v4824_v41, %v4487_v55 }
 0x2c9   : > { %v3835_v34 = vadd.f32 %v3777_v8, %v3548_v14 }
 0x2ca   : > { %v4917_v29 = vpack.c.bf16 %v4885_v43, %v4885_v43  ;;  %v4993_v37 = vsel %vm1480_vm13, %v4885_v43, 0.0  ;;  %v5050_v36 = vmul.f32 %v4885_v43, %v4885_v43 }
 0x2cb   : > { %v4429_v0 = vpop.f32.mrf.mxu3  ;;  %v4994_v46 = vadd.f32 %v4993_v37, %v4992_v40 }
 0x2cc   : > { %4949 = vst.msk [vmem:[%s7197_s9 + $0x34] sm:$0xf] %vm759_vm1, %v4917_v29  ;;  %v5094_v2 = vsel %vm1480_vm13, %v5050_v36, 0.0  ;;  %v4488_v35 = vadd.f32 %v4429_v0, %v3834_v59  ;;  %v3498_v63 = vpop.f32.mrf.mxu1 }
 0x2cd   : > { %v5095_v56 = vadd.f32 %v5094_v2, %v5093_v10  ;;  %v3551_v29 = vadd.f32 %v3498_v63, %v6922_v53 }
 0x2cf   : > { %v4827_v5 = vpop.f32.mrf.mxu0 }
 0x2d0   : > { %v3780_v31 = vpop.f32.mrf.mxu2  ;;  %v4886_v16 = vadd.f32 %v4827_v5, %v4488_v35 }
 0x2d1   : > { %v3836_v62 = vadd.f32 %v3780_v31, %v3549_v7 }
 0x2d2   : > { %5625 = vmatmul.msk.bf16.gmra.mxu0 %vm1480_vm13, %v4731_v32  ;;  %v4918_v60 = vpack.c.bf16 %v4886_v16, %v4886_v16  ;;  %v4995_v39 = vsel %vm1480_vm13, %v4886_v16, 0.0  ;;  %v5051_v27 = vmul.f32 %v4886_v16, %v4886_v16 }
 0x2d3   : > { %v4431_v49 = vpop.f32.mrf.mxu3  ;;  %v4996_v28 = vadd.f32 %v4995_v39, %v4994_v46 }
 0x2d4   : > { %4950 = vst.msk [vmem:[%s7197_s9 + $0x38] sm:$0xf] %vm759_vm1, %v4918_v60  ;;  %v5096_v15 = vsel %vm1480_vm13, %v5051_v27, 0.0  ;;  %v4489_v1 = vadd.f32 %v4431_v49, %v3835_v34  ;;  %v3500_v25 = vpop.f32.mrf.mxu1 }
 0x2d5   : > { %v5097_v18 = vadd.f32 %v5096_v15, %v5095_v56  ;;  %v3552_v53 = vadd.f32 %v3500_v25, %v6936_v45 }
 0x2d7   : > { %v4829_v26 = vpop.f32.mrf.mxu0 }
 0x2d8   : > { %v3782_v54 = vpop.f32.mrf.mxu2  ;;  %v4887_v12 = vadd.f32 %v4829_v26, %v4489_v1 }
 0x2d9   : > { %v3837_v10 = vadd.f32 %v3782_v54, %v3550_v48 }
 0x2da   : > { %v4919_v11 = vpack.c.bf16 %v4887_v12, %v4887_v12  ;;  %v4997_v3 = vsel %vm1480_vm13, %v4887_v12, 0.0  ;;  %v5052_v42 = vmul.f32 %v4887_v12, %v4887_v12 }
 0x2db   : > { %v4434_v24 = vpop.f32.mrf.mxu3  ;;  %v4998_v19 = vadd.f32 %v4997_v3, %v4996_v28 }
 0x2dc   : > { %4951 = vst.msk [vmem:[%s7197_s9 + $0x3c] sm:$0xf] %vm759_vm1, %v4919_v11  ;;  %v5098_v40 = vsel %vm1480_vm13, %v5052_v42, 0.0  ;;  %v4490_v47 = vadd.f32 %v4434_v24, %v3836_v62  ;;  %v3503_v6 = vpop.f32.mrf.mxu1 }
 0x2dd   : > { %v5099_v4 = vadd.f32 %v5098_v40, %v5097_v18  ;;  %v3553_v45 = vadd.f32 %v3503_v6, %v6957_v38 }
 0x2df   : > { %v4832_v20 = vpop.f32.mrf.mxu0 }
 0x2e0   : > { %v3785_v61 = vpop.f32.mrf.mxu2  ;;  %v4888_v55 = vadd.f32 %v4832_v20, %v4490_v47 }
 0x2e1   : > { %v3838_v50 = vadd.f32 %v3785_v61, %v3551_v29 }
 0x2e2   : > { %v4920_v13 = vpack.c.bf16 %v4888_v55, %v4888_v55  ;;  %v4999_v17 = vsel %vm1480_vm13, %v4888_v55, 0.0  ;;  %v5053_v41 = vmul.f32 %v4888_v55, %v4888_v55 }
 0x2e3   : > { %v4436_v9 = vpop.f32.mrf.mxu3  ;;  %v5000_v8 = vadd.f32 %v4999_v17, %v4998_v19 }
 0x2e4   : > { %4952 = vst.msk [vmem:[%s7197_s9 + $0x40] sm:$0xf] %vm759_vm1, %v4920_v13  ;;  %v5100_v43 = vsel %vm1480_vm13, %v5053_v41, 0.0  ;;  %v4491_v59 = vadd.f32 %v4436_v9, %v3837_v10  ;;  %v3505_v21 = vpop.f32.mrf.mxu1 }
 0x2e5   : > { %v5101_v57 = vadd.f32 %v5100_v43, %v5099_v4  ;;  %v3554_v38 = vadd.f32 %v3505_v21, %v6975_v58 }
 0x2e7   : > { %v4834_v33 = vpop.f32.mrf.mxu0 }
 0x2e8   : > { %v3787_v37 = vpop.f32.mrf.mxu2  ;;  %v4889_v36 = vadd.f32 %v4834_v33, %v4491_v59 }
 0x2e9   : > { %v3839_v34 = vadd.f32 %v3787_v37, %v3552_v53 }
 0x2ea   : > { %v4921_v0 = vpack.c.bf16 %v4889_v36, %v4889_v36  ;;  %v5001_v46 = vsel %vm1480_vm13, %v4889_v36, 0.0  ;;  %v5054_v2 = vmul.f32 %v4889_v36, %v4889_v36 }
 0x2eb   : > { %v4439_v35 = vpop.f32.mrf.mxu3  ;;  %v5002_v56 = vadd.f32 %v5001_v46, %v5000_v8 }
 0x2ec   : > { %4953 = vst.msk [vmem:[%s7197_s9 + $0x44] sm:$0xf] %vm759_vm1, %v4921_v0  ;;  %v5102_v32 = vsel %vm1480_vm13, %v5054_v2, 0.0  ;;  %v4492_v14 = vadd.f32 %v4439_v35, %v3838_v50  ;;  %v3508_v60 = vpop.f32.mrf.mxu1 }
 0x2ed   : > { %v5103_v5 = vadd.f32 %v5102_v32, %v5101_v57  ;;  %v3555_v58 = vadd.f32 %v3508_v60, %v6996_v51 }
 0x2ef   : > { %v4837_v63 = vpop.f32.mrf.mxu0 }
 0x2f0   : > { %v3790_v31 = vpop.f32.mrf.mxu2  ;;  %v4890_v16 = vadd.f32 %v4837_v63, %v4492_v14 }
 0x2f1   : > { %v3840_v12 = vadd.f32 %v3790_v31, %v3553_v45 }
 0x2f2   : > { %v4922_v39 = vpack.c.bf16 %v4890_v16, %v4890_v16  ;;  %v5003_v27 = vsel %vm1480_vm13, %v4890_v16, 0.0  ;;  %v5055_v49 = vmul.f32 %v4890_v16, %v4890_v16 }
 0x2f3   : > { %v4441_v28 = vpop.f32.mrf.mxu3  ;;  %v5004_v15 = vadd.f32 %v5003_v27, %v5002_v56 }
 0x2f4   : > { %4954 = vst.msk [vmem:[%s7197_s9 + $0x48] sm:$0xf] %vm759_vm1, %v4922_v39  ;;  %v5104_v1 = vsel %vm1480_vm13, %v5055_v49, 0.0  ;;  %v4493_v18 = vadd.f32 %v4441_v28, %v3839_v34  ;;  %v3510_v24 = vpop.f32.mrf.mxu1 }
 0x2f5   : > { %v5105_v7 = vadd.f32 %v5104_v1, %v5103_v5  ;;  %v3556_v32 = vadd.f32 %v3510_v24, %v7010_v23 }
 0x2f7   : > { %v4839_v25 = vpop.f32.mrf.mxu0 }
 0x2f8   : > { %v3792_v26 = vpop.f32.mrf.mxu2  ;;  %v4891_v54 = vadd.f32 %v4839_v25, %v4493_v18 }
 0x2f9   : > { %v3841_v61 = vadd.f32 %v3792_v26, %v3554_v38 }
 0x2fa   : > { %v4923_v62 = vpack.c.bf16 %v4891_v54, %v4891_v54  ;;  %v5005_v11 = vsel %vm1480_vm13, %v4891_v54, 0.0  ;;  %v5056_v3 = vmul.f32 %v4891_v54, %v4891_v54 }
 0x2fb   : > { %v4444_v42 = vpop.f32.mrf.mxu3  ;;  %v5006_v19 = vadd.f32 %v5005_v11, %v5004_v15 }
 0x2fc   : > { %4955 = vst.msk [vmem:[%s7197_s9 + $0x4c] sm:$0xf] %vm759_vm1, %v4923_v62  ;;  %v5106_v40 = vsel %vm1480_vm13, %v5056_v3, 0.0  ;;  %v4494_v47 = vadd.f32 %v4444_v42, %v3840_v12  ;;  %v3513_v43 = vpop.f32.mrf.mxu1 }
 0x2fd   : > { %v5107_v4 = vadd.f32 %v5106_v40, %v5105_v7  ;;  %v3557_v23 = vadd.f32 %v3513_v43, %v7032_v44 }
 0x2ff   : > { %v4842_v6 = vpop.f32.mrf.mxu0 }
 0x300   : > { %v3795_v48 = vpop.f32.mrf.mxu2  ;;  %v4892_v20 = vadd.f32 %v4842_v6, %v4494_v47 }
 0x301   : > { %v3842_v33 = vadd.f32 %v3795_v48, %v3555_v58 }
 0x302   : > { %v4924_v55 = vpack.c.bf16 %v4892_v20, %v4892_v20  ;;  %v5007_v10 = vsel %vm1480_vm13, %v4892_v20, 0.0  ;;  %v5057_v13 = vmul.f32 %v4892_v20, %v4892_v20 }
 0x303   : > { %v4446_v17 = vpop.f32.mrf.mxu3  ;;  %v5008_v41 = vadd.f32 %v5007_v10, %v5006_v19 }
 0x304   : > { %4956 = vst.msk [vmem:[%s7197_s9 + $0x50] sm:$0xf] %vm759_vm1, %v4924_v55  ;;  %v5108_v9 = vsel %vm1480_vm13, %v5057_v13, 0.0  ;;  %v4495_v8 = vadd.f32 %v4446_v17, %v3841_v61  ;;  %v3515_v51 = vpop.f32.mrf.mxu1 }
 0x305   : > { %v5109_v59 = vadd.f32 %v5108_v9, %v5107_v4  ;;  %v3558_v44 = vadd.f32 %v3515_v51, %v7049_v52 }
 0x307   : > { %v4844_v57 = vpop.f32.mrf.mxu0 }
 0x308   : > { %v3797_v29 = vpop.f32.mrf.mxu2  ;;  %v4893_v21 = vadd.f32 %v4844_v57, %v4495_v8 }
 0x309   : > { %v3843_v63 = vadd.f32 %v3797_v29, %v3556_v32 }
 0x30a   : > { %v4925_v37 = vpack.c.bf16 %v4893_v21, %v4893_v21  ;;  %v5009_v36 = vsel %vm1480_vm13, %v4893_v21, 0.0  ;;  %v5058_v50 = vmul.f32 %v4893_v21, %v4893_v21 }
 0x30b   : > { %v4449_v0 = vpop.f32.mrf.mxu3  ;;  %v5010_v46 = vadd.f32 %v5009_v36, %v5008_v41 }
 0x30c   : > { %4957 = vst.msk [vmem:[%s7197_s9 + $0x54] sm:$0xf] %vm759_vm1, %v4925_v37  ;;  %v5110_v2 = vsel %vm1480_vm13, %v5058_v50, 0.0  ;;  %v4496_v35 = vadd.f32 %v4449_v0, %v3842_v33  ;;  %v3518_v45 = vpop.f32.mrf.mxu1 }
 0x30d   : > { %v5111_v56 = vadd.f32 %v5110_v2, %v5109_v59  ;;  %v3559_v52 = vadd.f32 %v3518_v45, %v7070_v30 }
 0x30f   : > { %v4847_v14 = vpop.f32.mrf.mxu0 }
 0x310   : > { %v3800_v5 = vpop.f32.mrf.mxu2  ;;  %v4894_v53 = vadd.f32 %v4847_v14, %v4496_v35 }
 0x311   : > { %v3844_v7 = vadd.f32 %v3800_v5, %v3557_v23 }
 0x312   : > { %v4926_v31 = vpack.c.bf16 %v4894_v53, %v4894_v53  ;;  %v5011_v16 = vsel %vm1480_vm13, %v4894_v53, 0.0  ;;  %v5059_v34 = vmul.f32 %v4894_v53, %v4894_v53 }
 0x313   : > { %v4451_v60 = vpop.f32.mrf.mxu3  ;;  %v5012_v39 = vadd.f32 %v5011_v16, %v5010_v46 }
 0x314   : > { %4958 = vst.msk [vmem:[%s7197_s9 + $0x58] sm:$0xf] %vm759_vm1, %v4926_v31  ;;  %v5112_v27 = vsel %vm1480_vm13, %v5059_v34, 0.0  ;;  %v4497_v49 = vadd.f32 %v4451_v60, %v3843_v63  ;;  %v3520_v61 = vpop.f32.mrf.mxu1  ;;  %v7615_v31 = vld [vmem:[#allocation3_spill] sm:$0xff] }
 0x315   : > { %v5113_v28 = vadd.f32 %v5112_v27, %v5111_v56  ;;  %v3560_v30 = vadd.f32 %v3520_v61, %v7086_v22 }
 0x317   : > { %v4849_v15 = vpop.f32.mrf.mxu0 }
 0x318   : > { %v3802_v1 = vpop.f32.mrf.mxu2  ;;  %v4895_v18 = vadd.f32 %v4849_v15, %v4497_v49 }
 0x319   : > { %v3845_v47 = vadd.f32 %v3802_v1, %v3558_v44 }
 0x31a   : > { %v4927_v25 = vpack.c.bf16 %v4895_v18, %v4895_v18  ;;  %v5013_v26 = vsel %vm1480_vm13, %v4895_v18, 0.0  ;;  %v5060_v54 = vmul.f32 %v4895_v18, %v4895_v18 }
 0x31b   : > { %v4454_v12 = vpop.f32.mrf.mxu3  ;;  %v5014_v62 = vadd.f32 %v5013_v26, %v5012_v39 }
 0x31c   : > { %4959 = vst.msk [vmem:[%s7197_s9 + $0x5c] sm:$0xf] %vm759_vm1, %v4927_v25  ;;  %v5114_v11 = vsel %vm1480_vm13, %v5060_v54, 0.0  ;;  %v4498_v3 = vadd.f32 %v4454_v12, %v3844_v7  ;;  %v3523_v36 = vpop.f32.mrf.mxu1  ;;  %v7616_v25 = vld [vmem:[#allocation4_spill] sm:$0xff] }
 0x31d   : > { %v5115_v42 = vadd.f32 %v5114_v11, %v5113_v28  ;;  %v3561_v16 = vadd.f32 %v3523_v36, %v7615_v31 }
 0x31f   : > { %v4852_v24 = vpop.f32.mrf.mxu0 }
 0x320   : > { %v3805_v19 = vpop.f32.mrf.mxu2  ;;  %v4896_v40 = vadd.f32 %v4852_v24, %v4498_v3 }
 0x321   : > { %v3846_v8 = vadd.f32 %v3805_v19, %v3559_v52 }
 0x322   : > { %v4928_v4 = vpack.c.bf16 %v4896_v40, %v4896_v40  ;;  %v5015_v38 = vsel %vm1480_vm13, %v4896_v40, 0.0  ;;  %v5061_v6 = vmul.f32 %v4896_v40, %v4896_v40 }
 0x323   : > { %v4456_v48 = vpop.f32.mrf.mxu3  ;;  %v5016_v20 = vadd.f32 %v5015_v38, %v5014_v62 }
 0x324   : > { %4960 = vst.msk [vmem:[%s7197_s9 + $0x60] sm:$0xf] %vm759_vm1, %v4928_v4  ;;  %v5116_v55 = vsel %vm1480_vm13, %v5061_v6, 0.0  ;;  %v4499_v10 = vadd.f32 %v4456_v48, %v3845_v47  ;;  %v3525_v34 = vpop.f32.mrf.mxu1  ;;  %v7617_v6 = vld [vmem:[#allocation5_spill] sm:$0xff] }
 0x325   : > { %v5117_v13 = vadd.f32 %v5116_v55, %v5115_v42  ;;  %v3562_v26 = vadd.f32 %v3525_v34, %v7616_v25 }
 0x327   : > { %v4854_v17 = vpop.f32.mrf.mxu0 }
 0x328   : > { %v3807_v41 = vpop.f32.mrf.mxu2  ;;  %v4897_v9 = vadd.f32 %v4854_v17, %v4499_v10 }
 0x329   : > { %v3847_v2 = vadd.f32 %v3807_v41, %v3560_v30 }
 0x32a   : > { %v4929_v43 = vpack.c.bf16 %v4897_v9, %v4897_v9  ;;  %v5017_v59 = vsel %vm1480_vm13, %v4897_v9, 0.0  ;;  %v5062_v58 = vmul.f32 %v4897_v9, %v4897_v9 }
 0x32b   : > { %v4459_v57 = vpop.f32.mrf.mxu3  ;;  %v5018_v29 = vadd.f32 %v5017_v59, %v5016_v20 }
 0x32c   : > { %4961 = vst.msk [vmem:[%s7197_s9 + $0x64] sm:$0xf] %vm759_vm1, %v4929_v43  ;;  %v5118_v21 = vsel %vm1480_vm13, %v5062_v58, 0.0  ;;  %v4500_v33 = vadd.f32 %v4459_v57, %v3846_v8  ;;  %v3528_v11 = vpop.f32.mrf.mxu1  ;;  %v7618_v57 = vld [vmem:[#allocation10_spill] sm:$0xff] }
 0x32d   : > { %v5119_v37 = vadd.f32 %v5118_v21, %v5117_v13  ;;  %v3563_v48 = vadd.f32 %v3528_v11, %v7617_v6 }
 0x32f   : > { %v4857_v50 = vpop.f32.mrf.mxu0 }
 0x330   : > { %v3810_v0 = vpop.f32.mrf.mxu2  ;;  %v4898_v46 = vadd.f32 %v4857_v50, %v4500_v33 }
 0x331   : > { %v3848_v39 = vadd.f32 %v3810_v0, %v3561_v16 }
 0x332   : > { %v4930_v35 = vpack.c.bf16 %v4898_v46, %v4898_v46  ;;  %v5019_v56 = vsel %vm1480_vm13, %v4898_v46, 0.0  ;;  %v5063_v32 = vmul.f32 %v4898_v46, %v4898_v46 }
 0x333   : > { %v4461_v51 = vpop.f32.mrf.mxu3  ;;  %v5020_v14 = vadd.f32 %v5019_v56, %v5018_v29 }
 0x334   : > { %4962 = vst.msk [vmem:[%s7197_s9 + $0x68] sm:$0xf] %vm759_vm1, %v4930_v35  ;;  %v5120_v5 = vsel %vm1480_vm13, %v5063_v32, 0.0  ;;  %v4501_v53 = vadd.f32 %v4461_v51, %v3847_v2  ;;  %v3530_v9 = vpop.f32.mrf.mxu1 }
 0x335   : > { %v5121_v63 = vadd.f32 %v5120_v5, %v5119_v37  ;;  %v3564_v29 = vadd.f32 %v3530_v9, %v7618_v57 }
 0x337   : > { %v4859_v22 = vpop.f32.mrf.mxu0 }
 0x338   : > { %v4899_v60 = vadd.f32 %v4859_v22, %v4501_v53  ;;  %v3812_v27 = vpop.f32.mrf.mxu2 }
 0x339   : > { %v3849_v62 = vadd.f32 %v3812_v27, %v3562_v26 }
 0x33a   : > { %v4931_v49 = vpack.c.bf16 %v4899_v60, %v4899_v60  ;;  %v5021_v28 = vsel %vm1480_vm13, %v4899_v60, 0.0  ;;  %v5064_v23 = vmul.f32 %v4899_v60, %v4899_v60 }
 0x33b   : > { %v4464_v15 = vpop.f32.mrf.mxu3  ;;  %v5022_v1 = vadd.f32 %v5021_v28, %v5020_v14 }
 0x33c   : > { %4963 = vst.msk [vmem:[%s7197_s9 + $0x6c] sm:$0xf] %vm759_vm1, %v4931_v49  ;;  %v5122_v18 = vsel %vm1480_vm13, %v5064_v23, 0.0  ;;  %v4502_v7 = vadd.f32 %v4464_v15, %v3848_v39 }
 0x33d   : > { %v5123_v45 = vadd.f32 %v5122_v18, %v5121_v63 }
 0x33f   : > { %v4862_v54 = vpop.f32.mrf.mxu0 }
 0x340   : > { %v4900_v12 = vadd.f32 %v4862_v54, %v4502_v7  ;;  %v3815_v40 = vpop.f32.mrf.mxu2 }
 0x341   : > { %v3850_v55 = vadd.f32 %v3815_v40, %v3563_v48 }
 0x342   : > { %v4932_v3 = vpack.c.bf16 %v4900_v12, %v4900_v12  ;;  %v5023_v42 = vsel %vm1480_vm13, %v4900_v12, 0.0  ;;  %v5065_v44 = vmul.f32 %v4900_v12, %v4900_v12 }
 0x343   : > { %v4466_v24 = vpop.f32.mrf.mxu3  ;;  %v5024_v19 = vadd.f32 %v5023_v42, %v5022_v1 }
 0x344   : > { %4964 = vst.msk [vmem:[%s7197_s9 + $0x70] sm:$0xf] %vm759_vm1, %v4932_v3  ;;  %v5124_v47 = vsel %vm1480_vm13, %v5065_v44, 0.0  ;;  %v4503_v4 = vadd.f32 %v4466_v24, %v3849_v62 }
 0x345   : > { %v5125_v38 = vadd.f32 %v5124_v47, %v5123_v45 }
 0x347   : > { %v4864_v20 = vpop.f32.mrf.mxu0 }
 0x348   : > { %v4901_v61 = vadd.f32 %v4864_v20, %v4503_v4  ;;  %v3817_v58 = vpop.f32.mrf.mxu2 }
 0x349   : > { %v3851_v37 = vadd.f32 %v3817_v58, %v3564_v29 }
 0x34a   : > { %v4933_v10 = vpack.c.bf16 %v4901_v61, %v4901_v61  ;;  %v5025_v13 = vsel %vm1480_vm13, %v4901_v61, 0.0  ;;  %v5066_v52 = vmul.f32 %v4901_v61, %v4901_v61 }
 0x34b   : > { %v4469_v17 = vpop.f32.mrf.mxu3  ;;  %v5026_v41 = vadd.f32 %v5025_v13, %v5024_v19 }
 0x34c   : > { %4965 = vst.msk [vmem:[%s7197_s9 + $0x74] sm:$0xf] %vm759_vm1, %v4933_v10  ;;  %v5126_v8 = vsel %vm1480_vm13, %v5066_v52, 0.0  ;;  %v4504_v43 = vadd.f32 %v4469_v17, %v3850_v55 }
 0x34d   : > { %v5127_v59 = vadd.f32 %v5126_v8, %v5125_v38 }
 0x34f   : > { %v4867_v21 = vpop.f32.mrf.mxu0 }
 0x350   : > { %v4902_v33 = vadd.f32 %v4867_v21, %v4504_v43 }
 0x352   : > { %v4934_v36 = vpack.c.bf16 %v4902_v33, %v4902_v33  ;;  %v5027_v30 = vsel %vm1480_vm13, %v4902_v33, 0.0  ;;  %v5067_v50 = vmul.f32 %v4902_v33, %v4902_v33 }
 0x353   : > { %v5028_v0 = vadd.f32 %v5027_v30, %v5026_v41  ;;  %v4471_v46 = vpop.f32.mrf.mxu3 }
 0x354   : > { %4966 = vst.msk [vmem:[%s7197_s9 + $0x78] sm:$0xf] %vm759_vm1, %v4934_v36  ;;  %v5128_v2 = vsel %vm1480_vm13, %v5067_v50, 0.0  ;;  %v4505_v35 = vadd.f32 %v4471_v46, %v3851_v37 }
 0x355   : > { %v5129_v56 = vadd.f32 %v5128_v2, %v5127_v59 }
 0x357   : > { %v4869_v32 = vpop.f32.mrf.mxu0 }
 0x358   : > { %v4903_v51 = vadd.f32 %v4869_v32, %v4505_v35 }
 0x35a   : > { %v4935_v14 = vpack.c.bf16 %v4903_v51, %v4903_v51  ;;  %v5029_v5 = vsel %vm1480_vm13, %v4903_v51, 0.0  ;;  %v5068_v53 = vmul.f32 %v4903_v51, %v4903_v51 }
 0x35b   : > { %v5030_v63 = vadd.f32 %v5029_v5, %v5028_v0 }
 0x35c   : > { %4967 = vst.msk [vmem:[%s7197_s9 + $0x7c] sm:$0xf] %vm759_vm1, %v4935_v14  ;;  %v5130_v31 = vsel %vm1480_vm13, %v5068_v53, 0.0 }
 0x35d   : > { %v5131_v16 = vadd.f32 %v5130_v31, %v5129_v56  ;;  %v5031_v28 = vrot.slane %v5030_v63, 4 }
 0x35f   : > { %v5132_v22 = vrot.slane %v5131_v16, 4  ;;  %v5032_v23 = vadd.f32 %v5031_v28, %v5030_v63 }
 0x361   : > { %v5133_v34 = vadd.f32 %v5132_v22, %v5131_v16  ;;  %v5033_v15 = vrot.slane %v5032_v23, 2 }
 0x363   : > { %v5134_v60 = vrot.slane %v5133_v34, 2  ;;  %v5034_v1 = vadd.f32 %v5033_v15, %v5032_v23 }
 0x365   : > { %v5135_v39 = vadd.f32 %v5134_v60, %v5133_v34  ;;  %v5035_v18 = vrot.slane %v5034_v1, 1 }
 0x367   : > { %v5136_v27 = vrot.slane %v5135_v39, 1  ;;  %v5036_v7 = vadd.f32 %v5035_v18, %v5034_v1 }
 0x369   : > { %v5137_v49 = vadd.f32 %v5136_v27, %v5135_v39 }
 0x36b   : > { %5139 = vrot.lane.b32.xlu0 %v5137_v49, %s5841_s22 }
 0x3dd   : > { %v5140_v45 = vpop.permute.xlu0 %5139 }
 0x3de   : > { %v5142_v25 = vsel %vm1480_vm13, %v5036_v7, %v5140_v45 }
 0x3df   : > { %5144 = vst.msk [vmem:[%s233_s12] sm:$0x1] %vm5143_vm0, %v5142_v25 }
 0x3e0 PF: > { %s16_s18 = sadd.s32 1, %s5838_s18  }
 0x3e1   : > { %p13_p4 = scmp.ge.s32.totalorder %s16_s18, 4  }
 0x3e3   :  { %15 = sbr.rel (!%p13_p4) target bundleno = 1 (0x1), region = 89 }

</bundles_post_ra>
